<compile_context>
chip_gen: v5e
topology: v5e:2x2
jax: 0.10.0
libtpu: 0.0.40
codegen_flags: <defaults>
</compile_context>

<pallas_src>
import math

import jax
import jax.numpy as jnp
from jax import lax
from jax.experimental import pallas as pl
from jax.experimental.pallas import tpu as pltpu


# ----------------------------------------------------------------------------
# Fused basic-block kernel
# ----------------------------------------------------------------------------
def _acc_conv3x3(tap_fn, w_ref, ho, wo, cin, cout):
    """3x3 conv as 9 accumulated per-tap matmuls.

    tap_fn(kh, kw) -> Ref-sliced activation tap reshapeable to (ho*wo, cin);
    w_ref is a (9, cin, cout) VMEM ref (per-tap weight slab via leading index).
    """
    acc = jnp.zeros((ho * wo, cout), jnp.float32)
    for k in range(9):
        kh, kw = divmod(k, 3)
        patch = tap_fn(kh, kw).reshape(ho * wo, cin)
        acc = acc + jnp.dot(patch, w_ref[k], preferred_element_type=jnp.float32)
    return acc.reshape(ho, wo, cout)


def _make_block_kernel(h, w, cin, cout, stride, ho, wo, has_sc_conv):
    if not has_sc_conv:
        assert stride == 1, "identity shortcut requires stride 1"

    def kernel(*refs):
        if has_sc_conv:
            scal_ref, x_ref, w1_ref, w2_ref, ws_ref, o_ref, pa_ref, pb_ref = refs
        else:
            scal_ref, x_ref, w1_ref, w2_ref, o_ref, pa_ref, pb_ref = refs
            ws_ref = None

        b1 = scal_ref[0]
        b2 = scal_ref[1]
        b3 = scal_ref[2]
        b4 = scal_ref[3]
        adt = pa_ref.dtype

        # --- zero only the halo borders (interior is fully rewritten below).
        # Done per iteration (cheap) rather than behind program_id==0 so it
        # stays correct when the batch axis is megacore-sharded.
        if stride == 1:
            pa_ref[0:1, :, :] = jnp.zeros((1, w + 2, cin), adt)
            pa_ref[h + 1:h + 2, :, :] = jnp.zeros((1, w + 2, cin), adt)
            pa_ref[:, 0:1, :] = jnp.zeros((h + 2, 1, cin), adt)
            pa_ref[:, w + 1:w + 2, :] = jnp.zeros((h + 2, 1, cin), adt)
        else:
            pa_ref[:, 0:1, :, :] = jnp.zeros((4, 1, wo + 1, cin), adt)
            pa_ref[:, :, 0:1, :] = jnp.zeros((4, ho + 1, 1, cin), adt)
        pb_ref[0:1, :, :] = jnp.zeros((1, wo + 2, cout), adt)
        pb_ref[ho + 1:ho + 2, :, :] = jnp.zeros((1, wo + 2, cout), adt)
        pb_ref[:, 0:1, :] = jnp.zeros((ho + 2, 1, cout), adt)
        pb_ref[:, wo + 1:wo + 2, :] = jnp.zeros((ho + 2, 1, cout), adt)

        if stride == 1:
            x = x_ref[...].astype(jnp.float32)                  # (h, w, cin)
            h1 = jnp.maximum(x + b1, 0.0)
            # bias2 added BEFORE padding (padding is the zero border of pa).
            pa_ref[1:h + 1, 1:w + 1, :] = (h1 + b2).astype(adt)
            h1_sc = h1                                           # ho==h, wo==w

            def tap1(kh, kw):
                return pa_ref[kh:kh + ho, kw:kw + wo, :]
        else:
            # x_ref holds the 4 stride-2 parity planes on a LEADING dim:
            # plane (a, b) = x[a::2, b::2, :] at index 2*a+b.
            xp = x_ref[...].astype(jnp.float32)                  # (4, ho, wo, cin)
            h1 = jnp.maximum(xp + b1, 0.0)
            u1 = (h1 + b2).astype(adt)
            # Scatter each plane into the halo scratch at row/col offset (a,b);
            # the leftover zero row/col realizes the top/left zero padding that
            # a stride-2, pad-1, 3x3 conv needs.
            for a in range(2):
                for b in range(2):
                    blk = 2 * a + b
                    pa_ref[blk:blk + 1, a:a + ho, b:b + wo, :] = u1[blk:blk + 1]
            h1_sc = h1[0]          # parity-(0,0) plane == stride-2 subsample
            par = (1, 0, 1)        # row/col parity plane used by tap offset k

            def tap1(kh, kw):
                blk = 2 * par[kh] + par[kw]
                return pa_ref[blk:blk + 1,
                              kh // 2:kh // 2 + ho,
                              kw // 2:kw // 2 + wo, :]

        # Shortcut first: bounds h1's live range before the conv matmuls.
        if has_sc_conv:
            sc = jnp.dot(h1_sc.astype(adt).reshape(ho * wo, cin), ws_ref[...],
                         preferred_element_type=jnp.float32).reshape(ho, wo, cout)
        else:
            sc = x                 # identity shortcut (stride == 1 guaranteed)

        c1 = _acc_conv3x3(tap1, w1_ref, ho, wo, cin, cout)       # f32
        h2 = jnp.maximum(c1 + b3, 0.0)
        # TODO(synk): F.dropout between conv1/conv2 (dropRate > 0) not
        # implemented; the module default dropRate=0.0 needs no dropout.

        pb_ref[1:ho + 1, 1:wo + 1, :] = (h2 + b4).astype(adt)

        def tap2(kh, kw):
            return pb_ref[kh:kh + ho, kw:kw + wo, :]

        # scale1 is folded into w2 in the wrapper.
        out = _acc_conv3x3(tap2, w2_ref, ho, wo, cout, cout)

        o_ref[...] = (sc + out).astype(o_ref.dtype)

    return kernel


def basic_block_pallas(x, p, in_planes, out_planes, stride, drop_rate=0.0,
                       compute_dtype=jnp.bfloat16):
    """One WRNFixupBasicBlock as a single fused pallas_call."""
    assert drop_rate == 0.0, "dropout not implemented (module default is 0.0)"
    n, h, w, cin = x.shape
    assert cin == in_planes
    assert stride in (1, 2)
    cout = out_planes
    has_sc_conv = in_planes != out_planes
    if stride == 2:
        assert h % 2 == 0 and w % 2 == 0
        assert has_sc_conv, "stride-2 identity shortcut is shape-inconsistent"
    ho = (h + 2 - 3) // stride + 1
    wo = (w + 2 - 3) // stride + 1

    # Fixup scalars in SMEM (scale1 is folded into w2 below, so only 4 biases).
    scal = jnp.concatenate([p["bias1"], p["bias2"], p["bias3"],
                            p["bias4"]]).astype(jnp.float32)
    # Conv weights: HWIO -> (9, Cin, Cout) per-tap slabs, bf16 (f32 accumulate).
    w1 = p["w1"].reshape(9, cin, cout).astype(compute_dtype)
    w2 = (p["w2"] * p["scale1"][0]).reshape(9, cout, cout).astype(compute_dtype)

    if stride == 1:
        x_in = x.astype(compute_dtype)
        x_spec = pl.BlockSpec((pl.Squeezed(), h, w, cin),
                              lambda i: (i, 0, 0, 0))
        pa_shape = (h + 2, w + 2, cin)
    else:
        # Space-to-depth in the wrapper (plain XLA): 4 parity planes on a
        # LEADING dim so every in-kernel access stays full-lane.
        x_in = jnp.stack(
            [x[:, a::2, b::2, :] for a in range(2) for b in range(2)],
            axis=1).astype(compute_dtype)                        # (n,4,ho,wo,cin)
        x_spec = pl.BlockSpec((pl.Squeezed(), 4, ho, wo, cin),
                              lambda i: (i, 0, 0, 0, 0))
        pa_shape = (4, ho + 1, wo + 1, cin)

    in_specs = [
        pl.BlockSpec(memory_space=pltpu.MemorySpace.SMEM),       # 4 Fixup biases
        x_spec,                                                  # activations
        pl.BlockSpec((9, cin, cout), lambda i: (0, 0, 0)),       # conv1 weights
        pl.BlockSpec((9, cout, cout), lambda i: (0, 0, 0)),      # conv2 weights
    ]
    args = [scal, x_in, w1, w2]
    if has_sc_conv:
        in_specs.append(pl.BlockSpec((cin, cout), lambda i: (0, 0)))
        args.append(p["ws"].reshape(cin, cout).astype(compute_dtype))

    kernel = _make_block_kernel(h, w, cin, cout, stride, ho, wo, has_sc_conv)

    # NOTE: at real WRN widths, add cout (128/256-lane) + output-row tiles as
    # extra "parallel" grid axes and re-derive tile sizes per chip (v7x 64 MiB).
    return pl.pallas_call(
        kernel,
        out_shape=jax.ShapeDtypeStruct((n, ho, wo, cout), compute_dtype),
        grid=(n,),
        in_specs=in_specs,
        out_specs=pl.BlockSpec((pl.Squeezed(), ho, wo, cout),
                               lambda i: (i, 0, 0, 0)),
        scratch_shapes=[
            pltpu.VMEM(pa_shape, compute_dtype),                 # conv1 halo tile
            pltpu.VMEM((ho + 2, wo + 2, cout), compute_dtype),   # conv2 halo tile
        ],
        compiler_params=pltpu.CompilerParams(
            dimension_semantics=("parallel",),
            vmem_limit_bytes=48 * 1024 * 1024),
    )(*args)


def wrn_fixup_network_block(x, params_list, in_planes, out_planes, stride):
    for i, p in enumerate(params_list):
        cin = in_planes if i == 0 else out_planes
        s = stride if i == 0 else 1
        x = basic_block_pallas(x, p, cin, out_planes, s)
    return x


# ----------------------------------------------------------------------------
# Deterministic parameter init (synthetic, Fixup-like scales but non-zero)
# ----------------------------------------------------------------------------
def init_block_params(key, cin, cout):
    ks = jax.random.split(key, 8)
    p = {
        "bias1": (jax.random.normal(ks[0], (1,)) * 0.1).astype(jnp.float32),
        "bias2": (jax.random.normal(ks[1], (1,)) * 0.1).astype(jnp.float32),
        "bias3": (jax.random.normal(ks[2], (1,)) * 0.1).astype(jnp.float32),
        "bias4": (jax.random.normal(ks[3], (1,)) * 0.1).astype(jnp.float32),
        "scale1": (1.0 + jax.random.normal(ks[4], (1,)) * 0.1).astype(jnp.float32),
        "w1": (jax.random.normal(ks[5], (3, 3, cin, cout))
               / math.sqrt(9 * cin)).astype(jnp.float32),
        "w2": (jax.random.normal(ks[6], (3, 3, cout, cout))
               / math.sqrt(9 * cout)).astype(jnp.float32),
    }
    if cin != cout:
        p["ws"] = (jax.random.normal(ks[7], (1, 1, cin, cout))
                   / math.sqrt(cin)).astype(jnp.float32)
    return p


# ----------------------------------------------------------------------------
# Plain-JAX reference (f32, for correctness check)
# ----------------------------------------------------------------------------
def _conv_ref(x, w, stride, pad):
    return lax.conv_general_dilated(
        x, w, window_strides=(stride, stride),
        padding=((pad, pad), (pad, pad)),
        dimension_numbers=("NHWC", "HWIO", "NHWC"))


def _block_ref(x, p, cin, cout, stride):
    equal = cin == cout
    h1 = jax.nn.relu(x + p["bias1"][0])
    c1 = _conv_ref(h1 + p["bias2"][0], p["w1"], stride, 1)
    h2 = jax.nn.relu(c1 + p["bias3"][0])
    out = _conv_ref(h2 + p["bias4"][0], p["w2"], 1, 1) * p["scale1"][0]
    shortcut = x if equal else _conv_ref(h1, p["ws"], stride, 0)
    return shortcut + out


def network_block_ref(x, params_list, in_planes, out_planes, stride):
    for i, p in enumerate(params_list):
        cin = in_planes if i == 0 else out_planes
        s = stride if i == 0 else 1
        x = _block_ref(x, p, cin, out_planes, s)
    return x


# ----------------------------------------------------------------------------
if __name__ == "__main__":
    key = jax.random.PRNGKey(0)
    N, C_IN, H, W = 2, 4, 16, 16
    C_OUT, NB_LAYERS, STRIDE = 8, 2, 2

    k_x, k_p = jax.random.split(key)
    x_nchw = jax.random.normal(k_x, (N, C_IN, H, W), dtype=jnp.float32)
    x_nhwc = jnp.transpose(x_nchw, (0, 2, 3, 1))   # NCHW -> NHWC

    layer_keys = jax.random.split(k_p, NB_LAYERS)
    params = []
    for i in range(NB_LAYERS):
        cin = C_IN if i == 0 else C_OUT
        params.append(init_block_params(layer_keys[i], cin, C_OUT))

    fwd = jax.jit(
        lambda xx, ps: wrn_fixup_network_block(xx, ps, C_IN, C_OUT, STRIDE))
    out = jax.block_until_ready(fwd(x_nhwc, params))

    ref = network_block_ref(x_nhwc, params, C_IN, C_OUT, STRIDE)
    assert out.shape == (N, H // STRIDE, W // STRIDE, C_OUT), out.shape
    out_f32 = out.astype(jnp.float32)
    max_err = float(jnp.max(jnp.abs(out_f32 - ref)))
    # bf16 activations/weights with f32 accumulation -> loose but meaningful tol.
    assert jnp.allclose(out_f32, ref, atol=5e-2, rtol=5e-2), max_err

    print("KERNEL_OK")
</pallas_src>

<mosaic_0001>
module attributes {stable_mosaic.version = 11 : i64} {
  func.func @kernel(%arg0: i32, %arg1: memref<4xf32, #tpu.memory_space<smem>>, %arg2: memref<1x8x8x8xbf16, #tpu.memory_space<vmem>>, %arg3: memref<9x8x8xbf16, #tpu.memory_space<vmem>>, %arg4: memref<9x8x8xbf16, #tpu.memory_space<vmem>>, %arg5: memref<1x8x8x8xbf16, #tpu.memory_space<vmem>>, %arg6: memref<10x10x8xbf16, #tpu.memory_space<vmem>>, %arg7: memref<10x10x8xbf16, #tpu.memory_space<vmem>>) attributes {dimension_semantics = [#tpu.dimension_semantics<parallel>], iteration_bounds = array<i64: 2>, scalar_prefetch = 0 : i64, scratch_operands = 2 : i64, tpu.core_type = #tpu.core_type<tc>, window_params = [{transform_indices = @transform_0, window_bounds = array<i64: 4>}, {transform_indices = @transform_1, window_bounds = array<i64: 1, 8, 8, 8>}, {pipeline_mode = #tpu.pipeline_mode<synchronous>, transform_indices = @transform_2, window_bounds = array<i64: 9, 8, 8>}, {pipeline_mode = #tpu.pipeline_mode<synchronous>, transform_indices = @transform_3, window_bounds = array<i64: 9, 8, 8>}, {transform_indices = @transform_4, window_bounds = array<i64: 1, 8, 8, 8>}]} {
    %c0 = arith.constant 0 : index
    %0 = memref.load %arg1[%c0] : memref<4xf32, #tpu.memory_space<smem>>
    %c1 = arith.constant 1 : index
    %1 = memref.load %arg1[%c1] : memref<4xf32, #tpu.memory_space<smem>>
    %c2 = arith.constant 2 : index
    %2 = memref.load %arg1[%c2] : memref<4xf32, #tpu.memory_space<smem>>
    %c3 = arith.constant 3 : index
    %3 = memref.load %arg1[%c3] : memref<4xf32, #tpu.memory_space<smem>>
    %cst = arith.constant 0.000000e+00 : bf16
    %4 = vector.broadcast %cst : bf16 to vector<1x10x8xbf16>
    %c0_0 = arith.constant 0 : index
    %c0_1 = arith.constant 0 : index
    %c0_2 = arith.constant 0 : index
    %5 = vector.load %arg6[%c0_0, %c0_1, %c0_2] : memref<10x10x8xbf16, #tpu.memory_space<vmem>>, vector<1x10x8xbf16>
    tpu.vector_store %arg6[%c0_0, %c0_1, %c0_2], %4 {strides = array<i32>} : memref<10x10x8xbf16, #tpu.memory_space<vmem>>, vector<1x10x8xbf16>,
    %cst_3 = arith.constant 0.000000e+00 : bf16
    %6 = vector.broadcast %cst_3 : bf16 to vector<1x10x8xbf16>
    %c9 = arith.constant 9 : index
    %c0_4 = arith.constant 0 : index
    %c0_5 = arith.constant 0 : index
    %7 = vector.load %arg6[%c9, %c0_4, %c0_5] : memref<10x10x8xbf16, #tpu.memory_space<vmem>>, vector<1x10x8xbf16>
    tpu.vector_store %arg6[%c9, %c0_4, %c0_5], %6 {strides = array<i32>} : memref<10x10x8xbf16, #tpu.memory_space<vmem>>, vector<1x10x8xbf16>,
    %cst_6 = arith.constant 0.000000e+00 : bf16
    %8 = vector.broadcast %cst_6 : bf16 to vector<10x1x8xbf16>
    %c0_7 = arith.constant 0 : index
    %c0_8 = arith.constant 0 : index
    %c0_9 = arith.constant 0 : index
    %9 = vector.load %arg6[%c0_7, %c0_8, %c0_9] : memref<10x10x8xbf16, #tpu.memory_space<vmem>>, vector<10x1x8xbf16>
    tpu.vector_store %arg6[%c0_7, %c0_8, %c0_9], %8 {strides = array<i32>} : memref<10x10x8xbf16, #tpu.memory_space<vmem>>, vector<10x1x8xbf16>,
    %cst_10 = arith.constant 0.000000e+00 : bf16
    %10 = vector.broadcast %cst_10 : bf16 to vector<10x1x8xbf16>
    %c0_11 = arith.constant 0 : index
    %c9_12 = arith.constant 9 : index
    %c0_13 = arith.constant 0 : index
    %11 = vector.load %arg6[%c0_11, %c9_12, %c0_13] : memref<10x10x8xbf16, #tpu.memory_space<vmem>>, vector<10x1x8xbf16>
    tpu.vector_store %arg6[%c0_11, %c9_12, %c0_13], %10 {strides = array<i32>} : memref<10x10x8xbf16, #tpu.memory_space<vmem>>, vector<10x1x8xbf16>,
    %cst_14 = arith.constant 0.000000e+00 : bf16
    %12 = vector.broadcast %cst_14 : bf16 to vector<1x10x8xbf16>
    %c0_15 = arith.constant 0 : index
    %c0_16 = arith.constant 0 : index
    %c0_17 = arith.constant 0 : index
    %13 = vector.load %arg7[%c0_15, %c0_16, %c0_17] : memref<10x10x8xbf16, #tpu.memory_space<vmem>>, vector<1x10x8xbf16>
    tpu.vector_store %arg7[%c0_15, %c0_16, %c0_17], %12 {strides = array<i32>} : memref<10x10x8xbf16, #tpu.memory_space<vmem>>, vector<1x10x8xbf16>,
    %cst_18 = arith.constant 0.000000e+00 : bf16
    %14 = vector.broadcast %cst_18 : bf16 to vector<1x10x8xbf16>
    %c9_19 = arith.constant 9 : index
    %c0_20 = arith.constant 0 : index
    %c0_21 = arith.constant 0 : index
    %15 = vector.load %arg7[%c9_19, %c0_20, %c0_21] : memref<10x10x8xbf16, #tpu.memory_space<vmem>>, vector<1x10x8xbf16>
    tpu.vector_store %arg7[%c9_19, %c0_20, %c0_21], %14 {strides = array<i32>} : memref<10x10x8xbf16, #tpu.memory_space<vmem>>, vector<1x10x8xbf16>,
    %cst_22 = arith.constant 0.000000e+00 : bf16
    %16 = vector.broadcast %cst_22 : bf16 to vector<10x1x8xbf16>
    %c0_23 = arith.constant 0 : index
    %c0_24 = arith.constant 0 : index
    %c0_25 = arith.constant 0 : index
    %17 = vector.load %arg7[%c0_23, %c0_24, %c0_25] : memref<10x10x8xbf16, #tpu.memory_space<vmem>>, vector<10x1x8xbf16>
    tpu.vector_store %arg7[%c0_23, %c0_24, %c0_25], %16 {strides = array<i32>} : memref<10x10x8xbf16, #tpu.memory_space<vmem>>, vector<10x1x8xbf16>,
    %cst_26 = arith.constant 0.000000e+00 : bf16
    %18 = vector.broadcast %cst_26 : bf16 to vector<10x1x8xbf16>
    %c0_27 = arith.constant 0 : index
    %c9_28 = arith.constant 9 : index
    %c0_29 = arith.constant 0 : index
    %19 = vector.load %arg7[%c0_27, %c9_28, %c0_29] : memref<10x10x8xbf16, #tpu.memory_space<vmem>>, vector<10x1x8xbf16>
    tpu.vector_store %arg7[%c0_27, %c9_28, %c0_29], %18 {strides = array<i32>} : memref<10x10x8xbf16, #tpu.memory_space<vmem>>, vector<10x1x8xbf16>,
    %c0_30 = arith.constant 0 : index
    %c0_31 = arith.constant 0 : index
    %c0_32 = arith.constant 0 : index
    %c0_33 = arith.constant 0 : index
    %20 = vector.load %arg2[%c0_30, %c0_31, %c0_32, %c0_33] : memref<1x8x8x8xbf16, #tpu.memory_space<vmem>>, vector<1x8x8x8xbf16>
    %21 = vector.shape_cast %20 : vector<1x8x8x8xbf16> to vector<8x8x8xbf16>
    %22 = arith.extf %21 : vector<8x8x8xbf16> to vector<8x8x8xf32>
    %23 = vector.broadcast %0 : f32 to vector<8x8x8xf32>
    %24 = arith.addf %22, %23 : vector<8x8x8xf32>
    %cst_34 = arith.constant 0.000000e+00 : f32
    %25 = vector.broadcast %cst_34 : f32 to vector<8x8x8xf32>
    %26 = arith.maximumf %24, %25 : vector<8x8x8xf32>
    %27 = vector.broadcast %1 : f32 to vector<8x8x8xf32>
    %28 = arith.addf %26, %27 : vector<8x8x8xf32>
    %29 = arith.truncf %28 : vector<8x8x8xf32> to vector<8x8x8xbf16>
    %c1_35 = arith.constant 1 : index
    %c1_36 = arith.constant 1 : index
    %c0_37 = arith.constant 0 : index
    %30 = vector.load %arg6[%c1_35, %c1_36, %c0_37] : memref<10x10x8xbf16, #tpu.memory_space<vmem>>, vector<8x8x8xbf16>
    tpu.vector_store %arg6[%c1_35, %c1_36, %c0_37], %29 {strides = array<i32>} : memref<10x10x8xbf16, #tpu.memory_space<vmem>>, vector<8x8x8xbf16>,
    %cst_38 = arith.constant 0.000000e+00 : f32
    %31 = vector.broadcast %cst_38 : f32 to vector<64x8xf32>
    %c0_39 = arith.constant 0 : index
    %c0_40 = arith.constant 0 : index
    %c0_41 = arith.constant 0 : index
    %32 = vector.load %arg6[%c0_39, %c0_40, %c0_41] : memref<10x10x8xbf16, #tpu.memory_space<vmem>>, vector<8x8x8xbf16>
    %33 = vector.shape_cast %32 : vector<8x8x8xbf16> to vector<64x8xbf16>
    %c0_42 = arith.constant 0 : index
    %c0_43 = arith.constant 0 : index
    %c0_44 = arith.constant 0 : index
    %34 = vector.load %arg3[%c0_42, %c0_43, %c0_44] : memref<9x8x8xbf16, #tpu.memory_space<vmem>>, vector<1x8x8xbf16>
    %35 = vector.shape_cast %34 : vector<1x8x8xbf16> to vector<8x8xbf16>
    %cst_45 = arith.constant dense<0.000000e+00> : vector<64x8xf32>
    %36 = tpu.matmul %33, %35, %cst_45 {dimension_numbers = #tpu.dot_dimension_numbers<[1], [0], [0], [1], [0, 0, 1, 1], [], []>} : vector<64x8xbf16>, vector<8x8xbf16>, vector<64x8xf32> -> vector<64x8xf32>
    %37 = arith.addf %31, %36 : vector<64x8xf32>
    %c0_46 = arith.constant 0 : index
    %c1_47 = arith.constant 1 : index
    %c0_48 = arith.constant 0 : index
    %38 = vector.load %arg6[%c0_46, %c1_47, %c0_48] : memref<10x10x8xbf16, #tpu.memory_space<vmem>>, vector<8x8x8xbf16>
    %39 = vector.shape_cast %38 : vector<8x8x8xbf16> to vector<64x8xbf16>
    %c1_49 = arith.constant 1 : index
    %c0_50 = arith.constant 0 : index
    %c0_51 = arith.constant 0 : index
    %40 = vector.load %arg3[%c1_49, %c0_50, %c0_51] : memref<9x8x8xbf16, #tpu.memory_space<vmem>>, vector<1x8x8xbf16>
    %41 = vector.shape_cast %40 : vector<1x8x8xbf16> to vector<8x8xbf16>
    %cst_52 = arith.constant dense<0.000000e+00> : vector<64x8xf32>
    %42 = tpu.matmul %39, %41, %cst_52 {dimension_numbers = #tpu.dot_dimension_numbers<[1], [0], [0], [1], [0, 0, 1, 1], [], []>} : vector<64x8xbf16>, vector<8x8xbf16>, vector<64x8xf32> -> vector<64x8xf32>
    %43 = arith.addf %37, %42 : vector<64x8xf32>
    %c0_53 = arith.constant 0 : index
    %c2_54 = arith.constant 2 : index
    %c0_55 = arith.constant 0 : index
    %44 = vector.load %arg6[%c0_53, %c2_54, %c0_55] : memref<10x10x8xbf16, #tpu.memory_space<vmem>>, vector<8x8x8xbf16>
    %45 = vector.shape_cast %44 : vector<8x8x8xbf16> to vector<64x8xbf16>
    %c2_56 = arith.constant 2 : index
    %c0_57 = arith.constant 0 : index
    %c0_58 = arith.constant 0 : index
    %46 = vector.load %arg3[%c2_56, %c0_57, %c0_58] : memref<9x8x8xbf16, #tpu.memory_space<vmem>>, vector<1x8x8xbf16>
    %47 = vector.shape_cast %46 : vector<1x8x8xbf16> to vector<8x8xbf16>
    %cst_59 = arith.constant dense<0.000000e+00> : vector<64x8xf32>
    %48 = tpu.matmul %45, %47, %cst_59 {dimension_numbers = #tpu.dot_dimension_numbers<[1], [0], [0], [1], [0, 0, 1, 1], [], []>} : vector<64x8xbf16>, vector<8x8xbf16>, vector<64x8xf32> -> vector<64x8xf32>
    %49 = arith.addf %43, %48 : vector<64x8xf32>
    %c1_60 = arith.constant 1 : index
    %c0_61 = arith.constant 0 : index
    %c0_62 = arith.constant 0 : index
    %50 = vector.load %arg6[%c1_60, %c0_61, %c0_62] : memref<10x10x8xbf16, #tpu.memory_space<vmem>>, vector<8x8x8xbf16>
    %51 = vector.shape_cast %50 : vector<8x8x8xbf16> to vector<64x8xbf16>
    %c3_63 = arith.constant 3 : index
    %c0_64 = arith.constant 0 : index
    %c0_65 = arith.constant 0 : index
    %52 = vector.load %arg3[%c3_63, %c0_64, %c0_65] : memref<9x8x8xbf16, #tpu.memory_space<vmem>>, vector<1x8x8xbf16>
    %53 = vector.shape_cast %52 : vector<1x8x8xbf16> to vector<8x8xbf16>
    %cst_66 = arith.constant dense<0.000000e+00> : vector<64x8xf32>
    %54 = tpu.matmul %51, %53, %cst_66 {dimension_numbers = #tpu.dot_dimension_numbers<[1], [0], [0], [1], [0, 0, 1, 1], [], []>} : vector<64x8xbf16>, vector<8x8xbf16>, vector<64x8xf32> -> vector<64x8xf32>
    %55 = arith.addf %49, %54 : vector<64x8xf32>
    %c1_67 = arith.constant 1 : index
    %c1_68 = arith.constant 1 : index
    %c0_69 = arith.constant 0 : index
    %56 = vector.load %arg6[%c1_67, %c1_68, %c0_69] : memref<10x10x8xbf16, #tpu.memory_space<vmem>>, vector<8x8x8xbf16>
    %57 = vector.shape_cast %56 : vector<8x8x8xbf16> to vector<64x8xbf16>
    %c4 = arith.constant 4 : index
    %c0_70 = arith.constant 0 : index
    %c0_71 = arith.constant 0 : index
    %58 = vector.load %arg3[%c4, %c0_70, %c0_71] : memref<9x8x8xbf16, #tpu.memory_space<vmem>>, vector<1x8x8xbf16>
    %59 = vector.shape_cast %58 : vector<1x8x8xbf16> to vector<8x8xbf16>
    %cst_72 = arith.constant dense<0.000000e+00> : vector<64x8xf32>
    %60 = tpu.matmul %57, %59, %cst_72 {dimension_numbers = #tpu.dot_dimension_numbers<[1], [0], [0], [1], [0, 0, 1, 1], [], []>} : vector<64x8xbf16>, vector<8x8xbf16>, vector<64x8xf32> -> vector<64x8xf32>
    %61 = arith.addf %55, %60 : vector<64x8xf32>
    %c1_73 = arith.constant 1 : index
    %c2_74 = arith.constant 2 : index
    %c0_75 = arith.constant 0 : index
    %62 = vector.load %arg6[%c1_73, %c2_74, %c0_75] : memref<10x10x8xbf16, #tpu.memory_space<vmem>>, vector<8x8x8xbf16>
    %63 = vector.shape_cast %62 : vector<8x8x8xbf16> to vector<64x8xbf16>
    %c5 = arith.constant 5 : index
    %c0_76 = arith.constant 0 : index
    %c0_77 = arith.constant 0 : index
    %64 = vector.load %arg3[%c5, %c0_76, %c0_77] : memref<9x8x8xbf16, #tpu.memory_space<vmem>>, vector<1x8x8xbf16>
    %65 = vector.shape_cast %64 : vector<1x8x8xbf16> to vector<8x8xbf16>
    %cst_78 = arith.constant dense<0.000000e+00> : vector<64x8xf32>
    %66 = tpu.matmul %63, %65, %cst_78 {dimension_numbers = #tpu.dot_dimension_numbers<[1], [0], [0], [1], [0, 0, 1, 1], [], []>} : vector<64x8xbf16>, vector<8x8xbf16>, vector<64x8xf32> -> vector<64x8xf32>
    %67 = arith.addf %61, %66 : vector<64x8xf32>
    %c2_79 = arith.constant 2 : index
    %c0_80 = arith.constant 0 : index
    %c0_81 = arith.constant 0 : index
    %68 = vector.load %arg6[%c2_79, %c0_80, %c0_81] : memref<10x10x8xbf16, #tpu.memory_space<vmem>>, vector<8x8x8xbf16>
    %69 = vector.shape_cast %68 : vector<8x8x8xbf16> to vector<64x8xbf16>
    %c6 = arith.constant 6 : index
    %c0_82 = arith.constant 0 : index
    %c0_83 = arith.constant 0 : index
    %70 = vector.load %arg3[%c6, %c0_82, %c0_83] : memref<9x8x8xbf16, #tpu.memory_space<vmem>>, vector<1x8x8xbf16>
    %71 = vector.shape_cast %70 : vector<1x8x8xbf16> to vector<8x8xbf16>
    %cst_84 = arith.constant dense<0.000000e+00> : vector<64x8xf32>
    %72 = tpu.matmul %69, %71, %cst_84 {dimension_numbers = #tpu.dot_dimension_numbers<[1], [0], [0], [1], [0, 0, 1, 1], [], []>} : vector<64x8xbf16>, vector<8x8xbf16>, vector<64x8xf32> -> vector<64x8xf32>
    %73 = arith.addf %67, %72 : vector<64x8xf32>
    %c2_85 = arith.constant 2 : index
    %c1_86 = arith.constant 1 : index
    %c0_87 = arith.constant 0 : index
    %74 = vector.load %arg6[%c2_85, %c1_86, %c0_87] : memref<10x10x8xbf16, #tpu.memory_space<vmem>>, vector<8x8x8xbf16>
    %75 = vector.shape_cast %74 : vector<8x8x8xbf16> to vector<64x8xbf16>
    %c7 = arith.constant 7 : index
    %c0_88 = arith.constant 0 : index
    %c0_89 = arith.constant 0 : index
    %76 = vector.load %arg3[%c7, %c0_88, %c0_89] : memref<9x8x8xbf16, #tpu.memory_space<vmem>>, vector<1x8x8xbf16>
    %77 = vector.shape_cast %76 : vector<1x8x8xbf16> to vector<8x8xbf16>
    %cst_90 = arith.constant dense<0.000000e+00> : vector<64x8xf32>
    %78 = tpu.matmul %75, %77, %cst_90 {dimension_numbers = #tpu.dot_dimension_numbers<[1], [0], [0], [1], [0, 0, 1, 1], [], []>} : vector<64x8xbf16>, vector<8x8xbf16>, vector<64x8xf32> -> vector<64x8xf32>
    %79 = arith.addf %73, %78 : vector<64x8xf32>
    %c2_91 = arith.constant 2 : index
    %c2_92 = arith.constant 2 : index
    %c0_93 = arith.constant 0 : index
    %80 = vector.load %arg6[%c2_91, %c2_92, %c0_93] : memref<10x10x8xbf16, #tpu.memory_space<vmem>>, vector<8x8x8xbf16>
    %81 = vector.shape_cast %80 : vector<8x8x8xbf16> to vector<64x8xbf16>
    %c8 = arith.constant 8 : index
    %c0_94 = arith.constant 0 : index
    %c0_95 = arith.constant 0 : index
    %82 = vector.load %arg3[%c8, %c0_94, %c0_95] : memref<9x8x8xbf16, #tpu.memory_space<vmem>>, vector<1x8x8xbf16>
    %83 = vector.shape_cast %82 : vector<1x8x8xbf16> to vector<8x8xbf16>
    %cst_96 = arith.constant dense<0.000000e+00> : vector<64x8xf32>
    %84 = tpu.matmul %81, %83, %cst_96 {dimension_numbers = #tpu.dot_dimension_numbers<[1], [0], [0], [1], [0, 0, 1, 1], [], []>} : vector<64x8xbf16>, vector<8x8xbf16>, vector<64x8xf32> -> vector<64x8xf32>
    %85 = arith.addf %79, %84 : vector<64x8xf32>
    %86 = vector.shape_cast %85 : vector<64x8xf32> to vector<8x8x8xf32>
    %87 = vector.broadcast %2 : f32 to vector<8x8x8xf32>
    %88 = arith.addf %86, %87 : vector<8x8x8xf32>
    %cst_97 = arith.constant 0.000000e+00 : f32
    %89 = vector.broadcast %cst_97 : f32 to vector<8x8x8xf32>
    %90 = arith.maximumf %88, %89 : vector<8x8x8xf32>
    %91 = vector.broadcast %3 : f32 to vector<8x8x8xf32>
    %92 = arith.addf %90, %91 : vector<8x8x8xf32>
    %93 = arith.truncf %92 : vector<8x8x8xf32> to vector<8x8x8xbf16>
    %c1_98 = arith.constant 1 : index
    %c1_99 = arith.constant 1 : index
    %c0_100 = arith.constant 0 : index
    %94 = vector.load %arg7[%c1_98, %c1_99, %c0_100] : memref<10x10x8xbf16, #tpu.memory_space<vmem>>, vector<8x8x8xbf16>
    tpu.vector_store %arg7[%c1_98, %c1_99, %c0_100], %93 {strides = array<i32>} : memref<10x10x8xbf16, #tpu.memory_space<vmem>>, vector<8x8x8xbf16>,
    %cst_101 = arith.constant 0.000000e+00 : f32
    %95 = vector.broadcast %cst_101 : f32 to vector<64x8xf32>
    %c0_102 = arith.constant 0 : index
    %c0_103 = arith.constant 0 : index
    %c0_104 = arith.constant 0 : index
    %96 = vector.load %arg7[%c0_102, %c0_103, %c0_104] : memref<10x10x8xbf16, #tpu.memory_space<vmem>>, vector<8x8x8xbf16>
    %97 = vector.shape_cast %96 : vector<8x8x8xbf16> to vector<64x8xbf16>
    %c0_105 = arith.constant 0 : index
    %c0_106 = arith.constant 0 : index
    %c0_107 = arith.constant 0 : index
    %98 = vector.load %arg4[%c0_105, %c0_106, %c0_107] : memref<9x8x8xbf16, #tpu.memory_space<vmem>>, vector<1x8x8xbf16>
    %99 = vector.shape_cast %98 : vector<1x8x8xbf16> to vector<8x8xbf16>
    %cst_108 = arith.constant dense<0.000000e+00> : vector<64x8xf32>
    %100 = tpu.matmul %97, %99, %cst_108 {dimension_numbers = #tpu.dot_dimension_numbers<[1], [0], [0], [1], [0, 0, 1, 1], [], []>} : vector<64x8xbf16>, vector<8x8xbf16>, vector<64x8xf32> -> vector<64x8xf32>
    %101 = arith.addf %95, %100 : vector<64x8xf32>
    %c0_109 = arith.constant 0 : index
    %c1_110 = arith.constant 1 : index
    %c0_111 = arith.constant 0 : index
    %102 = vector.load %arg7[%c0_109, %c1_110, %c0_111] : memref<10x10x8xbf16, #tpu.memory_space<vmem>>, vector<8x8x8xbf16>
    %103 = vector.shape_cast %102 : vector<8x8x8xbf16> to vector<64x8xbf16>
    %c1_112 = arith.constant 1 : index
    %c0_113 = arith.constant 0 : index
    %c0_114 = arith.constant 0 : index
    %104 = vector.load %arg4[%c1_112, %c0_113, %c0_114] : memref<9x8x8xbf16, #tpu.memory_space<vmem>>, vector<1x8x8xbf16>
    %105 = vector.shape_cast %104 : vector<1x8x8xbf16> to vector<8x8xbf16>
    %cst_115 = arith.constant dense<0.000000e+00> : vector<64x8xf32>
    %106 = tpu.matmul %103, %105, %cst_115 {dimension_numbers = #tpu.dot_dimension_numbers<[1], [0], [0], [1], [0, 0, 1, 1], [], []>} : vector<64x8xbf16>, vector<8x8xbf16>, vector<64x8xf32> -> vector<64x8xf32>
    %107 = arith.addf %101, %106 : vector<64x8xf32>
    %c0_116 = arith.constant 0 : index
    %c2_117 = arith.constant 2 : index
    %c0_118 = arith.constant 0 : index
    %108 = vector.load %arg7[%c0_116, %c2_117, %c0_118] : memref<10x10x8xbf16, #tpu.memory_space<vmem>>, vector<8x8x8xbf16>
    %109 = vector.shape_cast %108 : vector<8x8x8xbf16> to vector<64x8xbf16>
    %c2_119 = arith.constant 2 : index
    %c0_120 = arith.constant 0 : index
    %c0_121 = arith.constant 0 : index
    %110 = vector.load %arg4[%c2_119, %c0_120, %c0_121] : memref<9x8x8xbf16, #tpu.memory_space<vmem>>, vector<1x8x8xbf16>
    %111 = vector.shape_cast %110 : vector<1x8x8xbf16> to vector<8x8xbf16>
    %cst_122 = arith.constant dense<0.000000e+00> : vector<64x8xf32>
    %112 = tpu.matmul %109, %111, %cst_122 {dimension_numbers = #tpu.dot_dimension_numbers<[1], [0], [0], [1], [0, 0, 1, 1], [], []>} : vector<64x8xbf16>, vector<8x8xbf16>, vector<64x8xf32> -> vector<64x8xf32>
    %113 = arith.addf %107, %112 : vector<64x8xf32>
    %c1_123 = arith.constant 1 : index
    %c0_124 = arith.constant 0 : index
    %c0_125 = arith.constant 0 : index
    %114 = vector.load %arg7[%c1_123, %c0_124, %c0_125] : memref<10x10x8xbf16, #tpu.memory_space<vmem>>, vector<8x8x8xbf16>
    %115 = vector.shape_cast %114 : vector<8x8x8xbf16> to vector<64x8xbf16>
    %c3_126 = arith.constant 3 : index
    %c0_127 = arith.constant 0 : index
    %c0_128 = arith.constant 0 : index
    %116 = vector.load %arg4[%c3_126, %c0_127, %c0_128] : memref<9x8x8xbf16, #tpu.memory_space<vmem>>, vector<1x8x8xbf16>
    %117 = vector.shape_cast %116 : vector<1x8x8xbf16> to vector<8x8xbf16>
    %cst_129 = arith.constant dense<0.000000e+00> : vector<64x8xf32>
    %118 = tpu.matmul %115, %117, %cst_129 {dimension_numbers = #tpu.dot_dimension_numbers<[1], [0], [0], [1], [0, 0, 1, 1], [], []>} : vector<64x8xbf16>, vector<8x8xbf16>, vector<64x8xf32> -> vector<64x8xf32>
    %119 = arith.addf %113, %118 : vector<64x8xf32>
    %c1_130 = arith.constant 1 : index
    %c1_131 = arith.constant 1 : index
    %c0_132 = arith.constant 0 : index
    %120 = vector.load %arg7[%c1_130, %c1_131, %c0_132] : memref<10x10x8xbf16, #tpu.memory_space<vmem>>, vector<8x8x8xbf16>
    %121 = vector.shape_cast %120 : vector<8x8x8xbf16> to vector<64x8xbf16>
    %c4_133 = arith.constant 4 : index
    %c0_134 = arith.constant 0 : index
    %c0_135 = arith.constant 0 : index
    %122 = vector.load %arg4[%c4_133, %c0_134, %c0_135] : memref<9x8x8xbf16, #tpu.memory_space<vmem>>, vector<1x8x8xbf16>
    %123 = vector.shape_cast %122 : vector<1x8x8xbf16> to vector<8x8xbf16>
    %cst_136 = arith.constant dense<0.000000e+00> : vector<64x8xf32>
    %124 = tpu.matmul %121, %123, %cst_136 {dimension_numbers = #tpu.dot_dimension_numbers<[1], [0], [0], [1], [0, 0, 1, 1], [], []>} : vector<64x8xbf16>, vector<8x8xbf16>, vector<64x8xf32> -> vector<64x8xf32>
    %125 = arith.addf %119, %124 : vector<64x8xf32>
    %c1_137 = arith.constant 1 : index
    %c2_138 = arith.constant 2 : index
    %c0_139 = arith.constant 0 : index
    %126 = vector.load %arg7[%c1_137, %c2_138, %c0_139] : memref<10x10x8xbf16, #tpu.memory_space<vmem>>, vector<8x8x8xbf16>
    %127 = vector.shape_cast %126 : vector<8x8x8xbf16> to vector<64x8xbf16>
    %c5_140 = arith.constant 5 : index
    %c0_141 = arith.constant 0 : index
    %c0_142 = arith.constant 0 : index
    %128 = vector.load %arg4[%c5_140, %c0_141, %c0_142] : memref<9x8x8xbf16, #tpu.memory_space<vmem>>, vector<1x8x8xbf16>
    %129 = vector.shape_cast %128 : vector<1x8x8xbf16> to vector<8x8xbf16>
    %cst_143 = arith.constant dense<0.000000e+00> : vector<64x8xf32>
    %130 = tpu.matmul %127, %129, %cst_143 {dimension_numbers = #tpu.dot_dimension_numbers<[1], [0], [0], [1], [0, 0, 1, 1], [], []>} : vector<64x8xbf16>, vector<8x8xbf16>, vector<64x8xf32> -> vector<64x8xf32>
    %131 = arith.addf %125, %130 : vector<64x8xf32>
    %c2_144 = arith.constant 2 : index
    %c0_145 = arith.constant 0 : index
    %c0_146 = arith.constant 0 : index
    %132 = vector.load %arg7[%c2_144, %c0_145, %c0_146] : memref<10x10x8xbf16, #tpu.memory_space<vmem>>, vector<8x8x8xbf16>
    %133 = vector.shape_cast %132 : vector<8x8x8xbf16> to vector<64x8xbf16>
    %c6_147 = arith.constant 6 : index
    %c0_148 = arith.constant 0 : index
    %c0_149 = arith.constant 0 : index
    %134 = vector.load %arg4[%c6_147, %c0_148, %c0_149] : memref<9x8x8xbf16, #tpu.memory_space<vmem>>, vector<1x8x8xbf16>
    %135 = vector.shape_cast %134 : vector<1x8x8xbf16> to vector<8x8xbf16>
    %cst_150 = arith.constant dense<0.000000e+00> : vector<64x8xf32>
    %136 = tpu.matmul %133, %135, %cst_150 {dimension_numbers = #tpu.dot_dimension_numbers<[1], [0], [0], [1], [0, 0, 1, 1], [], []>} : vector<64x8xbf16>, vector<8x8xbf16>, vector<64x8xf32> -> vector<64x8xf32>
    %137 = arith.addf %131, %136 : vector<64x8xf32>
    %c2_151 = arith.constant 2 : index
    %c1_152 = arith.constant 1 : index
    %c0_153 = arith.constant 0 : index
    %138 = vector.load %arg7[%c2_151, %c1_152, %c0_153] : memref<10x10x8xbf16, #tpu.memory_space<vmem>>, vector<8x8x8xbf16>
    %139 = vector.shape_cast %138 : vector<8x8x8xbf16> to vector<64x8xbf16>
    %c7_154 = arith.constant 7 : index
    %c0_155 = arith.constant 0 : index
    %c0_156 = arith.constant 0 : index
    %140 = vector.load %arg4[%c7_154, %c0_155, %c0_156] : memref<9x8x8xbf16, #tpu.memory_space<vmem>>, vector<1x8x8xbf16>
    %141 = vector.shape_cast %140 : vector<1x8x8xbf16> to vector<8x8xbf16>
    %cst_157 = arith.constant dense<0.000000e+00> : vector<64x8xf32>
    %142 = tpu.matmul %139, %141, %cst_157 {dimension_numbers = #tpu.dot_dimension_numbers<[1], [0], [0], [1], [0, 0, 1, 1], [], []>} : vector<64x8xbf16>, vector<8x8xbf16>, vector<64x8xf32> -> vector<64x8xf32>
    %143 = arith.addf %137, %142 : vector<64x8xf32>
    %c2_158 = arith.constant 2 : index
    %c2_159 = arith.constant 2 : index
    %c0_160 = arith.constant 0 : index
    %144 = vector.load %arg7[%c2_158, %c2_159, %c0_160] : memref<10x10x8xbf16, #tpu.memory_space<vmem>>, vector<8x8x8xbf16>
    %145 = vector.shape_cast %144 : vector<8x8x8xbf16> to vector<64x8xbf16>
    %c8_161 = arith.constant 8 : index
    %c0_162 = arith.constant 0 : index
    %c0_163 = arith.constant 0 : index
    %146 = vector.load %arg4[%c8_161, %c0_162, %c0_163] : memref<9x8x8xbf16, #tpu.memory_space<vmem>>, vector<1x8x8xbf16>
    %147 = vector.shape_cast %146 : vector<1x8x8xbf16> to vector<8x8xbf16>
    %cst_164 = arith.constant dense<0.000000e+00> : vector<64x8xf32>
    %148 = tpu.matmul %145, %147, %cst_164 {dimension_numbers = #tpu.dot_dimension_numbers<[1], [0], [0], [1], [0, 0, 1, 1], [], []>} : vector<64x8xbf16>, vector<8x8xbf16>, vector<64x8xf32> -> vector<64x8xf32>
    %149 = arith.addf %143, %148 : vector<64x8xf32>
    %150 = vector.shape_cast %149 : vector<64x8xf32> to vector<8x8x8xf32>
    %151 = arith.addf %22, %150 : vector<8x8x8xf32>
    %152 = arith.truncf %151 : vector<8x8x8xf32> to vector<8x8x8xbf16>
    %c0_165 = arith.constant 0 : index
    %c0_166 = arith.constant 0 : index
    %c0_167 = arith.constant 0 : index
    %c0_168 = arith.constant 0 : index
    %153 = vector.load %arg5[%c0_165, %c0_166, %c0_167, %c0_168] : memref<1x8x8x8xbf16, #tpu.memory_space<vmem>>, vector<1x8x8x8xbf16>
    %154 = vector.shape_cast %153 : vector<1x8x8x8xbf16> to vector<8x8x8xbf16>
    %155 = vector.shape_cast %152 : vector<8x8x8xbf16> to vector<1x8x8x8xbf16>
    tpu.vector_store %arg5[%c0_165, %c0_166, %c0_167, %c0_168], %155 {strides = array<i32>} : memref<1x8x8x8xbf16, #tpu.memory_space<vmem>>, vector<1x8x8x8xbf16>,
    return
  }
  func.func @transform_0(%arg0: i32) -> i32 {
    %c0_i32 = arith.constant 0 : i32
    %c0_i32_0 = arith.constant 0 : i32
    return %c0_i32 : i32
  }
  func.func @transform_1(%arg0: i32) -> (i32, i32, i32, i32) {
    %c0_i32 = arith.constant 0 : i32
    %c0_i32_0 = arith.constant 0 : i32
    %c0_i32_1 = arith.constant 0 : i32
    %c0_i32_2 = arith.constant 0 : i32
    return %arg0, %c0_i32, %c0_i32_0, %c0_i32_1 : i32, i32, i32, i32
  }
  func.func @transform_2(%arg0: i32) -> (i32, i32, i32) {
    %c0_i32 = arith.constant 0 : i32
    %c0_i32_0 = arith.constant 0 : i32
    %c0_i32_1 = arith.constant 0 : i32
    %c0_i32_2 = arith.constant 0 : i32
    return %c0_i32, %c0_i32_0, %c0_i32_1 : i32, i32, i32
  }
  func.func @transform_3(%arg0: i32) -> (i32, i32, i32) {
    %c0_i32 = arith.constant 0 : i32
    %c0_i32_0 = arith.constant 0 : i32
    %c0_i32_1 = arith.constant 0 : i32
    %c0_i32_2 = arith.constant 0 : i32
    return %c0_i32, %c0_i32_0, %c0_i32_1 : i32, i32, i32
  }
  func.func @transform_4(%arg0: i32) -> (i32, i32, i32, i32) {
    %c0_i32 = arith.constant 0 : i32
    %c0_i32_0 = arith.constant 0 : i32
    %c0_i32_1 = arith.constant 0 : i32
    %c0_i32_2 = arith.constant 0 : i32
    return %arg0, %c0_i32, %c0_i32_0, %c0_i32_1 : i32, i32, i32, i32
  }
}

module attributes {stable_mosaic.version = 11 : i64} {
  func.func @kernel(%arg0: i32, %arg1: memref<4xf32, #tpu.memory_space<smem>>, %arg2: memref<1x4x8x8x4xbf16, #tpu.memory_space<vmem>>, %arg3: memref<9x4x8xbf16, #tpu.memory_space<vmem>>, %arg4: memref<9x8x8xbf16, #tpu.memory_space<vmem>>, %arg5: memref<4x8xbf16, #tpu.memory_space<vmem>>, %arg6: memref<1x8x8x8xbf16, #tpu.memory_space<vmem>>, %arg7: memref<4x9x9x4xbf16, #tpu.memory_space<vmem>>, %arg8: memref<10x10x8xbf16, #tpu.memory_space<vmem>>) attributes {dimension_semantics = [#tpu.dimension_semantics<parallel>], iteration_bounds = array<i64: 2>, scalar_prefetch = 0 : i64, scratch_operands = 2 : i64, tpu.core_type = #tpu.core_type<tc>, window_params = [{transform_indices = @transform_0, window_bounds = array<i64: 4>}, {transform_indices = @transform_1, window_bounds = array<i64: 1, 4, 8, 8, 4>}, {pipeline_mode = #tpu.pipeline_mode<synchronous>, transform_indices = @transform_2, window_bounds = array<i64: 9, 4, 8>}, {pipeline_mode = #tpu.pipeline_mode<synchronous>, transform_indices = @transform_3, window_bounds = array<i64: 9, 8, 8>}, {pipeline_mode = #tpu.pipeline_mode<synchronous>, transform_indices = @transform_4, window_bounds = array<i64: 4, 8>}, {transform_indices = @transform_5, window_bounds = array<i64: 1, 8, 8, 8>}]} {
    %c0 = arith.constant 0 : index
    %0 = memref.load %arg1[%c0] : memref<4xf32, #tpu.memory_space<smem>>
    %c1 = arith.constant 1 : index
    %1 = memref.load %arg1[%c1] : memref<4xf32, #tpu.memory_space<smem>>
    %c2 = arith.constant 2 : index
    %2 = memref.load %arg1[%c2] : memref<4xf32, #tpu.memory_space<smem>>
    %c3 = arith.constant 3 : index
    %3 = memref.load %arg1[%c3] : memref<4xf32, #tpu.memory_space<smem>>
    %cst = arith.constant 0.000000e+00 : bf16
    %4 = vector.broadcast %cst : bf16 to vector<4x1x9x4xbf16>
    %c0_0 = arith.constant 0 : index
    %c0_1 = arith.constant 0 : index
    %c0_2 = arith.constant 0 : index
    %c0_3 = arith.constant 0 : index
    %5 = vector.load %arg7[%c0_0, %c0_1, %c0_2, %c0_3] : memref<4x9x9x4xbf16, #tpu.memory_space<vmem>>, vector<4x1x9x4xbf16>
    tpu.vector_store %arg7[%c0_0, %c0_1, %c0_2, %c0_3], %4 {strides = array<i32>} : memref<4x9x9x4xbf16, #tpu.memory_space<vmem>>, vector<4x1x9x4xbf16>,
    %cst_4 = arith.constant 0.000000e+00 : bf16
    %6 = vector.broadcast %cst_4 : bf16 to vector<4x9x1x4xbf16>
    %c0_5 = arith.constant 0 : index
    %c0_6 = arith.constant 0 : index
    %c0_7 = arith.constant 0 : index
    %c0_8 = arith.constant 0 : index
    %7 = vector.load %arg7[%c0_5, %c0_6, %c0_7, %c0_8] : memref<4x9x9x4xbf16, #tpu.memory_space<vmem>>, vector<4x9x1x4xbf16>
    tpu.vector_store %arg7[%c0_5, %c0_6, %c0_7, %c0_8], %6 {strides = array<i32>} : memref<4x9x9x4xbf16, #tpu.memory_space<vmem>>, vector<4x9x1x4xbf16>,
    %cst_9 = arith.constant 0.000000e+00 : bf16
    %8 = vector.broadcast %cst_9 : bf16 to vector<1x10x8xbf16>
    %c0_10 = arith.constant 0 : index
    %c0_11 = arith.constant 0 : index
    %c0_12 = arith.constant 0 : index
    %9 = vector.load %arg8[%c0_10, %c0_11, %c0_12] : memref<10x10x8xbf16, #tpu.memory_space<vmem>>, vector<1x10x8xbf16>
    tpu.vector_store %arg8[%c0_10, %c0_11, %c0_12], %8 {strides = array<i32>} : memref<10x10x8xbf16, #tpu.memory_space<vmem>>, vector<1x10x8xbf16>,
    %cst_13 = arith.constant 0.000000e+00 : bf16
    %10 = vector.broadcast %cst_13 : bf16 to vector<1x10x8xbf16>
    %c9 = arith.constant 9 : index
    %c0_14 = arith.constant 0 : index
    %c0_15 = arith.constant 0 : index
    %11 = vector.load %arg8[%c9, %c0_14, %c0_15] : memref<10x10x8xbf16, #tpu.memory_space<vmem>>, vector<1x10x8xbf16>
    tpu.vector_store %arg8[%c9, %c0_14, %c0_15], %10 {strides = array<i32>} : memref<10x10x8xbf16, #tpu.memory_space<vmem>>, vector<1x10x8xbf16>,
    %cst_16 = arith.constant 0.000000e+00 : bf16
    %12 = vector.broadcast %cst_16 : bf16 to vector<10x1x8xbf16>
    %c0_17 = arith.constant 0 : index
    %c0_18 = arith.constant 0 : index
    %c0_19 = arith.constant 0 : index
    %13 = vector.load %arg8[%c0_17, %c0_18, %c0_19] : memref<10x10x8xbf16, #tpu.memory_space<vmem>>, vector<10x1x8xbf16>
    tpu.vector_store %arg8[%c0_17, %c0_18, %c0_19], %12 {strides = array<i32>} : memref<10x10x8xbf16, #tpu.memory_space<vmem>>, vector<10x1x8xbf16>,
    %cst_20 = arith.constant 0.000000e+00 : bf16
    %14 = vector.broadcast %cst_20 : bf16 to vector<10x1x8xbf16>
    %c0_21 = arith.constant 0 : index
    %c9_22 = arith.constant 9 : index
    %c0_23 = arith.constant 0 : index
    %15 = vector.load %arg8[%c0_21, %c9_22, %c0_23] : memref<10x10x8xbf16, #tpu.memory_space<vmem>>, vector<10x1x8xbf16>
    tpu.vector_store %arg8[%c0_21, %c9_22, %c0_23], %14 {strides = array<i32>} : memref<10x10x8xbf16, #tpu.memory_space<vmem>>, vector<10x1x8xbf16>,
    %c0_24 = arith.constant 0 : index
    %c0_25 = arith.constant 0 : index
    %c0_26 = arith.constant 0 : index
    %c0_27 = arith.constant 0 : index
    %c0_28 = arith.constant 0 : index
    %16 = vector.load %arg2[%c0_24, %c0_25, %c0_26, %c0_27, %c0_28] : memref<1x4x8x8x4xbf16, #tpu.memory_space<vmem>>, vector<1x4x8x8x4xbf16>
    %17 = vector.shape_cast %16 : vector<1x4x8x8x4xbf16> to vector<4x8x8x4xbf16>
    %18 = arith.extf %17 : vector<4x8x8x4xbf16> to vector<4x8x8x4xf32>
    %19 = vector.broadcast %0 : f32 to vector<4x8x8x4xf32>
    %20 = arith.addf %18, %19 : vector<4x8x8x4xf32>
    %cst_29 = arith.constant 0.000000e+00 : f32
    %21 = vector.broadcast %cst_29 : f32 to vector<4x8x8x4xf32>
    %22 = arith.maximumf %20, %21 : vector<4x8x8x4xf32>
    %23 = vector.broadcast %1 : f32 to vector<4x8x8x4xf32>
    %24 = arith.addf %22, %23 : vector<4x8x8x4xf32>
    %25 = arith.truncf %24 : vector<4x8x8x4xf32> to vector<4x8x8x4xbf16>
    %26 = vector.extract_strided_slice %25 {offsets = [0, 0, 0, 0], sizes = [1, 8, 8, 4], strides = [1, 1, 1, 1]} : vector<4x8x8x4xbf16> to vector<1x8x8x4xbf16>
    %c0_30 = arith.constant 0 : index
    %c0_31 = arith.constant 0 : index
    %c0_32 = arith.constant 0 : index
    %c0_33 = arith.constant 0 : index
    %27 = vector.load %arg7[%c0_30, %c0_31, %c0_32, %c0_33] : memref<4x9x9x4xbf16, #tpu.memory_space<vmem>>, vector<1x8x8x4xbf16>
    tpu.vector_store %arg7[%c0_30, %c0_31, %c0_32, %c0_33], %26 {strides = array<i32>} : memref<4x9x9x4xbf16, #tpu.memory_space<vmem>>, vector<1x8x8x4xbf16>,
    %28 = vector.extract_strided_slice %25 {offsets = [1, 0, 0, 0], sizes = [1, 8, 8, 4], strides = [1, 1, 1, 1]} : vector<4x8x8x4xbf16> to vector<1x8x8x4xbf16>
    %c1_34 = arith.constant 1 : index
    %c0_35 = arith.constant 0 : index
    %c1_36 = arith.constant 1 : index
    %c0_37 = arith.constant 0 : index
    %29 = vector.load %arg7[%c1_34, %c0_35, %c1_36, %c0_37] : memref<4x9x9x4xbf16, #tpu.memory_space<vmem>>, vector<1x8x8x4xbf16>
    tpu.vector_store %arg7[%c1_34, %c0_35, %c1_36, %c0_37], %28 {strides = array<i32>} : memref<4x9x9x4xbf16, #tpu.memory_space<vmem>>, vector<1x8x8x4xbf16>,
    %30 = vector.extract_strided_slice %25 {offsets = [2, 0, 0, 0], sizes = [1, 8, 8, 4], strides = [1, 1, 1, 1]} : vector<4x8x8x4xbf16> to vector<1x8x8x4xbf16>
    %c2_38 = arith.constant 2 : index
    %c1_39 = arith.constant 1 : index
    %c0_40 = arith.constant 0 : index
    %c0_41 = arith.constant 0 : index
    %31 = vector.load %arg7[%c2_38, %c1_39, %c0_40, %c0_41] : memref<4x9x9x4xbf16, #tpu.memory_space<vmem>>, vector<1x8x8x4xbf16>
    tpu.vector_store %arg7[%c2_38, %c1_39, %c0_40, %c0_41], %30 {strides = array<i32>} : memref<4x9x9x4xbf16, #tpu.memory_space<vmem>>, vector<1x8x8x4xbf16>,
    %32 = vector.extract_strided_slice %25 {offsets = [3, 0, 0, 0], sizes = [1, 8, 8, 4], strides = [1, 1, 1, 1]} : vector<4x8x8x4xbf16> to vector<1x8x8x4xbf16>
    %c3_42 = arith.constant 3 : index
    %c1_43 = arith.constant 1 : index
    %c1_44 = arith.constant 1 : index
    %c0_45 = arith.constant 0 : index
    %33 = vector.load %arg7[%c3_42, %c1_43, %c1_44, %c0_45] : memref<4x9x9x4xbf16, #tpu.memory_space<vmem>>, vector<1x8x8x4xbf16>
    tpu.vector_store %arg7[%c3_42, %c1_43, %c1_44, %c0_45], %32 {strides = array<i32>} : memref<4x9x9x4xbf16, #tpu.memory_space<vmem>>, vector<1x8x8x4xbf16>,
    %34 = vector.extract_strided_slice %22 {offsets = [0, 0, 0, 0], sizes = [1, 8, 8, 4], strides = [1, 1, 1, 1]} : vector<4x8x8x4xf32> to vector<1x8x8x4xf32>
    %35 = vector.shape_cast %34 : vector<1x8x8x4xf32> to vector<8x8x4xf32>
    %36 = arith.truncf %35 : vector<8x8x4xf32> to vector<8x8x4xbf16>
    %37 = vector.shape_cast %36 : vector<8x8x4xbf16> to vector<64x4xbf16>
    %c0_46 = arith.constant 0 : index
    %c0_47 = arith.constant 0 : index
    %38 = vector.load %arg5[%c0_46, %c0_47] : memref<4x8xbf16, #tpu.memory_space<vmem>>, vector<4x8xbf16>
    %cst_48 = arith.constant dense<0.000000e+00> : vector<64x8xf32>
    %39 = tpu.matmul %37, %38, %cst_48 {dimension_numbers = #tpu.dot_dimension_numbers<[1], [0], [0], [1], [0, 0, 1, 1], [], []>} : vector<64x4xbf16>, vector<4x8xbf16>, vector<64x8xf32> -> vector<64x8xf32>
    %40 = vector.shape_cast %39 : vector<64x8xf32> to vector<8x8x8xf32>
    %cst_49 = arith.constant 0.000000e+00 : f32
    %41 = vector.broadcast %cst_49 : f32 to vector<64x8xf32>
    %c3_50 = arith.constant 3 : index
    %c0_51 = arith.constant 0 : index
    %c0_52 = arith.constant 0 : index
    %c0_53 = arith.constant 0 : index
    %42 = vector.load %arg7[%c3_50, %c0_51, %c0_52, %c0_53] : memref<4x9x9x4xbf16, #tpu.memory_space<vmem>>, vector<1x8x8x4xbf16>
    %43 = vector.shape_cast %42 : vector<1x8x8x4xbf16> to vector<64x4xbf16>
    %c0_54 = arith.constant 0 : index
    %c0_55 = arith.constant 0 : index
    %c0_56 = arith.constant 0 : index
    %44 = vector.load %arg3[%c0_54, %c0_55, %c0_56] : memref<9x4x8xbf16, #tpu.memory_space<vmem>>, vector<1x4x8xbf16>
    %45 = vector.shape_cast %44 : vector<1x4x8xbf16> to vector<4x8xbf16>
    %cst_57 = arith.constant dense<0.000000e+00> : vector<64x8xf32>
    %46 = tpu.matmul %43, %45, %cst_57 {dimension_numbers = #tpu.dot_dimension_numbers<[1], [0], [0], [1], [0, 0, 1, 1], [], []>} : vector<64x4xbf16>, vector<4x8xbf16>, vector<64x8xf32> -> vector<64x8xf32>
    %47 = arith.addf %41, %46 : vector<64x8xf32>
    %c2_58 = arith.constant 2 : index
    %c0_59 = arith.constant 0 : index
    %c0_60 = arith.constant 0 : index
    %c0_61 = arith.constant 0 : index
    %48 = vector.load %arg7[%c2_58, %c0_59, %c0_60, %c0_61] : memref<4x9x9x4xbf16, #tpu.memory_space<vmem>>, vector<1x8x8x4xbf16>
    %49 = vector.shape_cast %48 : vector<1x8x8x4xbf16> to vector<64x4xbf16>
    %c1_62 = arith.constant 1 : index
    %c0_63 = arith.constant 0 : index
    %c0_64 = arith.constant 0 : index
    %50 = vector.load %arg3[%c1_62, %c0_63, %c0_64] : memref<9x4x8xbf16, #tpu.memory_space<vmem>>, vector<1x4x8xbf16>
    %51 = vector.shape_cast %50 : vector<1x4x8xbf16> to vector<4x8xbf16>
    %cst_65 = arith.constant dense<0.000000e+00> : vector<64x8xf32>
    %52 = tpu.matmul %49, %51, %cst_65 {dimension_numbers = #tpu.dot_dimension_numbers<[1], [0], [0], [1], [0, 0, 1, 1], [], []>} : vector<64x4xbf16>, vector<4x8xbf16>, vector<64x8xf32> -> vector<64x8xf32>
    %53 = arith.addf %47, %52 : vector<64x8xf32>
    %c3_66 = arith.constant 3 : index
    %c0_67 = arith.constant 0 : index
    %c1_68 = arith.constant 1 : index
    %c0_69 = arith.constant 0 : index
    %54 = vector.load %arg7[%c3_66, %c0_67, %c1_68, %c0_69] : memref<4x9x9x4xbf16, #tpu.memory_space<vmem>>, vector<1x8x8x4xbf16>
    %55 = vector.shape_cast %54 : vector<1x8x8x4xbf16> to vector<64x4xbf16>
    %c2_70 = arith.constant 2 : index
    %c0_71 = arith.constant 0 : index
    %c0_72 = arith.constant 0 : index
    %56 = vector.load %arg3[%c2_70, %c0_71, %c0_72] : memref<9x4x8xbf16, #tpu.memory_space<vmem>>, vector<1x4x8xbf16>
    %57 = vector.shape_cast %56 : vector<1x4x8xbf16> to vector<4x8xbf16>
    %cst_73 = arith.constant dense<0.000000e+00> : vector<64x8xf32>
    %58 = tpu.matmul %55, %57, %cst_73 {dimension_numbers = #tpu.dot_dimension_numbers<[1], [0], [0], [1], [0, 0, 1, 1], [], []>} : vector<64x4xbf16>, vector<4x8xbf16>, vector<64x8xf32> -> vector<64x8xf32>
    %59 = arith.addf %53, %58 : vector<64x8xf32>
    %c1_74 = arith.constant 1 : index
    %c0_75 = arith.constant 0 : index
    %c0_76 = arith.constant 0 : index
    %c0_77 = arith.constant 0 : index
    %60 = vector.load %arg7[%c1_74, %c0_75, %c0_76, %c0_77] : memref<4x9x9x4xbf16, #tpu.memory_space<vmem>>, vector<1x8x8x4xbf16>
    %61 = vector.shape_cast %60 : vector<1x8x8x4xbf16> to vector<64x4xbf16>
    %c3_78 = arith.constant 3 : index
    %c0_79 = arith.constant 0 : index
    %c0_80 = arith.constant 0 : index
    %62 = vector.load %arg3[%c3_78, %c0_79, %c0_80] : memref<9x4x8xbf16, #tpu.memory_space<vmem>>, vector<1x4x8xbf16>
    %63 = vector.shape_cast %62 : vector<1x4x8xbf16> to vector<4x8xbf16>
    %cst_81 = arith.constant dense<0.000000e+00> : vector<64x8xf32>
    %64 = tpu.matmul %61, %63, %cst_81 {dimension_numbers = #tpu.dot_dimension_numbers<[1], [0], [0], [1], [0, 0, 1, 1], [], []>} : vector<64x4xbf16>, vector<4x8xbf16>, vector<64x8xf32> -> vector<64x8xf32>
    %65 = arith.addf %59, %64 : vector<64x8xf32>
    %c0_82 = arith.constant 0 : index
    %c0_83 = arith.constant 0 : index
    %c0_84 = arith.constant 0 : index
    %c0_85 = arith.constant 0 : index
    %66 = vector.load %arg7[%c0_82, %c0_83, %c0_84, %c0_85] : memref<4x9x9x4xbf16, #tpu.memory_space<vmem>>, vector<1x8x8x4xbf16>
    %67 = vector.shape_cast %66 : vector<1x8x8x4xbf16> to vector<64x4xbf16>
    %c4 = arith.constant 4 : index
    %c0_86 = arith.constant 0 : index
    %c0_87 = arith.constant 0 : index
    %68 = vector.load %arg3[%c4, %c0_86, %c0_87] : memref<9x4x8xbf16, #tpu.memory_space<vmem>>, vector<1x4x8xbf16>
    %69 = vector.shape_cast %68 : vector<1x4x8xbf16> to vector<4x8xbf16>
    %cst_88 = arith.constant dense<0.000000e+00> : vector<64x8xf32>
    %70 = tpu.matmul %67, %69, %cst_88 {dimension_numbers = #tpu.dot_dimension_numbers<[1], [0], [0], [1], [0, 0, 1, 1], [], []>} : vector<64x4xbf16>, vector<4x8xbf16>, vector<64x8xf32> -> vector<64x8xf32>
    %71 = arith.addf %65, %70 : vector<64x8xf32>
    %c1_89 = arith.constant 1 : index
    %c0_90 = arith.constant 0 : index
    %c1_91 = arith.constant 1 : index
    %c0_92 = arith.constant 0 : index
    %72 = vector.load %arg7[%c1_89, %c0_90, %c1_91, %c0_92] : memref<4x9x9x4xbf16, #tpu.memory_space<vmem>>, vector<1x8x8x4xbf16>
    %73 = vector.shape_cast %72 : vector<1x8x8x4xbf16> to vector<64x4xbf16>
    %c5 = arith.constant 5 : index
    %c0_93 = arith.constant 0 : index
    %c0_94 = arith.constant 0 : index
    %74 = vector.load %arg3[%c5, %c0_93, %c0_94] : memref<9x4x8xbf16, #tpu.memory_space<vmem>>, vector<1x4x8xbf16>
    %75 = vector.shape_cast %74 : vector<1x4x8xbf16> to vector<4x8xbf16>
    %cst_95 = arith.constant dense<0.000000e+00> : vector<64x8xf32>
    %76 = tpu.matmul %73, %75, %cst_95 {dimension_numbers = #tpu.dot_dimension_numbers<[1], [0], [0], [1], [0, 0, 1, 1], [], []>} : vector<64x4xbf16>, vector<4x8xbf16>, vector<64x8xf32> -> vector<64x8xf32>
    %77 = arith.addf %71, %76 : vector<64x8xf32>
    %c3_96 = arith.constant 3 : index
    %c1_97 = arith.constant 1 : index
    %c0_98 = arith.constant 0 : index
    %c0_99 = arith.constant 0 : index
    %78 = vector.load %arg7[%c3_96, %c1_97, %c0_98, %c0_99] : memref<4x9x9x4xbf16, #tpu.memory_space<vmem>>, vector<1x8x8x4xbf16>
    %79 = vector.shape_cast %78 : vector<1x8x8x4xbf16> to vector<64x4xbf16>
    %c6 = arith.constant 6 : index
    %c0_100 = arith.constant 0 : index
    %c0_101 = arith.constant 0 : index
    %80 = vector.load %arg3[%c6, %c0_100, %c0_101] : memref<9x4x8xbf16, #tpu.memory_space<vmem>>, vector<1x4x8xbf16>
    %81 = vector.shape_cast %80 : vector<1x4x8xbf16> to vector<4x8xbf16>
    %cst_102 = arith.constant dense<0.000000e+00> : vector<64x8xf32>
    %82 = tpu.matmul %79, %81, %cst_102 {dimension_numbers = #tpu.dot_dimension_numbers<[1], [0], [0], [1], [0, 0, 1, 1], [], []>} : vector<64x4xbf16>, vector<4x8xbf16>, vector<64x8xf32> -> vector<64x8xf32>
    %83 = arith.addf %77, %82 : vector<64x8xf32>
    %c2_103 = arith.constant 2 : index
    %c1_104 = arith.constant 1 : index
    %c0_105 = arith.constant 0 : index
    %c0_106 = arith.constant 0 : index
    %84 = vector.load %arg7[%c2_103, %c1_104, %c0_105, %c0_106] : memref<4x9x9x4xbf16, #tpu.memory_space<vmem>>, vector<1x8x8x4xbf16>
    %85 = vector.shape_cast %84 : vector<1x8x8x4xbf16> to vector<64x4xbf16>
    %c7 = arith.constant 7 : index
    %c0_107 = arith.constant 0 : index
    %c0_108 = arith.constant 0 : index
    %86 = vector.load %arg3[%c7, %c0_107, %c0_108] : memref<9x4x8xbf16, #tpu.memory_space<vmem>>, vector<1x4x8xbf16>
    %87 = vector.shape_cast %86 : vector<1x4x8xbf16> to vector<4x8xbf16>
    %cst_109 = arith.constant dense<0.000000e+00> : vector<64x8xf32>
    %88 = tpu.matmul %85, %87, %cst_109 {dimension_numbers = #tpu.dot_dimension_numbers<[1], [0], [0], [1], [0, 0, 1, 1], [], []>} : vector<64x4xbf16>, vector<4x8xbf16>, vector<64x8xf32> -> vector<64x8xf32>
    %89 = arith.addf %83, %88 : vector<64x8xf32>
    %c3_110 = arith.constant 3 : index
    %c1_111 = arith.constant 1 : index
    %c1_112 = arith.constant 1 : index
    %c0_113 = arith.constant 0 : index
    %90 = vector.load %arg7[%c3_110, %c1_111, %c1_112, %c0_113] : memref<4x9x9x4xbf16, #tpu.memory_space<vmem>>, vector<1x8x8x4xbf16>
    %91 = vector.shape_cast %90 : vector<1x8x8x4xbf16> to vector<64x4xbf16>
    %c8 = arith.constant 8 : index
    %c0_114 = arith.constant 0 : index
    %c0_115 = arith.constant 0 : index
    %92 = vector.load %arg3[%c8, %c0_114, %c0_115] : memref<9x4x8xbf16, #tpu.memory_space<vmem>>, vector<1x4x8xbf16>
    %93 = vector.shape_cast %92 : vector<1x4x8xbf16> to vector<4x8xbf16>
    %cst_116 = arith.constant dense<0.000000e+00> : vector<64x8xf32>
    %94 = tpu.matmul %91, %93, %cst_116 {dimension_numbers = #tpu.dot_dimension_numbers<[1], [0], [0], [1], [0, 0, 1, 1], [], []>} : vector<64x4xbf16>, vector<4x8xbf16>, vector<64x8xf32> -> vector<64x8xf32>
    %95 = arith.addf %89, %94 : vector<64x8xf32>
    %96 = vector.shape_cast %95 : vector<64x8xf32> to vector<8x8x8xf32>
    %97 = vector.broadcast %2 : f32 to vector<8x8x8xf32>
    %98 = arith.addf %96, %97 : vector<8x8x8xf32>
    %cst_117 = arith.constant 0.000000e+00 : f32
    %99 = vector.broadcast %cst_117 : f32 to vector<8x8x8xf32>
    %100 = arith.maximumf %98, %99 : vector<8x8x8xf32>
    %101 = vector.broadcast %3 : f32 to vector<8x8x8xf32>
    %102 = arith.addf %100, %101 : vector<8x8x8xf32>
    %103 = arith.truncf %102 : vector<8x8x8xf32> to vector<8x8x8xbf16>
    %c1_118 = arith.constant 1 : index
    %c1_119 = arith.constant 1 : index
    %c0_120 = arith.constant 0 : index
    %104 = vector.load %arg8[%c1_118, %c1_119, %c0_120] : memref<10x10x8xbf16, #tpu.memory_space<vmem>>, vector<8x8x8xbf16>
    tpu.vector_store %arg8[%c1_118, %c1_119, %c0_120], %103 {strides = array<i32>} : memref<10x10x8xbf16, #tpu.memory_space<vmem>>, vector<8x8x8xbf16>,
    %cst_121 = arith.constant 0.000000e+00 : f32
    %105 = vector.broadcast %cst_121 : f32 to vector<64x8xf32>
    %c0_122 = arith.constant 0 : index
    %c0_123 = arith.constant 0 : index
    %c0_124 = arith.constant 0 : index
    %106 = vector.load %arg8[%c0_122, %c0_123, %c0_124] : memref<10x10x8xbf16, #tpu.memory_space<vmem>>, vector<8x8x8xbf16>
    %107 = vector.shape_cast %106 : vector<8x8x8xbf16> to vector<64x8xbf16>
    %c0_125 = arith.constant 0 : index
    %c0_126 = arith.constant 0 : index
    %c0_127 = arith.constant 0 : index
    %108 = vector.load %arg4[%c0_125, %c0_126, %c0_127] : memref<9x8x8xbf16, #tpu.memory_space<vmem>>, vector<1x8x8xbf16>
    %109 = vector.shape_cast %108 : vector<1x8x8xbf16> to vector<8x8xbf16>
    %cst_128 = arith.constant dense<0.000000e+00> : vector<64x8xf32>
    %110 = tpu.matmul %107, %109, %cst_128 {dimension_numbers = #tpu.dot_dimension_numbers<[1], [0], [0], [1], [0, 0, 1, 1], [], []>} : vector<64x8xbf16>, vector<8x8xbf16>, vector<64x8xf32> -> vector<64x8xf32>
    %111 = arith.addf %105, %110 : vector<64x8xf32>
    %c0_129 = arith.constant 0 : index
    %c1_130 = arith.constant 1 : index
    %c0_131 = arith.constant 0 : index
    %112 = vector.load %arg8[%c0_129, %c1_130, %c0_131] : memref<10x10x8xbf16, #tpu.memory_space<vmem>>, vector<8x8x8xbf16>
    %113 = vector.shape_cast %112 : vector<8x8x8xbf16> to vector<64x8xbf16>
    %c1_132 = arith.constant 1 : index
    %c0_133 = arith.constant 0 : index
    %c0_134 = arith.constant 0 : index
    %114 = vector.load %arg4[%c1_132, %c0_133, %c0_134] : memref<9x8x8xbf16, #tpu.memory_space<vmem>>, vector<1x8x8xbf16>
    %115 = vector.shape_cast %114 : vector<1x8x8xbf16> to vector<8x8xbf16>
    %cst_135 = arith.constant dense<0.000000e+00> : vector<64x8xf32>
    %116 = tpu.matmul %113, %115, %cst_135 {dimension_numbers = #tpu.dot_dimension_numbers<[1], [0], [0], [1], [0, 0, 1, 1], [], []>} : vector<64x8xbf16>, vector<8x8xbf16>, vector<64x8xf32> -> vector<64x8xf32>
    %117 = arith.addf %111, %116 : vector<64x8xf32>
    %c0_136 = arith.constant 0 : index
    %c2_137 = arith.constant 2 : index
    %c0_138 = arith.constant 0 : index
    %118 = vector.load %arg8[%c0_136, %c2_137, %c0_138] : memref<10x10x8xbf16, #tpu.memory_space<vmem>>, vector<8x8x8xbf16>
    %119 = vector.shape_cast %118 : vector<8x8x8xbf16> to vector<64x8xbf16>
    %c2_139 = arith.constant 2 : index
    %c0_140 = arith.constant 0 : index
    %c0_141 = arith.constant 0 : index
    %120 = vector.load %arg4[%c2_139, %c0_140, %c0_141] : memref<9x8x8xbf16, #tpu.memory_space<vmem>>, vector<1x8x8xbf16>
    %121 = vector.shape_cast %120 : vector<1x8x8xbf16> to vector<8x8xbf16>
    %cst_142 = arith.constant dense<0.000000e+00> : vector<64x8xf32>
    %122 = tpu.matmul %119, %121, %cst_142 {dimension_numbers = #tpu.dot_dimension_numbers<[1], [0], [0], [1], [0, 0, 1, 1], [], []>} : vector<64x8xbf16>, vector<8x8xbf16>, vector<64x8xf32> -> vector<64x8xf32>
    %123 = arith.addf %117, %122 : vector<64x8xf32>
    %c1_143 = arith.constant 1 : index
    %c0_144 = arith.constant 0 : index
    %c0_145 = arith.constant 0 : index
    %124 = vector.load %arg8[%c1_143, %c0_144, %c0_145] : memref<10x10x8xbf16, #tpu.memory_space<vmem>>, vector<8x8x8xbf16>
    %125 = vector.shape_cast %124 : vector<8x8x8xbf16> to vector<64x8xbf16>
    %c3_146 = arith.constant 3 : index
    %c0_147 = arith.constant 0 : index
    %c0_148 = arith.constant 0 : index
    %126 = vector.load %arg4[%c3_146, %c0_147, %c0_148] : memref<9x8x8xbf16, #tpu.memory_space<vmem>>, vector<1x8x8xbf16>
    %127 = vector.shape_cast %126 : vector<1x8x8xbf16> to vector<8x8xbf16>
    %cst_149 = arith.constant dense<0.000000e+00> : vector<64x8xf32>
    %128 = tpu.matmul %125, %127, %cst_149 {dimension_numbers = #tpu.dot_dimension_numbers<[1], [0], [0], [1], [0, 0, 1, 1], [], []>} : vector<64x8xbf16>, vector<8x8xbf16>, vector<64x8xf32> -> vector<64x8xf32>
    %129 = arith.addf %123, %128 : vector<64x8xf32>
    %c1_150 = arith.constant 1 : index
    %c1_151 = arith.constant 1 : index
    %c0_152 = arith.constant 0 : index
    %130 = vector.load %arg8[%c1_150, %c1_151, %c0_152] : memref<10x10x8xbf16, #tpu.memory_space<vmem>>, vector<8x8x8xbf16>
    %131 = vector.shape_cast %130 : vector<8x8x8xbf16> to vector<64x8xbf16>
    %c4_153 = arith.constant 4 : index
    %c0_154 = arith.constant 0 : index
    %c0_155 = arith.constant 0 : index
    %132 = vector.load %arg4[%c4_153, %c0_154, %c0_155] : memref<9x8x8xbf16, #tpu.memory_space<vmem>>, vector<1x8x8xbf16>
    %133 = vector.shape_cast %132 : vector<1x8x8xbf16> to vector<8x8xbf16>
    %cst_156 = arith.constant dense<0.000000e+00> : vector<64x8xf32>
    %134 = tpu.matmul %131, %133, %cst_156 {dimension_numbers = #tpu.dot_dimension_numbers<[1], [0], [0], [1], [0, 0, 1, 1], [], []>} : vector<64x8xbf16>, vector<8x8xbf16>, vector<64x8xf32> -> vector<64x8xf32>
    %135 = arith.addf %129, %134 : vector<64x8xf32>
    %c1_157 = arith.constant 1 : index
    %c2_158 = arith.constant 2 : index
    %c0_159 = arith.constant 0 : index
    %136 = vector.load %arg8[%c1_157, %c2_158, %c0_159] : memref<10x10x8xbf16, #tpu.memory_space<vmem>>, vector<8x8x8xbf16>
    %137 = vector.shape_cast %136 : vector<8x8x8xbf16> to vector<64x8xbf16>
    %c5_160 = arith.constant 5 : index
    %c0_161 = arith.constant 0 : index
    %c0_162 = arith.constant 0 : index
    %138 = vector.load %arg4[%c5_160, %c0_161, %c0_162] : memref<9x8x8xbf16, #tpu.memory_space<vmem>>, vector<1x8x8xbf16>
    %139 = vector.shape_cast %138 : vector<1x8x8xbf16> to vector<8x8xbf16>
    %cst_163 = arith.constant dense<0.000000e+00> : vector<64x8xf32>
    %140 = tpu.matmul %137, %139, %cst_163 {dimension_numbers = #tpu.dot_dimension_numbers<[1], [0], [0], [1], [0, 0, 1, 1], [], []>} : vector<64x8xbf16>, vector<8x8xbf16>, vector<64x8xf32> -> vector<64x8xf32>
    %141 = arith.addf %135, %140 : vector<64x8xf32>
    %c2_164 = arith.constant 2 : index
    %c0_165 = arith.constant 0 : index
    %c0_166 = arith.constant 0 : index
    %142 = vector.load %arg8[%c2_164, %c0_165, %c0_166] : memref<10x10x8xbf16, #tpu.memory_space<vmem>>, vector<8x8x8xbf16>
    %143 = vector.shape_cast %142 : vector<8x8x8xbf16> to vector<64x8xbf16>
    %c6_167 = arith.constant 6 : index
    %c0_168 = arith.constant 0 : index
    %c0_169 = arith.constant 0 : index
    %144 = vector.load %arg4[%c6_167, %c0_168, %c0_169] : memref<9x8x8xbf16, #tpu.memory_space<vmem>>, vector<1x8x8xbf16>
    %145 = vector.shape_cast %144 : vector<1x8x8xbf16> to vector<8x8xbf16>
    %cst_170 = arith.constant dense<0.000000e+00> : vector<64x8xf32>
    %146 = tpu.matmul %143, %145, %cst_170 {dimension_numbers = #tpu.dot_dimension_numbers<[1], [0], [0], [1], [0, 0, 1, 1], [], []>} : vector<64x8xbf16>, vector<8x8xbf16>, vector<64x8xf32> -> vector<64x8xf32>
    %147 = arith.addf %141, %146 : vector<64x8xf32>
    %c2_171 = arith.constant 2 : index
    %c1_172 = arith.constant 1 : index
    %c0_173 = arith.constant 0 : index
    %148 = vector.load %arg8[%c2_171, %c1_172, %c0_173] : memref<10x10x8xbf16, #tpu.memory_space<vmem>>, vector<8x8x8xbf16>
    %149 = vector.shape_cast %148 : vector<8x8x8xbf16> to vector<64x8xbf16>
    %c7_174 = arith.constant 7 : index
    %c0_175 = arith.constant 0 : index
    %c0_176 = arith.constant 0 : index
    %150 = vector.load %arg4[%c7_174, %c0_175, %c0_176] : memref<9x8x8xbf16, #tpu.memory_space<vmem>>, vector<1x8x8xbf16>
    %151 = vector.shape_cast %150 : vector<1x8x8xbf16> to vector<8x8xbf16>
    %cst_177 = arith.constant dense<0.000000e+00> : vector<64x8xf32>
    %152 = tpu.matmul %149, %151, %cst_177 {dimension_numbers = #tpu.dot_dimension_numbers<[1], [0], [0], [1], [0, 0, 1, 1], [], []>} : vector<64x8xbf16>, vector<8x8xbf16>, vector<64x8xf32> -> vector<64x8xf32>
    %153 = arith.addf %147, %152 : vector<64x8xf32>
    %c2_178 = arith.constant 2 : index
    %c2_179 = arith.constant 2 : index
    %c0_180 = arith.constant 0 : index
    %154 = vector.load %arg8[%c2_178, %c2_179, %c0_180] : memref<10x10x8xbf16, #tpu.memory_space<vmem>>, vector<8x8x8xbf16>
    %155 = vector.shape_cast %154 : vector<8x8x8xbf16> to vector<64x8xbf16>
    %c8_181 = arith.constant 8 : index
    %c0_182 = arith.constant 0 : index
    %c0_183 = arith.constant 0 : index
    %156 = vector.load %arg4[%c8_181, %c0_182, %c0_183] : memref<9x8x8xbf16, #tpu.memory_space<vmem>>, vector<1x8x8xbf16>
    %157 = vector.shape_cast %156 : vector<1x8x8xbf16> to vector<8x8xbf16>
    %cst_184 = arith.constant dense<0.000000e+00> : vector<64x8xf32>
    %158 = tpu.matmul %155, %157, %cst_184 {dimension_numbers = #tpu.dot_dimension_numbers<[1], [0], [0], [1], [0, 0, 1, 1], [], []>} : vector<64x8xbf16>, vector<8x8xbf16>, vector<64x8xf32> -> vector<64x8xf32>
    %159 = arith.addf %153, %158 : vector<64x8xf32>
    %160 = vector.shape_cast %159 : vector<64x8xf32> to vector<8x8x8xf32>
    %161 = arith.addf %40, %160 : vector<8x8x8xf32>
    %162 = arith.truncf %161 : vector<8x8x8xf32> to vector<8x8x8xbf16>
    %c0_185 = arith.constant 0 : index
    %c0_186 = arith.constant 0 : index
    %c0_187 = arith.constant 0 : index
    %c0_188 = arith.constant 0 : index
    %163 = vector.load %arg6[%c0_185, %c0_186, %c0_187, %c0_188] : memref<1x8x8x8xbf16, #tpu.memory_space<vmem>>, vector<1x8x8x8xbf16>
    %164 = vector.shape_cast %163 : vector<1x8x8x8xbf16> to vector<8x8x8xbf16>
    %165 = vector.shape_cast %162 : vector<8x8x8xbf16> to vector<1x8x8x8xbf16>
    tpu.vector_store %arg6[%c0_185, %c0_186, %c0_187, %c0_188], %165 {strides = array<i32>} : memref<1x8x8x8xbf16, #tpu.memory_space<vmem>>, vector<1x8x8x8xbf16>,
    return
  }
  func.func @transform_0(%arg0: i32) -> i32 {
    %c0_i32 = arith.constant 0 : i32
    %c0_i32_0 = arith.constant 0 : i32
    return %c0_i32 : i32
  }
  func.func @transform_1(%arg0: i32) -> (i32, i32, i32, i32, i32) {
    %c0_i32 = arith.constant 0 : i32
    %c0_i32_0 = arith.constant 0 : i32
    %c0_i32_1 = arith.constant 0 : i32
    %c0_i32_2 = arith.constant 0 : i32
    %c0_i32_3 = arith.constant 0 : i32
    return %arg0, %c0_i32, %c0_i32_0, %c0_i32_1, %c0_i32_2 : i32, i32, i32, i32, i32
  }
  func.func @transform_2(%arg0: i32) -> (i32, i32, i32) {
    %c0_i32 = arith.constant 0 : i32
    %c0_i32_0 = arith.constant 0 : i32
    %c0_i32_1 = arith.constant 0 : i32
    %c0_i32_2 = arith.constant 0 : i32
    return %c0_i32, %c0_i32_0, %c0_i32_1 : i32, i32, i32
  }
  func.func @transform_3(%arg0: i32) -> (i32, i32, i32) {
    %c0_i32 = arith.constant 0 : i32
    %c0_i32_0 = arith.constant 0 : i32
    %c0_i32_1 = arith.constant 0 : i32
    %c0_i32_2 = arith.constant 0 : i32
    return %c0_i32, %c0_i32_0, %c0_i32_1 : i32, i32, i32
  }
  func.func @transform_4(%arg0: i32) -> (i32, i32) {
    %c0_i32 = arith.constant 0 : i32
    %c0_i32_0 = arith.constant 0 : i32
    %c0_i32_1 = arith.constant 0 : i32
    return %c0_i32, %c0_i32_0 : i32, i32
  }
  func.func @transform_5(%arg0: i32) -> (i32, i32, i32, i32) {
    %c0_i32 = arith.constant 0 : i32
    %c0_i32_0 = arith.constant 0 : i32
    %c0_i32_1 = arith.constant 0 : i32
    %c0_i32_2 = arith.constant 0 : i32
    return %arg0, %c0_i32, %c0_i32_0, %c0_i32_1 : i32, i32, i32, i32
  }
}

</mosaic_0001>

<bundles_post_ra>
// kernel: _lambda_.2
= control target key start
LH: loop header
LB: loop body
LE: loop exit
PB: predicated region body
PF: predicated region fallthrough
CT: control target
= control target key end

     0   :  { %10 = vsyncpa [#allocation5], 0  ;;  %s3959_s18 = smov 0   ;;  %s5114_s0 = inlined_call_operand.vmem [shape: f32[4], index: 0, kind: input, shape index: {}]   ;;  %s5115_s1 = inlined_call_operand.vmem [shape: bf16[2,4,8,8,4], index: 1, kind: input, shape index: {}]   ;;  %s5116_s2 = inlined_call_operand.vmem [shape: bf16[9,4,8], index: 2, kind: input, shape index: {}]   ;;  %s5117_s3 = inlined_call_operand.vmem [shape: bf16[9,8,8], index: 3, kind: input, shape index: {}]   ;;  %s5118_s4 = inlined_call_operand.vmem [shape: bf16[4,8], index: 4, kind: input, shape index: {}]   ;;  %s5119_s5 = inlined_call_operand.vmem [shape: bf16[2,8,8,8], index: 5, kind: output, shape index: {}]  }
   0x1 LB: > { %s3482_s19 = sadd.s32 4294967295, %s3925_s18   ;;  %p3484_p0 = scmp.ge.s32.totalorder %s3925_s18, 1  ;;  %s3925_s18 = sphi %s3959_s18, %s16_s18  }
   0x2   : > { %p157_p1 = scmp.lt.s32.totalorder %s3925_s18, 3  ;;  %s169_s22 = sshll.u32 %s5114_s0, 4  ;;  %s170_s22 = int_to_ptr.vmem [resolvable:$true] %s169_s22 }
   0x3   : > { %p3886_p3 = scmp.eq.s32.totalorder %s3482_s19, 0  ;;  %s3927_s23 = smov [#allocation4]  }
   0x4   : > { %p158_p2 = pnand %p3484_p0, %p157_p1 }
   0x6   : > { %p3882_p4 = pneg %p158_p2  ;;  %199 = sbr.rel (%p158_p2) target bundleno = 670 (0x29e), region = 40 }
   0x8   : > { %p3883_p5 = pnand %p3886_p3, %p3882_p4 }
   0xa   : > { %3885 = dma.vmem_to_smem (!%p3883_p5), %s170_s22, 16, %s3927_s23, [#allocation5]  }
   0xb   : > { %3920 = dma.done.wait (%p3886_p3), [#allocation5], 16  }
   0xc   : > { %3922 = vsyncadd (%p3886_p3), [#allocation5], 4294967280 }
   0xd   : > { %206 = sfence }
   0xe   : > { %v249_v0 = vld [vmem:[#allocation2 + $0x4] sm:$0x1]  ;;  %v257_v1 = vld [vmem:[#allocation2 + $0x94] sm:$0x1]  ;;  %v288_v2 = vld [vmem:[#allocation2 + $0x40] sm:$0x1] }
   0xf   : > { %v315_v3 = vld [vmem:[#allocation2 + $0x88] sm:$0x1]  ;;  %v922_v4 = vld [vmem:[%s5118_s4] sm:$0x3]  ;;  %vm956_vm0 = vcmask 1041408   ;;  %p229_p6 = scmp.lt.s32.totalorder %s3482_s19, 1 }
  0x10   : > { %v958_v5 = vsel %vm956_vm0, %v922_v4, 0  ;;  %s240_s26 = sld [smem:[#allocation4]]  ;;  %vm244_vm1 = vcmask 27648   ;;  %vm246_vm2 = vcmask 24576   ;;  %v3928_v6 = vmov 0  }
  0x11   : > { %967 = vmatpush.bf16.msra.mxu0 %v958_v5  ;;  %3875 = vmatpush.bf16.msra.mxu3 %v958_v5  ;;  %s5139_s19 = smov (!%p229_p6, %s3482_s19), 1  ;;  %245 = vst.msk [vmem:[#allocation2] sm:$0xf] %vm244_vm1, %v3928_v6  ;;  %vm247_vm3 = vsmask.f32 256  ;;  %s3978_s27 = sld [smem:[#allocation4 + $0x1]] }
  0x12   : > { %vm3981_vm4 = vmand %vm246_vm2, %vm247_vm3  ;;  %v267_v8 = vld [vmem:[#allocation2 + $0x8] sm:$0x1]  ;;  %252 = vst.msk [vmem:[#allocation2 + $0x48] sm:$0xf] %vm244_vm1, %v3928_v6  ;;  %s3758_s28 = sshll.u32 %s5139_s19, 7  ;;  %vm943_vm5 = vcmask 31744  }
  0x13   : > { %v250_v9 = vsel %vm3981_vm4, 0, %v249_v0  ;;  %v258_v10 = vsel %vm3981_vm4, 0, %v257_v1  ;;  %v268_v11 = vsel %vm3981_vm4, 0, %v267_v8  ;;  %s3997_s6 = scalar_lea.vmem %s5115_s1, %s3758_s28  ;;  %v289_v12 = vsel %vm3981_vm4, 0, %v288_v2  ;;  %v270_v14 = vld [vmem:[#allocation2 + $0x10] sm:$0x1] }
  0x14   : > { %251 = vst [vmem:[#allocation2 + $0x4] sm:$0x1] %v250_v9  ;;  %v316_v13 = vsel %vm3981_vm4, 0, %v315_v3  ;;  %v3797_v15 = vld [vmem:[%s3997_s6] sm:$0xff]   ;;  %v271_v16 = vsel %vm3981_vm4, 0, %v270_v14  ;;  %v3860_v22 = vld [vmem:[%s3997_s6 + $0x8] sm:$0xff]  }
  0x15   : > { %259 = vst [vmem:[#allocation2 + $0x94] sm:$0x1] %v258_v10  ;;  %v273_v17 = vld [vmem:[#allocation2 + $0x18] sm:$0x1]  ;;  %v3798_v18 = vunpack.c.l.bf16 %v3797_v15  ;;  %v3799_v19 = vunpack.c.h.bf16 %v3797_v15  ;;  %v3541_v23 = vld [vmem:[%s5116_s2 + $0x4] sm:$0x3]  ;;  %v3802_v24 = vunpack.c.l.bf16 %v3860_v22  ;;  %v3803_v25 = vunpack.c.h.bf16 %v3860_v22 }
  0x16   : > { %269 = vst [vmem:[#allocation2 + $0x8] sm:$0x1] %v268_v11  ;;  %v4006_v20 = vstv %s240_s26  ;;  %v274_v21 = vsel %vm3981_vm4, 0, %v273_v17  ;;  %v1296_v26 = vsel %vm956_vm0, %v3541_v23, 0  ;;  %v3500_v27 = vld [vmem:[%s5116_s2 + $0x2] sm:$0x3] }
  0x17   : > { %290 = vst [vmem:[#allocation2 + $0x40] sm:$0x1] %v289_v12  ;;  %v4019_v28 = vld [vmem:[%s3997_s6 + $0x40] sm:$0xff]   ;;  %v508_v30 = vadd.f32 %v3798_v18, %v4006_v20  ;;  %v509_v31 = vadd.f32 %v3799_v19, %v4006_v20  ;;  %1305 = vmatpush.bf16.msrb.mxu3 %v1296_v26  ;;  %v1043_v32 = vsel %vm956_vm0, %v3500_v27, 0  ;;  %v4025_v33 = vld [vmem:[%s3997_s6 + $0x48] sm:$0xff]   ;;  %v4030_v35 = vstv %s3978_s27  ;;  %v3861_v23 = vld [vmem:[%s3997_s6 + $0x10] sm:$0xff]  }
  0x18   : > { %v264_v29 = vld [vmem:[#allocation2] sm:$0x1]  ;;  %317 = vst [vmem:[#allocation2 + $0x88] sm:$0x1] %v316_v13  ;;  %v510_v36 = vadd.f32 %v3802_v24, %v4006_v20  ;;  %v511_v37 = vadd.f32 %v3803_v25, %v4006_v20  ;;  %3876 = vmatpush.bf16.msra.mxu1 %v1043_v32  ;;  %1052 = vmatpush.bf16.msrb.mxu0 %v1043_v32  ;;  %v3831_v42 = vunpack.c.h.bf16 %v4019_v28  ;;  %v3834_v46 = vunpack.c.l.bf16 %v4025_v33  ;;  %v327_v56 = vld [vmem:[#allocation2 + $0xa8] sm:$0x1] }
  0x19   : > { %v265_v34 = vsel %vm3981_vm4, 0, %v264_v29  ;;  %256 = vst.msk [vmem:[#allocation2 + $0x90] sm:$0xf] %vm244_vm1, %v3928_v6  ;;  %v324_v38 = vld [vmem:[#allocation2 + $0xa0] sm:$0x1]  ;;  %v540_v39 = vmax.f32 %v508_v30, 0.0  ;;  %v3830_v9 = vunpack.c.l.bf16 %v4019_v28 }
  0x1a   : > { %266 = vst [vmem:[#allocation2] sm:$0x1] %v265_v34  ;;  %v541_v40 = vmax.f32 %v509_v31, 0.0  ;;  %v325_v41 = vsel %vm3981_vm4, 0, %v324_v38  ;;  %v4040_v43 = vld [vmem:[%s3997_s6 + $0x60] sm:$0xff]   ;;  %v542_v44 = vmax.f32 %v510_v36, 0.0  ;;  %v525_v10 = vadd.f32 %v3831_v42, %v4006_v20 }
  0x1b   : > { %260 = vst.msk [vmem:[#allocation2 + $0xd8] sm:$0xf] %vm244_vm1, %v3928_v6  ;;  %v543_v45 = vmax.f32 %v511_v37, 0.0  ;;  %v3846_v47 = vunpack.c.l.bf16 %v4040_v43  ;;  %v573_v48 = vadd.f32 %v4030_v35, %v540_v39  ;;  %v914_v50 = vpack.c.bf16 %v540_v39, %v540_v39  ;;  %v3567_v61 = vld [vmem:[%s5116_s2 + $0x8] sm:$0x3]  ;;  %s3494_s29 = sld [smem:[#allocation4 + $0x2]] }
  0x1c   : > { %v574_v49 = vadd.f32 %v4030_v35, %v541_v40  ;;  %v915_v51 = vpack.c.bf16 %v541_v40, %v541_v40  ;;  %272 = vst [vmem:[#allocation2 + $0x10] sm:$0x1] %v271_v16  ;;  %v575_v52 = vadd.f32 %v4030_v35, %v542_v44  ;;  %v916_v54 = vpack.c.bf16 %v542_v44, %v542_v44  ;;  %v998_v62 = vld [vmem:[%s5116_s2] sm:$0x3]  ;;  %v351_v3 = vld [vmem:[#allocation2 + $0xe8] sm:$0x1] }
  0x1d   : > { %275 = vst [vmem:[#allocation2 + $0x18] sm:$0x1] %v274_v21  ;;  %v576_v53 = vadd.f32 %v4030_v35, %v543_v45  ;;  %v917_v55 = vpack.c.bf16 %v543_v45, %v543_v45  ;;  %v605_v57 = vpack.c.bf16 %v573_v48, %v573_v48  ;;  %v931_v59 = vunpack.c.l.b16 %v914_v50  ;;  %v354_v4 = vld [vmem:[#allocation2 + $0xf0] sm:$0x1]  ;;  %v4057_v5 = vld [vmem:[%s3997_s6 + $0x68] sm:$0xff]   ;;  %s3495_s30 = sld [smem:[#allocation4 + $0x3]] }
  0x1e   : > { %v606_v58 = vpack.c.bf16 %v574_v49, %v574_v49  ;;  %v932_v60 = vunpack.c.l.b16 %v915_v51  ;;  %326 = vst [vmem:[#allocation2 + $0xa0] sm:$0x1] %v325_v41  ;;  %v607_v63 = vpack.c.bf16 %v575_v52, %v575_v52  ;;  %v933_v1 = vunpack.c.l.b16 %v916_v54  ;;  %v276_v12 = vld [vmem:[#allocation2 + $0x20] sm:$0x1]  ;;  %v279_v13 = vld [vmem:[#allocation2 + $0x28] sm:$0x1] }
  0x1f   : > { %v608_v0 = vpack.c.bf16 %v576_v53, %v576_v53  ;;  %v934_v2 = vunpack.c.l.b16 %v917_v55  ;;  %637 = vst.msk [vmem:[#allocation2] sm:$0xf] %vm244_vm1, %v605_v57  ;;  %v526_v11 = vadd.f32 %v3834_v46, %v4006_v20  ;;  %v328_v15 = vsel %vm3981_vm4, 0, %v327_v56  ;;  %v321_v24 = vld [vmem:[#allocation2 + $0x98] sm:$0x1]  ;;  %v4094_v46 = vld [vmem:[%s3997_s6 + $0x50] sm:$0xff]  }
  0x20   : > { %v939_v8 = vpack.c.b16 %v932_v60, %v931_v59  ;;  %638 = vst.msk [vmem:[#allocation2 + $0x8] sm:$0xf] %vm244_vm1, %v606_v58  ;;  %v1460_v16 = vsel %vm956_vm0, %v3567_v61, 0  ;;  %v1107_v17 = vsel %vm956_vm0, %v998_v62, 0  ;;  %v557_v18 = vmax.f32 %v525_v10, 0.0  ;;  %s3759_s24 = sshll.u32 %s5139_s19, 5 }
  0x21   : > { %v940_v14 = vpack.c.b16 %v934_v2, %v933_v1  ;;  %639 = vst.msk [vmem:[#allocation2 + $0x10] sm:$0xf] %vm244_vm1, %v607_v63  ;;  %v558_v19 = vmax.f32 %v526_v11, 0.0  ;;  %1469 = vmatpush.bf16.msrb.mxu1 %v1460_v16  ;;  %v352_v21 = vsel %vm3981_vm4, 0, %v351_v3  ;;  %v3847_v22 = vunpack.c.h.bf16 %v4040_v43  ;;  %3877 = vmatpush.bf16.msra.mxu2 %v1107_v17  ;;  %v318_v29 = vld [vmem:[#allocation2 + $0x90] sm:$0x1]  ;;  %s5067_s27 = scalar_lea.vmem %s5119_s5, %s3759_s24 }
  0x22   : > { %3496 = vmatmul.msk.bf16.vlgmr.msra.gmra.mxu0 %vm943_vm5, %v939_v8  ;;  %640 = vst.msk [vmem:[#allocation2 + $0x18] sm:$0xf] %vm244_vm1, %v608_v0  ;;  %v355_v25 = vsel %vm3981_vm4, 0, %v354_v4  ;;  %v3850_v26 = vunpack.c.l.bf16 %v4057_v5  ;;  %v4080_v27 = vadd.f32 %v3846_v47, %v4006_v20  ;;  %v277_v28 = vsel %vm3981_vm4, 0, %v276_v12  ;;  %v330_v36 = vld [vmem:[#allocation2 + $0xb0] sm:$0x1] }
  0x23   : > { %3497 = vmatmul.msk.bf16.vlgmr.msra.gmra.mxu3 %vm943_vm5, %v940_v14  ;;  %329 = vst [vmem:[#allocation2 + $0xa8] sm:$0x1] %v328_v15  ;;  %v590_v30 = vadd.f32 %v4030_v35, %v557_v18  ;;  %v591_v31 = vadd.f32 %v4030_v35, %v558_v19  ;;  %vm411_vm6 = vsmask.f32 7938  ;;  %v533_v32 = vadd.f32 %v3847_v22, %v4006_v20  ;;  %v333_v41 = vld [vmem:[#allocation2 + $0xb8] sm:$0x1] }
  0x24   : > { %v280_v34 = vsel %vm3981_vm4, 0, %v279_v13  ;;  %1116 = vmatpush.bf16.msra.mxu0 %v1107_v17  ;;  %353 = vst [vmem:[#allocation2 + $0xe8] sm:$0x1] %v352_v21  ;;  %v534_v37 = vadd.f32 %v3850_v26, %v4006_v20  ;;  %v564_v38 = vmax.f32 %v4080_v27, 0.0  ;;  %v3806_v39 = vunpack.c.l.bf16 %v3861_v23  ;;  %v4100_v51 = vld [vmem:[#allocation2 + $0xf8] sm:$0x1]  ;;  %vm4126_vm7 = vmand %vm244_vm1, %vm411_vm6 }
  0x25   : > { %v3807_v40 = vunpack.c.h.bf16 %v3861_v23  ;;  %v622_v42 = vpack.c.bf16 %v590_v30, %v590_v30  ;;  %v623_v43 = vpack.c.bf16 %v591_v31, %v591_v31  ;;  %356 = vst [vmem:[#allocation2 + $0xf0] sm:$0x1] %v355_v25  ;;  %v565_v44 = vmax.f32 %v533_v32, 0.0  ;;  %v4119_v4 = vld [vmem:[%s3997_s6 + $0x70] sm:$0xff]   ;;  %v360_v11 = vld [vmem:[#allocation2 + $0x100] sm:$0x1] }
  0x26   : > { %v319_v45 = vsel %vm3981_vm4, 0, %v318_v29  ;;  %v566_v47 = vmax.f32 %v534_v37, 0.0  ;;  %278 = vst [vmem:[#allocation2 + $0x20] sm:$0x1] %v277_v28  ;;  %v512_v48 = vadd.f32 %v3806_v39, %v4006_v20  ;;  %v322_v50 = vsel %vm3981_vm4, 0, %v321_v24  ;;  %v3862_v30 = vld [vmem:[%s3997_s6 + $0x18] sm:$0xff]  }
  0x27   : > { %v513_v49 = vadd.f32 %v3807_v40, %v4006_v20  ;;  %778 = vst.msk [vmem:[#allocation2 + $0xa0] sm:$0xf] %vm244_vm1, %v622_v42  ;;  %v598_v52 = vadd.f32 %v4030_v35, %v565_v44  ;;  %v524_v53 = vadd.f32 %v3830_v9, %v4006_v20  ;;  %v331_v54 = vsel %vm3981_vm4, 0, %v330_v36  ;;  %v282_v22 = vld [vmem:[#allocation2 + $0x30] sm:$0x1] }
  0x28   : > { %v334_v55 = vsel %vm3981_vm4, 0, %v333_v41  ;;  %779 = vst.msk [vmem:[#allocation2 + $0xa8] sm:$0xf] %vm244_vm1, %v623_v43  ;;  %v599_v56 = vadd.f32 %v4030_v35, %v566_v47  ;;  %v544_v57 = vmax.f32 %v512_v48, 0.0  ;;  %v3835_v59 = vunpack.c.h.bf16 %v4025_v33  ;;  %v4142_v40 = vld [vmem:[#allocation2 + $0xd8] sm:$0x1] }
  0x29   : > { %v545_v58 = vmax.f32 %v513_v49, 0.0  ;;  %v630_v60 = vpack.c.bf16 %v598_v52, %v598_v52  ;;  %281 = vst [vmem:[#allocation2 + $0x28] sm:$0x1] %v280_v34  ;;  %v556_v61 = vmax.f32 %v524_v53, 0.0  ;;  %v3838_v62 = vunpack.c.l.bf16 %v4094_v46 }
  0x2a   : > { %v358_v63 = vsel %vm3981_vm4, 0, %v4100_v51  ;;  %v631_v0 = vpack.c.bf16 %v599_v56, %v599_v56  ;;  %v577_v1 = vadd.f32 %v4030_v35, %v544_v57  ;;  %v918_v3 = vpack.c.bf16 %v544_v57, %v544_v57  ;;  %320 = vst [vmem:[#allocation2 + $0x90] sm:$0x1] %v319_v45  ;;  %v285_v45 = vld [vmem:[#allocation2 + $0x38] sm:$0x1] }
  0x2b   : > { %v578_v2 = vadd.f32 %v4030_v35, %v545_v58  ;;  %v794_v8 = vshrl.u32 %v630_v60, 16  ;;  %v797_v33 = vshll.u32 %v630_v60, 16  ;;  %v919_v9 = vpack.c.bf16 %v545_v58, %v545_v58  ;;  %323 = vst [vmem:[#allocation2 + $0x98] sm:$0x1] %v322_v50  ;;  %v872_v14 = vld [vmem:[#allocation2 + $0xe8] sm:$0xf] }
  0x2c   : > { %v589_v10 = vadd.f32 %v4030_v35, %v556_v61  ;;  %v802_v12 = vshrl.u32 %v631_v0, 16  ;;  %v805_v13 = vshll.u32 %v631_v0, 16  ;;  %v609_v15 = vpack.c.bf16 %v577_v1, %v577_v1  ;;  %332 = vst [vmem:[#allocation2 + $0xb0] sm:$0x1] %v331_v54  ;;  %v878_v34 = vld [vmem:[#allocation2 + $0xf0] sm:$0xf] }
  0x2d   : > { %v610_v16 = vpack.c.bf16 %v578_v2, %v578_v2  ;;  %v4122_v17 = vrot.slane %v794_v8, 7  ;;  %v935_v18 = vunpack.c.l.b16 %v918_v3  ;;  %v936_v19 = vunpack.c.l.b16 %v919_v9  ;;  %335 = vst [vmem:[#allocation2 + $0xb8] sm:$0x1] %v334_v55  ;;  %v4152_v50 = vld [vmem:[#allocation2 + $0xe0] sm:$0x1] }
  0x2e   : > { %v621_v21 = vpack.c.bf16 %v589_v10, %v589_v10  ;;  %v3507_v23 = vld [vmem:[#allocation2 + $0xa0] sm:$0xf]  ;;  %v4130_v25 = vrot.slane %v802_v12, 7  ;;  %641 = vst.msk [vmem:[#allocation2 + $0x20] sm:$0xf] %vm244_vm1, %v609_v15  ;;  %v527_v26 = vadd.f32 %v3835_v59, %v4006_v20  ;;  %v528_v28 = vadd.f32 %v3838_v62, %v4006_v20 }
  0x2f   : > { %v361_v29 = vsel %vm3981_vm4, 0, %v360_v11  ;;  %v3765_v31 = vld [vmem:[#allocation2 + $0xa4] sm:$0xf0]  ;;  %v799_v32 = vor.u32 %v797_v33, %v4122_v17  ;;  %642 = vst.msk [vmem:[#allocation2 + $0x28] sm:$0xf] %vm244_vm1, %v610_v16  ;;  %v941_v36 = vpack.c.b16 %v936_v19, %v935_v18  ;;  %v3851_v37 = vunpack.c.h.bf16 %v4057_v5  ;;  %v3870_v33 = vld [vmem:[%s3997_s6 + $0x58] sm:$0xff]  }
  0x30   : > { %v3854_v39 = vunpack.c.l.bf16 %v4119_v4  ;;  %v3508_v41 = vor.u32 %v3765_v31, %v3507_v23  ;;  %v807_v42 = vor.u32 %v805_v13, %v4130_v25  ;;  %777 = vst.msk [vmem:[#allocation2 + $0x98] sm:$0xf] %vm244_vm1, %v621_v21  ;;  %v559_v43 = vmax.f32 %v527_v26, 0.0  ;;  %v4160_v54 = vld [vmem:[#allocation2 + $0xc0] sm:$0x1] }
  0x31   : > { %v560_v44 = vmax.f32 %v528_v28, 0.0  ;;  %v873_v47 = vsel %vm4126_vm7, %v799_v32, %v872_v14  ;;  %359 = vst [vmem:[#allocation2 + $0xf8] sm:$0x1] %v358_v63  ;;  %v535_v48 = vadd.f32 %v3851_v37, %v4006_v20  ;;  %v283_v49 = vsel %vm3981_vm4, 0, %v282_v22  ;;  %v4162_v55 = vld [vmem:[#allocation2 + $0xc8] sm:$0x1] }
  0x32   : > { %v536_v5 = vadd.f32 %v3854_v39, %v4006_v20  ;;  %3518 = vmatmul.msk.bf16.vlgmr.msra.gmra.mxu1 %vm943_vm5, %v3508_v41  ;;  %874 = vst [vmem:[#allocation2 + $0xe8] sm:$0xf] %v873_v47  ;;  %v879_v51 = vsel %vm4126_vm7, %v807_v42, %v878_v34  ;;  %v592_v52 = vadd.f32 %v4030_v35, %v559_v43  ;;  %v286_v58 = vsel %vm3981_vm4, 0, %v285_v45  ;;  %v3503_v0 = vld [vmem:[#allocation2 + $0x90] sm:$0xf] }
  0x33   : > { %3498 = vmatmul.msk.bf16.gmra.mxu3 %vm943_vm5, %v941_v36  ;;  %v593_v53 = vadd.f32 %v4030_v35, %v560_v44  ;;  %880 = vst [vmem:[#allocation2 + $0xf0] sm:$0xf] %v879_v51  ;;  %v567_v56 = vmax.f32 %v535_v48, 0.0  ;;  %v3810_v59 = vunpack.c.l.bf16 %v3862_v30  ;;  %v3811_v62 = vunpack.c.h.bf16 %v3862_v30  ;;  %v3546_v41 = vld [vmem:[%s5116_s2 + $0x6] sm:$0x3] }
  0x34   : > { %v568_v57 = vmax.f32 %v536_v5, 0.0  ;;  %v624_v60 = vpack.c.bf16 %v592_v52, %v592_v52  ;;  %362 = vst [vmem:[#allocation2 + $0x100] sm:$0x1] %v361_v29  ;;  %v346_v63 = vsel %vm3981_vm4, 0, %v4142_v40  ;;  %v349_v8 = vsel %vm3981_vm4, 0, %v4152_v50 }
  0x35   : > { %v625_v61 = vpack.c.bf16 %v593_v53, %v593_v53  ;;  %v600_v1 = vadd.f32 %v4030_v35, %v567_v56  ;;  %284 = vst [vmem:[#allocation2 + $0x30] sm:$0x1] %v283_v49  ;;  %v514_v3 = vadd.f32 %v3810_v59, %v4006_v20  ;;  %v515_v9 = vadd.f32 %v3811_v62, %v4006_v20  ;;  %v363_v42 = vld [vmem:[#allocation2 + $0x108] sm:$0x1]  ;;  %v3874_v49 = vld [vmem:[%s3997_s6 + $0x78] sm:$0xff]  }
  0x36   : > { %v601_v2 = vadd.f32 %v4030_v35, %v568_v57  ;;  %780 = vst.msk [vmem:[#allocation2 + $0xb0] sm:$0xf] %vm244_vm1, %v624_v60  ;;  %v597_v10 = vadd.f32 %v4030_v35, %v564_v38  ;;  %v337_v11 = vsel %vm3981_vm4, 0, %v4160_v54  ;;  %v340_v12 = vsel %vm3981_vm4, 0, %v4162_v55 }
  0x37   : > { %v3764_v13 = vld [vmem:[#allocation2 + $0x94] sm:$0xf0]  ;;  %781 = vst.msk [vmem:[#allocation2 + $0xb8] sm:$0xf] %vm244_vm1, %v625_v61  ;;  %v632_v14 = vpack.c.bf16 %v600_v1, %v600_v1  ;;  %v546_v16 = vmax.f32 %v514_v3, 0.0  ;;  %v3839_v18 = vunpack.c.h.bf16 %v4094_v46  ;;  %v547_v27 = vmax.f32 %v515_v9, 0.0 }
  0x38   : > { %v633_v15 = vpack.c.bf16 %v601_v2, %v601_v2  ;;  %v3504_v19 = vor.u32 %v3764_v13, %v3503_v0  ;;  %287 = vst [vmem:[#allocation2 + $0x38] sm:$0x1] %v286_v58  ;;  %v629_v38 = vpack.c.bf16 %v597_v10, %v597_v10  ;;  %v3842_v21 = vunpack.c.l.bf16 %v3870_v33  ;;  %v884_v43 = vld [vmem:[#allocation2 + $0xf8] sm:$0xf]  ;;  %v366_v1 = vld [vmem:[#allocation2 + $0x110] sm:$0x1] }
  0x39   : > { %v3527_v22 = vld [vmem:[#allocation2 + $0xe8] sm:$0xf]  ;;  %v810_v23 = vshrl.u32 %v632_v14, 16  ;;  %v813_v26 = vshll.u32 %v632_v14, 16  ;;  %v579_v31 = vadd.f32 %v4030_v35, %v546_v16  ;;  %v580_v32 = vadd.f32 %v4030_v35, %v547_v27  ;;  %347 = vst [vmem:[#allocation2 + $0xd8] sm:$0x1] %v346_v63 }
  0x3a   : > { %v818_v28 = vshrl.u32 %v633_v15, 16  ;;  %v821_v29 = vshll.u32 %v633_v15, 16  ;;  %v3761_v30 = vld [vmem:[#allocation2 + $0xec] sm:$0xf0]  ;;  %3517 = vmatmul.msk.bf16.vlgmr.msrb.gmra.mxu0 %vm943_vm5, %v3504_v19  ;;  %v920_v34 = vpack.c.bf16 %v546_v16, %v546_v16  ;;  %v921_v46 = vpack.c.bf16 %v547_v27, %v547_v27  ;;  %350 = vst [vmem:[#allocation2 + $0xe0] sm:$0x1] %v349_v8 }
  0x3b   : > { %v3528_v36 = vor.u32 %v3761_v30, %v3527_v22  ;;  %v4192_v37 = vrot.slane %v810_v23, 7  ;;  %v529_v40 = vadd.f32 %v3839_v18, %v4006_v20  ;;  %v890_v44 = vld [vmem:[#allocation2 + $0x100] sm:$0xf]  ;;  %v611_v45 = vpack.c.bf16 %v579_v31, %v579_v31  ;;  %338 = vst [vmem:[#allocation2 + $0xc0] sm:$0x1] %v337_v11 }
  0x3c   : > { %v4194_v39 = vrot.slane %v818_v28, 7  ;;  %v612_v47 = vpack.c.bf16 %v580_v32, %v580_v32  ;;  %v937_v48 = vunpack.c.l.b16 %v920_v34  ;;  %v938_v5 = vunpack.c.l.b16 %v921_v46  ;;  %v3863_v2 = vld [vmem:[%s3997_s6 + $0x20] sm:$0xff]   ;;  %v261_v9 = vld [vmem:[#allocation2 + $0xdc] sm:$0x1]  ;;  %v291_v15 = vld [vmem:[#allocation2 + $0x48] sm:$0x1] }
  0x3d   : > { %3538 = vmatmul.msk.bf16.vlgmr.msra.gmra.mxu2 %vm943_vm5, %v3528_v36  ;;  %v3511_v50 = vld [vmem:[#allocation2 + $0xb0] sm:$0xf]  ;;  %v815_v51 = vor.u32 %v813_v26, %v4192_v37  ;;  %v786_v53 = vshrl.u32 %v629_v38, 16  ;;  %v789_v54 = vshll.u32 %v629_v38, 16  ;;  %643 = vst.msk [vmem:[#allocation2 + $0x30] sm:$0xf] %vm244_vm1, %v611_v45  ;;  %v530_v58 = vadd.f32 %v3842_v21, %v4006_v20 }
  0x3e   : > { %v823_v52 = vor.u32 %v821_v29, %v4194_v39  ;;  %v3766_v56 = vld [vmem:[#allocation2 + $0xb4] sm:$0xf0]  ;;  %v942_v57 = vpack.c.b16 %v938_v5, %v937_v48  ;;  %v561_v59 = vmax.f32 %v529_v40, 0.0  ;;  %v1378_v60 = vsel %vm956_vm0, %v3546_v41, 0  ;;  %644 = vst.msk [vmem:[#allocation2 + $0x38] sm:$0xf] %vm244_vm1, %v612_v47 }
  0x3f   : > { %v3512_v61 = vor.u32 %v3766_v56, %v3511_v50  ;;  %v885_v62 = vsel %vm4126_vm7, %v815_v51, %v884_v43  ;;  %v788_v0 = vrot.slane %v786_v53, 7  ;;  %1387 = vmatpush.bf16.msrb.mxu0 %v1378_v60  ;;  %v562_v3 = vmax.f32 %v530_v58, 0.0  ;;  %v869_v14 = vld [vmem:[#allocation2 + $0xe4] sm:$0x1]  ;;  %341 = vst [vmem:[#allocation2 + $0xc8] sm:$0x1] %v340_v12 }
  0x40   : > { %v891_v63 = vsel %vm4126_vm7, %v823_v52, %v890_v44  ;;  %886 = vst [vmem:[#allocation2 + $0xf8] sm:$0xf] %v885_v62  ;;  %v594_v8 = vadd.f32 %v4030_v35, %v561_v59  ;;  %v364_v33 = vsel %vm3981_vm4, 0, %v363_v42  ;;  %v3855_v11 = vunpack.c.h.bf16 %v4119_v4  ;;  %v4226_v4 = vld [vmem:[#allocation2 + $0x50] sm:$0x1]  ;;  %v4249_v44 = vld [vmem:[%s3997_s6 + $0x28] sm:$0xff]  }
  0x41   : > { %892 = vst [vmem:[#allocation2 + $0x100] sm:$0xf] %v891_v63  ;;  %v791_v10 = vor.u32 %v789_v54, %v788_v0  ;;  %v3858_v13 = vunpack.c.l.bf16 %v3874_v49  ;;  %v595_v16 = vadd.f32 %v4030_v35, %v562_v3  ;;  %v367_v19 = vsel %vm3981_vm4, 0, %v366_v1  ;;  %v866_v38 = vld [vmem:[#allocation2 + $0xe0] sm:$0xf] }
  0x42   : > { %3519 = vmatmul.msk.bf16.gmra.mxu1 %vm943_vm5, %v3512_v61  ;;  %v626_v18 = vpack.c.bf16 %v594_v8, %v594_v8  ;;  %v792_v27 = vrot.slane %v788_v0, 4  ;;  %365 = vst [vmem:[#allocation2 + $0x108] sm:$0x1] %v364_v33  ;;  %v537_v21 = vadd.f32 %v3855_v11, %v4006_v20  ;;  %v1138_v23 = vld [vmem:[#allocation2 + $0xd8] sm:$0xf]  ;;  %v3814_v26 = vunpack.c.l.bf16 %v3863_v2 }
  0x43   : > { %3499 = vmatmul.msk.bf16.gmra.mxu3 %vm943_vm5, %v942_v57  ;;  %v538_v22 = vadd.f32 %v3858_v13, %v4006_v20  ;;  %v3815_v28 = vunpack.c.h.bf16 %v3863_v2  ;;  %v867_v55 = vsel %vm4126_vm7, %v791_v10, %v866_v38  ;;  %v627_v12 = vpack.c.bf16 %v595_v16, %v595_v16  ;;  %v3593_v31 = vld [vmem:[%s5116_s2 + $0xc] sm:$0x3]  ;;  %368 = vst [vmem:[#allocation2 + $0x110] sm:$0x1] %v367_v19  ;;  %v3523_v58 = vld [vmem:[#allocation2 + $0xd8] sm:$0xf] }
  0x44   : > { %782 = vst.msk [vmem:[#allocation2 + $0xc0] sm:$0xf] %vm244_vm1, %v626_v18  ;;  %v262_v29 = vsel %vm3981_vm4, 0, %v261_v9  ;;  %v292_v30 = vsel %vm3981_vm4, 0, %v291_v15  ;;  %v569_v32 = vmax.f32 %v537_v21, 0.0  ;;  %v870_v46 = vsel %vm3981_vm4, %v792_v27, %v869_v14 }
  0x45   : > { %868 = vst [vmem:[#allocation2 + $0xe0] sm:$0xf] %v867_v55  ;;  %v570_v34 = vmax.f32 %v538_v22, 0.0  ;;  %v516_v36 = vadd.f32 %v3814_v26, %v4006_v20  ;;  %vm1154_vm8 = vsmask.f32 3328  ;;  %v1158_v40 = vshrl.u32 %v1138_v23, 16 }
  0x46   : > { %783 = vst.msk [vmem:[#allocation2 + $0xc8] sm:$0xf] %vm244_vm1, %v627_v12  ;;  %vm1155_vm9 = vsmask.f32 7440  ;;  %v1161_v41 = vshll.u32 %v1138_v23, 16  ;;  %v295_v42 = vsel %vm3981_vm4, 0, %v4226_v4  ;;  %v517_v43 = vadd.f32 %v3815_v28, %v4006_v20 }
  0x47   : > { %v3531_v45 = vld [vmem:[#allocation2 + $0xf8] sm:$0xf]  ;;  %v602_v47 = vadd.f32 %v4030_v35, %v569_v32  ;;  %v603_v48 = vadd.f32 %v4030_v35, %v570_v34  ;;  %v548_v5 = vmax.f32 %v516_v36, 0.0  ;;  %v1736_v49 = vsel %vm956_vm0, %v3593_v31, 0  ;;  %263 = vst [vmem:[#allocation2 + $0xdc] sm:$0x1] %v262_v29  ;;  %vm4281_vm10 = vmor %vm1154_vm8, %vm1155_vm9 }
  0x48   : > { %v3762_v50 = vld [vmem:[#allocation2 + $0xfc] sm:$0xf0]  ;;  %v1160_v51 = vrot.slane %v1158_v40, 4  ;;  %v1163_v52 = vrot.slane %v1161_v41, 5  ;;  %1745 = vmatpush.bf16.msra.mxu3 %v1736_v49  ;;  %871 = vst [vmem:[#allocation2 + $0xe4] sm:$0x1] %v870_v46  ;;  %v3818_v62 = vunpack.c.l.bf16 %v4249_v44  ;;  %v3819_v63 = vunpack.c.h.bf16 %v4249_v44 }
  0x49   : > { %v3532_v53 = vor.u32 %v3762_v50, %v3531_v45  ;;  %v634_v54 = vpack.c.bf16 %v602_v47, %v602_v47  ;;  %v635_v56 = vpack.c.bf16 %v603_v48, %v603_v48  ;;  %v549_v57 = vmax.f32 %v517_v43, 0.0  ;;  %293 = vst [vmem:[#allocation2 + $0x48] sm:$0x1] %v292_v30  ;;  %v3614_v61 = vld [vmem:[%s5116_s2 + $0xe] sm:$0x3] }
  0x4a   : > { %v1164_v59 = vor.u32 %v1163_v52, %v1160_v51  ;;  %v581_v60 = vadd.f32 %v4030_v35, %v548_v5  ;;  %v896_v9 = vld [vmem:[#allocation2 + $0x108] sm:$0xf]  ;;  %v1818_v15 = vsel %vm956_vm0, %v3614_v61, 0  ;;  %v902_v21 = vld [vmem:[#allocation2 + $0x110] sm:$0xf]  ;;  %vm2372_vm11 = vcmask 1043456  }
  0x4b   : > { %v3515_v0 = vld [vmem:[#allocation2 + $0xc0] sm:$0xf]  ;;  %v826_v1 = vshrl.u32 %v634_v54, 16  ;;  %v829_v2 = vshll.u32 %v634_v54, 16  ;;  %v834_v3 = vshrl.u32 %v635_v56, 16  ;;  %v837_v8 = vshll.u32 %v635_v56, 16 }
  0x4c   : > { %v3760_v33 = vld [vmem:[#allocation2 + $0xdc] sm:$0xf0]  ;;  %v1165_v11 = vrot.slane %v1164_v59, 4  ;;  %v582_v13 = vadd.f32 %v4030_v35, %v549_v57  ;;  %v613_v14 = vpack.c.bf16 %v581_v60, %v581_v60  ;;  %296 = vst [vmem:[#allocation2 + $0x50] sm:$0x1] %v295_v42  ;;  %vm372_vm12 = vcmask 60416  }
  0x4d   : > { %v1140_v10 = vld [vmem:[#allocation2 + $0xe0] sm:$0xf]  ;;  %3539 = vmatmul.msk.bf16.gmra.mxu2 %vm943_vm5, %v3532_v53  ;;  %v3524_v16 = vor.u32 %v3760_v33, %v3523_v58  ;;  %v3767_v18 = vld [vmem:[#allocation2 + $0xc4] sm:$0xf0]  ;;  %v4263_v19 = vrot.slane %v826_v1, 7  ;;  %v4265_v27 = vrot.slane %v834_v3, 7 }
  0x4e   : > { %v1172_v4 = vshrl.u32 %v1140_v10, 16  ;;  %v3516_v38 = vor.u32 %v3767_v18, %v3515_v0  ;;  %v1175_v22 = vshll.u32 %v1140_v10, 16  ;;  %v614_v23 = vpack.c.bf16 %v582_v13, %v582_v13  ;;  %v253_v28 = vld [vmem:[#allocation2 + $0x4c] sm:$0x1]  ;;  %v1139_v29 = vld [vmem:[#allocation2 + $0xdc] sm:$0x1] }
  0x4f   : > { %v646_v26 = vshrl.u32 %v613_v14, 16  ;;  %3537 = vmatmul.msk.bf16.vlgmr.msra.gmra.mxu0 %vm943_vm5, %v3524_v16  ;;  %v831_v55 = vor.u32 %v829_v2, %v4263_v19  ;;  %v839_v12 = vor.u32 %v837_v8, %v4265_v27  ;;  %v649_v31 = vshll.u32 %v613_v14, 16  ;;  %v3635_v32 = vld [vmem:[%s5116_s2 + $0x10] sm:$0x3]  ;;  %v1141_v34 = vld [vmem:[#allocation2 + $0xe4] sm:$0x1] }
  0x50   : > { %v1174_v30 = vrot.slane %v1172_v4, 4  ;;  %v1167_v46 = vshll.u32 %v1139_v29, 16  ;;  %v1177_v36 = vrot.slane %v1175_v22, 5  ;;  %v654_v41 = vshrl.u32 %v614_v23, 16  ;;  %1827 = vmatpush.bf16.msra.mxu0 %v1818_v15  ;;  %v728_v5 = vld [vmem:[#allocation2 + $0x48] sm:$0xf] }
  0x51   : > { %v4273_v40 = vrot.slane %v646_v26, 7  ;;  %v897_v42 = vsel %vm4126_vm7, %v831_v55, %v896_v9  ;;  %v903_v43 = vsel %vm4126_vm7, %v839_v12, %v902_v21  ;;  %v1181_v47 = vshll.u32 %v1141_v34, 16  ;;  %v3588_v49 = vld [vmem:[%s5116_s2 + $0xa] sm:$0x3]  ;;  %v737_v54 = vld [vmem:[#allocation2 + $0x54] sm:$0x1] }
  0x52   : > { %v657_v48 = vshll.u32 %v614_v23, 16  ;;  %3520 = vmatmul.msk.bf16.gmra.mxu1 %vm943_vm5, %v3516_v38  ;;  %898 = vst [vmem:[#allocation2 + $0x108] sm:$0xf] %v897_v42  ;;  %v1169_v50 = vrot.slane %v1167_v46, 5  ;;  %v1178_v51 = vor.u32 %v1177_v36, %v1174_v30  ;;  %v656_v53 = vrot.slane %v654_v41, 7 }
  0x53   : > { %v651_v52 = vor.u32 %v649_v31, %v4273_v40  ;;  %904 = vst [vmem:[#allocation2 + $0x110] sm:$0xf] %v903_v43  ;;  %v1183_v56 = vrot.slane %v1181_v47, 5  ;;  %v2012_v57 = vsel %vm956_vm0, %v3635_v32, 0  ;;  %v1654_v58 = vsel %vm956_vm0, %v3588_v49, 0  ;;  %vm4681_vm0 = vmand %vm372_vm12, %vm411_vm6 }
  0x54   : > { %v254_v59 = vsel %vm3981_vm4, 0, %v253_v28  ;;  %v875_v60 = vld [vmem:[#allocation2 + $0xec] sm:$0x1]  ;;  %v1170_v61 = vsel %vm4281_vm10, %v1165_v11, %v1169_v50  ;;  %v1179_v0 = vrot.slane %v1178_v51, 4  ;;  %v659_v1 = vor.u32 %v657_v48, %v656_v53  ;;  %2021 = vmatpush.bf16.msra.mxu1 %v2012_v57  ;;  %1663 = vmatpush.bf16.msrb.mxu2 %v1654_v58  ;;  %v881_v3 = vld [vmem:[#allocation2 + $0xf4] sm:$0x1] }
  0x55   : > { %v729_v2 = vsel %vm4126_vm7, %v651_v52, %v728_v5  ;;  %v1142_v8 = vld [vmem:[#allocation2 + $0xe8] sm:$0xf]  ;;  %v1271_v33 = vunpack.c.l.b16 %v1170_v61  ;;  %v734_v9 = vld [vmem:[#allocation2 + $0x50] sm:$0xf]  ;;  %v652_v10 = vrot.slane %v4273_v40, 4  ;;  %v660_v13 = vrot.slane %v656_v53, 4 }
  0x56   : > { %730 = vst [vmem:[#allocation2 + $0x48] sm:$0xf] %v729_v2  ;;  %v4302_v14 = vadd.f32 %v3818_v62, %v4006_v20  ;;  %v3865_v11 = vld [vmem:[%s3997_s6 + $0x30] sm:$0xff]   ;;  %v1184_v15 = vsel %vm4281_vm10, %v1179_v0, %v1183_v56  ;;  %v735_v16 = vsel %vm4126_vm7, %v659_v1, %v734_v9  ;;  %v800_v18 = vrot.slane %v4122_v17, 4  ;;  %v297_v21 = vld [vmem:[#allocation2 + $0x58] sm:$0x1] }
  0x57   : > { %255 = vst [vmem:[#allocation2 + $0x4c] sm:$0x1] %v254_v59  ;;  %v808_v4 = vrot.slane %v4130_v25, 4  ;;  %v1144_v38 = vld [vmem:[#allocation2 + $0xf0] sm:$0xf]  ;;  %v1272_v23 = vunpack.c.l.b16 %v1184_v15  ;;  %v738_v28 = vsel %vm3981_vm4, %v660_v13, %v737_v54  ;;  %v1186_v55 = vshrl.u32 %v1142_v8, 16 }
  0x58   : > { %v4311_v22 = vld [vmem:[#allocation2 + $0x60] sm:$0x1]  ;;  %736 = vst [vmem:[#allocation2 + $0x50] sm:$0xf] %v735_v16  ;;  %v4315_v26 = vld [vmem:[#allocation2 + $0x4] sm:$0xf0]  ;;  %v876_v17 = vsel %vm3981_vm4, %v800_v18, %v875_v60  ;;  %v519_v41 = vadd.f32 %v3819_v63, %v4006_v20  ;;  %v3822_v48 = vunpack.c.l.bf16 %v3865_v11  ;;  %v3823_v5 = vunpack.c.h.bf16 %v3865_v11 }
  0x59   : > { %v4313_v62 = vld [vmem:[#allocation2] sm:$0xf]  ;;  %v1189_v12 = vshll.u32 %v1142_v8, 16  ;;  %v4319_v29 = vld [vmem:[#allocation2 + $0x10] sm:$0xf]  ;;  %v882_v25 = vsel %vm3981_vm4, %v808_v4, %v881_v3  ;;  %v1200_v30 = vshrl.u32 %v1144_v38, 16  ;;  %v1279_v46 = vpack.c.b16 %v1272_v23, %v1271_v33 }
  0x5a   : > { %739 = vst [vmem:[#allocation2 + $0x54] sm:$0x1] %v738_v28  ;;  %v1203_v31 = vshll.u32 %v1144_v38, 16  ;;  %v4325_v32 = vld [vmem:[#allocation2 + $0x14] sm:$0xf0]  ;;  %v1188_v36 = vrot.slane %v1186_v55, 4  ;;  %v3571_v44 = vor.u32 %v4315_v26, %v4313_v62  ;;  %v4341_v57 = vadd.f32 %v3822_v48, %v4006_v20 }
  0x5b   : > { %v3535_v34 = vld [vmem:[#allocation2 + $0x108] sm:$0xf]  ;;  %877 = vst [vmem:[#allocation2 + $0xec] sm:$0x1] %v876_v17  ;;  %v1191_v40 = vrot.slane %v1189_v12, 5  ;;  %v1202_v43 = vrot.slane %v1200_v30, 4  ;;  %3542 = vmatmul.msk.bf16.vlgmr.msrb.gmra.mxu3 %vm943_vm5, %v1279_v46  ;;  %v3575_v56 = vor.u32 %v4325_v32, %v4319_v29  ;;  %v4348_v9 = vadd.f32 %v3823_v5, %v4006_v20 }
  0x5c   : > { %v3763_v42 = vld [vmem:[#allocation2 + $0x10c] sm:$0xf0]  ;;  %883 = vst [vmem:[#allocation2 + $0xf4] sm:$0x1] %v882_v25  ;;  %v1205_v47 = vrot.slane %v1203_v31, 5  ;;  %v298_v51 = vsel %vm3981_vm4, 0, %v297_v21 }
  0x5d   : > { %v3536_v49 = vor.u32 %v3763_v42, %v3535_v34  ;;  %v1192_v50 = vor.u32 %v1191_v40, %v1188_v36  ;;  %v301_v52 = vsel %vm3981_vm4, 0, %v4311_v22  ;;  %v3549_v53 = vld [vmem:[#allocation2 + $0x48] sm:$0xf]  ;;  %299 = vst [vmem:[#allocation2 + $0x58] sm:$0x1] %v298_v51  ;;  %v550_v0 = vmax.f32 %v4302_v14, 0.0 }
  0x5e   : > { %v1499_v63 = vld [vmem:[#allocation2 + $0x48] sm:$0xf]  ;;  %v1206_v54 = vor.u32 %v1205_v47, %v1202_v43  ;;  %v731_v58 = vld [vmem:[#allocation2 + $0x4c] sm:$0x1]  ;;  %v551_v33 = vmax.f32 %v519_v41, 0.0  ;;  %v816_v28 = vrot.slane %v4192_v37, 4 }
  0x5f   : > { %3540 = vmatmul.msk.bf16.gmra.mxu2 %vm943_vm5, %v3536_v49  ;;  %v1516_v59 = vshrl.u32 %v1499_v63, 16  ;;  %v1519_v60 = vshll.u32 %v1499_v63, 16  ;;  %v1193_v61 = vrot.slane %v1192_v50, 4  ;;  %v3768_v1 = vld [vmem:[#allocation2 + $0x4c] sm:$0xf0]  ;;  %v732_v2 = vsel %vm3981_vm4, %v652_v10, %v731_v58 }
  0x60   : > { %v1501_v3 = vld [vmem:[#allocation2 + $0x50] sm:$0xf]  ;;  %v1207_v8 = vrot.slane %v1206_v54, 4  ;;  %v3550_v13 = vor.u32 %v3768_v1, %v3549_v53  ;;  %733 = vst [vmem:[#allocation2 + $0x4c] sm:$0x1] %v732_v2  ;;  %v583_v18 = vadd.f32 %v4030_v35, %v550_v0  ;;  %v584_v22 = vadd.f32 %v4030_v35, %v551_v33 }
  0x61   : > { %v1502_v11 = vld [vmem:[#allocation2 + $0x54] sm:$0x1]  ;;  %v1518_v15 = vrot.slane %v1516_v59, 4  ;;  %v1521_v16 = vrot.slane %v1519_v60, 5  ;;  %v1530_v4 = vshrl.u32 %v1501_v3, 16  ;;  %v1533_v38 = vshll.u32 %v1501_v3, 16 }
  0x62   : > { %v1539_v14 = vshll.u32 %v1502_v11, 16  ;;  %v1143_v21 = vld [vmem:[#allocation2 + $0xec] sm:$0x1]  ;;  %3563 = vmatmul.msk.bf16.vlgmr.msrb.gmra.mxu0 %vm943_vm5, %v3550_v13  ;;  %302 = vst [vmem:[#allocation2 + $0x60] sm:$0x1] %v301_v52  ;;  %v615_v26 = vpack.c.bf16 %v583_v18, %v583_v18  ;;  %3584 = vmatmul.msk.bf16.vlgmr.msrb.gmra.mxu1 %vm943_vm5, %v3571_v44  ;;  %v616_v34 = vpack.c.bf16 %v584_v22, %v584_v22  ;;  %v824_v43 = vrot.slane %v4194_v39, 4 }
  0x63   : > { %v1522_v10 = vor.u32 %v1521_v16, %v1518_v15  ;;  %v1145_v23 = vld [vmem:[#allocation2 + $0xf4] sm:$0x1]  ;;  %v1195_v62 = vshll.u32 %v1143_v21, 16  ;;  %v1532_v55 = vrot.slane %v1530_v4, 4  ;;  %v1535_v12 = vrot.slane %v1533_v38, 5 }
  0x64   : > { %v1541_v17 = vrot.slane %v1539_v14, 5  ;;  %v1209_v25 = vshll.u32 %v1145_v23, 16  ;;  %v662_v46 = vshrl.u32 %v615_v26, 16  ;;  %v887_v36 = vld [vmem:[#allocation2 + $0xfc] sm:$0x1]  ;;  %v665_v42 = vshll.u32 %v615_v26, 16 }
  0x65   : > { %v1523_v30 = vrot.slane %v1522_v10, 4  ;;  %v1197_v31 = vrot.slane %v1195_v62, 5  ;;  %v1536_v40 = vor.u32 %v1535_v12, %v1532_v55  ;;  %v893_v47 = vld [vmem:[#allocation2 + $0x104] sm:$0x1]  ;;  %v670_v5 = vshrl.u32 %v616_v34, 16 }
  0x66   : > { %v1211_v41 = vrot.slane %v1209_v25, 5  ;;  %v664_v48 = vrot.slane %v662_v46, 7  ;;  %v673_v49 = vshll.u32 %v616_v34, 16  ;;  %v1146_v50 = vld [vmem:[#allocation2 + $0xf8] sm:$0xf]  ;;  %v888_v54 = vsel %vm3981_vm4, %v816_v28, %v887_v36 }
  0x67   : > { %v1198_v37 = vsel %vm4281_vm10, %v1193_v61, %v1197_v31  ;;  %v1500_v51 = vld [vmem:[#allocation2 + $0x4c] sm:$0x1]  ;;  %v1537_v52 = vrot.slane %v1536_v40, 4  ;;  %v743_v63 = vld [vmem:[#allocation2 + $0x5c] sm:$0x1]  ;;  %v672_v60 = vrot.slane %v670_v5, 7 }
  0x68   : > { %v1212_v53 = vsel %vm4281_vm10, %v1207_v8, %v1211_v41  ;;  %v1273_v44 = vunpack.c.l.b16 %v1198_v37  ;;  %v1525_v58 = vshll.u32 %v1500_v51, 16  ;;  %v667_v59 = vor.u32 %v665_v42, %v664_v48  ;;  %v740_v0 = vld [vmem:[#allocation2 + $0x58] sm:$0xf]  ;;  %v749_v61 = vld [vmem:[#allocation2 + $0x64] sm:$0x1] }
  0x69   : > { %v1274_v39 = vunpack.c.l.b16 %v1212_v53  ;;  %889 = vst [vmem:[#allocation2 + $0xfc] sm:$0x1] %v888_v54  ;;  %v1542_v1 = vsel %vm4281_vm10, %v1537_v52, %v1541_v17  ;;  %v746_v2 = vld [vmem:[#allocation2 + $0x60] sm:$0xf]  ;;  %v668_v3 = vrot.slane %v664_v48, 4  ;;  %v894_v8 = vsel %vm3981_vm4, %v824_v43, %v893_v47 }
  0x6a   : > { %v1148_v33 = vld [vmem:[#allocation2 + $0x100] sm:$0xf]  ;;  %v1214_v13 = vshrl.u32 %v1146_v50, 16  ;;  %v1527_v11 = vrot.slane %v1525_v58, 5  ;;  %v1630_v15 = vunpack.c.l.b16 %v1542_v1  ;;  %v675_v18 = vor.u32 %v673_v49, %v672_v60  ;;  %895 = vst [vmem:[#allocation2 + $0x104] sm:$0x1] %v894_v8 }
  0x6b   : > { %v1280_v16 = vpack.c.b16 %v1274_v39, %v1273_v44  ;;  %v303_v4 = vld [vmem:[#allocation2 + $0x68] sm:$0x1]  ;;  %v741_v38 = vsel %vm4126_vm7, %v667_v59, %v740_v0  ;;  %v676_v14 = vrot.slane %v672_v60, 4  ;;  %v744_v21 = vsel %vm3981_vm4, %v668_v3, %v743_v63  ;;  %v306_v10 = vld [vmem:[#allocation2 + $0x70] sm:$0x1] }
  0x6c   : > { %v1216_v22 = vrot.slane %v1214_v13, 4  ;;  %v4370_v23 = vld [vmem:[#allocation2 + $0x20] sm:$0xf]  ;;  %v1528_v62 = vsel %vm4281_vm10, %v1523_v30, %v1527_v11  ;;  %742 = vst [vmem:[#allocation2 + $0x58] sm:$0xf] %v741_v38  ;;  %v747_v26 = vsel %vm4126_vm7, %v675_v18, %v746_v2  ;;  %v1217_v28 = vshll.u32 %v1146_v50, 16 }
  0x6d   : > { %3543 = vmatmul.msk.bf16.gmra.mxu3 %vm943_vm5, %v1280_v16  ;;  %v1228_v55 = vshrl.u32 %v1148_v33, 16  ;;  %v4377_v12 = vld [vmem:[#allocation2 + $0x24] sm:$0xf0]  ;;  %v1629_v17 = vunpack.c.l.b16 %v1528_v62  ;;  %748 = vst [vmem:[#allocation2 + $0x60] sm:$0xf] %v747_v26  ;;  %v750_v25 = vsel %vm3981_vm4, %v676_v14, %v749_v61  ;;  %v1231_v31 = vshll.u32 %v1148_v33, 16 }
  0x6e   : > { %v304_v34 = vsel %vm3981_vm4, 0, %v303_v4  ;;  %v4384_v30 = vld [vmem:[%s3997_s6 + $0x38] sm:$0xff]   ;;  %745 = vst [vmem:[#allocation2 + $0x5c] sm:$0x1] %v744_v21  ;;  %v1219_v46 = vrot.slane %v1217_v28, 5  ;;  %v307_v40 = vsel %vm3981_vm4, 0, %v306_v10  ;;  %v3579_v5 = vor.u32 %v4377_v12, %v4370_v23 }
  0x6f   : > { %v1230_v36 = vrot.slane %v1228_v55, 4  ;;  %v552_v41 = vmax.f32 %v4341_v57, 0.0  ;;  %v899_v42 = vld [vmem:[#allocation2 + $0x10c] sm:$0x1]  ;;  %v1637_v43 = vpack.c.b16 %v1630_v15, %v1629_v17  ;;  %751 = vst [vmem:[#allocation2 + $0x64] sm:$0x1] %v750_v25  ;;  %v3826_v54 = vunpack.c.l.bf16 %v4384_v30 }
  0x70   : > { %v1147_v47 = vld [vmem:[#allocation2 + $0xfc] sm:$0x1]  ;;  %v1233_v37 = vrot.slane %v1231_v31, 5  ;;  %v553_v48 = vmax.f32 %v4348_v9, 0.0  ;;  %v1220_v49 = vor.u32 %v1219_v46, %v1216_v22  ;;  %305 = vst [vmem:[#allocation2 + $0x68] sm:$0x1] %v304_v34  ;;  %v3827_v29 = vunpack.c.h.bf16 %v4384_v30 }
  0x71   : > { %v1223_v50 = vshll.u32 %v1147_v47, 16  ;;  %v585_v51 = vadd.f32 %v4030_v35, %v552_v41  ;;  %v832_v52 = vrot.slane %v4263_v19, 4  ;;  %v905_v53 = vld [vmem:[#allocation2 + $0x114] sm:$0x1]  ;;  %3589 = vmatmul.msk.bf16.vlgmr.msrb.gmra.mxu2 %vm943_vm5, %v1637_v43  ;;  %v1149_v57 = vld [vmem:[#allocation2 + $0x104] sm:$0x1] }
  0x72   : > { %v1234_v44 = vor.u32 %v1233_v37, %v1230_v36  ;;  %308 = vst [vmem:[#allocation2 + $0x70] sm:$0x1] %v307_v40  ;;  %v586_v63 = vadd.f32 %v4030_v35, %v553_v48  ;;  %v840_v9 = vrot.slane %v4265_v27, 4  ;;  %v1221_v58 = vrot.slane %v1220_v49, 4  ;;  %3585 = vmatmul.msk.bf16.gmra.mxu1 %vm943_vm5, %v3575_v56  ;;  %v1150_v34 = vld [vmem:[#allocation2 + $0x108] sm:$0xf] }
  0x73   : > { %v1225_v39 = vrot.slane %v1223_v50, 5  ;;  %v1237_v59 = vshll.u32 %v1149_v57, 16  ;;  %v617_v60 = vpack.c.bf16 %v585_v51, %v585_v51  ;;  %v3553_v0 = vld [vmem:[#allocation2 + $0x58] sm:$0xf]  ;;  %v900_v2 = vsel %vm3981_vm4, %v832_v52, %v899_v42  ;;  %v755_v42 = vld [vmem:[#allocation2 + $0x6c] sm:$0x1] }
  0x74   : > { %v1503_v19 = vld [vmem:[#allocation2 + $0x58] sm:$0xf]  ;;  %v1235_v61 = vrot.slane %v1234_v44, 4  ;;  %v618_v1 = vpack.c.bf16 %v586_v63, %v586_v63  ;;  %v906_v27 = vsel %vm3981_vm4, %v840_v9, %v905_v53  ;;  %v3769_v3 = vld [vmem:[#allocation2 + $0x5c] sm:$0xf0]  ;;  %v1242_v53 = vshrl.u32 %v1150_v34, 16 }
  0x75   : > { %v1505_v8 = vld [vmem:[#allocation2 + $0x60] sm:$0xf]  ;;  %v1544_v33 = vshrl.u32 %v1503_v19, 16  ;;  %v1547_v13 = vshll.u32 %v1503_v19, 16  ;;  %v1226_v11 = vsel %vm4281_vm10, %v1221_v58, %v1225_v39  ;;  %v3554_v32 = vor.u32 %v3769_v3, %v3553_v0  ;;  %v1504_v56 = vld [vmem:[#allocation2 + $0x5c] sm:$0x1] }
  0x76   : > { %v1558_v15 = vshrl.u32 %v1505_v8, 16  ;;  %v1561_v16 = vshll.u32 %v1505_v8, 16  ;;  %v1239_v18 = vrot.slane %v1237_v59, 5  ;;  %v1506_v4 = vld [vmem:[#allocation2 + $0x64] sm:$0x1]  ;;  %v1553_v21 = vshll.u32 %v1504_v56, 16 }
  0x77   : > { %v1546_v38 = vrot.slane %v1544_v33, 4  ;;  %v1549_v14 = vrot.slane %v1547_v13, 5  ;;  %v1275_v22 = vunpack.c.l.b16 %v1226_v11  ;;  %3564 = vmatmul.msk.bf16.gmra.mxu0 %vm943_vm5, %v3554_v32  ;;  %v1567_v26 = vshll.u32 %v1506_v4, 16  ;;  %901 = vst [vmem:[#allocation2 + $0x10c] sm:$0x1] %v900_v2 }
  0x78   : > { %v1560_v10 = vrot.slane %v1558_v15, 4  ;;  %v1563_v62 = vrot.slane %v1561_v16, 5  ;;  %v1240_v28 = vsel %vm4281_vm10, %v1235_v61, %v1239_v18  ;;  %v1555_v17 = vrot.slane %v1553_v21, 5  ;;  %907 = vst [vmem:[#allocation2 + $0x114] sm:$0x1] %v906_v27 }
  0x79   : > { %v1550_v55 = vor.u32 %v1549_v14, %v1546_v38  ;;  %v1276_v25 = vunpack.c.l.b16 %v1240_v28  ;;  %v678_v31 = vshrl.u32 %v617_v60, 16  ;;  %v1569_v36 = vrot.slane %v1567_v26, 5  ;;  %v1152_v49 = vld [vmem:[#allocation2 + $0x110] sm:$0xf]  ;;  %v752_v52 = vld [vmem:[#allocation2 + $0x68] sm:$0xf] }
  0x7a   : > { %v1564_v46 = vor.u32 %v1563_v62, %v1560_v10  ;;  %v681_v40 = vshll.u32 %v617_v60, 16  ;;  %v686_v41 = vshrl.u32 %v618_v1, 16  ;;  %v689_v48 = vshll.u32 %v618_v1, 16  ;;  %v758_v9 = vld [vmem:[#allocation2 + $0x70] sm:$0xf] }
  0x7b   : > { %v1551_v43 = vrot.slane %v1550_v55, 4  ;;  %v1281_v47 = vpack.c.b16 %v1276_v25, %v1275_v22  ;;  %v680_v37 = vrot.slane %v678_v31, 7  ;;  %v1245_v57 = vshll.u32 %v1150_v34, 16  ;;  %v761_v39 = vld [vmem:[#allocation2 + $0x74] sm:$0x1] }
  0x7c   : > { %v1565_v50 = vrot.slane %v1564_v46, 4  ;;  %v688_v51 = vrot.slane %v686_v41, 7  ;;  %v1256_v59 = vshrl.u32 %v1152_v49, 16  ;;  %v1244_v3 = vrot.slane %v1242_v53, 4  ;;  %v309_v8 = vld [vmem:[#allocation2 + $0x78] sm:$0x1] }
  0x7d   : > { %v1556_v44 = vsel %vm4281_vm10, %v1551_v43, %v1555_v17  ;;  %3544 = vmatmul.msk.bf16.gmra.mxu3 %vm943_vm5, %v1281_v47  ;;  %v683_v63 = vor.u32 %v681_v40, %v680_v37  ;;  %v684_v58 = vrot.slane %v680_v37, 4  ;;  %v312_v33 = vld [vmem:[#allocation2 + $0x80] sm:$0x1]  ;;  %v1247_v56 = vrot.slane %v1245_v57, 5  ;;  %373 = vst.msk [vmem:[#allocation3] sm:$0xf] %vm372_vm12, %v3928_v6 }
  0x7e   : > { %v1570_v60 = vsel %vm4281_vm10, %v1565_v50, %v1569_v36  ;;  %v1631_v0 = vunpack.c.l.b16 %v1556_v44  ;;  %v691_v19 = vor.u32 %v689_v48, %v688_v51  ;;  %v692_v61 = vrot.slane %v688_v51, 4  ;;  %v1151_v32 = vld [vmem:[#allocation2 + $0x10c] sm:$0x1]  ;;  %377 = vst.msk [vmem:[#allocation3 + $0x48] sm:$0xf] %vm372_vm12, %v3928_v6 }
  0x7f   : > { %v1632_v1 = vunpack.c.l.b16 %v1570_v60  ;;  %v753_v2 = vsel %vm4126_vm7, %v683_v63, %v752_v52  ;;  %v756_v27 = vsel %vm3981_vm4, %v684_v58, %v755_v42  ;;  %v1258_v15 = vrot.slane %v1256_v59, 4  ;;  %v1153_v18 = vld [vmem:[#allocation2 + $0x114] sm:$0x1] }
  0x80   : > { %754 = vst [vmem:[#allocation2 + $0x68] sm:$0xf] %v753_v2  ;;  %v759_v13 = vsel %vm4126_vm7, %v691_v19, %v758_v9  ;;  %v762_v11 = vsel %vm3981_vm4, %v692_v61, %v761_v39  ;;  %v1251_v4 = vshll.u32 %v1151_v32, 16  ;;  %v1259_v38 = vshll.u32 %v1152_v49, 16  ;;  %v3775_v2 = vld [vmem:[#allocation2 + $0x34] sm:$0xf0] }
  0x81   : > { %v1638_v16 = vpack.c.b16 %v1632_v1, %v1631_v0  ;;  %760 = vst [vmem:[#allocation2 + $0x70] sm:$0xf] %v759_v13  ;;  %v522_v14 = vadd.f32 %v3826_v54, %v4006_v20  ;;  %v1248_v21 = vor.u32 %v1247_v56, %v1244_v3  ;;  %v1265_v22 = vshll.u32 %v1153_v18, 16  ;;  %v3582_v1 = vld [vmem:[#allocation2 + $0x30] sm:$0xf] }
  0x82   : > { %757 = vst [vmem:[#allocation2 + $0x6c] sm:$0x1] %v756_v27  ;;  %v310_v10 = vsel %vm3981_vm4, 0, %v309_v8  ;;  %v313_v62 = vsel %vm3981_vm4, 0, %v312_v33  ;;  %v1253_v26 = vrot.slane %v1251_v4, 5  ;;  %v1261_v28 = vrot.slane %v1259_v38, 5  ;;  %3586 = vmatmul.msk.bf16.gmra.mxu1 %vm943_vm5, %v3579_v5 }
  0x83   : > { %3590 = vmatmul.msk.bf16.gmra.mxu2 %vm943_vm5, %v1638_v16  ;;  %763 = vst [vmem:[#allocation2 + $0x74] sm:$0x1] %v762_v11  ;;  %v523_v55 = vadd.f32 %v3827_v29, %v4006_v20  ;;  %v554_v17 = vmax.f32 %v522_v14, 0.0  ;;  %v1249_v54 = vrot.slane %v1248_v21, 4  ;;  %v1267_v31 = vrot.slane %v1265_v22, 5 }
  0x84   : > { %311 = vst [vmem:[#allocation2 + $0x78] sm:$0x1] %v310_v10  ;;  %v1262_v25 = vor.u32 %v1261_v28, %v1258_v15  ;;  %v767_v13 = vld [vmem:[#allocation2 + $0x7c] sm:$0x1]  ;;  %v773_v15 = vld [vmem:[#allocation2 + $0x84] sm:$0x1]  ;;  %v3583_v38 = vor.u32 %v3775_v2, %v3582_v1 }
  0x85   : > { %314 = vst [vmem:[#allocation2 + $0x80] sm:$0x1] %v313_v62  ;;  %v555_v34 = vmax.f32 %v523_v55, 0.0  ;;  %v587_v46 = vadd.f32 %v4030_v35, %v554_v17  ;;  %v1254_v36 = vsel %vm4281_vm10, %v1249_v54, %v1253_v26  ;;  %v1857_v14 = vld [vmem:[#allocation2 + $0xe0] sm:$0xf]  ;;  %vm374_vm13 = vcmask 57344  }
  0x86   : > { %v1263_v29 = vrot.slane %v1262_v25, 4  ;;  %v1277_v43 = vunpack.c.l.b16 %v1254_v36  ;;  %v1858_v26 = vld [vmem:[#allocation2 + $0xe4] sm:$0x1]  ;;  %v1874_v28 = vshrl.u32 %v1857_v14, 16  ;;  %vm4590_vm14 = vmand %vm374_vm13, %vm247_vm3  ;;  %375 = vst.msk [vmem:[#allocation3 + $0x4] sm:$0x1] %vm374_vm13, %v3928_v6 }
  0x87   : > { %v3557_v40 = vld [vmem:[#allocation2 + $0x68] sm:$0xf]  ;;  %v588_v41 = vadd.f32 %v4030_v35, %v555_v34  ;;  %v619_v47 = vpack.c.bf16 %v587_v46, %v587_v46  ;;  %v1860_v34 = vld [vmem:[#allocation2 + $0xec] sm:$0x1]  ;;  %vm4599_vm15 = vmand %vm374_vm13, %vm411_vm6  ;;  %378 = vst.msk [vmem:[#allocation3 + $0x4c] sm:$0x1] %vm374_vm13, %v3928_v6 }
  0x88   : > { %v1507_v30 = vld [vmem:[#allocation2 + $0x68] sm:$0xf]  ;;  %v3770_v42 = vld [vmem:[#allocation2 + $0x6c] sm:$0xf0]  ;;  %v1268_v51 = vsel %vm4281_vm10, %v1263_v29, %v1267_v31  ;;  %vm2494_vm2 = vcmask 1046532  }
  0x89   : > { %v1509_v23 = vld [vmem:[#allocation2 + $0x70] sm:$0xf]  ;;  %v1572_v12 = vshrl.u32 %v1507_v30, 16  ;;  %v1575_v5 = vshll.u32 %v1507_v30, 16  ;;  %v3558_v37 = vor.u32 %v3770_v42, %v3557_v40  ;;  %v1508_v48 = vld [vmem:[#allocation2 + $0x6c] sm:$0x1]  ;;  %v1278_v63 = vunpack.c.l.b16 %v1268_v51 }
  0x8a   : > { %v1586_v49 = vshrl.u32 %v1509_v23, 16  ;;  %v1589_v50 = vshll.u32 %v1509_v23, 16  ;;  %v1510_v52 = vld [vmem:[#allocation2 + $0x74] sm:$0x1]  ;;  %v1581_v44 = vshll.u32 %v1508_v48, 16  ;;  %v620_v59 = vpack.c.bf16 %v588_v41, %v588_v41 }
  0x8b   : > { %v1574_v53 = vrot.slane %v1572_v12, 4  ;;  %v1577_v57 = vrot.slane %v1575_v5, 5  ;;  %3565 = vmatmul.msk.bf16.gmra.mxu0 %vm943_vm5, %v3558_v37  ;;  %v1595_v39 = vshll.u32 %v1510_v52, 16  ;;  %v1282_v19 = vpack.c.b16 %v1278_v63, %v1277_v43  ;;  %v764_v4 = vld [vmem:[#allocation2 + $0x78] sm:$0xf] }
  0x8c   : > { %v1588_v9 = vrot.slane %v1586_v49, 4  ;;  %v1591_v58 = vrot.slane %v1589_v50, 5  ;;  %v1583_v0 = vrot.slane %v1581_v44, 5  ;;  %v694_v61 = vshrl.u32 %v619_v47, 16  ;;  %v770_v10 = vld [vmem:[#allocation2 + $0x80] sm:$0xf] }
  0x8d   : > { %v1578_v60 = vor.u32 %v1577_v57, %v1574_v53  ;;  %v1597_v3 = vrot.slane %v1595_v39, 5  ;;  %v697_v8 = vshll.u32 %v619_v47, 16  ;;  %v702_v33 = vshrl.u32 %v620_v59, 16  ;;  %3545 = vmatmul.msk.bf16.gmra.mxu3 %vm943_vm5, %v1282_v19  ;;  %v1859_v31 = vld [vmem:[#allocation2 + $0xe8] sm:$0xf] }
  0x8e   : > { %v1592_v27 = vor.u32 %v1591_v58, %v1588_v9  ;;  %v696_v32 = vrot.slane %v694_v61, 7  ;;  %v705_v56 = vshll.u32 %v620_v59, 16  ;;  %v1876_v30 = vrot.slane %v1874_v28, 4  ;;  %v3596_v50 = vld [vmem:[#allocation2 + $0xe0] sm:$0xf] }
  0x8f   : > { %v1579_v11 = vrot.slane %v1578_v60, 4  ;;  %v704_v18 = vrot.slane %v702_v33, 7  ;;  %v1877_v42 = vshll.u32 %v1857_v14, 16  ;;  %v1883_v23 = vshll.u32 %v1858_v26, 16  ;;  %v3776_v51 = vld [vmem:[#allocation2 + $0xe4] sm:$0xf0] }
  0x90   : > { %v1593_v16 = vrot.slane %v1592_v27, 4  ;;  %v699_v22 = vor.u32 %v697_v8, %v696_v32  ;;  %v700_v62 = vrot.slane %v696_v32, 4  ;;  %v1888_v5 = vshrl.u32 %v1859_v31, 16  ;;  %v1861_v63 = vld [vmem:[#allocation2 + $0xf0] sm:$0xf] }
  0x91   : > { %v1584_v21 = vsel %vm4281_vm10, %v1579_v11, %v1583_v0  ;;  %v707_v54 = vor.u32 %v705_v56, %v704_v18  ;;  %v708_v25 = vrot.slane %v704_v18, 4  ;;  %v1891_v43 = vshll.u32 %v1859_v31, 16  ;;  %v1863_v9 = vld [vmem:[#allocation2 + $0xf8] sm:$0xf]  ;;  %v1862_v18 = vld [vmem:[#allocation2 + $0xf4] sm:$0x1] }
  0x92   : > { %v1598_v55 = vsel %vm4281_vm10, %v1593_v16, %v1597_v3  ;;  %v1633_v17 = vunpack.c.l.b16 %v1584_v21  ;;  %v765_v36 = vsel %vm4126_vm7, %v699_v22, %v764_v4  ;;  %v768_v40 = vsel %vm3981_vm4, %v700_v62, %v767_v13  ;;  %3587 = vmatmul.msk.bf16.gmra.mxu1 %vm943_vm5, %v3583_v38 }
  0x93   : > { %v1634_v46 = vunpack.c.l.b16 %v1598_v55  ;;  %766 = vst [vmem:[#allocation2 + $0x78] sm:$0xf] %v765_v36  ;;  %v771_v29 = vsel %vm4126_vm7, %v707_v54, %v770_v10  ;;  %v774_v41 = vsel %vm3981_vm4, %v708_v25, %v773_v15  ;;  %v1897_v47 = vshll.u32 %v1860_v34, 16  ;;  %v1864_v54 = vld [vmem:[#allocation2 + $0xfc] sm:$0x1] }
  0x94   : > { %772 = vst [vmem:[#allocation2 + $0x80] sm:$0xf] %v771_v29  ;;  %v1879_v37 = vrot.slane %v1877_v42, 5  ;;  %v1890_v48 = vrot.slane %v1888_v5, 4  ;;  %v1893_v49 = vrot.slane %v1891_v43, 5  ;;  %v1885_v53 = vrot.slane %v1883_v23, 5 }
  0x95   : > { %v1639_v12 = vpack.c.b16 %v1634_v46, %v1633_v17  ;;  %769 = vst [vmem:[#allocation2 + $0x7c] sm:$0x1] %v768_v40  ;;  %v1899_v44 = vrot.slane %v1897_v47, 5  ;;  %v1902_v39 = vshrl.u32 %v1861_v63, 16  ;;  %v1905_v59 = vshll.u32 %v1861_v63, 16 }
  0x96   : > { %775 = vst [vmem:[#allocation2 + $0x84] sm:$0x1] %v774_v41  ;;  %v1880_v52 = vor.u32 %v1879_v37, %v1876_v30  ;;  %v1894_v57 = vor.u32 %v1893_v49, %v1890_v48  ;;  %v1916_v60 = vshrl.u32 %v1863_v9, 16  ;;  %v3597_v61 = vor.u32 %v3776_v51, %v3596_v50  ;;  %v3898_v51 = vld [vmem:[%s3997_s6 + $0x78] sm:$0xff]   ;;  %v3780_v63 = vld [vmem:[#allocation2 + $0x9c] sm:$0xf0] }
  0x97   : > { %3591 = vmatmul.msk.bf16.gmra.mxu2 %vm943_vm5, %v1639_v12  ;;  %v1919_v2 = vshll.u32 %v1863_v9, 16  ;;  %v1904_v25 = vrot.slane %v1902_v39, 4  ;;  %v1907_v31 = vrot.slane %v1905_v59, 5  ;;  %v1911_v40 = vshll.u32 %v1862_v18, 16 }
  0x98   : > { %v1881_v58 = vrot.slane %v1880_v52, 4  ;;  %v1895_v1 = vrot.slane %v1894_v57, 4  ;;  %v1918_v41 = vrot.slane %v1916_v60, 4  ;;  %v1925_v12 = vshll.u32 %v1864_v54, 16  ;;  %v3600_v60 = vld [vmem:[#allocation2 + $0xf0] sm:$0xf] }
  0x99   : > { %v1908_v29 = vor.u32 %v1907_v31, %v1904_v25  ;;  %v1921_v42 = vrot.slane %v1919_v2, 5  ;;  %v1913_v47 = vrot.slane %v1911_v40, 5  ;;  %v3859_v52 = vunpack.c.h.bf16 %v3898_v51 }
  0x9a   : > { %v3561_v0 = vld [vmem:[#allocation2 + $0x78] sm:$0xf]  ;;  %v1886_v13 = vsel %vm4281_vm10, %v1881_v58, %v1885_v53  ;;  %v1900_v16 = vsel %vm4281_vm10, %v1895_v1, %v1899_v44  ;;  %v1927_v50 = vrot.slane %v1925_v12, 5 }
  0x9b   : > { %v1511_v19 = vld [vmem:[#allocation2 + $0x78] sm:$0xf]  ;;  %v3771_v27 = vld [vmem:[#allocation2 + $0x7c] sm:$0xf0]  ;;  %v1987_v22 = vunpack.c.l.b16 %v1886_v13  ;;  %v1988_v28 = vunpack.c.l.b16 %v1900_v16  ;;  %v1909_v43 = vrot.slane %v1908_v29, 4  ;;  %v1922_v37 = vor.u32 %v1921_v42, %v1918_v41 }
  0x9c   : > { %v1513_v3 = vld [vmem:[#allocation2 + $0x80] sm:$0xf]  ;;  %v1600_v8 = vshrl.u32 %v1511_v19, 16  ;;  %v1603_v33 = vshll.u32 %v1511_v19, 16  ;;  %v3562_v11 = vor.u32 %v3771_v27, %v3561_v0  ;;  %v1512_v32 = vld [vmem:[#allocation2 + $0x7c] sm:$0x1]  ;;  %v539_v39 = vadd.f32 %v3859_v52, %v4006_v20 }
  0x9d   : > { %v1614_v56 = vshrl.u32 %v1513_v3, 16  ;;  %v1617_v15 = vshll.u32 %v1513_v3, 16  ;;  %v1514_v4 = vld [vmem:[#allocation2 + $0x84] sm:$0x1]  ;;  %v1609_v21 = vshll.u32 %v1512_v32, 16  ;;  %3610 = vmatmul.msk.bf16.vlgmr.msra.gmra.mxu3 %vm943_vm5, %v3597_v61  ;;  %v1995_v36 = vpack.c.b16 %v1988_v28, %v1987_v22  ;;  %v3899_v16 = vld [vmem:[%s3997_s6 + $0x58] sm:$0xff]  }
  0x9e   : > { %v1602_v38 = vrot.slane %v1600_v8, 4  ;;  %v1605_v14 = vrot.slane %v1603_v33, 5  ;;  %3566 = vmatmul.msk.bf16.gmra.mxu0 %vm943_vm5, %v3562_v11  ;;  %v1623_v26 = vshll.u32 %v1514_v4, 16  ;;  %v1923_v57 = vrot.slane %v1922_v37, 4  ;;  %v3617_v44 = vld [vmem:[#allocation2 + $0x98] sm:$0xf] }
  0x9f   : > { %v1616_v10 = vrot.slane %v1614_v56, 4  ;;  %v1619_v62 = vrot.slane %v1617_v15, 5  ;;  %v1611_v17 = vrot.slane %v1609_v21, 5  ;;  %v4474_v9 = vpop.f32.mrf.mxu0  ;;  %v369_v58 = vld [vmem:[#allocation2 + $0x118] sm:$0x1]  ;;  %v1914_v1 = vsel %vm4281_vm10, %v1909_v43, %v1913_v47 }
  0xa0   : > { %v1606_v55 = vor.u32 %v1605_v14, %v1602_v38  ;;  %v1625_v46 = vrot.slane %v1623_v26, 5  ;;  %v3777_v0 = vld [vmem:[#allocation2 + $0xf4] sm:$0xf0]  ;;  %v370_v61 = vsel %vm3981_vm4, 0, %v369_v58  ;;  %v1928_v2 = vsel %vm4281_vm10, %v1923_v57, %v1927_v50  ;;  %v1865_v27 = vld [vmem:[#allocation2 + $0x100] sm:$0xf] }
  0xa1   : > { %v1620_v34 = vor.u32 %v1619_v62, %v1616_v10  ;;  %v1867_v3 = vld [vmem:[#allocation2 + $0x108] sm:$0xf]  ;;  %371 = vst [vmem:[#allocation2 + $0x118] sm:$0x1] %v370_v61  ;;  %v1930_v8 = vshrl.u32 %v1865_v27, 16  ;;  %v1933_v33 = vshll.u32 %v1865_v27, 16  ;;  %v3618_v32 = vor.u32 %v3780_v63, %v3617_v44 }
  0xa2   : > { %v1607_v30 = vrot.slane %v1606_v55, 4  ;;  %3636 = vmatmul.msk.bf16.vlgmr.msra.gmra.mxu1 %vm943_vm5, %v1995_v36  ;;  %v1944_v13 = vshrl.u32 %v1867_v3, 16  ;;  %v1947_v11 = vshll.u32 %v1867_v3, 16  ;;  %v3601_v56 = vor.u32 %v3777_v0, %v3600_v60  ;;  %v1866_v28 = vld [vmem:[#allocation2 + $0x104] sm:$0x1] }
  0xa3   : > { %v1621_v23 = vrot.slane %v1620_v34, 4  ;;  %v571_v15 = vmax.f32 %v539_v39, 0.0  ;;  %v3843_v18 = vunpack.c.h.bf16 %v3899_v16  ;;  %v1989_v4 = vunpack.c.l.b16 %v1914_v1  ;;  %v1868_v55 = vld [vmem:[#allocation2 + $0x10c] sm:$0x1]  ;;  %v911_v37 = vld [vmem:[#allocation2 + $0x11c] sm:$0x1] }
  0xa4   : > { %v1612_v5 = vsel %vm4281_vm10, %v1607_v30, %v1611_v17  ;;  %v1990_v38 = vunpack.c.l.b16 %v1928_v2  ;;  %v1932_v14 = vrot.slane %v1930_v8, 4  ;;  %v1935_v21 = vrot.slane %v1933_v33, 5  ;;  %v342_v30 = vld [vmem:[#allocation2 + $0xd0] sm:$0x1]  ;;  %v3604_v58 = vld [vmem:[#allocation2 + $0x100] sm:$0xf] }
  0xa5   : > { %v1626_v48 = vsel %vm4281_vm10, %v1621_v23, %v1625_v46  ;;  %v1635_v49 = vunpack.c.l.b16 %v1612_v5  ;;  %v604_v22 = vadd.f32 %v4030_v35, %v571_v15  ;;  %v531_v10 = vadd.f32 %v3843_v18, %v4006_v20  ;;  %v3781_v57 = vld [vmem:[#allocation2 + $0xac] sm:$0xf0]  ;;  %v3778_v39 = vld [vmem:[#allocation2 + $0x104] sm:$0xf0] }
  0xa6   : > { %v1636_v53 = vunpack.c.l.b16 %v1626_v48  ;;  %v4477_v19 = vpop.f32.mrf.mxu3  ;;  %v1946_v62 = vrot.slane %v1944_v13, 4  ;;  %v1949_v26 = vrot.slane %v1947_v11, 5  ;;  %v1996_v25 = vpack.c.b16 %v1990_v38, %v1989_v4  ;;  %v1869_v60 = vld [vmem:[#allocation2 + $0x110] sm:$0xf] }
  0xa7   : > { %v636_v17 = vpack.c.bf16 %v604_v22, %v604_v22  ;;  %v563_v54 = vmax.f32 %v531_v10, 0.0  ;;  %v4493_v34 = vpop.f32.mrf.mxu0  ;;  %v1936_v46 = vor.u32 %v1935_v21, %v1932_v14  ;;  %v1939_v41 = vshll.u32 %v1866_v28, 16 }
  0xa8   : > { %v1640_v59 = vpack.c.b16 %v1636_v53, %v1635_v49  ;;  %v1950_v42 = vor.u32 %v1949_v26, %v1946_v62  ;;  %v1953_v23 = vshll.u32 %v1868_v55, 16  ;;  %v343_v12 = vsel %vm3981_vm4, 0, %v342_v30  ;;  %v908_v47 = vld [vmem:[#allocation2 + $0x118] sm:$0xf]  ;;  %v3621_v53 = vld [vmem:[#allocation2 + $0xa8] sm:$0xf] }
  0xa9   : > { %v842_v36 = vshrl.u32 %v636_v17, 16  ;;  %v845_v40 = vshll.u32 %v636_v17, 16  ;;  %v596_v20 = vadd.f32 %v4030_v35, %v563_v54  ;;  %344 = vst [vmem:[#allocation2 + $0xd0] sm:$0x1] %v343_v12  ;;  %v1937_v35 = vrot.slane %v1936_v46, 4 }
  0xaa   : > { %3592 = vmatmul.msk.bf16.gmra.mxu2 %vm943_vm5, %v1640_v59  ;;  %v1941_v50 = vrot.slane %v1939_v41, 5  ;;  %v1951_v51 = vrot.slane %v1950_v42, 4  ;;  %v1955_v52 = vrot.slane %v1953_v23, 5  ;;  %v1958_v24 = vshrl.u32 %v1869_v60, 16  ;;  %v3625_v46 = vld [vmem:[#allocation2 + $0xb8] sm:$0xf] }
  0xab   : > { %v844_v5 = vrot.slane %v842_v36, 7  ;;  %v628_v43 = vpack.c.bf16 %v596_v20, %v596_v20  ;;  %v1961_v2 = vshll.u32 %v1869_v60, 16  ;;  %v3622_v27 = vor.u32 %v3781_v57, %v3621_v53  ;;  %v3608_v30 = vld [vmem:[#allocation2 + $0x110] sm:$0xf]  ;;  %v3629_v53 = vld [vmem:[#allocation2 + $0xc8] sm:$0xf] }
  0xac   : > { %v1942_v61 = vsel %vm4281_vm10, %v1937_v35, %v1941_v50  ;;  %v1956_v1 = vsel %vm4281_vm10, %v1951_v51, %v1955_v52  ;;  %v3605_v3 = vor.u32 %v3778_v39, %v3604_v58  ;;  %v1960_v13 = vrot.slane %v1958_v24, 4 }
  0xad   : > { %3611 = vmatmul.msk.bf16.gmra.mxu3 %vm943_vm5, %v3601_v56  ;;  %v847_v48 = vor.u32 %v845_v40, %v844_v5  ;;  %784 = vst.msk [vmem:[#allocation2 + $0xd0] sm:$0xf] %vm244_vm1, %v628_v43  ;;  %v848_v49 = vrot.slane %v844_v5, 4  ;;  %v1991_v8 = vunpack.c.l.b16 %v1942_v61  ;;  %v1992_v33 = vunpack.c.l.b16 %v1956_v1  ;;  %v3782_v40 = vld [vmem:[#allocation2 + $0xbc] sm:$0xf0] }
  0xae   : > { %3631 = vmatmul.msk.bf16.vlgmr.msra.gmra.mxu0 %vm943_vm5, %v3618_v32  ;;  %v4491_v31 = vpop.f32.mrf.mxu3  ;;  %v1963_v11 = vrot.slane %v1961_v2, 5  ;;  %v1870_v32 = vld [vmem:[#allocation2 + $0x114] sm:$0x1]  ;;  %v3626_v12 = vor.u32 %v3782_v40, %v3625_v46  ;;  %v384_v46 = vld [vmem:[#allocation3 + $0x8] sm:$0x1]  ;;  %vm2493_vm1 = vcmask 1042432  }
  0xaf   : > { %v4496_v29 = vpop.f32.mrf.mxu1  ;;  %v909_v44 = vsel %vm4126_vm7, %v847_v48, %v908_v47  ;;  %v912_v63 = vsel %vm3981_vm4, %v848_v49, %v911_v37  ;;  %v1997_v18 = vpack.c.b16 %v1992_v33, %v1991_v8  ;;  %v1967_v21 = vshll.u32 %v1870_v32, 16  ;;  %vm4702_vm3 = vmor %vm2493_vm1, %vm2494_vm2 }
  0xb0   : > { %910 = vst [vmem:[#allocation2 + $0x118] sm:$0xf] %v909_v44  ;;  %v1964_v14 = vor.u32 %v1963_v11, %v1960_v13  ;;  %vm2359_vm4 = vcmask 64512  }
  0xb1   : > { %913 = vst [vmem:[#allocation2 + $0x11c] sm:$0x1] %v912_v63  ;;  %v1969_v54 = vrot.slane %v1967_v21, 5 }
  0xb2   : > { %3637 = vmatmul.msk.bf16.gmra.mxu1 %vm943_vm5, %v1996_v25  ;;  %v1965_v17 = vrot.slane %v1964_v14, 4 }
  0xb4   : > { %v1970_v42 = vsel %vm4281_vm10, %v1965_v17, %v1969_v54  ;;  %v3783_v57 = vld [vmem:[#allocation2 + $0xcc] sm:$0xf0] }
  0xb5   : > { %v1993_v47 = vunpack.c.l.b16 %v1970_v42  ;;  %v3630_v58 = vor.u32 %v3783_v57, %v3629_v53  ;;  %v419_v53 = vld [vmem:[#allocation3 + $0x14] sm:$0x1] }
  0xb6   : > { %v4506_v59 = vpop.f32.mrf.mxu3 }
  0xb7   : > { %v4508_v0 = vpop.f32.mrf.mxu1  ;;  %v1054_v7 = vpop.f32.mrf.mxu0  ;;  %v1871_v56 = vld [vmem:[#allocation2 + $0x118] sm:$0xf] }
  0xb8   : > { %v1872_v15 = vld [vmem:[#allocation2 + $0x11c] sm:$0x1]  ;;  %v1972_v16 = vshrl.u32 %v1871_v56, 16  ;;  %v1975_v4 = vshll.u32 %v1871_v56, 16  ;;  %v3779_v20 = vld [vmem:[#allocation2 + $0x114] sm:$0xf0] }
  0xb9   : > { %v1981_v10 = vshll.u32 %v1872_v15, 16  ;;  %v3609_v5 = vor.u32 %v3779_v20, %v3608_v30  ;;  %v3640_v56 = vld [vmem:[%s5117_s3 + $0x4] sm:$0xf]  ;;  %v385_v30 = vsel %vm4590_vm14, 0, %v384_v46 }
  0xba   : > { %v1974_v22 = vrot.slane %v1972_v16, 4  ;;  %v1977_v26 = vrot.slane %v1975_v4, 5  ;;  %v2374_v16 = vsel %vm2372_vm11, %v3640_v56, 0  ;;  %386 = vst [vmem:[#allocation3 + $0x8] sm:$0x1] %v385_v30  ;;  %v420_v56 = vsel %vm4599_vm15, 0, %v419_v53 }
  0xbb   : > { %v1983_v25 = vrot.slane %v1981_v10, 5  ;;  %2383 = vmatpush.bf16.msra.mxu2 %v2374_v16  ;;  %421 = vst [vmem:[#allocation3 + $0x14] sm:$0x1] %v420_v56  ;;  %v390_v53 = vld [vmem:[#allocation3 + $0x18] sm:$0x1] }
  0xbc   : > { %v1978_v55 = vor.u32 %v1977_v26, %v1974_v22 }
  0xbd   : > { %3612 = vmatmul.msk.bf16.gmra.mxu3 %vm943_vm5, %v3605_v3 }
  0xbe   : > { %3632 = vmatmul.msk.bf16.gmra.mxu0 %vm943_vm5, %v3622_v27  ;;  %v4518_v62 = vpop.f32.mrf.mxu3  ;;  %v1979_v36 = vrot.slane %v1978_v55, 4 }
  0xbf   : > { %v4516_v38 = vpop.f32.mrf.mxu1  ;;  %v4520_v28 = vpop.f32.mrf.mxu0 }
  0xc0   : > { %v1984_v23 = vsel %vm4281_vm10, %v1979_v36, %v1983_v25  ;;  %v4535_v51 = vpop.f32.mrf.mxu2  ;;  %v416_v36 = vld [vmem:[#allocation3 + $0xc] sm:$0x1] }
  0xc1   : > { %v1994_v37 = vunpack.c.l.b16 %v1984_v23  ;;  %v417_v42 = vsel %vm4599_vm15, 0, %v416_v36 }
  0xc2   : > { %3638 = vmatmul.msk.bf16.gmra.mxu1 %vm943_vm5, %v1997_v18  ;;  %418 = vst [vmem:[#allocation3 + $0xc] sm:$0x1] %v417_v42 }
  0xc3   : > { %v1998_v35 = vpack.c.b16 %v1994_v37, %v1993_v47 }
  0xc6   : > { %v4529_v43 = vpop.f32.mrf.mxu3 }
  0xc7   : > { %v4523_v41 = vpop.f32.mrf.mxu1  ;;  %5126 = vst [vmem:[#allocation7_spill] sm:$0xff] %v4529_v43 }
  0xc8   : > { %v4542_v39 = vpop.f32.mrf.mxu2 }
  0xcc   : > { %v1118_v48 = vpop.f32.mrf.mxu0 }
  0xcd   : > { %3613 = vmatmul.msk.bf16.gmra.mxu3 %vm943_vm5, %v3609_v5  ;;  %v1119_v49 = vadd.f32 %v1118_v48, %v1054_v7 }
  0xce   : > { %3633 = vmatmul.msk.bf16.gmra.mxu0 %vm943_vm5, %v3626_v12  ;;  %v4538_v52 = vpop.f32.mrf.mxu3 }
  0xcf   : > { %v4533_v50 = vpop.f32.mrf.mxu1  ;;  %5127 = vst [vmem:[#allocation8_spill] sm:$0xff] %v4538_v52 }
  0xd0   : > { %v4545_v24 = vpop.f32.mrf.mxu2 }
  0xd2   : > { %3639 = vmatmul.msk.bf16.gmra.mxu1 %vm943_vm5, %v1998_v35  ;;  %v387_v35 = vld [vmem:[#allocation3 + $0x10] sm:$0x1] }
  0xd4   : > { %v1120_v44 = vpop.f32.mrf.mxu0 }
  0xd5   : > { %v1121_v16 = vadd.f32 %v1120_v44, %v4520_v28 }
  0xd7   : > { %v4540_v63 = vpop.f32.mrf.mxu1 }
  0xd8   : > { %v4555_v33 = vpop.f32.mrf.mxu2 }
  0xde   : > { %3634 = vmatmul.msk.bf16.gmra.mxu0 %vm943_vm5, %v3630_v58  ;;  %v1307_v60 = vpop.f32.mrf.mxu3  ;;  %v388_v58 = vsel %vm4590_vm14, 0, %v387_v35 }
  0xdf   : > { %v1389_v61 = vpop.f32.mrf.mxu0  ;;  %v1471_v1 = vpop.f32.mrf.mxu1  ;;  %v1327_v37 = vadd.f32 %v1307_v60, %v1119_v49  ;;  %389 = vst [vmem:[#allocation3 + $0x10] sm:$0x1] %v388_v58  ;;  %v381_v60 = vld [vmem:[#allocation3] sm:$0x1]  ;;  %v422_v58 = vld [vmem:[#allocation3 + $0x1c] sm:$0x1] }
  0xe1   : > { %v1409_v48 = vadd.f32 %v1389_v61, %v1327_v37  ;;  %v413_v61 = vld [vmem:[#allocation3 + $0x4] sm:$0x1]  ;;  %v382_v37 = vsel %vm4590_vm14, 0, %v381_v60  ;;  %v4638_v60 = vstv %s3494_s29 }
  0xe2   : > { %v4566_v15 = vpop.f32.mrf.mxu2  ;;  %v414_v35 = vsel %vm4599_vm15, 0, %v413_v61  ;;  %383 = vst [vmem:[#allocation3] sm:$0x1] %v382_v37 }
  0xe3   : > { %v1491_v36 = vadd.f32 %v1471_v1, %v1409_v48  ;;  %415 = vst [vmem:[#allocation3 + $0x4] sm:$0x1] %v414_v35  ;;  %v1124_v48 = vadd.f32 %v4535_v51, %v4496_v29 }
  0xe6   : > { %v1309_v2 = vpop.f32.mrf.mxu3 }
  0xe7   : > { %v4547_v27 = vpop.f32.mrf.mxu1  ;;  %v4549_v7 = vpop.f32.mrf.mxu0  ;;  %v1328_v30 = vadd.f32 %v1309_v2, %v1121_v16  ;;  %v391_v2 = vsel %vm4590_vm14, 0, %v390_v53  ;;  %v4647_v53 = vstv %s3495_s30 }
  0xe8   : > { %392 = vst [vmem:[#allocation3 + $0x18] sm:$0x1] %v391_v2 }
  0xe9   : > { %v1410_v28 = vadd.f32 %v4549_v7, %v1328_v30  ;;  %v2224_v30 = vld [vmem:[%s5117_s3] sm:$0xf] }
  0xea   : > { %v4575_v21 = vpop.f32.mrf.mxu2  ;;  %v2438_v61 = vsel %vm2372_vm11, %v2224_v30, 0 }
  0xeb   : > { %v1492_v7 = vadd.f32 %v4547_v27, %v1410_v28  ;;  %2447 = vmatpush.bf16.msrb.mxu3 %v2438_v61  ;;  %v425_v28 = vld [vmem:[#allocation3 + $0x24] sm:$0x1] }
  0xef   : > { %v4553_v8 = vpop.f32.mrf.mxu1 }
  0xf0   : > { %v4551_v3 = vpop.f32.mrf.mxu3 }
  0xf4   : > { %v4557_v13 = vpop.f32.mrf.mxu0  ;;  %v1665_v55 = vpop.f32.mrf.mxu2 }
  0xf5   : > { %v1685_v42 = vadd.f32 %v1665_v55, %v1491_v36  ;;  %v423_v55 = vsel %vm4599_vm15, 0, %v422_v58 }
  0xf6   : > { %424 = vst [vmem:[#allocation3 + $0x1c] sm:$0x1] %v423_v55 }
  0xf7   : > { %v4561_v32 = vpop.f32.mrf.mxu1 }
  0xf8   : > { %v4559_v11 = vpop.f32.mrf.mxu3 }
  0xfc   : > { %v4569_v18 = vpop.f32.mrf.mxu0  ;;  %v1667_v12 = vpop.f32.mrf.mxu2 }
  0xff   : > { %v4573_v14 = vpop.f32.mrf.mxu1 }
 0x100   : > { %v4571_v4 = vpop.f32.mrf.mxu3 }
 0x106   : > { %v1670_v49 = vpop.f32.mrf.mxu2 }
 0x107   : > { %v4581_v26 = vpop.f32.mrf.mxu1 }
 0x108   : > { %v4577_v22 = vpop.f32.mrf.mxu0  ;;  %v4579_v10 = vpop.f32.mrf.mxu3 }
 0x10e   : > { %v4641_v37 = vpop.f32.mrf.mxu2 }
 0x10f   : > { %v4587_v25 = vpop.f32.mrf.mxu1 }
 0x110   : > { %v4583_v17 = vpop.f32.mrf.mxu0  ;;  %v4585_v54 = vpop.f32.mrf.mxu3 }
 0x117   : > { %v4611_v5 = vpop.f32.mrf.mxu1 }
 0x118   : > { %v4608_v23 = vpop.f32.mrf.mxu3 }
 0x11b   : > { %v4613_v47 = vpop.f32.mrf.mxu0 }
 0x11f   : > { %v2023_v46 = vpop.f32.mrf.mxu1 }
 0x120   : > { %v1747_v57 = vpop.f32.mrf.mxu3 }
 0x121   : > { %v1767_v44 = vadd.f32 %v1747_v57, %v1685_v42  ;;  %v1329_v57 = vadd.f32 %v4551_v3, %v1124_v48  ;;  %v1686_v42 = vadd.f32 %v1667_v12, %v1492_v7  ;;  %v393_v3 = vld [vmem:[#allocation3 + $0x20] sm:$0x1] }
 0x122   : > { %v394_v12 = vsel %vm4590_vm14, 0, %v393_v3 }
 0x123   : > { %v4620_v6 = vpop.f32.mrf.mxu0  ;;  %v1411_v51 = vadd.f32 %v4557_v13, %v1329_v57  ;;  %v3673_v13 = vld [vmem:[%s5117_s3 + $0x8] sm:$0xf]  ;;  %395 = vst [vmem:[#allocation3 + $0x20] sm:$0x1] %v394_v12  ;;  %v3678_v57 = vld [vmem:[%s5117_s3 + $0xc] sm:$0xf] }
 0x124   : > { %v2637_v30 = vsel %vm2372_vm11, %v3678_v57, 0  ;;  %v428_v12 = vld [vmem:[#allocation3 + $0x2c] sm:$0x1] }
 0x125   : > { %v1493_v48 = vadd.f32 %v4553_v8, %v1411_v51  ;;  %2646 = vmatpush.bf16.msrb.mxu1 %v2637_v30  ;;  %v4668_v51 = vpop.f32.mrf.mxu2 }
 0x127   : > { %v2025_v56 = vpop.f32.mrf.mxu1  ;;  %v1687_v61 = vadd.f32 %v1670_v49, %v1493_v48  ;;  %v429_v49 = vsel %vm4599_vm15, 0, %v428_v12  ;;  %v2171_v48 = vld [vmem:[#allocation3 + $0xc] sm:$0x1]  ;;  %v399_v12 = vld [vmem:[#allocation3 + $0x30] sm:$0x1] }
 0x128   : > { %v1749_v1 = vpop.f32.mrf.mxu3  ;;  %430 = vst [vmem:[#allocation3 + $0x2c] sm:$0x1] %v429_v49 }
 0x129   : > { %v1768_v35 = vadd.f32 %v1749_v1, %v1686_v42  ;;  %v2555_v1 = vsel %vm2372_vm11, %v3673_v13, 0 }
 0x12a   : > { %2564 = vmatpush.bf16.msrb.mxu0 %v2555_v1 }
 0x12b   : > { %v1829_v16 = vpop.f32.mrf.mxu0 }
 0x12c   : > { %v1849_v36 = vadd.f32 %v1829_v16, %v1767_v44  ;;  %v1126_v44 = vadd.f32 %v4542_v39, %v4508_v0 }
 0x12e   : > { %v2043_v29 = vadd.f32 %v2023_v46, %v1849_v36  ;;  %v426_v46 = vsel %vm4599_vm15, 0, %v425_v28  ;;  %v1330_v55 = vadd.f32 %v4559_v11, %v1126_v44  ;;  %v1129_v36 = vadd.f32 %v4545_v24, %v4516_v38  ;;  %v396_v44 = vld [vmem:[#allocation3 + $0x28] sm:$0x1] }
 0x12f   : > { %v2028_v39 = vpop.f32.mrf.mxu1  ;;  %427 = vst [vmem:[#allocation3 + $0x24] sm:$0x1] %v426_v46  ;;  %v397_v24 = vsel %vm4590_vm14, 0, %v396_v44 }
 0x130   : > { %v2052_v27 = vadd.f32 %v4638_v60, %v2043_v29  ;;  %v1752_v58 = vpop.f32.mrf.mxu3  ;;  %v2216_v29 = vld [vmem:[#allocation3] sm:$0xf]  ;;  %v1331_v8 = vadd.f32 %v4571_v4, %v1129_v36  ;;  %398 = vst [vmem:[#allocation3 + $0x28] sm:$0x1] %v397_v24 }
 0x131   : > { %v1769_v28 = vadd.f32 %v1752_v58, %v1687_v61  ;;  %v2237_v46 = vshll.u32 %v2216_v29, 16 }
 0x132   : > { %v2060_v2 = vmax.f32 %v2052_v27, 0.0  ;;  %v1412_v27 = vadd.f32 %v4569_v18, %v1330_v55  ;;  %v1413_v1 = vadd.f32 %v4577_v22, %v1331_v8  ;;  %v2469_v22 = vld [vmem:[#allocation3] sm:$0xe] }
 0x133   : > { %v1831_v0 = vpop.f32.mrf.mxu0  ;;  %v3665_v44 = vrot.slane %v2469_v22, 9 }
 0x134   : > { %v2069_v16 = vadd.f32 %v4647_v53, %v2060_v2  ;;  %v1850_v7 = vadd.f32 %v1831_v0, %v1768_v35  ;;  %v1131_v2 = vadd.f32 %v4555_v33, %v4523_v41  ;;  %v1494_v58 = vadd.f32 %v4561_v32, %v1412_v27  ;;  %v2168_v0 = vld [vmem:[#allocation3 + $0x8] sm:$0xf] }
 0x135   : > { %v1134_v41 = vadd.f32 %v4566_v15, %v4533_v50 }
 0x136   : > { %v2077_v11 = vpack.c.bf16 %v2069_v16, %v2069_v16  ;;  %v2044_v42 = vadd.f32 %v2025_v56, %v1850_v7  ;;  %v2234_v56 = vshrl.u32 %v2216_v29, 16  ;;  %v1688_v33 = vadd.f32 %v4641_v37, %v1494_v58 }
 0x137   : > { %v2030_v32 = vpop.f32.mrf.mxu1 }
 0x138   : > { %v2086_v35 = vshrl.u32 %v2077_v11, 16  ;;  %v2053_v3 = vadd.f32 %v4638_v60, %v2044_v42  ;;  %v1754_v38 = vpop.f32.mrf.mxu3  ;;  %v2089_v13 = vshll.u32 %v2077_v11, 16  ;;  %v2236_v61 = vrot.slane %v2234_v56, 4  ;;  %v431_v56 = vld [vmem:[#allocation3 + $0x34] sm:$0x1] }
 0x139   : > { %v2239_v11 = vrot.slane %v2237_v46, 5  ;;  %v1770_v37 = vadd.f32 %v1754_v38, %v1688_v33  ;;  %v3647_v33 = vld [vmem:[#allocation3] sm:$0xf] }
 0x13a   : > { %v2088_v18 = vrot.slane %v2086_v35, 7  ;;  %v2061_v4 = vmax.f32 %v2053_v3, 0.0  ;;  %v2225_v35 = vld [vmem:[#allocation3 + $0x4] sm:$0x1]  ;;  %v1495_v3 = vadd.f32 %v4573_v14, %v1413_v1 }
 0x13b   : > { %v1834_v16 = vpop.f32.mrf.mxu0  ;;  %v2498_v49 = vrot.slane %v2225_v35, 5  ;;  %v2240_v46 = vor.u32 %v2239_v11, %v2236_v61  ;;  %v2243_v14 = vshll.u32 %v2225_v35, 16 }
 0x13c   : > { %v2091_v7 = vor.u32 %v2089_v13, %v2088_v18  ;;  %v2092_v57 = vrot.slane %v2088_v18, 4  ;;  %v2070_v36 = vadd.f32 %v4647_v53, %v2061_v4  ;;  %v1851_v30 = vadd.f32 %v1834_v16, %v1769_v28  ;;  %v1677_v18 = vpop.f32.mrf.mxu2  ;;  %v2177_v16 = vld [vmem:[#allocation3 + $0x14] sm:$0x1] }
 0x13d   : > { %v1332_v28 = vadd.f32 %v4579_v10, %v1131_v2  ;;  %v1136_v10 = vadd.f32 %v4575_v21, %v4540_v63  ;;  %v1689_v1 = vadd.f32 %v4668_v51, %v1495_v3  ;;  %v432_v21 = vsel %vm4599_vm15, 0, %v431_v56 }
 0x13e   : > { %v2169_v42 = vsel %vm4681_vm0, %v2091_v7, %v2168_v0  ;;  %v2172_v29 = vsel %vm4590_vm14, %v2092_v57, %v2171_v48  ;;  %v2078_v27 = vpack.c.bf16 %v2070_v36, %v2070_v36  ;;  %v2045_v8 = vadd.f32 %v2028_v39, %v1851_v30  ;;  %v2174_v48 = vld [vmem:[#allocation3 + $0x10] sm:$0xf]  ;;  %433 = vst [vmem:[#allocation3 + $0x34] sm:$0x1] %v432_v21 }
 0x13f   : > { %2170 = vst [vmem:[#allocation3 + $0x8] sm:$0xf] %v2169_v42  ;;  %v400_v39 = vsel %vm4590_vm14, 0, %v399_v12  ;;  %v1414_v58 = vadd.f32 %v4583_v17, %v1332_v28  ;;  %v1333_v0 = vadd.f32 %v4585_v54, %v1134_v41  ;;  %v2499_v17 = vsel %vm4702_vm3, %v3665_v44, %v2498_v49  ;;  %v2033_v3 = vpop.f32.mrf.mxu1 }
 0x140   : > { %2173 = vst [vmem:[#allocation3 + $0xc] sm:$0x1] %v2172_v29  ;;  %v2094_v50 = vshrl.u32 %v2078_v27, 16  ;;  %v2054_v15 = vadd.f32 %v4638_v60, %v2045_v8  ;;  %v1757_v24 = vpop.f32.mrf.mxu3  ;;  %v2097_v4 = vshll.u32 %v2078_v27, 16  ;;  %v4714_v51 = vrot.slane %v2240_v46, 4 }
 0x141   : > { %401 = vst [vmem:[#allocation3 + $0x30] sm:$0x1] %v400_v39  ;;  %v4716_v54 = vrot.slane %v2243_v14, 5  ;;  %v1496_v27 = vadd.f32 %v4581_v26, %v1414_v58  ;;  %v4724_v8 = vadd.f32 %v4608_v23, %v1136_v10  ;;  %v1771_v44 = vadd.f32 %v1757_v24, %v1689_v1  ;;  %v2180_v39 = vld [vmem:[#allocation3 + $0x18] sm:$0xf] }
 0x142   : > { %v2096_v13 = vrot.slane %v2094_v50, 7  ;;  %v2062_v2 = vmax.f32 %v2054_v15, 0.0  ;;  %v2530_v26 = vunpack.c.l.b16 %v2499_v17 }
 0x143   : > { %v1836_v63 = vpop.f32.mrf.mxu0  ;;  %v1690_v49 = vadd.f32 %v1677_v18, %v1496_v27  ;;  %v2246_v46 = vsel %vm4281_vm10, %v4714_v51, %v4716_v54  ;;  %v2183_v18 = vld [vmem:[#allocation3 + $0x1c] sm:$0x1] }
 0x144   : > { %v2099_v7 = vor.u32 %v2097_v4, %v2096_v13  ;;  %v2100_v57 = vrot.slane %v2096_v13, 4  ;;  %v2071_v36 = vadd.f32 %v4647_v53, %v2062_v2  ;;  %v1852_v30 = vadd.f32 %v1836_v63, %v1770_v37 }
 0x146   : > { %v2175_v41 = vsel %vm4681_vm0, %v2099_v7, %v2174_v48  ;;  %v2178_v22 = vsel %vm4590_vm14, %v2100_v57, %v2177_v16  ;;  %v2079_v61 = vpack.c.bf16 %v2071_v36, %v2071_v36  ;;  %v2046_v11 = vadd.f32 %v2030_v32, %v1852_v30  ;;  %v3784_v42 = vld [vmem:[#allocation3 + $0x4] sm:$0xf0]  ;;  %v1680_v48 = vpop.f32.mrf.mxu2  ;;  %v402_v57 = vld [vmem:[#allocation3 + $0x38] sm:$0x1]  ;;  %v434_v36 = vld [vmem:[#allocation3 + $0x3c] sm:$0x1] }
 0x147   : > { %v2470_v29 = vld [vmem:[#allocation3 + $0x8] sm:$0xe]  ;;  %2176 = vst [vmem:[#allocation3 + $0x10] sm:$0xf] %v2175_v41  ;;  %v3648_v35 = vor.u32 %v3784_v42, %v3647_v33  ;;  %v2226_v28 = vld [vmem:[#allocation3 + $0xc] sm:$0x1]  ;;  %v1415_v32 = vadd.f32 %v4613_v47, %v1333_v0 }
 0x148   : > { %v3666_v50 = vrot.slane %v2470_v29, 9  ;;  %2179 = vst [vmem:[#allocation3 + $0x14] sm:$0x1] %v2178_v22  ;;  %v2102_v15 = vshrl.u32 %v2079_v61, 16  ;;  %v2055_v37 = vadd.f32 %v4638_v60, %v2046_v11  ;;  %v2502_v12 = vrot.slane %v2226_v28, 5  ;;  %v1759_v23 = vpop.f32.mrf.mxu3 }
 0x149   : > { %3661 = vmatmul.msk.bf16.vlgmr.msrb.gmra.mxu3 %vm2359_vm4, %v3648_v35  ;;  %v2217_v56 = vld [vmem:[#allocation3 + $0x8] sm:$0xf]  ;;  %v2105_v10 = vshll.u32 %v2079_v61, 16  ;;  %v3699_v47 = vld [vmem:[%s5117_s3 + $0x10] sm:$0xf]  ;;  %v2257_v0 = vshll.u32 %v2226_v28, 16 }
 0x14a   : > { %v2104_v14 = vrot.slane %v2102_v15, 7  ;;  %v2063_v13 = vmax.f32 %v2055_v37, 0.0  ;;  %v2503_v24 = vsel %vm4702_vm3, %v3666_v50, %v2502_v12  ;;  %v2248_v58 = vshrl.u32 %v2217_v56, 16  ;;  %v3681_v11 = vld [vmem:[#allocation3 + $0x8] sm:$0xf] }
 0x14b   : > { %v1839_v4 = vpop.f32.mrf.mxu0  ;;  %v2531_v2 = vunpack.c.l.b16 %v2503_v24  ;;  %v2251_v1 = vshll.u32 %v2217_v56, 16  ;;  %v2831_v51 = vsel %vm2372_vm11, %v3699_v47, 0  ;;  %v403_v35 = vsel %vm4590_vm14, 0, %v402_v57  ;;  %v2186_v56 = vld [vmem:[#allocation3 + $0x20] sm:$0xf] }
 0x14c   : > { %v2107_v16 = vor.u32 %v2105_v10, %v2104_v14  ;;  %v2108_v63 = vrot.slane %v2104_v14, 4  ;;  %v2072_v21 = vadd.f32 %v4647_v53, %v2063_v13  ;;  %v1853_v7 = vadd.f32 %v1839_v4, %v1771_v44  ;;  %2840 = vmatpush.bf16.msrb.mxu2 %v2831_v51  ;;  %v2189_v14 = vld [vmem:[#allocation3 + $0x24] sm:$0x1]  ;;  %v2035_v10 = vpop.f32.mrf.mxu1  ;;  %404 = vst [vmem:[#allocation3 + $0x38] sm:$0x1] %v403_v35 }
 0x14d   : > { %v2538_v30 = vpack.c.b16 %v2531_v2, %v2530_v26  ;;  %v2250_v33 = vrot.slane %v2248_v58, 4  ;;  %v2253_v17 = vrot.slane %v2251_v1, 5  ;;  %v435_v28 = vsel %vm4599_vm15, 0, %v434_v36  ;;  %v405_v24 = vld [vmem:[#allocation3 + $0x40] sm:$0x1] }
 0x14e   : > { %v2181_v54 = vsel %vm4681_vm0, %v2107_v16, %v2180_v39  ;;  %v2184_v41 = vsel %vm4590_vm14, %v2108_v63, %v2183_v18  ;;  %v2080_v22 = vpack.c.bf16 %v2072_v21, %v2072_v21  ;;  %v2047_v61 = vadd.f32 %v2033_v3, %v1853_v7  ;;  %v3788_v42 = vld [vmem:[#allocation3 + $0xc] sm:$0xf0]  ;;  %436 = vst [vmem:[#allocation3 + $0x3c] sm:$0x1] %v435_v28 }
 0x14f   : > { %2182 = vst [vmem:[#allocation3 + $0x18] sm:$0xf] %v2181_v54  ;;  %3674 = vmatmul.msk.bf16.vlgmr.msrb.gmra.mxu0 %vm2359_vm4, %v2538_v30  ;;  %v3682_v29 = vor.u32 %v3788_v42, %v3681_v11  ;;  %v2254_v27 = vor.u32 %v2253_v17, %v2250_v33  ;;  %v4749_v50 = vld [vmem:[#allocation3 + $0x10] sm:$0xe]  ;;  %v1772_v37 = vadd.f32 %v1759_v23, %v1690_v49  ;;  %v2259_v44 = vrot.slane %v2257_v0, 5 }
 0x150   : > { %2185 = vst [vmem:[#allocation3 + $0x1c] sm:$0x1] %v2184_v41  ;;  %v2110_v15 = vshrl.u32 %v2080_v22, 16  ;;  %v2056_v3 = vadd.f32 %v4638_v60, %v2047_v61  ;;  %v4752_v12 = vld [vmem:[#allocation3 + $0x14] sm:$0x1]  ;;  %v1497_v39 = vadd.f32 %v4587_v25, %v1415_v32  ;;  %v2113_v26 = vshll.u32 %v2080_v22, 16  ;;  %v1762_v1 = vpop.f32.mrf.mxu3 }
 0x151   : > { %3695 = vmatmul.msk.bf16.vlgmr.msrb.gmra.mxu1 %vm2359_vm4, %v3682_v29  ;;  %v2255_v13 = vrot.slane %v2254_v27, 4  ;;  %v3667_v4 = vrot.slane %v4749_v50, 9  ;;  %v406_v49 = vsel %vm4590_vm14, 0, %v405_v24  ;;  %v1416_v25 = vadd.f32 %v4620_v6, %v4724_v8  ;;  %v437_v0 = vld [vmem:[#allocation3 + $0x44] sm:$0x1] }
 0x152   : > { %v2112_v47 = vrot.slane %v2110_v15, 7  ;;  %v2064_v18 = vmax.f32 %v2056_v3, 0.0  ;;  %v1691_v32 = vadd.f32 %v1680_v48, %v1497_v39  ;;  %v2347_v58 = vunpack.c.l.b16 %v2246_v46  ;;  %407 = vst [vmem:[#allocation3 + $0x40] sm:$0x1] %v406_v49  ;;  %v2218_v16 = vld [vmem:[#allocation3 + $0x10] sm:$0xf]  ;;  %v1682_v48 = vpop.f32.mrf.mxu2 }
 0x153   : > { %v1841_v23 = vpop.f32.mrf.mxu0  ;;  %v2260_v2 = vsel %vm4281_vm10, %v2255_v13, %v2259_v44  ;;  %v2506_v30 = vrot.slane %v4752_v12, 5  ;;  %v438_v6 = vsel %vm4599_vm15, 0, %v437_v0  ;;  %v2262_v8 = vshrl.u32 %v2218_v16, 16  ;;  %v3651_v54 = vld [vmem:[#allocation3 + $0x10] sm:$0xf] }
 0x154   : > { %v2115_v63 = vor.u32 %v2113_v26, %v2112_v47  ;;  %v2116_v21 = vrot.slane %v2112_v47, 4  ;;  %v2073_v7 = vadd.f32 %v4647_v53, %v2064_v18  ;;  %v1854_v57 = vadd.f32 %v1841_v23, %v1772_v37  ;;  %v2192_v3 = vld [vmem:[#allocation3 + $0x28] sm:$0xf]  ;;  %439 = vst [vmem:[#allocation3 + $0x44] sm:$0x1] %v438_v6  ;;  %v2038_v47 = vpop.f32.mrf.mxu1 }
 0x155   : > { %v2348_v36 = vunpack.c.l.b16 %v2260_v2  ;;  %v1498_v61 = vadd.f32 %v4611_v5, %v1416_v25  ;;  %v1773_v50 = vadd.f32 %v1762_v1, %v1691_v32  ;;  %v2264_v5 = vrot.slane %v2262_v8, 4  ;;  %v2195_v13 = vld [vmem:[#allocation3 + $0x2c] sm:$0x1] }
 0x156   : > { %v2187_v46 = vsel %vm4681_vm0, %v2115_v63, %v2186_v56  ;;  %v2190_v33 = vsel %vm4590_vm14, %v2116_v21, %v2189_v14  ;;  %v2081_v17 = vpack.c.bf16 %v2073_v7, %v2073_v7  ;;  %v2048_v51 = vadd.f32 %v2035_v10, %v1854_v57  ;;  %v3785_v41 = vld [vmem:[#allocation3 + $0x14] sm:$0xf0] }
 0x157   : > { %v2472_v22 = vld [vmem:[#allocation3 + $0x18] sm:$0xe]  ;;  %2188 = vst [vmem:[#allocation3 + $0x20] sm:$0xf] %v2187_v46  ;;  %v2355_v11 = vpack.c.b16 %v2348_v36, %v2347_v58  ;;  %v3652_v42 = vor.u32 %v3785_v41, %v3651_v54  ;;  %v4772_v29 = vld [vmem:[#allocation3 + $0x1c] sm:$0x1]  ;;  %v1692_v15 = vadd.f32 %v1682_v48, %v1498_v61  ;;  %v2507_v14 = vsel %vm4702_vm3, %v3667_v4, %v2506_v30 }
 0x158   : > { %v3668_v27 = vrot.slane %v2472_v22, 9  ;;  %2191 = vst [vmem:[#allocation3 + $0x24] sm:$0x1] %v2190_v33  ;;  %v2118_v35 = vshrl.u32 %v2081_v17, 16  ;;  %v2057_v28 = vadd.f32 %v4638_v60, %v2048_v51  ;;  %v2510_v37 = vrot.slane %v4772_v29, 5  ;;  %v1764_v63 = vpop.f32.mrf.mxu3 }
 0x159   : > { %3641 = vmatmul.msk.bf16.vlgmr.msra.gmra.mxu2 %vm2359_vm4, %v2355_v11  ;;  %3662 = vmatmul.msk.bf16.gmra.mxu3 %vm2359_vm4, %v3652_v42  ;;  %v2265_v44 = vshll.u32 %v2218_v16, 16  ;;  %v2121_v26 = vshll.u32 %v2081_v17, 16  ;;  %v2219_v10 = vld [vmem:[#allocation3 + $0x18] sm:$0xf]  ;;  %v2271_v25 = vshll.u32 %v4752_v12, 16  ;;  %v2532_v0 = vunpack.c.l.b16 %v2507_v14 }
 0x15a   : > { %v2120_v39 = vrot.slane %v2118_v35, 7  ;;  %v2065_v56 = vmax.f32 %v2057_v28, 0.0  ;;  %v2511_v18 = vsel %vm4702_vm3, %v3668_v27, %v2510_v37  ;;  %v2276_v32 = vshrl.u32 %v2219_v10, 16  ;;  %v3685_v12 = vld [vmem:[#allocation3 + $0x18] sm:$0xf] }
 0x15b   : > { %v1844_v24 = vpop.f32.mrf.mxu0  ;;  %v2267_v49 = vrot.slane %v2265_v44, 5  ;;  %v2533_v16 = vunpack.c.l.b16 %v2511_v18  ;;  %v2279_v33 = vshll.u32 %v2219_v10, 16  ;;  %v1774_v41 = vadd.f32 %v1764_v63, %v1692_v15  ;;  %v2201_v15 = vld [vmem:[#allocation3 + $0x34] sm:$0x1] }
 0x15c   : > { %v2123_v23 = vor.u32 %v2121_v26, %v2120_v39  ;;  %v2124_v2 = vrot.slane %v2120_v39, 4  ;;  %v2074_v58 = vadd.f32 %v4647_v53, %v2065_v56  ;;  %v1855_v1 = vadd.f32 %v1844_v24, %v1773_v50  ;;  %v2198_v50 = vld [vmem:[#allocation3 + $0x30] sm:$0xf] }
 0x15d   : > { %v2268_v4 = vor.u32 %v2267_v49, %v2264_v5  ;;  %v2278_v21 = vrot.slane %v2276_v32, 4  ;;  %v2539_v8 = vpack.c.b16 %v2533_v16, %v2532_v0  ;;  %v2273_v22 = vrot.slane %v2271_v25, 5 }
 0x15e   : > { %v2193_v7 = vsel %vm4681_vm0, %v2123_v23, %v2192_v3  ;;  %v2196_v57 = vsel %vm4590_vm14, %v2124_v2, %v2195_v13  ;;  %v2082_v36 = vpack.c.bf16 %v2074_v58, %v2074_v58  ;;  %v2049_v30 = vadd.f32 %v2038_v47, %v1855_v1  ;;  %v3789_v6 = vld [vmem:[#allocation3 + $0x1c] sm:$0xf0]  ;;  %v2040_v47 = vpop.f32.mrf.mxu1 }
 0x15f   : > { %2194 = vst [vmem:[#allocation3 + $0x28] sm:$0xf] %v2193_v7  ;;  %v3686_v48 = vor.u32 %v3789_v6, %v3685_v12  ;;  %v2269_v46 = vrot.slane %v2268_v4, 4  ;;  %v2473_v17 = vld [vmem:[#allocation3 + $0x20] sm:$0xe]  ;;  %3675 = vmatmul.msk.bf16.gmra.mxu0 %vm2359_vm4, %v2539_v8  ;;  %v2281_v42 = vrot.slane %v2279_v33, 5 }
 0x160   : > { %2197 = vst [vmem:[#allocation3 + $0x2c] sm:$0x1] %v2196_v57  ;;  %v2126_v51 = vshrl.u32 %v2082_v36, 16  ;;  %v2058_v54 = vadd.f32 %v4638_v60, %v2049_v30  ;;  %v4789_v61 = vld [vmem:[#allocation3 + $0x24] sm:$0x1]  ;;  %v2129_v11 = vshll.u32 %v2082_v36, 16 }
 0x161   : > { %3696 = vmatmul.msk.bf16.gmra.mxu1 %vm2359_vm4, %v3686_v48  ;;  %v2285_v27 = vshll.u32 %v4772_v29, 16  ;;  %v2220_v35 = vld [vmem:[#allocation3 + $0x20] sm:$0xf]  ;;  %v2274_v37 = vsel %vm4281_vm10, %v2269_v46, %v2273_v22  ;;  %v3669_v5 = vrot.slane %v2473_v17, 9  ;;  %v2282_v39 = vor.u32 %v2281_v42, %v2278_v21  ;;  %v2204_v42 = vld [vmem:[#allocation3 + $0x38] sm:$0xf] }
 0x162   : > { %v2128_v28 = vrot.slane %v2126_v51, 7  ;;  %v2066_v3 = vmax.f32 %v2058_v54, 0.0  ;;  %v2514_v26 = vrot.slane %v4789_v61, 5  ;;  %v2290_v56 = vshrl.u32 %v2220_v35, 16  ;;  %v3655_v0 = vld [vmem:[#allocation3 + $0x20] sm:$0xf] }
 0x163   : > { %v1846_v44 = vpop.f32.mrf.mxu0  ;;  %v2293_v14 = vshll.u32 %v2220_v35, 16  ;;  %v2283_v18 = vrot.slane %v2282_v39, 4  ;;  %v2287_v49 = vrot.slane %v2285_v27, 5  ;;  %v2349_v21 = vunpack.c.l.b16 %v2274_v37  ;;  %v2207_v27 = vld [vmem:[#allocation3 + $0x3c] sm:$0x1] }
 0x164   : > { %v2131_v10 = vor.u32 %v2129_v11, %v2128_v28  ;;  %v2132_v13 = vrot.slane %v2128_v28, 4  ;;  %v2075_v24 = vadd.f32 %v4647_v53, %v2066_v3  ;;  %v1856_v29 = vadd.f32 %v1846_v44, %v1774_v41  ;;  %v3712_v44 = vld [vmem:[%s5117_s3 + $0x14] sm:$0xf] }
 0x165   : > { %v2292_v25 = vrot.slane %v2290_v56, 4  ;;  %v2295_v32 = vrot.slane %v2293_v14, 5  ;;  %v2288_v4 = vsel %vm4281_vm10, %v2283_v18, %v2287_v49  ;;  %v2515_v8 = vsel %vm4702_vm3, %v3669_v5, %v2514_v26 }
 0x166   : > { %v2199_v23 = vsel %vm4681_vm0, %v2131_v10, %v2198_v50  ;;  %v2202_v2 = vsel %vm4590_vm14, %v2132_v13, %v2201_v15  ;;  %v2083_v58 = vpack.c.bf16 %v2075_v24, %v2075_v24  ;;  %v2050_v1 = vadd.f32 %v2040_v47, %v1856_v29  ;;  %v3786_v16 = vld [vmem:[#allocation3 + $0x24] sm:$0xf0] }
 0x167   : > { %v2474_v63 = vld [vmem:[#allocation3 + $0x28] sm:$0xe]  ;;  %2200 = vst [vmem:[#allocation3 + $0x30] sm:$0xf] %v2199_v23  ;;  %v3656_v7 = vor.u32 %v3786_v16, %v3655_v0  ;;  %v2230_v57 = vld [vmem:[#allocation3 + $0x2c] sm:$0x1]  ;;  %v2350_v6 = vunpack.c.l.b16 %v2288_v4  ;;  %v2296_v17 = vor.u32 %v2295_v32, %v2292_v25  ;;  %v2534_v35 = vunpack.c.l.b16 %v2515_v8 }
 0x168   : > { %v3670_v36 = vrot.slane %v2474_v63, 9  ;;  %2203 = vst [vmem:[#allocation3 + $0x34] sm:$0x1] %v2202_v2  ;;  %v2134_v30 = vshrl.u32 %v2083_v58, 16  ;;  %v2059_v12 = vadd.f32 %v4638_v60, %v2050_v1  ;;  %v2221_v48 = vld [vmem:[#allocation3 + $0x28] sm:$0xf] }
 0x169   : > { %v2137_v46 = vshll.u32 %v2083_v58, 16  ;;  %3663 = vmatmul.msk.bf16.gmra.mxu3 %vm2359_vm4, %v3656_v7  ;;  %v2518_v33 = vrot.slane %v2230_v57, 5  ;;  %v2304_v51 = vshrl.u32 %v2221_v48, 16  ;;  %v2356_v22 = vpack.c.b16 %v2350_v6, %v2349_v21  ;;  %v3689_v24 = vld [vmem:[#allocation3 + $0x28] sm:$0xf] }
 0x16a   : > { %v2136_v54 = vrot.slane %v2134_v30, 7  ;;  %v2067_v41 = vmax.f32 %v2059_v12, 0.0  ;;  %v2307_v11 = vshll.u32 %v2221_v48, 16  ;;  %v2299_v28 = vshll.u32 %v4789_v61, 16  ;;  %v2210_v7 = vld [vmem:[#allocation3 + $0x40] sm:$0xf] }
 0x16b   : > { %v2519_v60 = vsel %vm4702_vm3, %v3670_v36, %v2518_v33  ;;  %v2306_v50 = vrot.slane %v2304_v51, 4  ;;  %3642 = vmatmul.msk.bf16.gmra.mxu2 %vm2359_vm4, %v2356_v22  ;;  %v2297_v39 = vrot.slane %v2296_v17, 4  ;;  %v2313_v56 = vshll.u32 %v2230_v57, 16  ;;  %v2213_v57 = vld [vmem:[#allocation3 + $0x44] sm:$0x1] }
 0x16c   : > { %v2139_v3 = vor.u32 %v2137_v46, %v2136_v54  ;;  %v2140_v37 = vrot.slane %v2136_v54, 4  ;;  %v2076_v5 = vadd.f32 %v4647_v53, %v2067_v41  ;;  %v2535_v15 = vunpack.c.l.b16 %v2519_v60  ;;  %v4829_v12 = vld [vmem:[#allocation3 + $0x14] sm:$0x1]  ;;  %v4832_v33 = vld [vmem:[#allocation3 + $0x8] sm:$0xe] }
 0x16d   : > { %v2309_v26 = vrot.slane %v2307_v11, 5  ;;  %v2953_v14 = vsel %vm2372_vm11, %v3712_v44, 0  ;;  %v2301_v18 = vrot.slane %v2299_v28, 5  ;;  %v2315_v58 = vrot.slane %v2313_v56, 5  ;;  %v2871_v17 = vld [vmem:[#allocation3 + $0x10] sm:$0xe] }
 0x16e   : > { %v2205_v61 = vsel %vm4681_vm0, %v2139_v3, %v2204_v42  ;;  %v2208_v10 = vsel %vm4590_vm14, %v2140_v37, %v2207_v27  ;;  %v2084_v13 = vpack.c.bf16 %v2076_v5, %v2076_v5  ;;  %v2540_v53 = vpack.c.b16 %v2535_v15, %v2534_v35  ;;  %v3790_v29 = vld [vmem:[#allocation3 + $0x2c] sm:$0xf0]  ;;  %2962 = vmatpush.bf16.msra.mxu3 %v2953_v14  ;;  %v3717_v51 = vld [vmem:[%s5117_s3 + $0x18] sm:$0xf]  ;;  %v3738_v11 = vld [vmem:[%s5117_s3 + $0x1c] sm:$0xf] }
 0x16f   : > { %2206 = vst [vmem:[#allocation3 + $0x38] sm:$0xf] %v2205_v61  ;;  %v3690_v47 = vor.u32 %v3790_v29, %v3689_v24  ;;  %v2310_v49 = vor.u32 %v2309_v26, %v2306_v50  ;;  %v2475_v32 = vld [vmem:[#allocation3 + $0x30] sm:$0xe]  ;;  %v2302_v23 = vsel %vm4281_vm10, %v2297_v39, %v2301_v18  ;;  %v4825_v1 = vld [vmem:[#allocation3 + $0x34] sm:$0x1] }
 0x170   : > { %2209 = vst [vmem:[#allocation3 + $0x3c] sm:$0x1] %v2208_v10  ;;  %v2142_v25 = vshrl.u32 %v2084_v13, 16  ;;  %3676 = vmatmul.msk.bf16.gmra.mxu0 %vm2359_vm4, %v2540_v53  ;;  %v2222_v0 = vld [vmem:[#allocation3 + $0x30] sm:$0xf]  ;;  %v2145_v63 = vshll.u32 %v2084_v13, 16  ;;  %v2351_v54 = vunpack.c.l.b16 %v2302_v23 }
 0x171   : > { %3697 = vmatmul.msk.bf16.gmra.mxu1 %vm2359_vm4, %v3690_v47  ;;  %v2311_v2 = vrot.slane %v2310_v49, 4  ;;  %v2318_v4 = vshrl.u32 %v2222_v0, 16  ;;  %v2321_v21 = vshll.u32 %v2222_v0, 16  ;;  %v3671_v30 = vrot.slane %v2475_v32, 9  ;;  %v3659_v41 = vld [vmem:[#allocation3 + $0x30] sm:$0xf] }
 0x172   : > { %v2144_v16 = vrot.slane %v2142_v25, 7  ;;  %v2522_v46 = vrot.slane %v4825_v1, 5  ;;  %v2327_v22 = vshll.u32 %v4825_v1, 16  ;;  %v4845_v15 = vld [vmem:[#allocation3 + $0xc] sm:$0x1]  ;;  %v3705_v44 = vrot.slane %v2871_v17, 9 }
 0x173   : > { %v2316_v36 = vsel %vm4281_vm10, %v2311_v2, %v2315_v58  ;;  %v2320_v28 = vrot.slane %v2318_v4, 4  ;;  %v2323_v50 = vrot.slane %v2321_v21, 5  ;;  %v2900_v14 = vrot.slane %v4829_v12, 5  ;;  %v3075_v24 = vld [vmem:[#allocation3 + $0x10] sm:$0xf] }
 0x174   : > { %v2147_v6 = vor.u32 %v2145_v63, %v2144_v16  ;;  %v2148_v8 = vrot.slane %v2144_v16, 4  ;;  %v2352_v48 = vunpack.c.l.b16 %v2316_v36  ;;  %v2523_v55 = vsel %vm4702_vm3, %v3671_v30, %v2522_v46  ;;  %v3077_v25 = vld [vmem:[#allocation3 + $0x18] sm:$0xf]  ;;  %v2676_v4 = vld [vmem:[#allocation3 + $0x8] sm:$0xf] }
 0x175   : > { %v3704_v13 = vrot.slane %v4832_v33, 9  ;;  %v3036_v53 = vsel %vm2372_vm11, %v3717_v51, 0  ;;  %v2324_v47 = vor.u32 %v2323_v50, %v2320_v28  ;;  %v3230_v49 = vsel %vm2372_vm11, %v3738_v11, 0  ;;  %v4860_v36 = vld [vmem:[#allocation3 + $0x1c] sm:$0x1] }
 0x176   : > { %v2211_v42 = vsel %vm4681_vm0, %v2147_v6, %v2210_v7  ;;  %v2214_v27 = vsel %vm4590_vm14, %v2148_v8, %v2213_v57  ;;  %v3787_v60 = vld [vmem:[#allocation3 + $0x34] sm:$0xf0]  ;;  %v2357_v39 = vpack.c.b16 %v2352_v48, %v2351_v54  ;;  %3045 = vmatpush.bf16.msra.mxu0 %v3036_v53  ;;  %v2536_v32 = vunpack.c.l.b16 %v2523_v55  ;;  %3239 = vmatpush.bf16.msra.mxu1 %v3230_v49  ;;  %v3751_v55 = vld [vmem:[%s5117_s3 + $0x20] sm:$0xf] }
 0x177   : > { %v2476_v35 = vld [vmem:[#allocation3 + $0x38] sm:$0xe]  ;;  %2212 = vst [vmem:[#allocation3 + $0x40] sm:$0xf] %v2211_v42  ;;  %v3660_v3 = vor.u32 %v3787_v60, %v3659_v41  ;;  %v2232_v37 = vld [vmem:[#allocation3 + $0x3c] sm:$0x1]  ;;  %v2901_v0 = vsel %vm4702_vm3, %v3705_v44, %v2900_v14 }
 0x178   : > { %v3672_v5 = vrot.slane %v2476_v35, 9  ;;  %2215 = vst [vmem:[#allocation3 + $0x44] sm:$0x1] %v2214_v27  ;;  %v2526_v26 = vrot.slane %v2232_v37, 5  ;;  %v2223_v56 = vld [vmem:[#allocation3 + $0x38] sm:$0xf] }
 0x179   : > { %3664 = vmatmul.msk.bf16.gmra.mxu3 %vm2359_vm4, %v3660_v3  ;;  %v2332_v61 = vshrl.u32 %v2223_v56, 16  ;;  %v2335_v10 = vshll.u32 %v2223_v56, 16  ;;  %v2341_v18 = vshll.u32 %v2232_v37, 16  ;;  %v2896_v1 = vrot.slane %v4845_v15, 5  ;;  %v3693_v7 = vld [vmem:[#allocation3 + $0x38] sm:$0xf] }
 0x17a   : > { %v2527_v29 = vsel %vm4702_vm3, %v3672_v5, %v2526_v26  ;;  %v3092_v16 = vshrl.u32 %v3075_v24, 16  ;;  %v3095_v63 = vshll.u32 %v3075_v24, 16  ;;  %v3106_v30 = vshrl.u32 %v3077_v25, 16  ;;  %v2678_v42 = vld [vmem:[#allocation3 + $0x10] sm:$0xf] }
 0x17b   : > { %v2537_v23 = vunpack.c.l.b16 %v2527_v29  ;;  %v2334_v2 = vrot.slane %v2332_v61, 4  ;;  %v2337_v58 = vrot.slane %v2335_v10, 5  ;;  %3643 = vmatmul.msk.bf16.gmra.mxu2 %vm2359_vm4, %v2357_v39  ;;  %v3109_v6 = vshll.u32 %v3077_v25, 16  ;;  %v4862_v60 = vld [vmem:[#allocation3 + $0x14] sm:$0x1] }
 0x17c   : > { %v2325_v48 = vrot.slane %v2324_v47, 4  ;;  %v2343_v46 = vrot.slane %v2341_v18, 5  ;;  %v3094_v33 = vrot.slane %v3092_v16, 4  ;;  %v3097_v17 = vrot.slane %v3095_v63, 5  ;;  %v3720_v25 = vld [vmem:[#allocation3 + $0x10] sm:$0xf] }
 0x17d   : > { %v2541_v21 = vpack.c.b16 %v2537_v23, %v2536_v32  ;;  %v2338_v57 = vor.u32 %v2337_v58, %v2334_v2  ;;  %v3108_v41 = vrot.slane %v3106_v30, 4  ;;  %v3111_v11 = vrot.slane %v3109_v6, 5  ;;  %v3792_v32 = vld [vmem:[#allocation3 + $0x14] sm:$0xf0]  ;;  %v4880_v16 = vld [vmem:[#allocation3 + $0x24] sm:$0x1] }
 0x17e   : > { %v3791_v8 = vld [vmem:[#allocation3 + $0x3c] sm:$0xf0]  ;;  %v2329_v27 = vrot.slane %v2327_v22, 5  ;;  %v2693_v35 = vshrl.u32 %v2676_v4, 16  ;;  %v2696_v28 = vshll.u32 %v2676_v4, 16  ;;  %v3098_v3 = vor.u32 %v3097_v17, %v3094_v33 }
 0x17f   : > { %v3694_v51 = vor.u32 %v3791_v8, %v3693_v7  ;;  %v2339_v54 = vrot.slane %v2338_v57, 4  ;;  %v3112_v37 = vor.u32 %v3111_v11, %v3108_v41  ;;  %v3115_v5 = vshll.u32 %v4860_v36, 16  ;;  %v3079_v63 = vld [vmem:[#allocation3 + $0x20] sm:$0xf]  ;;  %v3081_v30 = vld [vmem:[#allocation3 + $0x28] sm:$0xf] }
 0x180   : > { %3677 = vmatmul.msk.bf16.gmra.mxu0 %vm2359_vm4, %v2541_v21  ;;  %v2897_v44 = vsel %vm4702_vm3, %v3704_v13, %v2896_v1  ;;  %v2929_v39 = vunpack.c.l.b16 %v2901_v0  ;;  %v2707_v22 = vshrl.u32 %v2678_v42, 16  ;;  %v2330_v26 = vsel %vm4281_vm10, %v2325_v48, %v2329_v27  ;;  %v2873_v57 = vld [vmem:[#allocation3 + $0x20] sm:$0xe]  ;;  %v4886_v33 = vld [vmem:[#allocation3 + $0x1c] sm:$0x1] }
 0x181   : > { %3698 = vmatmul.msk.bf16.gmra.mxu1 %vm2359_vm4, %v3694_v51  ;;  %v2344_v50 = vsel %vm4281_vm10, %v2339_v54, %v2343_v46  ;;  %v3101_v56 = vshll.u32 %v4862_v60, 16  ;;  %v3113_v14 = vrot.slane %v3112_v37, 4  ;;  %v2710_v61 = vshll.u32 %v2678_v42, 16  ;;  %v2872_v17 = vld [vmem:[#allocation3 + $0x18] sm:$0xe] }
 0x182   : > { %v2354_v10 = vunpack.c.l.b16 %v2344_v50  ;;  %v2695_v53 = vrot.slane %v2693_v35, 4  ;;  %v2698_v24 = vrot.slane %v2696_v28, 5  ;;  %v2928_v29 = vunpack.c.l.b16 %v2897_v44 }
 0x183   : > { %v3099_v47 = vrot.slane %v3098_v3, 4  ;;  %v3117_v18 = vrot.slane %v3115_v5, 5  ;;  %v3352_v13 = vsel %vm2372_vm11, %v3751_v55, 0  ;;  %v2353_v49 = vunpack.c.l.b16 %v2330_v26  ;;  %v2680_v3 = vld [vmem:[#allocation3 + $0x18] sm:$0xf] }
 0x184   : > { %v2709_v23 = vrot.slane %v2707_v22, 4  ;;  %v2712_v2 = vrot.slane %v2710_v61, 5  ;;  %3361 = vmatpush.bf16.msra.mxu2 %v3352_v13  ;;  %v2936_v58 = vpack.c.b16 %v2929_v39, %v2928_v29  ;;  %v3103_v1 = vrot.slane %v3101_v56, 5  ;;  %v2682_v22 = vld [vmem:[#allocation3 + $0x20] sm:$0xf] }
 0x185   : > { %v3118_v0 = vsel %vm4281_vm10, %v3113_v14, %v3117_v18  ;;  %v2358_v4 = vpack.c.b16 %v2354_v10, %v2353_v49  ;;  %v2699_v21 = vor.u32 %v2698_v24, %v2695_v53  ;;  %v2702_v7 = vshll.u32 %v4845_v15, 16  ;;  %v4892_v56 = vld [vmem:[#allocation3 + $0x2c] sm:$0x1] }
 0x186   : > { %v3721_v6 = vor.u32 %v3792_v32, %v3720_v25  ;;  %v3104_v8 = vsel %vm4281_vm10, %v3099_v47, %v3103_v1  ;;  %v3206_v48 = vunpack.c.l.b16 %v3118_v0  ;;  %v2713_v46 = vor.u32 %v2712_v2, %v2709_v23  ;;  %v4896_v47 = vld [vmem:[#allocation3 + $0x24] sm:$0x1] }
 0x187   : > { %v3120_v51 = vshrl.u32 %v3079_v63, 16  ;;  %v3123_v54 = vshll.u32 %v3079_v63, 16  ;;  %v3707_v41 = vrot.slane %v2873_v57, 9  ;;  %v2908_v11 = vrot.slane %v4880_v16, 5 }
 0x188   : > { %v3134_v42 = vshrl.u32 %v3081_v30, 16  ;;  %v3137_v15 = vshll.u32 %v3081_v30, 16  ;;  %v3205_v27 = vunpack.c.l.b16 %v3104_v8  ;;  %v2700_v35 = vrot.slane %v2699_v21, 4  ;;  %v3083_v8 = vld [vmem:[#allocation3 + $0x30] sm:$0xf] }
 0x189   : > { %3713 = vmatmul.msk.bf16.vlgmr.msra.gmra.mxu3 %vm2359_vm4, %v2936_v58  ;;  %v2704_v28 = vrot.slane %v2702_v7, 5  ;;  %v2716_v50 = vshll.u32 %v4829_v12, 16  ;;  %v3706_v37 = vrot.slane %v2872_v17, 9  ;;  %v2904_v5 = vrot.slane %v4886_v33, 5 }
 0x18a   : > { %v3136_v44 = vrot.slane %v3134_v42, 4  ;;  %v3139_v39 = vrot.slane %v3137_v15, 5  ;;  %v3213_v55 = vpack.c.b16 %v3206_v48, %v3205_v27  ;;  %v2714_v26 = vrot.slane %v2713_v46, 4  ;;  %v3085_v48 = vld [vmem:[#allocation3 + $0x38] sm:$0xf] }
 0x18b   : > { %3644 = vmatmul.msk.bf16.gmra.mxu2 %vm2359_vm4, %v2358_v4  ;;  %v3122_v14 = vrot.slane %v3120_v51, 4  ;;  %v3125_v61 = vrot.slane %v3123_v54, 5  ;;  %v2909_v10 = vsel %vm4702_vm3, %v3707_v41, %v2908_v11  ;;  %v2721_v24 = vshrl.u32 %v2680_v3, 16  ;;  %v4910_v42 = vld [vmem:[#allocation3 + $0x2c] sm:$0x1] }
 0x18c   : > { %v3140_v53 = vor.u32 %v3139_v39, %v3136_v44  ;;  %v2724_v29 = vshll.u32 %v2680_v3, 16  ;;  %v2718_v12 = vrot.slane %v2716_v50, 5  ;;  %v2735_v18 = vshrl.u32 %v2682_v22, 16  ;;  %v2874_v15 = vld [vmem:[#allocation3 + $0x28] sm:$0xe] }
 0x18d   : > { %v2738_v13 = vshll.u32 %v2682_v22, 16  ;;  %v2705_v49 = vsel %vm4281_vm10, %v2700_v35, %v2704_v28  ;;  %v3143_v25 = vshll.u32 %v4892_v56, 16  ;;  %v2905_v23 = vsel %vm4702_vm3, %v3706_v37, %v2904_v5  ;;  %v2875_v35 = vld [vmem:[#allocation3 + $0x30] sm:$0xe]  ;;  %v4915_v39 = vld [vmem:[#allocation3 + $0x34] sm:$0x1] }
 0x18e   : > { %v2719_v32 = vsel %vm4281_vm10, %v2714_v26, %v2718_v12  ;;  %v2931_v2 = vunpack.c.l.b16 %v2909_v10  ;;  %v3126_v58 = vor.u32 %v3125_v61, %v3122_v14  ;;  %v3129_v1 = vshll.u32 %v4896_v47, 16 }
 0x18f   : > { %v3141_v0 = vrot.slane %v3140_v53, 4  ;;  %v2723_v63 = vrot.slane %v2721_v24, 4  ;;  %v2726_v4 = vrot.slane %v2724_v29, 5  ;;  %v2737_v21 = vrot.slane %v2735_v18, 4  ;;  %v2684_v53 = vld [vmem:[#allocation3 + $0x28] sm:$0xf] }
 0x190   : > { %3734 = vmatmul.msk.bf16.vlgmr.msra.gmra.mxu0 %vm2359_vm4, %v3721_v6  ;;  %v2740_v7 = vrot.slane %v2738_v13, 5  ;;  %v2807_v57 = vunpack.c.l.b16 %v2719_v32  ;;  %v2930_v30 = vunpack.c.l.b16 %v2905_v23  ;;  %v3145_v6 = vrot.slane %v3143_v25, 5  ;;  %v2686_v13 = vld [vmem:[#allocation3 + $0x30] sm:$0xf]  ;;  %v4922_v25 = vld [vmem:[#allocation3 + $0x34] sm:$0x1] }
 0x191   : > { %3739 = vmatmul.msk.bf16.vlgmr.msra.gmra.mxu1 %vm2359_vm4, %v3213_v55  ;;  %v2806_v46 = vunpack.c.l.b16 %v2705_v49  ;;  %v3127_v17 = vrot.slane %v3126_v58, 4  ;;  %v3131_v54 = vrot.slane %v3129_v1, 5  ;;  %v2727_v11 = vor.u32 %v2726_v4, %v2723_v63  ;;  %v3793_v55 = vld [vmem:[#allocation3 + $0x24] sm:$0xf0]  ;;  %v4924_v1 = vld [vmem:[#allocation3 + $0x3c] sm:$0x1] }
 0x192   : > { %v2937_v51 = vpack.c.b16 %v2931_v2, %v2930_v30  ;;  %v3146_v41 = vsel %vm4281_vm10, %v3141_v0, %v3145_v6  ;;  %v2741_v27 = vor.u32 %v2740_v7, %v2737_v21  ;;  %v3148_v28 = vshrl.u32 %v3083_v8, 16  ;;  %v408_v30 = vld [vmem:[#allocation3 + $0x48] sm:$0x1] }
 0x193   : > { %v3151_v50 = vshll.u32 %v3083_v8, 16  ;;  %v3162_v3 = vshrl.u32 %v3085_v48, 16  ;;  %v2814_v37 = vpack.c.b16 %v2807_v57, %v2806_v46  ;;  %v2730_v5 = vshll.u32 %v4886_v33, 16 }
 0x194   : > { %v2744_v44 = vshll.u32 %v4880_v16, 16  ;;  %v3165_v22 = vshll.u32 %v3085_v48, 16  ;;  %v3132_v26 = vsel %vm4281_vm10, %v3127_v17, %v3131_v54  ;;  %v3708_v14 = vrot.slane %v2874_v15, 9  ;;  %v3724_v16 = vld [vmem:[#allocation3 + $0x20] sm:$0xf] }
 0x195   : > { %v2912_v61 = vrot.slane %v4910_v42, 5  ;;  %v3164_v10 = vrot.slane %v3162_v3, 4  ;;  %v3208_v24 = vunpack.c.l.b16 %v3146_v41  ;;  %v2728_v29 = vrot.slane %v2727_v11, 4  ;;  %v440_v17 = vld [vmem:[#allocation3 + $0x4c] sm:$0x1] }
 0x196   : > { %v3709_v12 = vrot.slane %v2875_v35, 9  ;;  %v3167_v18 = vrot.slane %v3165_v22, 5  ;;  %v2742_v33 = vrot.slane %v2741_v27, 4  ;;  %v2916_v49 = vrot.slane %v4915_v39, 5  ;;  %v4935_v15 = vld [vmem:[#allocation3 + $0x3c] sm:$0x1] }
 0x197   : > { %v3150_v32 = vrot.slane %v3148_v28, 4  ;;  %v3153_v23 = vrot.slane %v3151_v50, 5  ;;  %v3207_v2 = vunpack.c.l.b16 %v3132_v26  ;;  %v2732_v58 = vrot.slane %v2730_v5, 5  ;;  %v2876_v50 = vld [vmem:[#allocation3 + $0x38] sm:$0xe] }
 0x198   : > { %v2749_v0 = vshrl.u32 %v2684_v53, 16  ;;  %v2752_v63 = vshll.u32 %v2684_v53, 16  ;;  %v2746_v4 = vrot.slane %v2744_v44, 5  ;;  %v3168_v21 = vor.u32 %v3167_v18, %v3164_v10 }
 0x199   : > { %3714 = vmatmul.msk.bf16.gmra.mxu3 %vm2359_vm4, %v2937_v51  ;;  %v2763_v7 = vshrl.u32 %v2686_v13, 16  ;;  %v2766_v57 = vshll.u32 %v2686_v13, 16  ;;  %v3725_v6 = vor.u32 %v3793_v55, %v3724_v16  ;;  %v3214_v8 = vpack.c.b16 %v3208_v24, %v3207_v2 }
 0x19a   : > { %v2733_v48 = vsel %vm4281_vm10, %v2728_v29, %v2732_v58  ;;  %v2913_v46 = vsel %vm4702_vm3, %v3708_v14, %v2912_v61  ;;  %v2747_v51 = vsel %vm4281_vm10, %v2742_v33, %v2746_v4  ;;  %v2917_v54 = vsel %vm4702_vm3, %v3709_v12, %v2916_v49  ;;  %v4944_v14 = vld [vmem:[#allocation3 + $0x44] sm:$0x1]  ;;  %v2877_v61 = vld [vmem:[#allocation3 + $0x40] sm:$0xe] }
 0x19b   : > { %3700 = vmatmul.msk.bf16.vlgmr.msrb.gmra.mxu2 %vm2359_vm4, %v2814_v37  ;;  %v3154_v41 = vor.u32 %v3153_v23, %v3150_v32  ;;  %v3171_v11 = vshll.u32 %v4924_v1, 16  ;;  %v3157_v27 = vshll.u32 %v4922_v25, 16  ;;  %v2751_v35 = vrot.slane %v2749_v0, 4  ;;  %v3087_v12 = vld [vmem:[#allocation3 + $0x40] sm:$0xf] }
 0x19c   : > { %v2754_v28 = vrot.slane %v2752_v63, 5  ;;  %v409_v3 = vsel %vm4590_vm14, 0, %v408_v30  ;;  %v3169_v37 = vrot.slane %v3168_v21, 4  ;;  %v2765_v5 = vrot.slane %v2763_v7, 4  ;;  %v3269_v21 = vld [vmem:[#allocation3 + $0x10] sm:$0xe] }
 0x19d   : > { %v2768_v44 = vrot.slane %v2766_v57, 5  ;;  %410 = vst [vmem:[#allocation3 + $0x48] sm:$0x1] %v409_v3  ;;  %v441_v22 = vsel %vm4599_vm15, 0, %v440_v17  ;;  %v2808_v55 = vunpack.c.l.b16 %v2733_v48  ;;  %v2933_v26 = vunpack.c.l.b16 %v2917_v54  ;;  %v3728_v48 = vld [vmem:[#allocation3 + $0x30] sm:$0xf] }
 0x19e   : > { %442 = vst [vmem:[#allocation3 + $0x4c] sm:$0x1] %v441_v22  ;;  %v2809_v10 = vunpack.c.l.b16 %v2747_v51  ;;  %v2932_v53 = vunpack.c.l.b16 %v2913_v46  ;;  %v3155_v24 = vrot.slane %v3154_v41, 4  ;;  %v3173_v29 = vrot.slane %v3171_v11, 5  ;;  %v3794_v46 = vld [vmem:[#allocation3 + $0x34] sm:$0xf0] }
 0x19f   : > { %v3159_v40 = vrot.slane %v3157_v27, 5  ;;  %v2755_v18 = vor.u32 %v2754_v28, %v2751_v35  ;;  %v3710_v13 = vrot.slane %v2876_v50, 9  ;;  %v2920_v16 = vrot.slane %v4935_v15, 5  ;;  %v4965_v27 = vld [vmem:[#allocation3 + $0x44] sm:$0x1] }
 0x1a0   : > { %3735 = vmatmul.msk.bf16.gmra.mxu0 %vm2359_vm4, %v3725_v6  ;;  %v3174_v20 = vsel %vm4281_vm10, %v3169_v37, %v3173_v29  ;;  %v2769_v33 = vor.u32 %v2768_v44, %v2765_v5  ;;  %v3711_v49 = vrot.slane %v2877_v61, 9  ;;  %v2924_v32 = vrot.slane %v4944_v14, 5  ;;  %v3271_v44 = vld [vmem:[#allocation3 + $0x20] sm:$0xe] }
 0x1a1   : > { %3740 = vmatmul.msk.bf16.gmra.mxu1 %vm2359_vm4, %v3214_v8  ;;  %v2938_v23 = vpack.c.b16 %v2933_v26, %v2932_v53  ;;  %v2758_v2 = vshll.u32 %v4910_v42, 16  ;;  %v3176_v58 = vshrl.u32 %v3087_v12, 16  ;;  %v3179_v0 = vshll.u32 %v3087_v12, 16  ;;  %v3270_v42 = vld [vmem:[#allocation3 + $0x18] sm:$0xe] }
 0x1a2   : > { %v3160_v63 = vsel %vm4281_vm10, %v3155_v24, %v3159_v40  ;;  %v2772_v4 = vshll.u32 %v4915_v39, 16  ;;  %v2815_v7 = vpack.c.b16 %v2809_v10, %v2808_v55  ;;  %v3210_v57 = vunpack.c.l.b16 %v3174_v20  ;;  %v2688_v10 = vld [vmem:[#allocation3 + $0x38] sm:$0xf]  ;;  %v2690_v29 = vld [vmem:[#allocation3 + $0x40] sm:$0xf] }
 0x1a3   : > { %v4955_v30 = vrot.slane %v2755_v18, 4  ;;  %v4959_v6 = vsel %vm4702_vm3, %v3710_v13, %v2920_v16  ;;  %v2770_v17 = vrot.slane %v2769_v33, 4  ;;  %v4963_v51 = vsel %vm4702_vm3, %v3711_v49, %v2924_v32  ;;  %v3272_v18 = vld [vmem:[#allocation3 + $0x28] sm:$0xe] }
 0x1a4   : > { %v3089_v8 = vld [vmem:[#allocation3 + $0x48] sm:$0xf]  ;;  %v3209_v41 = vunpack.c.l.b16 %v3160_v63  ;;  %v2760_v11 = vrot.slane %v2758_v2, 5  ;;  %v3178_v35 = vrot.slane %v3176_v58, 4  ;;  %v3181_v28 = vrot.slane %v3179_v0, 5 }
 0x1a5   : > { %v3190_v39 = vshrl.u32 %v3089_v8, 16  ;;  %v3193_v54 = vshll.u32 %v3089_v8, 16  ;;  %v2774_v50 = vrot.slane %v2772_v4, 5  ;;  %v3743_v5 = vrot.slane %v3269_v21, 9  ;;  %v4976_v13 = vld [vmem:[#allocation3 + $0x4c] sm:$0x1] }
 0x1a6   : > { %v3729_v22 = vor.u32 %v3794_v46, %v3728_v48  ;;  %v2761_v55 = vsel %vm4281_vm10, %v4955_v30, %v2760_v11  ;;  %v2934_v26 = vunpack.c.l.b16 %v4959_v6  ;;  %v2935_v61 = vunpack.c.l.b16 %v4963_v51  ;;  %v3273_v0 = vld [vmem:[#allocation3 + $0x30] sm:$0xe] }
 0x1a7   : > { %v3192_v3 = vrot.slane %v3190_v39, 4  ;;  %v3195_v37 = vrot.slane %v3193_v54, 5  ;;  %v3215_v53 = vpack.c.b16 %v3210_v57, %v3209_v41  ;;  %v2775_v24 = vsel %vm4281_vm10, %v2770_v17, %v2774_v50 }
 0x1a8   : > { %v3295_v12 = vrot.slane %v4862_v60, 5  ;;  %v3744_v40 = vrot.slane %v3270_v42, 9  ;;  %v3182_v16 = vor.u32 %v3181_v28, %v3178_v35  ;;  %v3185_v20 = vshll.u32 %v4965_v27, 16  ;;  %v3274_v35 = vld [vmem:[#allocation3 + $0x38] sm:$0xe] }
 0x1a9   : > { %3715 = vmatmul.msk.bf16.gmra.mxu3 %vm2359_vm4, %v2938_v23  ;;  %v3299_v33 = vrot.slane %v4860_v36, 5  ;;  %v3745_v49 = vrot.slane %v3271_v44, 9  ;;  %v3196_v32 = vor.u32 %v3195_v37, %v3192_v3  ;;  %v3199_v23 = vshll.u32 %v4976_v13, 16 }
 0x1aa   : > { %v3296_v2 = vsel %vm4702_vm3, %v3743_v5, %v3295_v12  ;;  %v3303_v58 = vrot.slane %v4896_v47, 5  ;;  %v2811_v60 = vunpack.c.l.b16 %v2775_v24  ;;  %v2777_v63 = vshrl.u32 %v2688_v10, 16 }
 0x1ab   : > { %3701 = vmatmul.msk.bf16.gmra.mxu2 %vm2359_vm4, %v2815_v7  ;;  %v3300_v4 = vsel %vm4702_vm3, %v3744_v40, %v3299_v33  ;;  %v3746_v36 = vrot.slane %v3272_v18, 9  ;;  %v2791_v21 = vshrl.u32 %v2690_v29, 16  ;;  %v3327_v7 = vunpack.c.l.b16 %v3296_v2  ;;  %v3795_v33 = vld [vmem:[#allocation3 + $0x44] sm:$0xf0] }
 0x1ac   : > { %v3328_v57 = vunpack.c.l.b16 %v3300_v4  ;;  %v3304_v30 = vsel %vm4702_vm3, %v3745_v49, %v3303_v58  ;;  %v3183_v6 = vrot.slane %v3182_v16, 4  ;;  %v2794_v8 = vshll.u32 %v2690_v29, 16  ;;  %v3276_v2 = vld [vmem:[#allocation3 + $0x48] sm:$0xe] }
 0x1ad   : > { %v3307_v47 = vrot.slane %v4892_v56, 5  ;;  %v3747_v42 = vrot.slane %v3273_v0, 9  ;;  %v3197_v48 = vrot.slane %v3196_v32, 4  ;;  %v3201_v46 = vrot.slane %v3199_v23, 5  ;;  %v3275_v23 = vld [vmem:[#allocation3 + $0x40] sm:$0xe] }
 0x1ae   : > { %v3335_v17 = vpack.c.b16 %v3328_v57, %v3327_v7  ;;  %v3311_v51 = vrot.slane %v4922_v25, 5  ;;  %v3187_v39 = vrot.slane %v3185_v20, 5  ;;  %v2780_v54 = vshll.u32 %v2688_v10, 16  ;;  %v3732_v20 = vld [vmem:[#allocation3 + $0x40] sm:$0xf] }
 0x1af   : > { %v3308_v41 = vsel %vm4702_vm3, %v3746_v36, %v3307_v47  ;;  %v3329_v11 = vunpack.c.l.b16 %v3304_v30  ;;  %v3748_v3 = vrot.slane %v3274_v35, 9  ;;  %v3315_v56 = vrot.slane %v4924_v1, 5 }
 0x1b0   : > { %3736 = vmatmul.msk.bf16.gmra.mxu0 %vm2359_vm4, %v3729_v22  ;;  %v3330_v28 = vunpack.c.l.b16 %v3308_v41  ;;  %v3312_v50 = vsel %vm4702_vm3, %v3747_v42, %v3311_v51  ;;  %v2810_v37 = vunpack.c.l.b16 %v2761_v55  ;;  %v2939_v5 = vpack.c.b16 %v2935_v61, %v2934_v26 }
 0x1b1   : > { %3741 = vmatmul.msk.bf16.gmra.mxu1 %vm2359_vm4, %v3215_v53  ;;  %v2793_v44 = vrot.slane %v2791_v21, 4  ;;  %v2796_v22 = vrot.slane %v2794_v8, 5  ;;  %v3188_v25 = vsel %vm4281_vm10, %v3183_v6, %v3187_v39  ;;  %v3202_v10 = vsel %vm4281_vm10, %v3197_v48, %v3201_v46 }
 0x1b2   : > { %v3336_v53 = vpack.c.b16 %v3330_v28, %v3329_v11  ;;  %v3316_v24 = vsel %vm4702_vm3, %v3748_v3, %v3315_v56  ;;  %v2779_v29 = vrot.slane %v2777_v63, 4  ;;  %v2782_v12 = vrot.slane %v2780_v54, 5 }
 0x1b3   : > { %v3331_v40 = vunpack.c.l.b16 %v3312_v50  ;;  %v3332_v1 = vunpack.c.l.b16 %v3316_v24  ;;  %v2816_v55 = vpack.c.b16 %v2811_v60, %v2810_v37  ;;  %v3211_v26 = vunpack.c.l.b16 %v3188_v25 }
 0x1b4   : > { %v3212_v61 = vunpack.c.l.b16 %v3202_v10  ;;  %v2797_v18 = vor.u32 %v2796_v22, %v2793_v44  ;;  %v2783_v49 = vor.u32 %v2782_v12, %v2779_v29  ;;  %v2800_v32 = vshll.u32 %v4944_v14, 16 }
 0x1b5   : > { %v3337_v16 = vpack.c.b16 %v3332_v1, %v3331_v40  ;;  %v3749_v58 = vrot.slane %v3275_v23, 9  ;;  %v3319_v0 = vrot.slane %v4965_v27, 5  ;;  %v3750_v63 = vrot.slane %v3276_v2, 9 }
 0x1b6   : > { %v3323_v4 = vrot.slane %v4976_v13, 5  ;;  %v3733_v60 = vor.u32 %v3795_v33, %v3732_v20  ;;  %v3216_v36 = vpack.c.b16 %v3212_v61, %v3211_v26  ;;  %v2786_v21 = vshll.u32 %v4935_v15, 16 }
 0x1b7   : > { %v2798_v7 = vrot.slane %v2797_v18, 4  ;;  %v3320_v57 = vsel %vm4702_vm3, %v3749_v58, %v3319_v0  ;;  %v2784_v14 = vrot.slane %v2783_v49, 4  ;;  %v2802_v27 = vrot.slane %v2800_v32, 5 }
 0x1b8   : > { %v3324_v30 = vsel %vm4702_vm3, %v3750_v63, %v3323_v4  ;;  %v3333_v6 = vunpack.c.l.b16 %v3320_v57  ;;  %v2788_v13 = vrot.slane %v2786_v21, 5 }
 0x1b9   : > { %3716 = vmatmul.msk.bf16.gmra.mxu3 %vm2359_vm4, %v2939_v5  ;;  %v3334_v8 = vunpack.c.l.b16 %v3324_v30  ;;  %v2803_v47 = vsel %vm4281_vm10, %v2798_v7, %v2802_v27 }
 0x1ba   : > { %v2789_v42 = vsel %vm4281_vm10, %v2784_v14, %v2788_v13  ;;  %v2813_v48 = vunpack.c.l.b16 %v2803_v47 }
 0x1bb   : > { %3702 = vmatmul.msk.bf16.gmra.mxu2 %vm2359_vm4, %v2816_v55  ;;  %v3338_v15 = vpack.c.b16 %v3334_v8, %v3333_v6  ;;  %v2812_v46 = vunpack.c.l.b16 %v2789_v42 }
 0x1bd   : > { %v2817_v38 = vpack.c.b16 %v2813_v48, %v2812_v46 }
 0x1c0   : > { %3737 = vmatmul.msk.bf16.gmra.mxu0 %vm2359_vm4, %v3733_v60 }
 0x1c1   : > { %3742 = vmatmul.msk.bf16.gmra.mxu1 %vm2359_vm4, %v3216_v36 }
 0x1cb   : > { %3703 = vmatmul.msk.bf16.gmra.mxu2 %vm2359_vm4, %v2817_v38 }
 0x1cc   : > { %v2449_v41 = vpop.f32.mrf.mxu3  ;;  %v2566_v35 = vpop.f32.mrf.mxu0 }
 0x1ce   : > { %v2648_v28 = vpop.f32.mrf.mxu1 }
 0x1d4   : > { %v2451_v50 = vpop.f32.mrf.mxu3  ;;  %v2568_v3 = vpop.f32.mrf.mxu0 }
 0x1d6   : > { %v2650_v37 = vpop.f32.mrf.mxu1 }
 0x1db   : > { %3752 = vmatmul.msk.bf16.vlgmr.msra.gmra.mxu2 %vm2359_vm4, %v3335_v17 }
 0x1dc   : > { %v2385_v51 = vpop.f32.mrf.mxu2  ;;  %v2454_v5 = vpop.f32.mrf.mxu3 }
 0x1dd   : > { %v2571_v17 = vpop.f32.mrf.mxu0  ;;  %v2450_v60 = vadd.f32 %v2449_v41, %v2385_v51 }
 0x1de   : > { %v2653_v22 = vpop.f32.mrf.mxu1 }
 0x1df   : > { %v2586_v21 = vadd.f32 %v2566_v35, %v2450_v60 }
 0x1e1   : > { %v2668_v14 = vadd.f32 %v2648_v28, %v2586_v21 }
 0x1e4   : > { %v2387_v39 = vpop.f32.mrf.mxu2  ;;  %v2456_v25 = vpop.f32.mrf.mxu3 }
 0x1e5   : > { %v2452_v30 = vadd.f32 %v2451_v50, %v2387_v39 }
 0x1e6   : > { %v2655_v24 = vpop.f32.mrf.mxu1 }
 0x1e7   : > { %v2587_v8 = vadd.f32 %v2568_v3, %v2452_v30 }
 0x1e9   : > { %v2669_v48 = vadd.f32 %v2650_v37, %v2587_v8 }
 0x1eb   : > { %3753 = vmatmul.msk.bf16.gmra.mxu2 %vm2359_vm4, %v3336_v53  ;;  %v2573_v53 = vpop.f32.mrf.mxu0 }
 0x1ec   : > { %v2459_v29 = vpop.f32.mrf.mxu3 }
 0x1ee   : > { %v2390_v54 = vpop.f32.mrf.mxu2  ;;  %v5034_v1 = vpop.f32.mrf.mxu1 }
 0x1ef   : > { %v2455_v42 = vadd.f32 %v2454_v5, %v2390_v54 }
 0x1f1   : > { %v2588_v35 = vadd.f32 %v2571_v17, %v2455_v42 }
 0x1f3   : > { %v5032_v40 = vpop.f32.mrf.mxu0  ;;  %v2670_v50 = vadd.f32 %v2653_v22, %v2588_v35 }
 0x1f4   : > { %v5036_v26 = vpop.f32.mrf.mxu3 }
 0x1f6   : > { %v2392_v11 = vpop.f32.mrf.mxu2 }
 0x1f7   : > { %v2457_v28 = vadd.f32 %v2456_v25, %v2392_v11 }
 0x1f9   : > { %v2589_v54 = vadd.f32 %v2573_v53, %v2457_v28 }
 0x1fb   : > { %3754 = vmatmul.msk.bf16.gmra.mxu2 %vm2359_vm4, %v3337_v16  ;;  %v5038_v61 = vpop.f32.mrf.mxu0  ;;  %v5040_v16 = vpop.f32.mrf.mxu1 }
 0x1fc   : > { %v5042_v20 = vpop.f32.mrf.mxu3 }
 0x1fe   : > { %v5023_v45 = vpop.f32.mrf.mxu2 }
 0x1ff   : > { %v2460_v22 = vadd.f32 %v2459_v29, %v5023_v45 }
 0x203   : > { %v5044_v33 = vpop.f32.mrf.mxu0  ;;  %v5046_v32 = vpop.f32.mrf.mxu1 }
 0x204   : > { %v5048_v23 = vpop.f32.mrf.mxu3 }
 0x206   : > { %v5025_v56 = vpop.f32.mrf.mxu2 }
 0x207   : > { %v2462_v45 = vadd.f32 %v5036_v26, %v5025_v56 }
 0x209   : > { %v2591_v42 = vadd.f32 %v5038_v61, %v2462_v45 }
 0x20b   : > { %3755 = vmatmul.msk.bf16.gmra.mxu2 %vm2359_vm4, %v3338_v15  ;;  %v5052_v58 = vpop.f32.mrf.mxu0  ;;  %v5054_v0 = vpop.f32.mrf.mxu1 }
 0x20c   : > { %v2964_v63 = vpop.f32.mrf.mxu3 }
 0x20e   : > { %v5028_v44 = vpop.f32.mrf.mxu2 }
 0x20f   : > { %v2465_v56 = vadd.f32 %v5042_v20, %v5028_v44 }
 0x213   : > { %v3047_v36 = vpop.f32.mrf.mxu0  ;;  %v3241_v7 = vpop.f32.mrf.mxu1 }
 0x214   : > { %v2966_v27 = vpop.f32.mrf.mxu3 }
 0x216   : > { %v5030_v10 = vpop.f32.mrf.mxu2 }
 0x217   : > { %v2467_v44 = vadd.f32 %v5048_v23, %v5030_v10 }
 0x21b   : > { %v3049_v13 = vpop.f32.mrf.mxu0  ;;  %v3243_v46 = vpop.f32.mrf.mxu1 }
 0x21c   : > { %v2969_v41 = vpop.f32.mrf.mxu3 }
 0x21e   : > { %v2842_v12 = vpop.f32.mrf.mxu2 }
 0x21f   : > { %v2862_v6 = vadd.f32 %v2842_v12, %v2668_v14  ;;  %v2590_v14 = vadd.f32 %v5032_v40, %v2460_v22 }
 0x221   : > { %v2984_v47 = vadd.f32 %v2964_v63, %v2862_v6 }
 0x223   : > { %v3067_v51 = vadd.f32 %v3047_v36, %v2984_v47  ;;  %v3052_v43 = vpop.f32.mrf.mxu0  ;;  %v3246_v30 = vpop.f32.mrf.mxu1 }
 0x224   : > { %v2971_v5 = vpop.f32.mrf.mxu3 }
 0x225   : > { %v3261_v52 = vadd.f32 %v3241_v7, %v3067_v51 }
 0x226   : > { %v2844_v55 = vpop.f32.mrf.mxu2 }
 0x227   : > { %v2863_v38 = vadd.f32 %v2844_v55, %v2669_v48 }
 0x229   : > { %v2985_v60 = vadd.f32 %v2966_v27, %v2863_v38 }
 0x22b   : > { %v3068_v21 = vadd.f32 %v3049_v13, %v2985_v60  ;;  %v3054_v55 = vpop.f32.mrf.mxu0  ;;  %v3248_v27 = vpop.f32.mrf.mxu1  ;;  %v2592_v60 = vadd.f32 %v5044_v33, %v2465_v56 }
 0x22c   : > { %v2974_v13 = vpop.f32.mrf.mxu3 }
 0x22d   : > { %v3262_v11 = vadd.f32 %v3243_v46, %v3068_v21 }
 0x22e   : > { %v2847_v18 = vpop.f32.mrf.mxu2 }
 0x22f   : > { %v2864_v12 = vadd.f32 %v2847_v18, %v2670_v50 }
 0x231   : > { %v2986_v17 = vadd.f32 %v2969_v41, %v2864_v12 }
 0x233   : > { %v3069_v7 = vadd.f32 %v3052_v43, %v2986_v17  ;;  %v3251_v51 = vpop.f32.mrf.mxu1 }
 0x235   : > { %v3263_v8 = vadd.f32 %v3246_v30, %v3069_v7  ;;  %v2593_v30 = vadd.f32 %v5052_v58, %v2467_v44  ;;  %v5136_v7 = vld [vmem:[#allocation7_spill] sm:$0xff] }
 0x236   : > { %v2849_v49 = vpop.f32.mrf.mxu2 }
 0x23e   : > { %v5050_v2 = vpop.f32.mrf.mxu2 }
 0x246   : > { %v5056_v4 = vpop.f32.mrf.mxu2 }
 0x24e   : > { %v5058_v57 = vpop.f32.mrf.mxu2 }
 0x256   : > { %v5060_v15 = vpop.f32.mrf.mxu2 }
 0x25e   : > { %v3363_v39 = vpop.f32.mrf.mxu2 }
 0x25f   : > { %v3383_v3 = vadd.f32 %v3363_v39, %v3261_v52 }
 0x261   : > { %v3391_v63 = vadd.f32 %v3383_v3, %v4474_v9  ;;  %v2671_v9 = vadd.f32 %v2655_v24, %v2589_v54  ;;  %v2672_v24 = vadd.f32 %v5034_v1, %v2590_v14  ;;  %v2673_v1 = vadd.f32 %v5040_v16, %v2591_v42 }
 0x262   : > { %v2674_v16 = vadd.f32 %v5046_v32, %v2592_v60  ;;  %v2675_v32 = vadd.f32 %v5054_v0, %v2593_v30 }
 0x263   : > { %v3399_v37 = vpack.c.bf16 %v3391_v63, %v3391_v63  ;;  %v2865_v18 = vadd.f32 %v2849_v49, %v2671_v9  ;;  %v3057_v49 = vpop.f32.mrf.mxu0 }
 0x265   : > { %3407 = vst.msk [vmem:[%s5067_s27] sm:$0xf] %vm372_vm12, %v3399_v37  ;;  %v2987_v6 = vadd.f32 %v2971_v5, %v2865_v18 }
 0x266   : > { %v3365_v52 = vpop.f32.mrf.mxu2 }
 0x267   : > { %v3384_v25 = vadd.f32 %v3365_v52, %v3262_v11  ;;  %v3070_v40 = vadd.f32 %v3054_v55, %v2987_v6  ;;  %v2869_v11 = vadd.f32 %v5060_v15, %v2675_v32 }
 0x269   : > { %v3392_v36 = vadd.f32 %v3384_v25, %v4493_v34  ;;  %v2866_v34 = vadd.f32 %v5050_v2, %v2672_v24  ;;  %v3264_v38 = vadd.f32 %v3248_v27, %v3070_v40  ;;  %v2976_v2 = vpop.f32.mrf.mxu3 }
 0x26b   : > { %v3400_v53 = vpack.c.bf16 %v3392_v36, %v3392_v36  ;;  %v2988_v46 = vadd.f32 %v2974_v13, %v2866_v34  ;;  %v3059_v28 = vpop.f32.mrf.mxu0 }
 0x26d   : > { %3408 = vst.msk [vmem:[%s5067_s27 + $0x4] sm:$0xf] %vm372_vm12, %v3400_v53  ;;  %v3071_v61 = vadd.f32 %v3057_v49, %v2988_v46 }
 0x26e   : > { %v3368_v47 = vpop.f32.mrf.mxu2 }
 0x26f   : > { %v3385_v29 = vadd.f32 %v3368_v47, %v3263_v8  ;;  %v3265_v3 = vadd.f32 %v3251_v51, %v3071_v61  ;;  %v5137_v8 = vld [vmem:[#allocation8_spill] sm:$0xff] }
 0x271   : > { %v3393_v43 = vadd.f32 %v3385_v29, %v4477_v19  ;;  %v2867_v19 = vadd.f32 %v5056_v4, %v2673_v1  ;;  %v3253_v4 = vpop.f32.mrf.mxu1  ;;  %v2979_v21 = vpop.f32.mrf.mxu3 }
 0x273   : > { %v3401_v48 = vpack.c.bf16 %v3393_v43, %v3393_v43  ;;  %v2989_v50 = vadd.f32 %v2976_v2, %v2867_v19  ;;  %v3062_v17 = vpop.f32.mrf.mxu0 }
 0x275   : > { %3409 = vst.msk [vmem:[%s5067_s27 + $0x8] sm:$0xf] %vm372_vm12, %v3401_v48  ;;  %v3072_v33 = vadd.f32 %v3059_v28, %v2989_v50 }
 0x276   : > { %v3370_v41 = vpop.f32.mrf.mxu2 }
 0x277   : > { %v3386_v26 = vadd.f32 %v3370_v41, %v3264_v38  ;;  %v3266_v5 = vadd.f32 %v3253_v4, %v3072_v33 }
 0x279   : > { %v3394_v35 = vadd.f32 %v3386_v26, %v4491_v31  ;;  %v2868_v31 = vadd.f32 %v5058_v57, %v2674_v16  ;;  %v3256_v52 = vpop.f32.mrf.mxu1  ;;  %v2981_v58 = vpop.f32.mrf.mxu3 }
 0x27a   : > { %v2991_v9 = vadd.f32 %v2981_v58, %v2869_v11 }
 0x27b   : > { %v3402_v39 = vpack.c.bf16 %v3394_v35, %v3394_v35  ;;  %v2990_v37 = vadd.f32 %v2979_v21, %v2868_v31  ;;  %v3064_v36 = vpop.f32.mrf.mxu0 }
 0x27c   : > { %v3074_v14 = vadd.f32 %v3064_v36, %v2991_v9 }
 0x27d   : > { %3410 = vst.msk [vmem:[%s5067_s27 + $0xc] sm:$0xf] %vm372_vm12, %v3402_v39  ;;  %v3073_v57 = vadd.f32 %v3062_v17, %v2990_v37 }
 0x27e   : > { %v3373_v12 = vpop.f32.mrf.mxu2 }
 0x27f   : > { %v3387_v20 = vadd.f32 %v3373_v12, %v3265_v3  ;;  %v3267_v25 = vadd.f32 %v3256_v52, %v3073_v57 }
 0x281   : > { %v3395_v63 = vadd.f32 %v3387_v20, %v4506_v59  ;;  %v3258_v15 = vpop.f32.mrf.mxu1 }
 0x283   : > { %v3403_v54 = vpack.c.bf16 %v3395_v63, %v3395_v63 }
 0x285   : > { %3411 = vst.msk [vmem:[%s5067_s27 + $0x10] sm:$0xf] %vm372_vm12, %v3403_v54 }
 0x286   : > { %v3375_v10 = vpop.f32.mrf.mxu2 }
 0x287   : > { %v3388_v23 = vadd.f32 %v3375_v10, %v3266_v5 }
 0x289   : > { %v3396_v59 = vadd.f32 %v3388_v23, %v4518_v62  ;;  %v3268_v62 = vadd.f32 %v3258_v15, %v3074_v14 }
 0x28b   : > { %v3404_v22 = vpack.c.bf16 %v3396_v59, %v3396_v59 }
 0x28d   : > { %3412 = vst.msk [vmem:[%s5067_s27 + $0x14] sm:$0xf] %vm372_vm12, %v3404_v22 }
 0x28e   : > { %v3378_v55 = vpop.f32.mrf.mxu2 }
 0x28f   : > { %v3389_v18 = vadd.f32 %v3378_v55, %v3267_v25 }
 0x291   : > { %v3397_v0 = vadd.f32 %v3389_v18, %v5136_v7 }
 0x293   : > { %v3405_v53 = vpack.c.bf16 %v3397_v0, %v3397_v0 }
 0x295   : > { %3413 = vst.msk [vmem:[%s5067_s27 + $0x18] sm:$0xf] %vm372_vm12, %v3405_v53 }
 0x296   : > { %v3380_v27 = vpop.f32.mrf.mxu2 }
 0x297   : > { %v3390_v6 = vadd.f32 %v3380_v27, %v3268_v62 }
 0x299   : > { %v3398_v13 = vadd.f32 %v3390_v6, %v5137_v8 }
 0x29b   : > { %v3406_v47 = vpack.c.bf16 %v3398_v13, %v3398_v13 }
 0x29d   : > { %3414 = vst.msk [vmem:[%s5067_s27 + $0x1c] sm:$0xf] %vm372_vm12, %v3406_v47 }
 0x29e PF: > { %s16_s18 = sadd.s32 1, %s3925_s18  }
 0x29f   : > { %p13_p7 = scmp.ge.s32.totalorder %s16_s18, 4  }
 0x2a1   :  { %15 = sbr.rel (!%p13_p7) target bundleno = 1 (0x1), region = 99 }
 0x2a6   :  { %3436 = vsyncpa [#allocation5], 1 }
 0x2a7   :  { %3438 = vsyncpa [#allocation5 + $0x1], 1 }

// kernel: _lambda_.3
= control target key start
LH: loop header
LB: loop body
LE: loop exit
PB: predicated region body
PF: predicated region fallthrough
CT: control target
= control target key end

     0   :  { %9 = vsyncpa [#allocation6], 0  ;;  %s4739_s0 = inlined_call_operand.vmem [shape: f32[4], index: 0, kind: input, shape index: {}]   ;;  %s4740_s1 = inlined_call_operand.vmem [shape: bf16[2,8,8,8], index: 1, kind: input, shape index: {}]   ;;  %s4741_s2 = inlined_call_operand.vmem [shape: bf16[9,8,8], index: 2, kind: input, shape index: {}]   ;;  %s4742_s3 = inlined_call_operand.vmem [shape: bf16[9,8,8], index: 3, kind: input, shape index: {}]   ;;  %s4743_s4 = inlined_call_operand.hbm [shape: bf16[2,8,8,8], index: 4, kind: output, shape index: {}]  }
   0x1   :  { %10 = vsyncpa [#allocation5], 0 }
   0x2   :  { %12 = vsyncpa [#allocation5 + $0x1], 0  ;;  %s3619_s15 = smov 0   ;;  %s3621_s16 = smov 0  }
   0x3   :  { %s3623_s17 = smov 0   ;;  %s3625_s18 = smov 0  }
   0x4 LB: > { %s3640_s19 = sadd.s32 4294967295, %s3588_s18   ;;  %s3158_s20 = sadd.s32 4294967294, %s3588_s18   ;;  %s3588_s18 = sphi %s3625_s18, %s4769_s18   ;;  %s3584_s17 = sphi %s3623_s17, %s4768_s17   ;;  %s3580_s16 = sphi %s3621_s16, %s4767_s16   ;;  %s3576_s15 = sphi %s3619_s15, %s4766_s15  }
   0x5   : > { %s3644_s21 = sadd.s32 1, %s3588_s18   ;;  %s114_s22 = sadd.s32 1, %s3584_s17 }
   0x6   : > { %s111_s23 = ssub.s32 %s3588_s18, %s3644_s21  ;;  %p124_p0 = scmp.ne.s32.totalorder %s3584_s17, %s3580_s16 }
   0x7   : > { %p112_p1 = scmp.eq.s32.totalorder %s111_s23, 0  ;;  %p125_p2 = scmp.eq.s32.totalorder %s3640_s19, 1 }
   0x8   : > { %p130_p3 = scmp.ne.s32.totalorder %s3580_s16, %s3576_s15  ;;  %p131_p4 = scmp.eq.s32.totalorder %s3158_s20, 1 }
   0x9   : > { %s3655_s24 = scalar_select %p112_p1, %s3584_s17, %s114_s22  }
   0xa   : > { %p3657_p5 = por %p125_p2, %p124_p0  ;;  %p3661_p6 = por %p131_p4, %p130_p3 }
   0xb   : > { %p3159_p7 = scmp.ge.s32.totalorder %s3588_s18, 1  ;;  %p138_p8 = scmp.lt.s32.totalorder %s3588_s18, 3 }
   0xc   : > { %p3468_p9 = scmp.eq.s32.totalorder %s3640_s19, 0  ;;  %s150_s29 = sshll.u32 %s4739_s0, 4  ;;  %s151_s29 = int_to_ptr.vmem [resolvable:$true] %s150_s29 }
   0xd   : > { %p139_p10 = pnand %p3159_p7, %p138_p8  ;;  %s3590_s30 = smov [#allocation4]  }
   0xf   : > { %p3460_p11 = pneg %p139_p10  ;;  %177 = sbr.rel (%p139_p10) target bundleno = 672 (0x2a0), region = 36 }
  0x11   : > { %p3461_p12 = pnand %p3468_p9, %p3460_p11 }
  0x13   : > { %3463 = dma.vmem_to_smem (!%p3461_p12), %s151_s29, 16, %s3590_s30, [#allocation6]  }
  0x14   : > { %3567 = dma.done.wait (%p3468_p9), [#allocation6], 16  }
  0x15   : > { %3569 = vsyncadd (%p3468_p9), [#allocation6], 4294967280 }
  0x16   : > { %184 = sfence }
  0x17   : > { %v541_v0 = vld [vmem:[%s4741_s2] sm:$0xf]  ;;  %vm692_vm0 = vcmask 1043456   ;;  %p205_p13 = scmp.lt.s32.totalorder %s3640_s19, 1  ;;  %s211_s7 = sld [smem:[#allocation4]]  ;;  %vm217_vm1 = vcmask 57344  }
  0x18   : > { %v758_v1 = vsel %vm692_vm0, %v541_v0, 0  ;;  %s3676_s8 = sld [smem:[#allocation4 + $0x1]]  ;;  %vm215_vm2 = vcmask 60416   ;;  %vm223_vm3 = vsmask.f32 256  ;;  %v3591_v26 = vmov 0  }
  0x19   : > { %3453 = vmatpush.bf16.msra.mxu3 %v758_v1  ;;  %s206_s9 = scalar_select %p205_p13, %s3640_s19, 1  ;;  %v237_v2 = vld [vmem:[#allocation2 + $0x20] sm:$0x1]  ;;  %767 = vmatpush.bf16.msra.mxu1 %v758_v1  ;;  %vm3680_vm4 = vmand %vm217_vm1, %vm223_vm3  ;;  %v240_v4 = vld [vmem:[#allocation2 + $0x28] sm:$0x1]  ;;  %vm679_vm8 = vcmask 64512  }
  0x1a   : > { %vm255_vm5 = vsmask.f32 7938  ;;  %v3170_v5 = vld [vmem:[%s4741_s2 + $0x4] sm:$0xf]  ;;  %v238_v6 = vsel %vm3680_vm4, 0, %v237_v2  ;;  %v241_v7 = vsel %vm3680_vm4, 0, %v240_v4 }
  0x1b   : > { %s3407_s12 = sshll.u32 %s206_s9, 5  ;;  %vm3693_vm6 = vmand %vm217_vm1, %vm255_vm5  ;;  %v694_v9 = vsel %vm692_vm0, %v3170_v5, 0  ;;  %v269_v10 = vld [vmem:[#allocation2 + $0x24] sm:$0x1]  ;;  %239 = vst [vmem:[#allocation2 + $0x20] sm:$0x1] %v238_v6 }
  0x1c   : > { %s209_s20 = scalar_lea.vmem %s4740_s1, %s3407_s12  ;;  %3452 = vmatpush.bf16.msra.mxu2 %v694_v9  ;;  %703 = vmatpush.bf16.msra.mxu0 %v694_v9  ;;  %v270_v11 = vsel %vm3693_vm6, 0, %v269_v10  ;;  %v272_v12 = vld [vmem:[#allocation2 + $0x2c] sm:$0x1]  ;;  %242 = vst [vmem:[#allocation2 + $0x28] sm:$0x1] %v241_v7  ;;  %vm3784_vm7 = vmand %vm215_vm2, %vm255_vm5  ;;  %vm813_vm12 = vcmask 1042432  }
  0x1d   : > { %v3703_v13 = vld [vmem:[%s209_s20 + $0x8] sm:$0xff]   ;;  %v3705_v14 = vld [vmem:[%s209_s20 + $0x10] sm:$0xff]   ;;  %v3707_v15 = vstv %s211_s7  ;;  %v273_v16 = vsel %vm3693_vm6, 0, %v272_v12  ;;  %v3711_v17 = vld [vmem:[%s209_s20] sm:$0xff]   ;;  %271 = vst [vmem:[#allocation2 + $0x24] sm:$0x1] %v270_v11 }
  0x1e   : > { %v4748_v18 = vunpack.c.h.bf16 %v3703_v13  ;;  %v4747_v19 = vunpack.c.l.bf16 %v3705_v14  ;;  %v228_v20 = vld [vmem:[#allocation2 + $0x8] sm:$0x1]  ;;  %v260_v21 = vld [vmem:[#allocation2 + $0xc] sm:$0x1]  ;;  %274 = vst [vmem:[#allocation2 + $0x2c] sm:$0x1] %v273_v16  ;;  %v3435_v22 = vunpack.c.l.bf16 %v3711_v17  ;;  %v4746_v23 = vunpack.c.h.bf16 %v3705_v14 }
  0x1f   : > { %216 = vst.msk [vmem:[#allocation2] sm:$0xf] %vm215_vm2, %v3591_v26  ;;  %v229_v27 = vsel %vm3680_vm4, 0, %v228_v20  ;;  %v3727_v28 = vld [vmem:[%s209_s20 + $0x18] sm:$0xff]   ;;  %v3730_v29 = vstv %s3676_s8  ;;  %v261_v30 = vsel %vm3693_vm6, 0, %v260_v21  ;;  %v3439_v35 = vunpack.c.l.bf16 %v3703_v13  ;;  %s3168_s20 = sld [smem:[#allocation4 + $0x2]] }
  0x20   : > { %v372_v24 = vadd.f32 %v4748_v18, %v3707_v15  ;;  %v373_v25 = vadd.f32 %v4747_v19, %v3707_v15  ;;  %218 = vst.msk [vmem:[#allocation2 + $0x4] sm:$0x1] %vm217_vm1, %v3591_v26  ;;  %v369_v31 = vadd.f32 %v3435_v22, %v3707_v15  ;;  %v4745_v32 = vunpack.c.l.bf16 %v3727_v28  ;;  %v3751_v41 = vld [vmem:[#allocation2 + $0x30] sm:$0x1]  ;;  %v3203_v42 = vld [vmem:[%s4741_s2 + $0x8] sm:$0xf] }
  0x21   : > { %230 = vst [vmem:[#allocation2 + $0x8] sm:$0x1] %v229_v27  ;;  %v374_v37 = vadd.f32 %v4746_v23, %v3707_v15  ;;  %v875_v46 = vsel %vm692_vm0, %v3203_v42, 0  ;;  %v3765_v48 = vadd.f32 %v3439_v35, %v3707_v15  ;;  %v244_v51 = vsel %vm3680_vm4, 0, %v3751_v41  ;;  %v3776_v1 = vld [vmem:[#allocation2 + $0x38] sm:$0x1] }
  0x22   : > { %v380_v33 = vmax.f32 %v372_v24, 0.0  ;;  %v381_v34 = vmax.f32 %v373_v25, 0.0  ;;  %262 = vst [vmem:[#allocation2 + $0xc] sm:$0x1] %v261_v30  ;;  %v377_v36 = vmax.f32 %v369_v31, 0.0  ;;  %v375_v38 = vadd.f32 %v4745_v32, %v3707_v15  ;;  %884 = vmatpush.bf16.msrb.mxu2 %v875_v46  ;;  %s3169_s22 = sld [smem:[#allocation4 + $0x3]] }
  0x23   : > { %220 = vst.msk [vmem:[#allocation2 + $0x48] sm:$0xf] %vm215_vm2, %v3591_v26  ;;  %v382_v47 = vmax.f32 %v374_v37, 0.0  ;;  %v503_v58 = vld [vmem:[#allocation2 + $0x20] sm:$0xf]  ;;  %v379_v9 = vmax.f32 %v3765_v48, 0.0  ;;  %v3436_v20 = vunpack.c.h.bf16 %v3711_v17 }
  0x24   : > { %v389_v39 = vadd.f32 %v3730_v29, %v380_v33  ;;  %v390_v40 = vadd.f32 %v3730_v29, %v381_v34  ;;  %v386_v43 = vadd.f32 %v3730_v29, %v377_v36  ;;  %221 = vst.msk [vmem:[#allocation2 + $0x4c] sm:$0x1] %vm217_vm1, %v3591_v26  ;;  %v383_v52 = vmax.f32 %v375_v38, 0.0  ;;  %v509_v59 = vld [vmem:[#allocation2 + $0x28] sm:$0xf]  ;;  %s3432_s28 = sshll.u32 %s3640_s19, 5 }
  0x25   : > { %287 = vst.msk [vmem:[#allocation3] sm:$0xf] %vm215_vm2, %v3591_v26  ;;  %v506_v60 = vld [vmem:[#allocation2 + $0x24] sm:$0x1]  ;;  %v512_v5 = vld [vmem:[#allocation2 + $0x2c] sm:$0x1]  ;;  %v391_v6 = vadd.f32 %v3730_v29, %v382_v47  ;;  %v370_v46 = vadd.f32 %v3436_v20, %v3707_v15  ;;  %s3080_s5 = scalar_lea.hbm %s4743_s4, %s3432_s28 }
  0x26   : > { %v397_v44 = vpack.c.bf16 %v389_v39, %v389_v39  ;;  %v398_v45 = vpack.c.bf16 %v390_v40, %v390_v40  ;;  %v225_v49 = vld [vmem:[#allocation2] sm:$0x1]  ;;  %v394_v50 = vpack.c.bf16 %v386_v43, %v386_v43  ;;  %288 = vst.msk [vmem:[#allocation3 + $0x4] sm:$0x1] %vm217_vm1, %v3591_v26  ;;  %v3779_v7 = vld [vmem:[#allocation2 + $0x34] sm:$0x1]  ;;  %v392_v16 = vadd.f32 %v3730_v29, %v383_v52 }
  0x27   : > { %v257_v57 = vld [vmem:[#allocation2 + $0x4] sm:$0x1]  ;;  %v226_v61 = vsel %vm3680_vm4, 0, %v225_v49  ;;  %v3208_v12 = vld [vmem:[%s4741_s2 + $0xc] sm:$0xf]  ;;  %v399_v36 = vpack.c.bf16 %v391_v6, %v391_v6  ;;  %vm814_vm13 = vcmask 1046532  }
  0x28   : > { %v427_v53 = vshrl.u32 %v397_v44, 16  ;;  %v430_v54 = vshll.u32 %v397_v44, 16  ;;  %v435_v55 = vshrl.u32 %v398_v45, 16  ;;  %v438_v56 = vshll.u32 %v398_v45, 16  ;;  %227 = vst [vmem:[#allocation2] sm:$0x1] %v226_v61  ;;  %vm3954_vm14 = vmor %vm813_vm12, %vm814_vm13 }
  0x29   : > { %v258_v62 = vsel %vm3693_vm6, 0, %v257_v57  ;;  %v403_v63 = vshrl.u32 %v394_v50, 16  ;;  %v406_v0 = vshll.u32 %v394_v50, 16  ;;  %v485_v30 = vld [vmem:[#allocation2 + $0x8] sm:$0xf]  ;;  %v957_v34 = vsel %vm692_vm0, %v3208_v12, 0 }
  0x2a   : > { %v429_v2 = vrot.slane %v427_v53, 7  ;;  %v437_v4 = vrot.slane %v435_v55, 7  ;;  %259 = vst [vmem:[#allocation2 + $0x4] sm:$0x1] %v258_v62  ;;  %v3229_v37 = vld [vmem:[%s4741_s2 + $0x10] sm:$0xf]  ;;  %966 = vmatpush.bf16.msrb.mxu3 %v957_v34  ;;  %v400_v44 = vpack.c.bf16 %v392_v16, %v392_v16 }
  0x2b   : > { %v405_v11 = vrot.slane %v403_v63, 7  ;;  %290 = vst.msk [vmem:[#allocation3 + $0x48] sm:$0xf] %vm215_vm2, %v3591_v26  ;;  %v488_v42 = vld [vmem:[#allocation2 + $0xc] sm:$0x1]  ;;  %v276_v45 = vsel %vm3693_vm6, 0, %v3779_v7 }
  0x2c   : > { %v432_v21 = vor.u32 %v430_v54, %v429_v2  ;;  %v433_v24 = vrot.slane %v429_v2, 4  ;;  %v440_v25 = vor.u32 %v438_v56, %v437_v4  ;;  %v441_v27 = vrot.slane %v437_v4, 4  ;;  %291 = vst.msk [vmem:[#allocation3 + $0x4c] sm:$0x1] %vm217_vm1, %v3591_v26  ;;  %v3821_v50 = vld [vmem:[#allocation2 + $0x3c] sm:$0x1] }
  0x2d   : > { %v408_v31 = vor.u32 %v406_v0, %v405_v11  ;;  %v409_v33 = vrot.slane %v405_v11, 4  ;;  %v247_v26 = vsel %vm3680_vm4, 0, %v3776_v1  ;;  %v443_v48 = vshrl.u32 %v399_v36, 16  ;;  %v3825_v54 = vld [vmem:[#allocation2 + $0x10] sm:$0x1]  ;;  %s3083_s7 = sshll.u32 %s3080_s5, 4  ;;  %s3084_s7 = int_to_ptr.hbm [resolvable:$true] %s3083_s7 }
  0x2e   : > { %v504_v38 = vsel %vm3784_vm7, %v432_v21, %v503_v58  ;;  %v510_v39 = vsel %vm3784_vm7, %v440_v25, %v509_v59  ;;  %v507_v40 = vsel %vm3680_vm4, %v433_v24, %v506_v60  ;;  %v513_v43 = vsel %vm3680_vm4, %v441_v27, %v512_v5  ;;  %245 = vst [vmem:[#allocation2 + $0x30] sm:$0x1] %v244_v51  ;;  %s3536_s8 = sshra.s32 %s3084_s7, 4  ;;  %s3542_s12 = scalar_lea.hbm %s4743_s4, 64  ;;  %s3537_s8 = int_to_ptr.hbm [resolvable:$true] %s3536_s8 }
  0x2f   : > { %505 = vst [vmem:[#allocation2 + $0x20] sm:$0xf] %v504_v38  ;;  %v486_v47 = vsel %vm3784_vm7, %v408_v31, %v485_v30  ;;  %v1151_v49 = vsel %vm692_vm0, %v3229_v37, 0  ;;  %vm550_vm9 = vsmask.f32 3328  ;;  %v489_v52 = vsel %vm3680_vm4, %v409_v33, %v488_v42  ;;  %s3538_s9 = scalar_lea.hbm %s3537_s8, 32  ;;  %p3543_p3 = scmp.lt.s32.totalorder %s3537_s8, %s4743_s4 }
  0x30   : > { %511 = vst [vmem:[#allocation2 + $0x28] sm:$0xf] %v510_v39  ;;  %vm551_vm10 = vsmask.f32 7440  ;;  %v533_v53 = vld [vmem:[#allocation2] sm:$0xf]  ;;  %1160 = vmatpush.bf16.msrb.mxu0 %v1151_v49  ;;  %v388_v58 = vadd.f32 %v3730_v29, %v379_v9  ;;  %p3539_p0 = scmp.ne.s32.totalorder %s3537_s8, %s3538_s9  ;;  %p3544_p4 = scmp.lt.s32.totalorder %s3542_s12, %s3538_s9 }
  0x31   : > { %508 = vst [vmem:[#allocation2 + $0x24] sm:$0x1] %v507_v40  ;;  %v3827_v55 = vld [vmem:[#allocation2 + $0x4] sm:$0x1]  ;;  %v554_v56 = vshrl.u32 %v533_v53, 16  ;;  %v557_v57 = vshll.u32 %v533_v53, 16  ;;  %vm3863_vm11 = vmor %vm550_vm9, %vm551_vm10 }
  0x32   : > { %514 = vst [vmem:[#allocation2 + $0x2c] sm:$0x1] %v513_v43  ;;  %v563_v59 = vshll.u32 %v3827_v55, 16  ;;  %v446_v60 = vshll.u32 %v399_v36, 16  ;;  %v451_v61 = vshrl.u32 %v400_v44, 16  ;;  %v378_v62 = vmax.f32 %v370_v46, 0.0  ;;  %p3540_p1 = pnand %p3539_p0, %p3657_p5  ;;  %p3545_p7 = por %p3544_p4, %p3543_p3 }
  0x33   : > { %487 = vst [vmem:[#allocation2 + $0x8] sm:$0xf] %v486_v47  ;;  %v556_v63 = vrot.slane %v554_v56, 4  ;;  %v559_v0 = vrot.slane %v557_v57, 5  ;;  %v3831_v1 = vrot.slane %v443_v48, 7  ;;  %v279_v2 = vsel %vm3693_vm6, 0, %v3821_v50 }
  0x34   : > { %490 = vst [vmem:[#allocation2 + $0xc] sm:$0x1] %v489_v52  ;;  %v3836_v4 = vrot.slane %v563_v59, 5  ;;  %v3842_v5 = vrot.slane %v451_v61, 7  ;;  %v454_v6 = vshll.u32 %v400_v44, 16  ;;  %v232_v9 = vsel %vm3680_vm4, 0, %v3825_v54  ;;  %p3541_p2 = pneg %p3540_p1 }
  0x35   : > { %v560_v16 = vor.u32 %v559_v0, %v556_v63  ;;  %248 = vst [vmem:[#allocation2 + $0x38] sm:$0x1] %v247_v26  ;;  %v387_v30 = vadd.f32 %v3730_v29, %v378_v62  ;;  %v3848_v31 = vpack.c.bf16 %v388_v58, %v388_v58  ;;  %v448_v36 = vor.u32 %v446_v60, %v3831_v1  ;;  %v234_v37 = vld [vmem:[#allocation2 + $0x18] sm:$0x1]  ;;  %v3177_v26 = vld [vmem:[#allocation2] sm:$0xf] }
  0x36   : > { %v3185_v11 = vld [vmem:[#allocation2 + $0x20] sm:$0xf]  ;;  %v456_v43 = vor.u32 %v454_v6, %v3842_v5  ;;  %v515_v0 = vld [vmem:[#allocation2 + $0x30] sm:$0xf]  ;;  %277 = vst [vmem:[#allocation2 + $0x34] sm:$0x1] %v276_v45  ;;  %p3546_p8 = pnand %p3545_p7, %p3541_p2 }
  0x37   : > { %v537_v12 = vld [vmem:[#allocation2 + $0x20] sm:$0xf]  ;;  %v3410_v21 = vld [vmem:[#allocation2 + $0x24] sm:$0xf0]  ;;  %v561_v49 = vrot.slane %v560_v16, 4  ;;  %v395_v6 = vpack.c.bf16 %v387_v30, %v387_v30  ;;  %v449_v7 = vrot.slane %v3831_v1, 4 }
  0x38   : > { %v538_v24 = vld [vmem:[#allocation2 + $0x28] sm:$0xf]  ;;  %v610_v25 = vshrl.u32 %v537_v12, 16  ;;  %v613_v27 = vshll.u32 %v537_v12, 16  ;;  %v3186_v41 = vor.u32 %v3410_v21, %v3185_v11  ;;  %v3850_v51 = vld [vmem:[#allocation2 + $0x24] sm:$0x1] }
  0x39   : > { %v624_v33 = vshrl.u32 %v538_v24, 16  ;;  %v627_v34 = vshll.u32 %v538_v24, 16  ;;  %v3853_v38 = vld [vmem:[#allocation2 + $0x2c] sm:$0x1]  ;;  %v619_v42 = vshll.u32 %v3850_v51, 16  ;;  %v235_v24 = vsel %vm3680_vm4, 0, %v234_v37 }
  0x3a   : > { %v612_v39 = vrot.slane %v610_v25, 4  ;;  %v615_v40 = vrot.slane %v613_v27, 5  ;;  %3193 = vmatmul.msk.bf16.vlgmr.msra.gmra.mxu3 %vm679_vm8, %v3186_v41  ;;  %v633_v47 = vshll.u32 %v3853_v38, 16  ;;  %v534_v48 = vld [vmem:[#allocation2 + $0x8] sm:$0xf]  ;;  %v566_v27 = vsel %vm3863_vm11, %v561_v49, %v3836_v4 }
  0x3b   : > { %v626_v44 = vrot.slane %v624_v33, 4  ;;  %v629_v46 = vrot.slane %v627_v34, 5  ;;  %v621_v53 = vrot.slane %v619_v42, 5  ;;  %v3859_v56 = vld [vmem:[#allocation2 + $0xc] sm:$0x1]  ;;  %v568_v57 = vshrl.u32 %v534_v48, 16 }
  0x3c   : > { %v616_v52 = vor.u32 %v615_v40, %v612_v39  ;;  %v571_v58 = vshll.u32 %v534_v48, 16  ;;  %v635_v61 = vrot.slane %v633_v47, 5  ;;  %v577_v62 = vshll.u32 %v3859_v56, 16  ;;  %v3408_v63 = vld [vmem:[#allocation2 + $0x4] sm:$0xf0] }
  0x3d   : > { %v630_v60 = vor.u32 %v629_v46, %v626_v44  ;;  %v570_v12 = vrot.slane %v568_v57, 4  ;;  %v521_v21 = vld [vmem:[#allocation2 + $0x38] sm:$0xf]  ;;  %v3178_v41 = vor.u32 %v3408_v63, %v3177_v26  ;;  %v516_v33 = vsel %vm3784_vm7, %v448_v36, %v515_v0  ;;  %v263_v30 = vld [vmem:[#allocation2 + $0x14] sm:$0x1] }
  0x3e   : > { %v617_v11 = vrot.slane %v616_v52, 4  ;;  %v573_v16 = vrot.slane %v571_v58, 5  ;;  %v579_v37 = vrot.slane %v577_v62, 5  ;;  %517 = vst [vmem:[#allocation2 + $0x30] sm:$0xf] %v516_v33  ;;  %v522_v40 = vsel %vm3784_vm7, %v456_v43, %v521_v21 }
  0x3f   : > { %v631_v25 = vrot.slane %v630_v60, 4  ;;  %v266_v4 = vld [vmem:[#allocation2 + $0x1c] sm:$0x1]  ;;  %3191 = vmatmul.msk.bf16.vlgmr.msra.gmra.mxu1 %vm679_vm8, %v3178_v41  ;;  %523 = vst [vmem:[#allocation2 + $0x38] sm:$0xf] %v522_v40  ;;  %v411_v45 = vshrl.u32 %v395_v6, 16  ;;  %v667_v47 = vunpack.c.l.b16 %v566_v27 }
  0x40   : > { %v622_v34 = vsel %vm3863_vm11, %v617_v11, %v621_v53  ;;  %v574_v39 = vor.u32 %v573_v16, %v570_v12  ;;  %280 = vst [vmem:[#allocation2 + $0x3c] sm:$0x1] %v279_v2  ;;  %v264_v43 = vsel %vm3693_vm6, 0, %v263_v30  ;;  %v419_v46 = vshrl.u32 %v3848_v31, 16  ;;  %v518_v57 = vld [vmem:[#allocation2 + $0x34] sm:$0x1] }
  0x41   : > { %v636_v42 = vsel %vm3863_vm11, %v631_v25, %v635_v61  ;;  %v671_v36 = vunpack.c.l.b16 %v622_v34  ;;  %233 = vst [vmem:[#allocation2 + $0x10] sm:$0x1] %v232_v9  ;;  %v267_v1 = vsel %vm3693_vm6, 0, %v266_v4  ;;  %v413_v48 = vrot.slane %v411_v45, 7  ;;  %v996_v30 = vld [vmem:[#allocation2 + $0x8] sm:$0xf] }
  0x42   : > { %v672_v26 = vunpack.c.l.b16 %v636_v42  ;;  %v575_v44 = vrot.slane %v574_v39, 4  ;;  %v414_v49 = vshll.u32 %v395_v6, 16  ;;  %236 = vst [vmem:[#allocation2 + $0x18] sm:$0x1] %v235_v24  ;;  %v457_v53 = vrot.slane %v3842_v5, 4 }
  0x43   : > { %265 = vst [vmem:[#allocation2 + $0x14] sm:$0x1] %v264_v43  ;;  %v421_v54 = vrot.slane %v419_v46, 7  ;;  %v422_v9 = vshll.u32 %v3848_v31, 16  ;;  %v519_v61 = vsel %vm3680_vm4, %v449_v7, %v518_v57  ;;  %v417_v0 = vrot.slane %v413_v48, 4 }
  0x44   : > { %v677_v52 = vpack.c.b16 %v672_v26, %v671_v36  ;;  %v580_v50 = vsel %vm3863_vm11, %v575_v44, %v579_v37  ;;  %268 = vst [vmem:[#allocation2 + $0x1c] sm:$0x1] %v267_v1  ;;  %v416_v63 = vor.u32 %v414_v49, %v413_v48  ;;  %v3915_v44 = vld [vmem:[#allocation2] sm:$0xe]  ;;  %v3247_v43 = vld [vmem:[%s4741_s2 + $0x18] sm:$0xf] }
  0x45   : > { %v668_v2 = vunpack.c.l.b16 %v580_v50  ;;  %v3189_v60 = vld [vmem:[#allocation2 + $0x30] sm:$0xf]  ;;  %520 = vst [vmem:[#allocation2 + $0x34] sm:$0x1] %v519_v61  ;;  %v424_v27 = vor.u32 %v422_v9, %v421_v54  ;;  %v425_v41 = vrot.slane %v421_v54, 4  ;;  %v1356_v48 = vsel %vm692_vm0, %v3247_v43, 0 }
  0x46   : > { %3173 = vmatmul.msk.bf16.vlgmr.msra.gmra.mxu2 %vm679_vm8, %v677_v52  ;;  %v539_v62 = vld [vmem:[#allocation2 + $0x30] sm:$0xf]  ;;  %v3411_v6 = vld [vmem:[#allocation2 + $0x34] sm:$0xf0]  ;;  %v3924_v1 = vld [vmem:[#allocation2 + $0x8] sm:$0xe] }
  0x47   : > { %v675_v58 = vpack.c.b16 %v668_v2, %v667_v47  ;;  %v540_v11 = vld [vmem:[#allocation2 + $0x38] sm:$0xf]  ;;  %v3190_v5 = vor.u32 %v3411_v6, %v3189_v60  ;;  %v524_v12 = vld [vmem:[#allocation2 + $0x3c] sm:$0x1]  ;;  %v638_v16 = vshrl.u32 %v539_v62, 16  ;;  %v641_v21 = vshll.u32 %v539_v62, 16  ;;  %1365 = vmatpush.bf16.msra.mxu2 %v1356_v48 }
  0x48   : > { %v652_v24 = vshrl.u32 %v540_v11, 16  ;;  %v525_v31 = vsel %vm3680_vm4, %v457_v53, %v524_v12  ;;  %v655_v25 = vshll.u32 %v540_v11, 16  ;;  %v491_v33 = vld [vmem:[#allocation2 + $0x10] sm:$0xf]  ;;  %v1013_v50 = vshrl.u32 %v996_v30, 16 }
  0x49   : > { %3171 = vmatmul.msk.bf16.vlgmr.msra.gmra.mxu0 %vm679_vm8, %v675_v58  ;;  %526 = vst [vmem:[#allocation2 + $0x3c] sm:$0x1] %v525_v31  ;;  %v640_v34 = vrot.slane %v638_v16, 4  ;;  %v643_v39 = vrot.slane %v641_v21, 5  ;;  %v492_v40 = vsel %vm3784_vm7, %v416_v63, %v491_v33  ;;  %v497_v45 = vld [vmem:[#allocation2 + $0x18] sm:$0xf] }
  0x4a   : > { %3194 = vmatmul.msk.bf16.gmra.mxu3 %vm679_vm8, %v3190_v5  ;;  %v654_v37 = vrot.slane %v652_v24, 4  ;;  %v657_v4 = vrot.slane %v655_v25, 5  ;;  %493 = vst [vmem:[#allocation2 + $0x10] sm:$0xf] %v492_v40  ;;  %v494_v42 = vld [vmem:[#allocation2 + $0x14] sm:$0x1]  ;;  %v498_v46 = vsel %vm3784_vm7, %v424_v27, %v497_v45 }
  0x4b   : > { %v644_v36 = vor.u32 %v643_v39, %v640_v34  ;;  %v495_v7 = vsel %vm3680_vm4, %v417_v0, %v494_v42  ;;  %v500_v26 = vld [vmem:[#allocation2 + $0x1c] sm:$0x1]  ;;  %499 = vst [vmem:[#allocation2 + $0x18] sm:$0xf] %v498_v46  ;;  %v3930_v57 = vld [vmem:[#allocation2 + $0xc] sm:$0x1] }
  0x4c   : > { %496 = vst [vmem:[#allocation2 + $0x14] sm:$0x1] %v495_v7  ;;  %v501_v47 = vsel %vm3680_vm4, %v425_v41, %v500_v26  ;;  %v3927_v49 = vld [vmem:[#allocation2 + $0x34] sm:$0x1]  ;;  %v658_v52 = vor.u32 %v657_v4, %v654_v37  ;;  %v818_v54 = vrot.slane %v3827_v55, 5  ;;  %v822_v9 = vrot.slane %v3859_v56, 5 }
  0x4d   : > { %v645_v2 = vrot.slane %v644_v36, 4  ;;  %v647_v53 = vshll.u32 %v3927_v49, 16  ;;  %502 = vst [vmem:[#allocation2 + $0x1c] sm:$0x1] %v501_v47  ;;  %v1016_v58 = vshll.u32 %v996_v30, 16  ;;  %v3195_v63 = vrot.slane %v3915_v44, 9 }
  0x4e   : > { %v3211_v62 = vld [vmem:[#allocation2 + $0x8] sm:$0xf]  ;;  %v3196_v0 = vrot.slane %v3924_v1, 9  ;;  %v659_v6 = vrot.slane %v658_v52, 4  ;;  %v3939_v12 = vrot.slane %v1013_v50, 4  ;;  %v1022_v55 = vshll.u32 %v3930_v57, 16 }
  0x4f   : > { %v649_v61 = vrot.slane %v647_v53, 5  ;;  %v1018_v34 = vrot.slane %v1016_v58, 5 }
  0x50   : > { %v3934_v60 = vld [vmem:[#allocation2 + $0x3c] sm:$0x1] }
  0x51   : > { %v661_v11 = vshll.u32 %v3934_v60, 16  ;;  %v535_v5 = vld [vmem:[#allocation2 + $0x10] sm:$0xf]  ;;  %v650_v16 = vsel %vm3863_vm11, %v645_v2, %v649_v61  ;;  %v3268_v61 = vld [vmem:[%s4741_s2 + $0x1c] sm:$0xf] }
  0x52   : > { %v582_v21 = vshrl.u32 %v535_v5, 16  ;;  %v585_v24 = vshll.u32 %v535_v5, 16  ;;  %v3412_v31 = vld [vmem:[#allocation2 + $0xc] sm:$0xf0]  ;;  %v673_v41 = vunpack.c.l.b16 %v650_v16  ;;  %v536_v39 = vld [vmem:[#allocation2 + $0x18] sm:$0xf] }
  0x53   : > { %v998_v25 = vld [vmem:[#allocation2 + $0x10] sm:$0xf]  ;;  %v663_v27 = vrot.slane %v661_v11, 5  ;;  %v3944_v33 = vld [vmem:[#allocation2 + $0x14] sm:$0x1]  ;;  %v596_v45 = vshrl.u32 %v536_v39, 16  ;;  %v3212_v43 = vor.u32 %v3412_v31, %v3211_v62  ;;  %v819_v31 = vsel %vm3954_vm14, %v3195_v63, %v818_v54 }
  0x54   : > { %v3181_v30 = vld [vmem:[#allocation2 + $0x10] sm:$0xf]  ;;  %v584_v37 = vrot.slane %v582_v21, 4  ;;  %v587_v40 = vrot.slane %v585_v24, 5  ;;  %v591_v4 = vshll.u32 %v3944_v33, 16  ;;  %v1027_v42 = vshrl.u32 %v998_v25, 16 }
  0x55   : > { %v664_v36 = vsel %vm3863_vm11, %v659_v6, %v663_v27  ;;  %v3949_v7 = vld [vmem:[#allocation2 + $0x1c] sm:$0x1]  ;;  %v599_v26 = vshll.u32 %v536_v39, 16  ;;  %v3409_v44 = vld [vmem:[#allocation2 + $0x14] sm:$0xf0]  ;;  %v598_v2 = vrot.slane %v596_v45, 4 }
  0x56   : > { %v674_v46 = vunpack.c.l.b16 %v664_v36  ;;  %v588_v47 = vor.u32 %v587_v40, %v584_v37  ;;  %v593_v48 = vrot.slane %v591_v4, 5  ;;  %v605_v52 = vshll.u32 %v3949_v7, 16  ;;  %v3242_v62 = vld [vmem:[%s4741_s2 + $0x14] sm:$0xf]  ;;  %v3281_v21 = vld [vmem:[%s4741_s2 + $0x20] sm:$0xf] }
  0x57   : > { %v601_v53 = vrot.slane %v599_v26, 5  ;;  %v3182_v58 = vor.u32 %v3409_v44, %v3181_v30  ;;  %v999_v16 = vld [vmem:[#allocation2 + $0x14] sm:$0x1]  ;;  %v1029_v27 = vrot.slane %v1027_v42, 4  ;;  %v1030_v30 = vshll.u32 %v998_v25, 16 }
  0x58   : > { %v678_v6 = vpack.c.b16 %v674_v46, %v673_v41  ;;  %v589_v11 = vrot.slane %v588_v47, 4  ;;  %v607_v5 = vrot.slane %v605_v52, 5  ;;  %v1190_v39 = vld [vmem:[#allocation2 + $0x8] sm:$0xe]  ;;  %v1191_v37 = vld [vmem:[#allocation2 + $0x10] sm:$0xe]  ;;  %v1019_v40 = vor.u32 %v1018_v34, %v3939_v12 }
  0x59   : > { %v602_v24 = vor.u32 %v601_v53, %v598_v2  ;;  %3192 = vmatmul.msk.bf16.gmra.mxu1 %vm679_vm8, %v3182_v58  ;;  %v1550_v4 = vsel %vm692_vm0, %v3268_v61, 0  ;;  %v1273_v36 = vsel %vm692_vm0, %v3242_v62, 0  ;;  %v1032_v44 = vrot.slane %v1030_v30, 5  ;;  %v1000_v2 = vld [vmem:[#allocation2 + $0x18] sm:$0xf] }
  0x5a   : > { %3225 = vmatmul.msk.bf16.vlgmr.msrb.gmra.mxu3 %vm679_vm8, %v3212_v43  ;;  %3174 = vmatmul.msk.bf16.gmra.mxu2 %vm679_vm8, %v678_v6  ;;  %v594_v41 = vsel %vm3863_vm11, %v589_v11, %v593_v48  ;;  %v1036_v43 = vshll.u32 %v999_v16, 16  ;;  %v1672_v54 = vsel %vm692_vm0, %v3281_v21, 0  ;;  %v3234_v63 = vrot.slane %v1190_v39, 9  ;;  %v3215_v11 = vld [vmem:[#allocation2 + $0x18] sm:$0xf] }
  0x5b   : > { %v603_v45 = vrot.slane %v602_v24, 4  ;;  %v669_v26 = vunpack.c.l.b16 %v594_v41  ;;  %1559 = vmatpush.bf16.msra.mxu3 %v1550_v4  ;;  %1282 = vmatpush.bf16.msrb.mxu1 %v1273_v36  ;;  %v1216_v25 = vrot.slane %v3930_v57, 5  ;;  %v3235_v42 = vrot.slane %v1191_v37, 9 }
  0x5c   : > { %v823_v12 = vsel %vm3954_vm14, %v3196_v0, %v822_v9  ;;  %v1033_v34 = vor.u32 %v1032_v44, %v1029_v27  ;;  %1681 = vmatpush.bf16.msra.mxu0 %v1672_v54  ;;  %v1220_v47 = vrot.slane %v999_v16, 5  ;;  %v850_v53 = vunpack.c.l.b16 %v819_v31  ;;  %v1002_v0 = vld [vmem:[#allocation2 + $0x20] sm:$0xf]  ;;  %v792_v31 = vld [vmem:[#allocation2 + $0x18] sm:$0xe] }
  0x5d   : > { %v608_v46 = vsel %vm3863_vm11, %v603_v45, %v607_v5  ;;  %v1217_v52 = vsel %vm3954_vm14, %v3234_v63, %v1216_v25  ;;  %v1020_v58 = vrot.slane %v1019_v40, 4  ;;  %v1024_v61 = vrot.slane %v1022_v55, 5  ;;  %v3413_v5 = vld [vmem:[#allocation2 + $0x1c] sm:$0xf0]  ;;  %v791_v55 = vld [vmem:[#allocation2 + $0x10] sm:$0xe] }
  0x5e   : > { %v670_v48 = vunpack.c.l.b16 %v608_v46  ;;  %v1221_v56 = vsel %vm3954_vm14, %v3235_v42, %v1220_v47  ;;  %v851_v62 = vunpack.c.l.b16 %v823_v12  ;;  %v1034_v6 = vrot.slane %v1033_v34, 4  ;;  %v793_v40 = vld [vmem:[#allocation2 + $0x20] sm:$0xe]  ;;  %v1001_v45 = vld [vmem:[#allocation2 + $0x1c] sm:$0x1] }
  0x5f   : > { %v1038_v9 = vrot.slane %v1036_v43, 5  ;;  %v1248_v16 = vunpack.c.l.b16 %v1217_v52  ;;  %v1249_v21 = vunpack.c.l.b16 %v1221_v56  ;;  %v1041_v24 = vshrl.u32 %v1000_v2, 16  ;;  %v794_v43 = vld [vmem:[#allocation2 + $0x28] sm:$0xe]  ;;  %v1192_v46 = vld [vmem:[#allocation2 + $0x18] sm:$0xe] }
  0x60   : > { %v676_v1 = vpack.c.b16 %v670_v48, %v669_v26  ;;  %v1044_v27 = vshll.u32 %v1000_v2, 16  ;;  %v1025_v57 = vsel %vm3863_vm11, %v1020_v58, %v1024_v61  ;;  %v1055_v30 = vshrl.u32 %v1002_v0, 16  ;;  %v1193_v48 = vld [vmem:[#allocation2 + $0x20] sm:$0xe] }
  0x61   : > { %v1058_v39 = vshll.u32 %v1002_v0, 16  ;;  %v858_v37 = vpack.c.b16 %v851_v62, %v850_v53  ;;  %v3216_v41 = vor.u32 %v3413_v5, %v3215_v11  ;;  %v1039_v4 = vsel %vm3863_vm11, %v1034_v6, %v1038_v9  ;;  %v1003_v53 = vld [vmem:[#allocation2 + $0x24] sm:$0x1] }
  0x62   : > { %3172 = vmatmul.msk.bf16.gmra.mxu0 %vm679_vm8, %v676_v1  ;;  %v1256_v36 = vpack.c.b16 %v1249_v21, %v1248_v16  ;;  %v1043_v26 = vrot.slane %v1041_v24, 4  ;;  %v1046_v44 = vrot.slane %v1044_v27, 5  ;;  %v1126_v54 = vunpack.c.l.b16 %v1025_v57  ;;  %v249_v21 = vld [vmem:[#allocation2 + $0x40] sm:$0x1] }
  0x63   : > { %v3197_v63 = vrot.slane %v791_v55, 9  ;;  %v826_v25 = vrot.slane %v3944_v33, 5  ;;  %v3198_v42 = vrot.slane %v792_v31, 9  ;;  %v830_v12 = vrot.slane %v3949_v7, 5  ;;  %v281_v31 = vld [vmem:[#allocation2 + $0x44] sm:$0x1] }
  0x64   : > { %v1057_v34 = vrot.slane %v1055_v30, 4  ;;  %v1060_v47 = vrot.slane %v1058_v39, 5  ;;  %v3199_v52 = vrot.slane %v793_v40, 9  ;;  %v1127_v2 = vunpack.c.l.b16 %v1039_v4 }
  0x65   : > { %v834_v58 = vrot.slane %v3850_v51, 5  ;;  %v3200_v61 = vrot.slane %v794_v43, 9  ;;  %v838_v56 = vrot.slane %v3853_v38, 5  ;;  %v1047_v33 = vor.u32 %v1046_v44, %v1043_v26  ;;  %v1006_v43 = vld [vmem:[#allocation2 + $0x30] sm:$0xf] }
  0x66   : > { %v1050_v1 = vshll.u32 %v1001_v45, 16  ;;  %v3236_v62 = vrot.slane %v1192_v46, 9  ;;  %v1224_v6 = vrot.slane %v1001_v45, 5  ;;  %v3237_v7 = vrot.slane %v1193_v48, 9 }
  0x67   : > { %v1228_v9 = vrot.slane %v1003_v53, 5  ;;  %v835_v0 = vsel %vm3954_vm14, %v3199_v52, %v834_v58  ;;  %v839_v51 = vsel %vm3954_vm14, %v3200_v61, %v838_v56  ;;  %v1061_v11 = vor.u32 %v1060_v47, %v1057_v34  ;;  %v3219_v34 = vld [vmem:[#allocation2 + $0x28] sm:$0xf]  ;;  %v3414_v47 = vld [vmem:[#allocation2 + $0x2c] sm:$0xf0] }
  0x68   : > { %v1064_v38 = vshll.u32 %v1003_v53, 16  ;;  %v854_v5 = vunpack.c.l.b16 %v835_v0  ;;  %v855_v16 = vunpack.c.l.b16 %v839_v51  ;;  %v1134_v24 = vpack.c.b16 %v1127_v2, %v1126_v54  ;;  %v795_v56 = vld [vmem:[#allocation2 + $0x30] sm:$0xe]  ;;  %v1005_v51 = vld [vmem:[#allocation2 + $0x2c] sm:$0x1] }
  0x69   : > { %3243 = vmatmul.msk.bf16.vlgmr.msrb.gmra.mxu1 %vm679_vm8, %v1256_v36  ;;  %v827_v27 = vsel %vm3954_vm14, %v3197_v63, %v826_v25  ;;  %v831_v57 = vsel %vm3954_vm14, %v3198_v42, %v830_v12  ;;  %v1048_v30 = vrot.slane %v1047_v33, 4  ;;  %v1052_v39 = vrot.slane %v1050_v1, 5  ;;  %v1004_v36 = vld [vmem:[#allocation2 + $0x28] sm:$0xf]  ;;  %v796_v33 = vld [vmem:[#allocation2 + $0x38] sm:$0xe] }
  0x6a   : > { %3226 = vmatmul.msk.bf16.gmra.mxu3 %vm679_vm8, %v3216_v41  ;;  %3204 = vmatmul.msk.bf16.vlgmr.msrb.gmra.mxu2 %vm679_vm8, %v858_v37  ;;  %v4013_v55 = vpack.c.b16 %v855_v16, %v854_v5  ;;  %v1225_v37 = vsel %vm3954_vm14, %v3236_v62, %v1224_v6  ;;  %v1229_v41 = vsel %vm3954_vm14, %v3237_v7, %v1228_v9  ;;  %v1062_v40 = vrot.slane %v1061_v11, 4 }
  0x6b   : > { %v1066_v4 = vrot.slane %v1064_v38, 5  ;;  %v250_v45 = vsel %vm3680_vm4, 0, %v249_v21  ;;  %v4744_v26 = vunpack.c.h.bf16 %v3727_v28  ;;  %v852_v44 = vunpack.c.l.b16 %v827_v27  ;;  %v1194_v38 = vld [vmem:[#allocation2 + $0x28] sm:$0xe] }
  0x6c   : > { %251 = vst [vmem:[#allocation2 + $0x40] sm:$0x1] %v250_v45  ;;  %v282_v54 = vsel %vm3693_vm6, 0, %v281_v31  ;;  %v853_v63 = vunpack.c.l.b16 %v831_v57  ;;  %v1250_v25 = vunpack.c.l.b16 %v1225_v37  ;;  %v1251_v42 = vunpack.c.l.b16 %v1229_v41  ;;  %v1007_v31 = vld [vmem:[#allocation2 + $0x34] sm:$0x1] }
  0x6d   : > { %v376_v46 = vadd.f32 %v4744_v26, %v3707_v15  ;;  %283 = vst [vmem:[#allocation2 + $0x44] sm:$0x1] %v282_v54  ;;  %v1053_v12 = vsel %vm3863_vm11, %v1048_v30, %v1052_v39  ;;  %v1069_v48 = vshrl.u32 %v1004_v36, 16  ;;  %v1067_v52 = vsel %vm3863_vm11, %v1062_v40, %v1066_v4 }
  0x6e   : > { %v1072_v2 = vshll.u32 %v1004_v36, 16  ;;  %v1083_v53 = vshrl.u32 %v1006_v43, 16  ;;  %v1086_v61 = vshll.u32 %v1006_v43, 16  ;;  %v842_v15 = vrot.slane %v3927_v49, 5 }
  0x6f   : > { %v384_v58 = vmax.f32 %v376_v46, 0.0  ;;  %v859_v1 = vpack.c.b16 %v853_v63, %v852_v44  ;;  %v3220_v62 = vor.u32 %v3414_v47, %v3219_v34  ;;  %v1257_v6 = vpack.c.b16 %v1251_v42, %v1250_v25  ;;  %v1395_v34 = vld [vmem:[#allocation2 + $0x10] sm:$0xf]  ;;  %v1397_v47 = vld [vmem:[#allocation2 + $0x18] sm:$0xf] }
  0x70   : > { %v1128_v9 = vunpack.c.l.b16 %v1053_v12  ;;  %v1129_v0 = vunpack.c.l.b16 %v1067_v52  ;;  %v1071_v11 = vrot.slane %v1069_v48, 4  ;;  %v3201_v5 = vrot.slane %v795_v56, 9  ;;  %v1008_v56 = vld [vmem:[#allocation2 + $0x38] sm:$0xf] }
  0x71   : > { %v393_v7 = vadd.f32 %v3730_v29, %v384_v58  ;;  %v1074_v16 = vrot.slane %v1072_v2, 5  ;;  %v3202_v27 = vrot.slane %v796_v33, 9  ;;  %v846_v57 = vrot.slane %v3934_v60, 5 }
  0x72   : > { %3230 = vmatmul.msk.bf16.vlgmr.msrb.gmra.mxu0 %vm679_vm8, %v1134_v24  ;;  %v1195_v24 = vld [vmem:[#allocation2 + $0x30] sm:$0xe]  ;;  %v1085_v30 = vrot.slane %v1083_v53, 4  ;;  %v1088_v49 = vrot.slane %v1086_v61, 5  ;;  %v1232_v39 = vrot.slane %v1005_v51, 5  ;;  %v843_v37 = vsel %vm3954_vm14, %v3201_v5, %v842_v15 }
  0x73   : > { %v401_v21 = vpack.c.bf16 %v393_v7, %v393_v7  ;;  %v3238_v40 = vrot.slane %v1194_v38, 9  ;;  %v847_v4 = vsel %vm3954_vm14, %v3202_v27, %v846_v57  ;;  %v3239_v60 = vrot.slane %v1195_v24, 9  ;;  %v527_v25 = vld [vmem:[#allocation2 + $0x40] sm:$0xf]  ;;  %v4053_v24 = vld [vmem:[#allocation2 + $0x14] sm:$0x1] }
  0x74   : > { %v1236_v36 = vrot.slane %v1007_v31, 5  ;;  %v856_v45 = vunpack.c.l.b16 %v843_v37  ;;  %v857_v44 = vunpack.c.l.b16 %v847_v4  ;;  %v1078_v43 = vshll.u32 %v1005_v51, 16  ;;  %v530_v12 = vld [vmem:[#allocation2 + $0x44] sm:$0x1]  ;;  %v4055_v27 = vld [vmem:[#allocation2 + $0x1c] sm:$0x1] }
  0x75   : > { %v459_v29 = vshrl.u32 %v401_v21, 16  ;;  %v462_v41 = vshll.u32 %v401_v21, 16  ;;  %v1092_v54 = vshll.u32 %v1007_v31, 16  ;;  %v1075_v42 = vor.u32 %v1074_v16, %v1071_v11 }
  0x76   : > { %v4042_v46 = vpack.c.b16 %v857_v44, %v856_v45  ;;  %v1135_v48 = vpack.c.b16 %v1129_v0, %v1128_v9  ;;  %v1089_v52 = vor.u32 %v1088_v49, %v1085_v30  ;;  %v1233_v58 = vsel %vm3954_vm14, %v3238_v40, %v1232_v39  ;;  %v3223_v39 = vld [vmem:[#allocation2 + $0x38] sm:$0xf]  ;;  %v1009_v40 = vld [vmem:[#allocation2 + $0x3c] sm:$0x1] }
  0x77   : > { %v461_v63 = vrot.slane %v459_v29, 7  ;;  %v1237_v61 = vsel %vm3954_vm14, %v3239_v60, %v1236_v36  ;;  %v1412_v33 = vshrl.u32 %v1395_v34, 16  ;;  %v1415_v15 = vshll.u32 %v1395_v34, 16  ;;  %v1196_v60 = vld [vmem:[#allocation2 + $0x38] sm:$0xe] }
  0x78   : > { %v1429_v7 = vshll.u32 %v1397_v47, 16  ;;  %v1076_v9 = vrot.slane %v1075_v42, 4  ;;  %v1080_v0 = vrot.slane %v1078_v43, 5  ;;  %v1094_v51 = vrot.slane %v1092_v54, 5 }
  0x79   : > { %3244 = vmatmul.msk.bf16.gmra.mxu1 %vm679_vm8, %v1257_v6  ;;  %v464_v2 = vor.u32 %v462_v41, %v461_v63  ;;  %v465_v53 = vrot.slane %v461_v63, 4  ;;  %v1426_v6 = vshrl.u32 %v1397_v47, 16  ;;  %v1090_v11 = vrot.slane %v1089_v52, 4 }
  0x7a   : > { %3227 = vmatmul.msk.bf16.gmra.mxu3 %vm679_vm8, %v3220_v62  ;;  %3205 = vmatmul.msk.bf16.gmra.mxu2 %vm679_vm8, %v859_v1  ;;  %v1252_v38 = vunpack.c.l.b16 %v1233_v58  ;;  %v1253_v5 = vunpack.c.l.b16 %v1237_v61  ;;  %v1097_v16 = vshrl.u32 %v1008_v56, 16  ;;  %v1100_v21 = vshll.u32 %v1008_v56, 16 }
  0x7b   : > { %v528_v1 = vsel %vm3784_vm7, %v464_v2, %v527_v25  ;;  %v531_v62 = vsel %vm3680_vm4, %v465_v53, %v530_v12  ;;  %v1414_v57 = vrot.slane %v1412_v33, 4  ;;  %v1417_v31 = vrot.slane %v1415_v15, 5 }
  0x7c   : > { %529 = vst [vmem:[#allocation2 + $0x40] sm:$0xf] %v528_v1  ;;  %v1428_v30 = vrot.slane %v1426_v6, 4  ;;  %v1431_v49 = vrot.slane %v1429_v7, 5  ;;  %v1081_v37 = vsel %vm3863_vm11, %v1076_v9, %v1080_v0  ;;  %v1095_v29 = vsel %vm3863_vm11, %v1090_v11, %v1094_v51 }
  0x7d   : > { %532 = vst [vmem:[#allocation2 + $0x44] sm:$0x1] %v531_v62  ;;  %v1258_v41 = vpack.c.b16 %v1253_v5, %v1252_v38  ;;  %v1099_v4 = vrot.slane %v1097_v16, 4  ;;  %v1102_v36 = vrot.slane %v1100_v21, 5  ;;  %v1421_v45 = vshll.u32 %v4053_v24, 16 }
  0x7e   : > { %v1435_v44 = vshll.u32 %v4055_v27, 16  ;;  %v1240_v43 = vrot.slane %v1009_v40, 5  ;;  %v1418_v25 = vor.u32 %v1417_v31, %v1414_v57  ;;  %v1432_v42 = vor.u32 %v1431_v49, %v1428_v30  ;;  %v1399_v5 = vld [vmem:[#allocation2 + $0x20] sm:$0xf]  ;;  %v1401_v16 = vld [vmem:[#allocation2 + $0x28] sm:$0xf] }
  0x7f   : > { %v3240_v52 = vrot.slane %v1196_v60, 9  ;;  %v1130_v2 = vunpack.c.l.b16 %v1081_v37  ;;  %v1131_v53 = vunpack.c.l.b16 %v1095_v29  ;;  %v1106_v61 = vshll.u32 %v1009_v40, 16 }
  0x80   : > { %v1103_v33 = vor.u32 %v1102_v36, %v1099_v4  ;;  %v1419_v6 = vrot.slane %v1418_v25, 4  ;;  %v1423_v7 = vrot.slane %v1421_v45, 5  ;;  %v1433_v9 = vrot.slane %v1432_v42, 4  ;;  %v4076_v25 = vld [vmem:[#allocation2 + $0x24] sm:$0x1] }
  0x81   : > { %v1437_v0 = vrot.slane %v1435_v44, 5  ;;  %v1241_v38 = vsel %vm3954_vm14, %v3240_v52, %v1240_v43  ;;  %v1440_v21 = vshrl.u32 %v1399_v5, 16  ;;  %v1443_v57 = vshll.u32 %v1399_v5, 16  ;;  %v4078_v42 = vld [vmem:[#allocation2 + $0x2c] sm:$0x1] }
  0x82   : > { %3231 = vmatmul.msk.bf16.gmra.mxu0 %vm679_vm8, %v1135_v48  ;;  %v1136_v31 = vpack.c.b16 %v1131_v53, %v1130_v2  ;;  %v1108_v30 = vrot.slane %v1106_v61, 5  ;;  %v1454_v49 = vshrl.u32 %v1401_v16, 16  ;;  %v1424_v37 = vsel %vm3863_vm11, %v1419_v6, %v1423_v7  ;;  %v1403_v7 = vld [vmem:[#allocation2 + $0x30] sm:$0xf]  ;;  %v1590_v5 = vld [vmem:[#allocation2 + $0x18] sm:$0xe] }
  0x83   : > { %v3415_v54 = vld [vmem:[#allocation2 + $0x3c] sm:$0xf0]  ;;  %v1438_v29 = vsel %vm3863_vm11, %v1433_v9, %v1437_v0  ;;  %v1457_v36 = vshll.u32 %v1401_v16, 16  ;;  %v1442_v45 = vrot.slane %v1440_v21, 4  ;;  %v1445_v44 = vrot.slane %v1443_v57, 5 }
  0x84   : > { %v1010_v63 = vld [vmem:[#allocation2 + $0x40] sm:$0xf]  ;;  %v3224_v34 = vor.u32 %v3415_v54, %v3223_v39  ;;  %v1011_v58 = vld [vmem:[#allocation2 + $0x44] sm:$0x1]  ;;  %v1104_v39 = vrot.slane %v1103_v33, 4  ;;  %v1456_v43 = vrot.slane %v1454_v49, 4  ;;  %v1525_v54 = vunpack.c.l.b16 %v1424_v37 }
  0x85   : > { %v1197_v12 = vld [vmem:[#allocation2 + $0x40] sm:$0xe]  ;;  %v1111_v47 = vshrl.u32 %v1010_v63, 16  ;;  %v1114_v48 = vshll.u32 %v1010_v63, 16  ;;  %v1244_v62 = vrot.slane %v1011_v58, 5  ;;  %v1120_v11 = vshll.u32 %v1011_v58, 16 }
  0x86   : > { %v3241_v56 = vrot.slane %v1197_v12, 9  ;;  %v1526_v63 = vunpack.c.l.b16 %v1438_v29  ;;  %v1459_v12 = vrot.slane %v1457_v36, 5  ;;  %v1446_v52 = vor.u32 %v1445_v44, %v1442_v45  ;;  %v1405_v9 = vld [vmem:[#allocation2 + $0x38] sm:$0xf]  ;;  %v4097_v45 = vld [vmem:[#allocation2 + $0x34] sm:$0x1] }
  0x87   : > { %v1113_v15 = vrot.slane %v1111_v47, 4  ;;  %v1116_v1 = vrot.slane %v1114_v48, 5  ;;  %v1122_v4 = vrot.slane %v1120_v11, 5  ;;  %v1449_v2 = vshll.u32 %v4076_v25, 16  ;;  %v4099_v44 = vld [vmem:[#allocation2 + $0x3c] sm:$0x1] }
  0x88   : > { %v1460_v53 = vor.u32 %v1459_v12, %v1456_v43  ;;  %v1463_v58 = vshll.u32 %v4078_v42, 16  ;;  %v1533_v61 = vpack.c.b16 %v1526_v63, %v1525_v54  ;;  %v1468_v16 = vshrl.u32 %v1403_v7, 16  ;;  %v252_v43 = vld [vmem:[#allocation2 + $0x48] sm:$0x1] }
  0x89   : > { %3245 = vmatmul.msk.bf16.gmra.mxu1 %vm679_vm8, %v1258_v41  ;;  %v1117_v51 = vor.u32 %v1116_v1, %v1113_v15  ;;  %v1254_v41 = vunpack.c.l.b16 %v1241_v38  ;;  %v1447_v15 = vrot.slane %v1446_v52, 4  ;;  %v1451_v1 = vrot.slane %v1449_v2, 5  ;;  %v284_v2 = vld [vmem:[#allocation2 + $0x4c] sm:$0x1] }
  0x8a   : > { %3206 = vmatmul.msk.bf16.gmra.mxu2 %vm679_vm8, %v4013_v55  ;;  %3228 = vmatmul.msk.bf16.gmra.mxu3 %vm679_vm8, %v3224_v34  ;;  %v1245_v55 = vsel %vm3954_vm14, %v3241_v56, %v1244_v62  ;;  %v1109_v34 = vsel %vm3863_vm11, %v1104_v39, %v1108_v30  ;;  %v1461_v62 = vrot.slane %v1460_v53, 4  ;;  %v1465_v6 = vrot.slane %v1463_v58, 5  ;;  %v3250_v30 = vld [vmem:[#allocation2 + $0x10] sm:$0xf] }
  0x8b   : > { %v1118_v40 = vrot.slane %v1117_v51, 4  ;;  %v1255_v60 = vunpack.c.l.b16 %v1245_v55  ;;  %v1132_v56 = vunpack.c.l.b16 %v1109_v34  ;;  %v1589_v51 = vld [vmem:[#allocation2 + $0x10] sm:$0xe]  ;;  %v1452_v11 = vsel %vm3863_vm11, %v1447_v15, %v1451_v1 }
  0x8c   : > { %v1466_v38 = vsel %vm3863_vm11, %v1461_v62, %v1465_v6  ;;  %v1471_v55 = vshll.u32 %v1403_v7, 16  ;;  %v1482_v21 = vshrl.u32 %v1405_v9, 16  ;;  %v1485_v57 = vshll.u32 %v1405_v9, 16  ;;  %v1407_v62 = vld [vmem:[#allocation2 + $0x40] sm:$0xf] }
  0x8d   : > { %v1123_v47 = vsel %vm3863_vm11, %v1118_v40, %v1122_v4  ;;  %v1259_v48 = vpack.c.b16 %v1255_v60, %v1254_v41  ;;  %v3274_v49 = vrot.slane %v1590_v5, 9  ;;  %v1619_v39 = vrot.slane %v4055_v27, 5  ;;  %v3416_v41 = vld [vmem:[#allocation2 + $0x14] sm:$0xf0]  ;;  %v1591_v9 = vld [vmem:[#allocation2 + $0x20] sm:$0xe] }
  0x8e   : > { %v1133_v33 = vunpack.c.l.b16 %v1123_v47  ;;  %v1527_v37 = vunpack.c.l.b16 %v1452_v11  ;;  %v1528_v29 = vunpack.c.l.b16 %v1466_v38  ;;  %v1470_v40 = vrot.slane %v1468_v16, 4  ;;  %v1592_v11 = vld [vmem:[#allocation2 + $0x28] sm:$0xe] }
  0x8f   : > { %v1473_v4 = vrot.slane %v1471_v55, 5  ;;  %v1484_v60 = vrot.slane %v1482_v21, 4  ;;  %v1487_v36 = vrot.slane %v1485_v57, 5  ;;  %v3251_v54 = vor.u32 %v3416_v41, %v3250_v30 }
  0x90   : > { %v1137_v0 = vpack.c.b16 %v1133_v33, %v1132_v56  ;;  %v1620_v63 = vsel %vm3954_vm14, %v3274_v49, %v1619_v39  ;;  %v1534_v12 = vpack.c.b16 %v1528_v29, %v1527_v37  ;;  %v1477_v47 = vshll.u32 %v4097_v45, 16  ;;  %v3417_v37 = vld [vmem:[#allocation2 + $0x24] sm:$0xf0] }
  0x91   : > { %v1474_v34 = vor.u32 %v1473_v4, %v1470_v40  ;;  %v1491_v52 = vshll.u32 %v4099_v44, 16  ;;  %v285_v53 = vsel %vm3693_vm6, 0, %v284_v2  ;;  %v1496_v38 = vshrl.u32 %v1407_v62, 16 }
  0x92   : > { %3232 = vmatmul.msk.bf16.gmra.mxu0 %vm679_vm8, %v1136_v31  ;;  %v3273_v31 = vrot.slane %v1589_v51, 9  ;;  %286 = vst [vmem:[#allocation2 + $0x4c] sm:$0x1] %v285_v53  ;;  %v1479_v33 = vrot.slane %v1477_v47, 5  ;;  %v1499_v5 = vshll.u32 %v1407_v62, 16  ;;  %v1623_v21 = vrot.slane %v4076_v25, 5 }
  0x93   : > { %v1475_v56 = vrot.slane %v1474_v34, 4  ;;  %v1493_v1 = vrot.slane %v1491_v52, 5  ;;  %v1627_v57 = vrot.slane %v4078_v42, 5  ;;  %v3276_v30 = vrot.slane %v1592_v11, 9  ;;  %v3258_v62 = vld [vmem:[#allocation2 + $0x30] sm:$0xf] }
  0x94   : > { %v1498_v29 = vrot.slane %v1496_v38, 4  ;;  %v1501_v41 = vrot.slane %v1499_v5, 5  ;;  %v1635_v38 = vrot.slane %v4099_v44, 5 }
  0x95   : > { %v1628_v42 = vsel %vm3954_vm14, %v3276_v30, %v1627_v57 }
  0x96   : > { %v1650_v47 = vunpack.c.l.b16 %v1628_v42 }
  0x99   : > { %3246 = vmatmul.msk.bf16.gmra.mxu1 %vm679_vm8, %v1259_v48  ;;  %v1488_v48 = vor.u32 %v1487_v36, %v1484_v60  ;;  %v1408_v60 = vld [vmem:[#allocation2 + $0x44] sm:$0x1]  ;;  %v1410_v36 = vld [vmem:[#allocation2 + $0x4c] sm:$0x1] }
  0x9a   : > { %3207 = vmatmul.msk.bf16.gmra.mxu2 %vm679_vm8, %v4042_v46  ;;  %3269 = vmatmul.msk.bf16.vlgmr.msra.gmra.mxu3 %vm679_vm8, %v1533_v61  ;;  %v1615_v46 = vrot.slane %v4053_v24, 5  ;;  %v253_v24 = vsel %vm3680_vm4, 0, %v252_v43  ;;  %v1648_v61 = vunpack.c.l.b16 %v1620_v63 }
  0x9b   : > { %254 = vst [vmem:[#allocation2 + $0x48] sm:$0x1] %v253_v24  ;;  %v1489_v15 = vrot.slane %v1488_v48, 4 }
  0x9c   : > { %v1616_v27 = vsel %vm3954_vm14, %v3273_v31, %v1615_v46  ;;  %v3254_v31 = vld [vmem:[#allocation2 + $0x20] sm:$0xf]  ;;  %v3275_v46 = vrot.slane %v1591_v9, 9  ;;  %v3418_v9 = vld [vmem:[#allocation2 + $0x34] sm:$0xf0] }
  0x9d   : > { %v1647_v58 = vunpack.c.l.b16 %v1616_v27  ;;  %v1494_v51 = vsel %vm3863_vm11, %v1489_v15, %v1493_v1  ;;  %v3255_v43 = vor.u32 %v3417_v37, %v3254_v31  ;;  %v1505_v27 = vshll.u32 %v1408_v60, 16  ;;  %v1593_v15 = vld [vmem:[#allocation2 + $0x30] sm:$0xe]  ;;  %v1594_v1 = vld [vmem:[#allocation2 + $0x38] sm:$0xe] }
  0x9e   : > { %v1530_v39 = vunpack.c.l.b16 %v1494_v51  ;;  %v1624_v25 = vsel %vm3954_vm14, %v3275_v46, %v1623_v21  ;;  %v1631_v51 = vrot.slane %v4097_v45, 5  ;;  %v3278_v11 = vrot.slane %v1594_v1, 9  ;;  %v1595_v37 = vld [vmem:[#allocation2 + $0x40] sm:$0xe] }
  0x9f   : > { %v1655_v7 = vpack.c.b16 %v1648_v61, %v1647_v58  ;;  %v1649_v34 = vunpack.c.l.b16 %v1624_v25  ;;  %v1507_v52 = vrot.slane %v1505_v27, 5 }
  0xa0   : > { %v1636_v57 = vsel %vm3954_vm14, %v3278_v11, %v1635_v38 }
  0xa1   : > { %v1656_v61 = vpack.c.b16 %v1650_v47, %v1649_v34  ;;  %v1652_v45 = vunpack.c.l.b16 %v1636_v57 }
  0xa2   : > { %3233 = vmatmul.msk.bf16.gmra.mxu0 %vm679_vm8, %v1137_v0  ;;  %v1409_v6 = vld [vmem:[#allocation2 + $0x48] sm:$0xf]  ;;  %v1480_v0 = vsel %vm3863_vm11, %v1475_v56, %v1479_v33 }
  0xa3   : > { %v1510_v16 = vshrl.u32 %v1409_v6, 16  ;;  %v1513_v55 = vshll.u32 %v1409_v6, 16  ;;  %v1529_v49 = vunpack.c.l.b16 %v1480_v0  ;;  %v3277_v0 = vrot.slane %v1593_v15, 9  ;;  %v3419_v25 = vld [vmem:[#allocation2 + $0x44] sm:$0xf0] }
  0xa5   : > { %v1512_v40 = vrot.slane %v1510_v16, 4  ;;  %v1515_v4 = vrot.slane %v1513_v55, 5  ;;  %v1535_v24 = vpack.c.b16 %v1530_v39, %v1529_v49  ;;  %v3259_v16 = vor.u32 %v3418_v9, %v3258_v62 }
  0xa6   : > { %v1632_v21 = vsel %vm3954_vm14, %v3277_v0, %v1631_v51  ;;  %v3286_v0 = vld [vmem:[%s4742_s3 + $0x4] sm:$0xf] }
  0xa7   : > { %v1516_v63 = vor.u32 %v1515_v4, %v1512_v40  ;;  %v1651_v30 = vunpack.c.l.b16 %v1632_v21  ;;  %v1639_v40 = vrot.slane %v1408_v60, 5  ;;  %v2030_v51 = vsel %vm692_vm0, %v3286_v0, 0 }
  0xa8   : > { %2039 = vmatpush.bf16.msra.mxu1 %v2030_v51  ;;  %v298_v51 = vld [vmem:[#allocation3 + $0x10] sm:$0x1] }
  0xa9   : > { %v1517_v2 = vrot.slane %v1516_v63, 4  ;;  %v1657_v39 = vpack.c.b16 %v1652_v45, %v1651_v30 }
  0xaa   : > { %3264 = vmatmul.msk.bf16.vlgmr.msra.gmra.mxu2 %vm679_vm8, %v3251_v54  ;;  %3270 = vmatmul.msk.bf16.gmra.mxu3 %vm679_vm8, %v1534_v12  ;;  %v1502_v54 = vor.u32 %v1501_v41, %v1498_v29  ;;  %v1519_v12 = vshll.u32 %v1410_v36, 16  ;;  %v1596_v29 = vld [vmem:[#allocation2 + $0x48] sm:$0xe]  ;;  %v3279_v41 = vrot.slane %v1595_v37, 9 }
  0xab   : > { %v3280_v42 = vrot.slane %v1596_v29, 9  ;;  %v295_v29 = vld [vmem:[#allocation3 + $0x8] sm:$0x1] }
  0xac   : > { %v1503_v48 = vrot.slane %v1502_v54, 4  ;;  %v1521_v53 = vrot.slane %v1519_v12, 5  ;;  %v1640_v12 = vsel %vm3954_vm14, %v3279_v41, %v1639_v40  ;;  %v325_v41 = vld [vmem:[#allocation3 + $0xc] sm:$0x1]  ;;  %v296_v40 = vsel %vm3680_vm4, 0, %v295_v29 }
  0xad   : > { %v1653_v47 = vunpack.c.l.b16 %v1640_v12  ;;  %297 = vst [vmem:[#allocation3 + $0x8] sm:$0x1] %v296_v40  ;;  %v328_v29 = vld [vmem:[#allocation3 + $0x14] sm:$0x1]  ;;  %v299_v40 = vsel %vm3680_vm4, 0, %v298_v51 }
  0xae   : > { %v1508_v56 = vsel %vm3863_vm11, %v1503_v48, %v1507_v52  ;;  %v1522_v33 = vsel %vm3863_vm11, %v1517_v2, %v1521_v53  ;;  %300 = vst [vmem:[#allocation3 + $0x10] sm:$0x1] %v299_v40  ;;  %v301_v40 = vld [vmem:[#allocation3 + $0x18] sm:$0x1] }
  0xaf   : > { %v1531_v6 = vunpack.c.l.b16 %v1508_v56 }
  0xb2   : > { %3282 = vmatmul.msk.bf16.vlgmr.msra.gmra.mxu0 %vm679_vm8, %v1655_v7  ;;  %v1532_v7 = vunpack.c.l.b16 %v1522_v33 }
  0xb4   : > { %v1536_v55 = vpack.c.b16 %v1532_v7, %v1531_v6 }
  0xba   : > { %3265 = vmatmul.msk.bf16.gmra.mxu2 %vm679_vm8, %v3255_v43  ;;  %3271 = vmatmul.msk.bf16.gmra.mxu3 %vm679_vm8, %v1535_v24  ;;  %v3262_v43 = vld [vmem:[#allocation2 + $0x40] sm:$0xf]  ;;  %v1643_v24 = vrot.slane %v1410_v36, 5 }
  0xbb   : > { %v3263_v63 = vor.u32 %v3419_v25, %v3262_v43  ;;  %v326_v43 = vsel %vm3693_vm6, 0, %v325_v41 }
  0xbc   : > { %v1644_v34 = vsel %vm3954_vm14, %v3280_v42, %v1643_v24  ;;  %v769_v62 = vpop.f32.mrf.mxu1  ;;  %327 = vst [vmem:[#allocation3 + $0xc] sm:$0x1] %v326_v43  ;;  %v329_v43 = vsel %vm3693_vm6, 0, %v328_v29 }
  0xbd   : > { %v779_v58 = vpop.f32.mrf.mxu3  ;;  %v1654_v60 = vunpack.c.l.b16 %v1644_v34  ;;  %330 = vst [vmem:[#allocation3 + $0x14] sm:$0x1] %v329_v43  ;;  %v331_v43 = vld [vmem:[#allocation3 + $0x1c] sm:$0x1] }
  0xbf   : > { %v1658_v2 = vpack.c.b16 %v1654_v60, %v1653_v47 }
  0xc2   : > { %3283 = vmatmul.msk.bf16.gmra.mxu0 %vm679_vm8, %v1656_v61 }
  0xc4   : > { %v771_v11 = vpop.f32.mrf.mxu1 }
  0xc5   : > { %v4133_v5 = vpop.f32.mrf.mxu3 }
  0xc6   : > { %v4143_v44 = vpop.f32.mrf.mxu0 }
  0xc7   : > { %v770_v34 = vadd.f32 %v769_v62, %v4143_v44  ;;  %v292_v44 = vld [vmem:[#allocation3] sm:$0x1] }
  0xc9   : > { %v715_v31 = vpop.f32.mrf.mxu2 }
  0xca   : > { %v4139_v46 = vadd.f32 %v779_v58, %v715_v31  ;;  %3266 = vmatmul.msk.bf16.gmra.mxu2 %vm679_vm8, %v3259_v16  ;;  %3272 = vmatmul.msk.bf16.gmra.mxu3 %vm679_vm8, %v1536_v55 }
  0xcd   : > { %v784_v49 = vpop.f32.mrf.mxu3 }
  0xce   : > { %v707_v27 = vpop.f32.mrf.mxu0 }
  0xcf   : > { %v772_v26 = vadd.f32 %v771_v11, %v707_v27 }
  0xd1   : > { %v4146_v4 = vpop.f32.mrf.mxu2 }
  0xd2   : > { %3284 = vmatmul.msk.bf16.gmra.mxu0 %vm679_vm8, %v1657_v39 }
  0xd5   : > { %v4148_v54 = vpop.f32.mrf.mxu3 }
  0xd6   : > { %v774_v21 = vpop.f32.mrf.mxu1 }
  0xda   : > { %3267 = vmatmul.msk.bf16.gmra.mxu2 %vm679_vm8, %v3263_v63 }
  0xdd   : > { %v968_v48 = vpop.f32.mrf.mxu3  ;;  %v720_v52 = vpop.f32.mrf.mxu2 }
  0xde   : > { %v4155_v53 = vadd.f32 %v784_v49, %v720_v52  ;;  %v4192_v39 = vpop.f32.mrf.mxu1 }
  0xdf   : > { %v4157_v36 = vpop.f32.mrf.mxu0 }
  0xe2   : > { %3285 = vmatmul.msk.bf16.gmra.mxu0 %vm679_vm8, %v1658_v2 }
  0xe5   : > { %v4160_v58 = vpop.f32.mrf.mxu3  ;;  %v4162_v61 = vpop.f32.mrf.mxu2 }
  0xe6   : > { %v1284_v42 = vpop.f32.mrf.mxu1 }
  0xe7   : > { %v4164_v56 = vpop.f32.mrf.mxu0 }
  0xed   : > { %v4166_v33 = vpop.f32.mrf.mxu3  ;;  %v886_v15 = vpop.f32.mrf.mxu2 }
  0xee   : > { %v906_v60 = vadd.f32 %v886_v15, %v770_v34  ;;  %v1286_v52 = vpop.f32.mrf.mxu1  ;;  %v322_v15 = vld [vmem:[#allocation3 + $0x4] sm:$0x1] }
  0xef   : > { %v1162_v1 = vpop.f32.mrf.mxu0 }
  0xf0   : > { %v988_v0 = vadd.f32 %v968_v48, %v906_v60  ;;  %v293_v48 = vsel %vm3680_vm4, 0, %v292_v44  ;;  %v323_v60 = vsel %vm3693_vm6, 0, %v322_v15 }
  0xf1   : > { %294 = vst [vmem:[#allocation3] sm:$0x1] %v293_v48  ;;  %v4235_v48 = vstv %s3168_s20 }
  0xf2   : > { %v1182_v62 = vadd.f32 %v1162_v1, %v988_v0  ;;  %324 = vst [vmem:[#allocation3 + $0x4] sm:$0x1] %v323_v60  ;;  %v332_v1 = vsel %vm3693_vm6, 0, %v331_v43  ;;  %v304_v43 = vld [vmem:[#allocation3 + $0x20] sm:$0x1] }
  0xf3   : > { %333 = vst [vmem:[#allocation3 + $0x1c] sm:$0x1] %v332_v1 }
  0xf4   : > { %v1304_v27 = vadd.f32 %v1284_v42, %v1182_v62  ;;  %v1882_v42 = vld [vmem:[%s4742_s3] sm:$0xf] }
  0xf5   : > { %v4168_v6 = vpop.f32.mrf.mxu3  ;;  %v888_v7 = vpop.f32.mrf.mxu2 }
  0xf6   : > { %v907_v34 = vadd.f32 %v888_v7, %v772_v26  ;;  %v1289_v51 = vpop.f32.mrf.mxu1  ;;  %v302_v26 = vsel %vm3680_vm4, 0, %v301_v40  ;;  %v775_v7 = vadd.f32 %v774_v21, %v4157_v36 }
  0xf7   : > { %v4170_v9 = vpop.f32.mrf.mxu0  ;;  %303 = vst [vmem:[#allocation3 + $0x18] sm:$0x1] %v302_v26 }
  0xf8   : > { %v989_v11 = vadd.f32 %v4160_v58, %v907_v34  ;;  %v2094_v58 = vsel %vm692_vm0, %v1882_v42, 0 }
  0xf9   : > { %2103 = vmatpush.bf16.msrb.mxu2 %v2094_v58 }
  0xfa   : > { %v1183_v15 = vadd.f32 %v4170_v9, %v989_v11  ;;  %v334_v9 = vld [vmem:[#allocation3 + $0x24] sm:$0x1]  ;;  %v4247_v11 = vstv %s3169_s22  ;;  %s202_s22 = sand.u32 1, %s3580_s16  }
  0xfb   : > { %s3164_s23 = sshll.u32 %s202_s22, 5  ;;  %s3069_s19 = scalar_lea.sflag [#allocation5], %s202_s22 }
  0xfc   : > { %v1305_v36 = vadd.f32 %v1286_v52, %v1183_v15  ;;  %v305_v52 = vsel %vm3680_vm4, 0, %v304_v43  ;;  %s4654_s27 = scalar_lea.vmem [#allocation7], %s3164_s23 }
  0xfd   : > { %v4176_v38 = vpop.f32.mrf.mxu3  ;;  %v4178_v16 = vpop.f32.mrf.mxu2  ;;  %306 = vst [vmem:[#allocation3 + $0x20] sm:$0x1] %v305_v52  ;;  %s3081_s6 = sshll.u32 %s4654_s27, 4  ;;  %s3082_s6 = int_to_ptr.vmem [resolvable:$true] %s3081_s6 }
  0xfe   : > { %v908_v62 = vadd.f32 %v4178_v16, %v775_v7 }
  0xff   : > { %v4180_v55 = vpop.f32.mrf.mxu0 }
 0x100   : > { %v990_v21 = vadd.f32 %v4166_v33, %v908_v62  ;;  %v335_v33 = vsel %vm3693_vm6, 0, %v334_v9 }
 0x101   : > { %336 = vst [vmem:[#allocation3 + $0x24] sm:$0x1] %v335_v33 }
 0x105   : > { %v4182_v57 = vpop.f32.mrf.mxu3  ;;  %v4184_v31 = vpop.f32.mrf.mxu2 }
 0x107   : > { %v4186_v30 = vpop.f32.mrf.mxu0 }
 0x10d   : > { %v4188_v45 = vpop.f32.mrf.mxu2  ;;  %v4190_v49 = vpop.f32.mrf.mxu3 }
 0x10f   : > { %v4194_v37 = vpop.f32.mrf.mxu0 }
 0x115   : > { %v4200_v25 = vpop.f32.mrf.mxu2  ;;  %v4204_v63 = vpop.f32.mrf.mxu3 }
 0x117   : > { %v4202_v24 = vpop.f32.mrf.mxu0 }
 0x11d   : > { %v4206_v12 = vpop.f32.mrf.mxu2  ;;  %v1561_v2 = vpop.f32.mrf.mxu3 }
 0x11f   : > { %v4209_v47 = vpop.f32.mrf.mxu0 }
 0x125   : > { %v4211_v41 = vpop.f32.mrf.mxu2  ;;  %v1563_v29 = vpop.f32.mrf.mxu3 }
 0x127   : > { %v4217_v32 = vpop.f32.mrf.mxu0 }
 0x12d   : > { %v1367_v23 = vpop.f32.mrf.mxu2  ;;  %v1566_v1 = vpop.f32.mrf.mxu3 }
 0x12e   : > { %v1387_v0 = vadd.f32 %v1367_v23, %v1304_v27  ;;  %v3319_v23 = vld [vmem:[%s4742_s3 + $0x8] sm:$0xf]  ;;  %v4241_v27 = vpop.f32.mrf.mxu1 }
 0x12f   : > { %v1683_v44 = vpop.f32.mrf.mxu0  ;;  %v2208_v16 = vsel %vm692_vm0, %v3319_v23, 0  ;;  %v1874_v23 = vld [vmem:[#allocation3] sm:$0xf] }
 0x130   : > { %v1581_v34 = vadd.f32 %v1561_v2, %v1387_v0  ;;  %v777_v2 = vadd.f32 %v4192_v39, %v4164_v56  ;;  %2217 = vmatpush.bf16.msrb.mxu3 %v2208_v16  ;;  %v3324_v56 = vld [vmem:[%s4742_s3 + $0xc] sm:$0xf]  ;;  %v1184_v39 = vadd.f32 %v4180_v55, %v990_v21  ;;  %v307_v21 = vld [vmem:[#allocation3 + $0x28] sm:$0x1]  ;;  %v1895_v52 = vshll.u32 %v1874_v23, 16 }
 0x131   : > { %v2290_v62 = vsel %vm692_vm0, %v3324_v56, 0 }
 0x132   : > { %v1703_v60 = vadd.f32 %v1683_v44, %v1581_v34  ;;  %v909_v42 = vadd.f32 %v4184_v31, %v777_v2  ;;  %2299 = vmatpush.bf16.msrb.mxu0 %v2290_v62  ;;  %v910_v31 = vadd.f32 %v4188_v45, %v4139_v46  ;;  %v1306_v43 = vadd.f32 %v1289_v51, %v1184_v39 }
 0x133   : > { %v308_v2 = vsel %vm3680_vm4, 0, %v307_v21 }
 0x134   : > { %v1712_v40 = vadd.f32 %v4235_v48, %v1703_v60  ;;  %309 = vst [vmem:[#allocation3 + $0x28] sm:$0x1] %v308_v2  ;;  %v992_v51 = vadd.f32 %v4176_v38, %v910_v31  ;;  %v1883_v31 = vld [vmem:[#allocation3 + $0x4] sm:$0x1] }
 0x135   : > { %v1369_v26 = vpop.f32.mrf.mxu2  ;;  %v1568_v39 = vpop.f32.mrf.mxu3 }
 0x136   : > { %v1720_v7 = vmax.f32 %v1712_v40, 0.0  ;;  %v1388_v0 = vadd.f32 %v1369_v26, %v1305_v36  ;;  %v991_v36 = vadd.f32 %v4168_v6, %v909_v42  ;;  %v782_v40 = vadd.f32 %v4133_v5, %v4146_v4  ;;  %v1294_v33 = vpop.f32.mrf.mxu1  ;;  %v1826_v42 = vld [vmem:[#allocation3 + $0x8] sm:$0xf] }
 0x137   : > { %v1685_v44 = vpop.f32.mrf.mxu0  ;;  %v1892_v6 = vshrl.u32 %v1874_v23, 16 }
 0x138   : > { %v1729_v58 = vadd.f32 %v4247_v11, %v1720_v7  ;;  %v1582_v15 = vadd.f32 %v1563_v29, %v1388_v0  ;;  %v337_v29 = vld [vmem:[#allocation3 + $0x2c] sm:$0x1]  ;;  %v1185_v4 = vadd.f32 %v4186_v30, %v991_v36  ;;  %v911_v0 = vadd.f32 %v4200_v25, %v782_v40 }
 0x139   : > { %v338_v26 = vsel %vm3693_vm6, 0, %v337_v29  ;;  %v1894_v23 = vrot.slane %v1892_v6, 4 }
 0x13a   : > { %v1737_v34 = vpack.c.bf16 %v1729_v58, %v1729_v58  ;;  %v1704_v60 = vadd.f32 %v1685_v44, %v1582_v15  ;;  %v1829_v44 = vld [vmem:[#allocation3 + $0xc] sm:$0x1]  ;;  %339 = vst [vmem:[#allocation3 + $0x2c] sm:$0x1] %v338_v26  ;;  %v1307_v40 = vadd.f32 %v4241_v27, %v1185_v4  ;;  %v2151_v26 = vrot.slane %v1883_v31, 5 }
 0x13c   : > { %v1746_v9 = vshrl.u32 %v1737_v34, 16  ;;  %v1713_v55 = vadd.f32 %v4235_v48, %v1704_v60  ;;  %v1749_v45 = vshll.u32 %v1737_v34, 16  ;;  %v2125_v34 = vld [vmem:[#allocation3] sm:$0xe] }
 0x13d   : > { %v1372_v16 = vpop.f32.mrf.mxu2  ;;  %v3311_v29 = vrot.slane %v2125_v34, 9 }
 0x13e   : > { %v1748_v46 = vrot.slane %v1746_v9, 7  ;;  %v1721_v7 = vmax.f32 %v1713_v55, 0.0  ;;  %v1389_v5 = vadd.f32 %v1372_v16, %v1306_v43  ;;  %v1897_v43 = vrot.slane %v1895_v52, 5  ;;  %v310_v16 = vld [vmem:[#allocation3 + $0x30] sm:$0x1] }
 0x13f   : > { %v1688_v56 = vpop.f32.mrf.mxu0  ;;  %v993_v9 = vadd.f32 %v4182_v57, %v911_v0  ;;  %v1186_v55 = vadd.f32 %v4194_v37, %v992_v51  ;;  %v311_v6 = vsel %vm3680_vm4, 0, %v310_v16  ;;  %v340_v52 = vld [vmem:[#allocation3 + $0x34] sm:$0x1]  ;;  %v787_v37 = vadd.f32 %v4148_v54, %v4162_v61  ;;  %v1832_v0 = vld [vmem:[#allocation3 + $0x10] sm:$0xf]  ;;  %v1571_v61 = vpop.f32.mrf.mxu3 }
 0x140   : > { %v1751_v58 = vor.u32 %v1749_v45, %v1748_v46  ;;  %v1752_v15 = vrot.slane %v1748_v46, 4  ;;  %v1730_v62 = vadd.f32 %v4247_v11, %v1721_v7  ;;  %v1583_v60 = vadd.f32 %v1566_v1, %v1389_v5  ;;  %312 = vst [vmem:[#allocation3 + $0x30] sm:$0x1] %v311_v6 }
 0x141   : > { %v1898_v46 = vor.u32 %v1897_v43, %v1894_v23  ;;  %v1901_v45 = vshll.u32 %v1883_v31, 16  ;;  %v1187_v4 = vadd.f32 %v4202_v24, %v993_v9  ;;  %v912_v51 = vadd.f32 %v4206_v12, %v4155_v53  ;;  %v3293_v23 = vld [vmem:[#allocation3] sm:$0xf] }
 0x142   : > { %v1827_v30 = vsel %vm3784_vm7, %v1751_v58, %v1826_v42  ;;  %v1830_v38 = vsel %vm3680_vm4, %v1752_v15, %v1829_v44  ;;  %v1738_v25 = vpack.c.bf16 %v1730_v62, %v1730_v62  ;;  %v1705_v36 = vadd.f32 %v1688_v56, %v1583_v60  ;;  %v1835_v42 = vld [vmem:[#allocation3 + $0x14] sm:$0x1]  ;;  %v1296_v58 = vpop.f32.mrf.mxu1 }
 0x143   : > { %1828 = vst [vmem:[#allocation3 + $0x8] sm:$0xf] %v1827_v30  ;;  %v341_v56 = vsel %vm3693_vm6, 0, %v340_v52  ;;  %v1308_v54 = vadd.f32 %v1294_v33, %v1186_v55  ;;  %v2152_v24 = vsel %vm3954_vm14, %v3311_v29, %v2151_v26  ;;  %v4294_v53 = vrot.slane %v1898_v46, 4 }
 0x144   : > { %1831 = vst [vmem:[#allocation3 + $0xc] sm:$0x1] %v1830_v38  ;;  %v1754_v1 = vshrl.u32 %v1738_v25, 16  ;;  %v1714_v21 = vadd.f32 %v4235_v48, %v1705_v36  ;;  %v1757_v7 = vshll.u32 %v1738_v25, 16  ;;  %v4296_v12 = vrot.slane %v1901_v45, 5 }
 0x145   : > { %v1374_v2 = vpop.f32.mrf.mxu2  ;;  %342 = vst [vmem:[#allocation3 + $0x34] sm:$0x1] %v341_v56  ;;  %v4302_v31 = vadd.f32 %v1296_v58, %v1187_v4  ;;  %v4305_v33 = vadd.f32 %v4190_v49, %v912_v51  ;;  %v2183_v6 = vunpack.c.l.b16 %v2152_v24 }
 0x146   : > { %v1756_v27 = vrot.slane %v1754_v1, 7  ;;  %v1722_v57 = vmax.f32 %v1714_v21, 0.0  ;;  %v1390_v5 = vadd.f32 %v1374_v2, %v1307_v40  ;;  %v4308_v1 = vadd.f32 %v4211_v41, %v787_v37  ;;  %v1838_v41 = vld [vmem:[#allocation3 + $0x18] sm:$0xf]  ;;  %v1841_v37 = vld [vmem:[#allocation3 + $0x1c] sm:$0x1] }
 0x147   : > { %v1690_v44 = vpop.f32.mrf.mxu0  ;;  %v1904_v49 = vsel %vm3863_vm11, %v4294_v53, %v4296_v12 }
 0x148   : > { %v1759_v15 = vor.u32 %v1757_v7, %v1756_v27  ;;  %v1760_v62 = vrot.slane %v1756_v27, 4  ;;  %v1731_v60 = vadd.f32 %v4247_v11, %v1722_v57  ;;  %v1584_v34 = vadd.f32 %v1568_v39, %v1390_v5  ;;  %v3345_v5 = vld [vmem:[%s4742_s3 + $0x10] sm:$0xf] }
 0x14a   : > { %v1833_v43 = vsel %vm3784_vm7, %v1759_v15, %v1832_v0  ;;  %v1836_v30 = vsel %vm3680_vm4, %v1760_v62, %v1835_v42  ;;  %v1739_v38 = vpack.c.bf16 %v1731_v60, %v1731_v60  ;;  %v1706_v25 = vadd.f32 %v1690_v44, %v1584_v34  ;;  %v3420_v39 = vld [vmem:[#allocation3 + $0x4] sm:$0xf0]  ;;  %v313_v60 = vld [vmem:[#allocation3 + $0x38] sm:$0x1]  ;;  %v343_v34 = vld [vmem:[#allocation3 + $0x3c] sm:$0x1] }
 0x14b   : > { %v2126_v36 = vld [vmem:[#allocation3 + $0x8] sm:$0xe]  ;;  %1834 = vst [vmem:[#allocation3 + $0x10] sm:$0xf] %v1833_v43  ;;  %v3294_v40 = vor.u32 %v3420_v39, %v3293_v23  ;;  %v1884_v9 = vld [vmem:[#allocation3 + $0xc] sm:$0x1] }
 0x14c   : > { %v3312_v55 = vrot.slane %v2126_v36, 9  ;;  %1837 = vst [vmem:[#allocation3 + $0x14] sm:$0x1] %v1836_v30  ;;  %v1762_v21 = vshrl.u32 %v1739_v38, 16  ;;  %v1715_v29 = vadd.f32 %v4235_v48, %v1706_v25  ;;  %v2155_v16 = vrot.slane %v1884_v9, 5 }
 0x14d   : > { %v1765_v2 = vshll.u32 %v1739_v38, 16  ;;  %v1377_v26 = vpop.f32.mrf.mxu2  ;;  %3307 = vmatmul.msk.bf16.vlgmr.msrb.gmra.mxu2 %vm679_vm8, %v3294_v40  ;;  %v1875_v52 = vld [vmem:[#allocation3 + $0x8] sm:$0xf]  ;;  %v1915_v46 = vshll.u32 %v1884_v9, 16  ;;  %v2484_v43 = vsel %vm692_vm0, %v3345_v5, 0 }
 0x14e   : > { %v1764_v45 = vrot.slane %v1762_v21, 7  ;;  %v1723_v27 = vmax.f32 %v1715_v29, 0.0  ;;  %v1391_v7 = vadd.f32 %v1377_v26, %v1308_v54  ;;  %v2156_v57 = vsel %vm3954_vm14, %v3312_v55, %v2155_v16  ;;  %v3327_v36 = vld [vmem:[#allocation3 + $0x8] sm:$0xf]  ;;  %2493 = vmatpush.bf16.msrb.mxu1 %v2484_v43  ;;  %v316_v5 = vld [vmem:[#allocation3 + $0x40] sm:$0x1] }
 0x14f   : > { %v1693_v4 = vpop.f32.mrf.mxu0  ;;  %v2184_v51 = vunpack.c.l.b16 %v2156_v57  ;;  %v1906_v0 = vshrl.u32 %v1875_v52, 16  ;;  %v1909_v42 = vshll.u32 %v1875_v52, 16  ;;  %v1917_v44 = vrot.slane %v1915_v46, 5 }
 0x150   : > { %v1767_v56 = vor.u32 %v1765_v2, %v1764_v45  ;;  %v1768_v58 = vrot.slane %v1764_v45, 4  ;;  %v1732_v15 = vadd.f32 %v4247_v11, %v1723_v27  ;;  %v1585_v62 = vadd.f32 %v1571_v61, %v1391_v7  ;;  %v1573_v61 = vpop.f32.mrf.mxu3  ;;  %v1844_v45 = vld [vmem:[#allocation3 + $0x20] sm:$0xf] }
 0x151   : > { %v2191_v23 = vpack.c.b16 %v2184_v51, %v2183_v6  ;;  %v1908_v54 = vrot.slane %v1906_v0, 4  ;;  %v1911_v24 = vrot.slane %v1909_v42, 5  ;;  %v314_v29 = vsel %vm3680_vm4, 0, %v313_v60  ;;  %v346_v60 = vld [vmem:[#allocation3 + $0x44] sm:$0x1] }
 0x152   : > { %v1839_v30 = vsel %vm3784_vm7, %v1767_v56, %v1838_v41  ;;  %v1842_v38 = vsel %vm3680_vm4, %v1768_v58, %v1841_v37  ;;  %v1740_v25 = vpack.c.bf16 %v1732_v15, %v1732_v15  ;;  %v1707_v39 = vadd.f32 %v1693_v4, %v1585_v62  ;;  %v3424_v40 = vld [vmem:[#allocation3 + $0xc] sm:$0xf0]  ;;  %v1847_v41 = vld [vmem:[#allocation3 + $0x24] sm:$0x1]  ;;  %315 = vst [vmem:[#allocation3 + $0x38] sm:$0x1] %v314_v29  ;;  %v1299_v56 = vpop.f32.mrf.mxu1 }
 0x153   : > { %v2127_v9 = vld [vmem:[#allocation3 + $0x10] sm:$0xe]  ;;  %1840 = vst [vmem:[#allocation3 + $0x18] sm:$0xf] %v1839_v30  ;;  %3320 = vmatmul.msk.bf16.vlgmr.msrb.gmra.mxu3 %vm679_vm8, %v2191_v23  ;;  %v3328_v55 = vor.u32 %v3424_v40, %v3327_v36  ;;  %v1912_v21 = vor.u32 %v1911_v24, %v1908_v54  ;;  %v344_v16 = vsel %vm3693_vm6, 0, %v343_v34  ;;  %v317_v0 = vsel %vm3680_vm4, 0, %v316_v5 }
 0x154   : > { %v4332_v2 = vld [vmem:[#allocation3 + $0x14] sm:$0x1]  ;;  %1843 = vst [vmem:[#allocation3 + $0x1c] sm:$0x1] %v1842_v38  ;;  %v1770_v26 = vshrl.u32 %v1740_v25, 16  ;;  %v1773_v6 = vshll.u32 %v1740_v25, 16  ;;  %v1716_v52 = vadd.f32 %v4235_v48, %v1707_v39  ;;  %v1188_v42 = vadd.f32 %v4209_v47, %v4305_v33 }
 0x155   : > { %v3313_v46 = vrot.slane %v2127_v9, 9  ;;  %v1379_v27 = vpop.f32.mrf.mxu2  ;;  %3341 = vmatmul.msk.bf16.vlgmr.msrb.gmra.mxu0 %vm679_vm8, %v3328_v55  ;;  %v1913_v7 = vrot.slane %v1912_v21, 4  ;;  %v2159_v57 = vrot.slane %v4332_v2, 5  ;;  %345 = vst [vmem:[#allocation3 + $0x3c] sm:$0x1] %v344_v16  ;;  %v995_v58 = vadd.f32 %v4204_v63, %v4308_v1 }
 0x156   : > { %v1772_v37 = vrot.slane %v1770_v26, 7  ;;  %v1724_v4 = vmax.f32 %v1716_v52, 0.0  ;;  %v1392_v51 = vadd.f32 %v1379_v27, %v4302_v31  ;;  %v2005_v31 = vunpack.c.l.b16 %v1904_v49  ;;  %318 = vst [vmem:[#allocation3 + $0x40] sm:$0x1] %v317_v0  ;;  %v1876_v34 = vld [vmem:[#allocation3 + $0x10] sm:$0xf] }
 0x157   : > { %v1695_v15 = vpop.f32.mrf.mxu0  ;;  %v1918_v62 = vsel %vm3863_vm11, %v1913_v7, %v1917_v44  ;;  %v3297_v63 = vld [vmem:[#allocation3 + $0x10] sm:$0xf]  ;;  %v2160_v1 = vsel %vm3954_vm14, %v3313_v46, %v2159_v57  ;;  %v347_v44 = vsel %vm3693_vm6, 0, %v346_v60  ;;  %v1920_v43 = vshrl.u32 %v1876_v34, 16  ;;  %v1850_v16 = vld [vmem:[#allocation3 + $0x28] sm:$0xf] }
 0x158   : > { %v1775_v23 = vor.u32 %v1773_v6, %v1772_v37  ;;  %v1776_v54 = vrot.slane %v1772_v37, 4  ;;  %v1733_v47 = vadd.f32 %v4247_v11, %v1724_v4  ;;  %v1586_v33 = vadd.f32 %v1573_v61, %v1392_v51  ;;  %348 = vst [vmem:[#allocation3 + $0x44] sm:$0x1] %v347_v44  ;;  %v1576_v26 = vpop.f32.mrf.mxu3  ;;  %v1853_v37 = vld [vmem:[#allocation3 + $0x2c] sm:$0x1] }
 0x159   : > { %v2006_v24 = vunpack.c.l.b16 %v1918_v62  ;;  %v1310_v61 = vadd.f32 %v1299_v56, %v1188_v42  ;;  %v1189_v55 = vadd.f32 %v4217_v32, %v995_v58  ;;  %v2185_v46 = vunpack.c.l.b16 %v2160_v1 }
 0x15a   : > { %v1845_v53 = vsel %vm3784_vm7, %v1775_v23, %v1844_v45  ;;  %v1848_v12 = vsel %vm3680_vm4, %v1776_v54, %v1847_v41  ;;  %v1741_v49 = vpack.c.bf16 %v1733_v47, %v1733_v47  ;;  %v1708_v30 = vadd.f32 %v1695_v15, %v1586_v33  ;;  %v3421_v38 = vld [vmem:[#allocation3 + $0x14] sm:$0xf0]  ;;  %v1301_v60 = vpop.f32.mrf.mxu1 }
 0x15b   : > { %v2128_v25 = vld [vmem:[#allocation3 + $0x18] sm:$0xe]  ;;  %1846 = vst [vmem:[#allocation3 + $0x20] sm:$0xf] %v1845_v53  ;;  %v2013_v39 = vpack.c.b16 %v2006_v24, %v2005_v31  ;;  %v3298_v36 = vor.u32 %v3421_v38, %v3297_v63  ;;  %v4360_v40 = vld [vmem:[#allocation3 + $0x1c] sm:$0x1]  ;;  %v1311_v38 = vadd.f32 %v1301_v60, %v1189_v55 }
 0x15c   : > { %v3314_v9 = vrot.slane %v2128_v25, 9  ;;  %1849 = vst [vmem:[#allocation3 + $0x24] sm:$0x1] %v1848_v12  ;;  %v1778_v21 = vshrl.u32 %v1741_v49, 16  ;;  %v1717_v29 = vadd.f32 %v4235_v48, %v1708_v30  ;;  %v2163_v52 = vrot.slane %v4360_v40, 5 }
 0x15d   : > { %3287 = vmatmul.msk.bf16.vlgmr.msra.gmra.mxu1 %vm679_vm8, %v2013_v39  ;;  %v1382_v6 = vpop.f32.mrf.mxu2  ;;  %3308 = vmatmul.msk.bf16.gmra.mxu2 %vm679_vm8, %v3298_v36  ;;  %v1922_v45 = vrot.slane %v1920_v43, 4  ;;  %v1923_v41 = vshll.u32 %v1876_v34, 16  ;;  %v1781_v7 = vshll.u32 %v1741_v49, 16  ;;  %v1877_v5 = vld [vmem:[#allocation3 + $0x18] sm:$0xf]  ;;  %v1929_v42 = vshll.u32 %v4332_v2, 16 }
 0x15e   : > { %v1780_v27 = vrot.slane %v1778_v21, 7  ;;  %v1725_v57 = vmax.f32 %v1717_v29, 0.0  ;;  %v1393_v32 = vadd.f32 %v1382_v6, %v1310_v61  ;;  %v2164_v51 = vsel %vm3954_vm14, %v3314_v9, %v2163_v52  ;;  %v3331_v2 = vld [vmem:[#allocation3 + $0x18] sm:$0xf]  ;;  %v1856_v6 = vld [vmem:[#allocation3 + $0x30] sm:$0xf] }
 0x15f   : > { %v1698_v4 = vpop.f32.mrf.mxu0  ;;  %v1925_v0 = vrot.slane %v1923_v41, 5  ;;  %v1934_v56 = vshrl.u32 %v1877_v5, 16  ;;  %v2186_v34 = vunpack.c.l.b16 %v2164_v51  ;;  %v1931_v54 = vrot.slane %v1929_v42, 5  ;;  %v1859_v41 = vld [vmem:[#allocation3 + $0x34] sm:$0x1] }
 0x160   : > { %v1783_v58 = vor.u32 %v1781_v7, %v1780_v27  ;;  %v1784_v15 = vrot.slane %v1780_v27, 4  ;;  %v1734_v62 = vadd.f32 %v4247_v11, %v1725_v57  ;;  %v1587_v31 = vadd.f32 %v1576_v26, %v1393_v32 }
 0x161   : > { %v1926_v23 = vor.u32 %v1925_v0, %v1922_v45  ;;  %v1936_v47 = vrot.slane %v1934_v56, 4  ;;  %v2192_v43 = vpack.c.b16 %v2186_v34, %v2185_v46  ;;  %v1937_v49 = vshll.u32 %v1877_v5, 16 }
 0x162   : > { %v1851_v33 = vsel %vm3784_vm7, %v1783_v58, %v1850_v16  ;;  %v1854_v24 = vsel %vm3680_vm4, %v1784_v15, %v1853_v37  ;;  %v1742_v63 = vpack.c.bf16 %v1734_v62, %v1734_v62  ;;  %v1709_v1 = vadd.f32 %v1698_v4, %v1587_v31  ;;  %v3425_v44 = vld [vmem:[#allocation3 + $0x1c] sm:$0xf0] }
 0x163   : > { %1852 = vst [vmem:[#allocation3 + $0x28] sm:$0xf] %v1851_v33  ;;  %v3332_v53 = vor.u32 %v3425_v44, %v3331_v2  ;;  %v1927_v12 = vrot.slane %v1926_v23, 4  ;;  %v2129_v30 = vld [vmem:[#allocation3 + $0x20] sm:$0xe]  ;;  %v1943_v36 = vshll.u32 %v4360_v40, 16  ;;  %3321 = vmatmul.msk.bf16.gmra.mxu3 %vm679_vm8, %v2192_v43  ;;  %v1578_v40 = vpop.f32.mrf.mxu3 }
 0x164   : > { %1855 = vst [vmem:[#allocation3 + $0x2c] sm:$0x1] %v1854_v24  ;;  %v1786_v25 = vshrl.u32 %v1742_v63, 16  ;;  %v1718_v39 = vadd.f32 %v4235_v48, %v1709_v1  ;;  %v4377_v9 = vld [vmem:[#allocation3 + $0x24] sm:$0x1]  ;;  %v1789_v61 = vshll.u32 %v1742_v63, 16 }
 0x165   : > { %v1384_v21 = vpop.f32.mrf.mxu2  ;;  %3342 = vmatmul.msk.bf16.gmra.mxu0 %vm679_vm8, %v3332_v53  ;;  %v1932_v29 = vsel %vm3863_vm11, %v1927_v12, %v1931_v54  ;;  %v1939_v16 = vrot.slane %v1937_v49, 5  ;;  %v1878_v26 = vld [vmem:[#allocation3 + $0x20] sm:$0xf]  ;;  %v3315_v45 = vrot.slane %v2129_v30, 9  ;;  %v1945_v7 = vrot.slane %v1943_v36, 5 }
 0x166   : > { %v1788_v55 = vrot.slane %v1786_v25, 7  ;;  %v1726_v52 = vmax.f32 %v1718_v39, 0.0  ;;  %v1394_v46 = vadd.f32 %v1384_v21, %v1311_v38  ;;  %v2167_v57 = vrot.slane %v4377_v9, 5  ;;  %v3301_v23 = vld [vmem:[#allocation3 + $0x20] sm:$0xf] }
 0x167   : > { %v1940_v27 = vor.u32 %v1939_v16, %v1936_v47  ;;  %v1948_v32 = vshrl.u32 %v1878_v26, 16  ;;  %v1700_v0 = vpop.f32.mrf.mxu0  ;;  %v2007_v56 = vunpack.c.l.b16 %v1932_v29  ;;  %v1951_v15 = vshll.u32 %v1878_v26, 16  ;;  %v1862_v16 = vld [vmem:[#allocation3 + $0x38] sm:$0xf]  ;;  %v1865_v26 = vld [vmem:[#allocation3 + $0x3c] sm:$0x1] }
 0x168   : > { %v1791_v5 = vor.u32 %v1789_v61, %v1788_v55  ;;  %v1792_v37 = vrot.slane %v1788_v55, 4  ;;  %v1735_v4 = vadd.f32 %v4247_v11, %v1726_v52  ;;  %v1588_v51 = vadd.f32 %v1578_v40, %v1394_v46 }
 0x169   : > { %v1941_v42 = vrot.slane %v1940_v27, 4  ;;  %v1950_v58 = vrot.slane %v1948_v32, 4  ;;  %v1953_v2 = vrot.slane %v1951_v15, 5  ;;  %v2168_v12 = vsel %vm3954_vm14, %v3315_v45, %v2167_v57  ;;  %v3358_v27 = vld [vmem:[%s4742_s3 + $0x14] sm:$0xf] }
 0x16a   : > { %v1857_v62 = vsel %vm3784_vm7, %v1791_v5, %v1856_v6  ;;  %v1860_v31 = vsel %vm3680_vm4, %v1792_v37, %v1859_v41  ;;  %v1743_v60 = vpack.c.bf16 %v1735_v4, %v1735_v4  ;;  %v1710_v34 = vadd.f32 %v1700_v0, %v1588_v51  ;;  %v3422_v54 = vld [vmem:[#allocation3 + $0x24] sm:$0xf0] }
 0x16b   : > { %v2130_v47 = vld [vmem:[#allocation3 + $0x28] sm:$0xe]  ;;  %1858 = vst [vmem:[#allocation3 + $0x30] sm:$0xf] %v1857_v62  ;;  %v1946_v33 = vsel %vm3863_vm11, %v1941_v42, %v1945_v7  ;;  %v3302_v24 = vor.u32 %v3422_v54, %v3301_v23  ;;  %v1888_v63 = vld [vmem:[#allocation3 + $0x2c] sm:$0x1]  ;;  %v1954_v25 = vor.u32 %v1953_v2, %v1950_v58  ;;  %v2187_v55 = vunpack.c.l.b16 %v2168_v12 }
 0x16c   : > { %v3316_v1 = vrot.slane %v2130_v47, 9  ;;  %1861 = vst [vmem:[#allocation3 + $0x34] sm:$0x1] %v1860_v31  ;;  %v1794_v44 = vshrl.u32 %v1743_v60, 16  ;;  %v1719_v43 = vadd.f32 %v4235_v48, %v1710_v34  ;;  %v2008_v53 = vunpack.c.l.b16 %v1946_v33  ;;  %v1879_v49 = vld [vmem:[#allocation3 + $0x28] sm:$0xf] }
 0x16d   : > { %v1797_v30 = vshll.u32 %v1743_v60, 16  ;;  %3309 = vmatmul.msk.bf16.gmra.mxu2 %vm679_vm8, %v3302_v24  ;;  %v2171_v38 = vrot.slane %v1888_v63, 5  ;;  %v1962_v39 = vshrl.u32 %v1879_v49, 16  ;;  %v1965_v29 = vshll.u32 %v1879_v49, 16  ;;  %v3335_v51 = vld [vmem:[#allocation3 + $0x28] sm:$0xf] }
 0x16e   : > { %v1796_v36 = vrot.slane %v1794_v44, 7  ;;  %v1727_v61 = vmax.f32 %v1719_v43, 0.0  ;;  %v2014_v21 = vpack.c.b16 %v2008_v53, %v2007_v56  ;;  %v1957_v6 = vshll.u32 %v4377_v9, 16  ;;  %v1871_v2 = vld [vmem:[#allocation3 + $0x44] sm:$0x1] }
 0x16f   : > { %v2172_v48 = vsel %vm3954_vm14, %v3316_v1, %v2171_v38  ;;  %v1964_v52 = vrot.slane %v1962_v39, 4  ;;  %v1955_v7 = vrot.slane %v1954_v25, 4  ;;  %v1967_v57 = vrot.slane %v1965_v29, 5  ;;  %v1868_v1 = vld [vmem:[#allocation3 + $0x40] sm:$0xf] }
 0x170   : > { %v1799_v46 = vor.u32 %v1797_v30, %v1796_v36  ;;  %v1800_v45 = vrot.slane %v1796_v36, 4  ;;  %v1736_v41 = vadd.f32 %v4247_v11, %v1727_v61  ;;  %3288 = vmatmul.msk.bf16.gmra.mxu1 %vm679_vm8, %v2014_v21  ;;  %v2188_v40 = vunpack.c.l.b16 %v2172_v48  ;;  %v4416_v53 = vld [vmem:[#allocation3 + $0x14] sm:$0x1]  ;;  %v4419_v25 = vld [vmem:[#allocation3 + $0x8] sm:$0xe] }
 0x171   : > { %v1971_v32 = vshll.u32 %v1888_v63, 16  ;;  %v2606_v5 = vsel %vm692_vm0, %v3358_v27, 0  ;;  %v1959_v56 = vrot.slane %v1957_v6, 5  ;;  %v1968_v58 = vor.u32 %v1967_v57, %v1964_v52  ;;  %v2524_v39 = vld [vmem:[#allocation3 + $0x10] sm:$0xe] }
 0x172   : > { %v1863_v9 = vsel %vm3784_vm7, %v1799_v46, %v1862_v16  ;;  %v1866_v37 = vsel %vm3680_vm4, %v1800_v45, %v1865_v26  ;;  %v1744_v4 = vpack.c.bf16 %v1736_v41, %v1736_v41  ;;  %v2193_v11 = vpack.c.b16 %v2188_v40, %v2187_v55  ;;  %v3426_v0 = vld [vmem:[#allocation3 + $0x2c] sm:$0xf0]  ;;  %2615 = vmatpush.bf16.msra.mxu2 %v2606_v5  ;;  %v3363_v36 = vld [vmem:[%s4742_s3 + $0x18] sm:$0xf]  ;;  %v3384_v16 = vld [vmem:[%s4742_s3 + $0x1c] sm:$0xf] }
 0x173   : > { %1864 = vst [vmem:[#allocation3 + $0x38] sm:$0xf] %v1863_v9  ;;  %v3336_v42 = vor.u32 %v3426_v0, %v3335_v51  ;;  %v2131_v62 = vld [vmem:[#allocation3 + $0x30] sm:$0xe]  ;;  %v1960_v31 = vsel %vm3863_vm11, %v1955_v7, %v1959_v56  ;;  %v1969_v60 = vrot.slane %v1968_v58, 4  ;;  %v1973_v34 = vrot.slane %v1971_v32, 5 }
 0x174   : > { %1867 = vst [vmem:[#allocation3 + $0x3c] sm:$0x1] %v1866_v37  ;;  %v1802_v15 = vshrl.u32 %v1744_v4, 16  ;;  %3322 = vmatmul.msk.bf16.gmra.mxu3 %vm679_vm8, %v2193_v11  ;;  %v4412_v23 = vld [vmem:[#allocation3 + $0x34] sm:$0x1]  ;;  %v1805_v33 = vshll.u32 %v1744_v4, 16  ;;  %v2009_v61 = vunpack.c.l.b16 %v1960_v31 }
 0x175   : > { %3343 = vmatmul.msk.bf16.gmra.mxu0 %vm679_vm8, %v3336_v42  ;;  %v1880_v54 = vld [vmem:[#allocation3 + $0x30] sm:$0xf]  ;;  %v1974_v44 = vsel %vm3863_vm11, %v1969_v60, %v1973_v34  ;;  %v3317_v43 = vrot.slane %v2131_v62, 9  ;;  %v2175_v38 = vrot.slane %v4412_v23, 5  ;;  %v1985_v29 = vshll.u32 %v4412_v23, 16 }
 0x176   : > { %v1804_v47 = vrot.slane %v1802_v15, 7  ;;  %v1976_v24 = vshrl.u32 %v1880_v54, 16  ;;  %v1979_v63 = vshll.u32 %v1880_v54, 16  ;;  %v2010_v30 = vunpack.c.l.b16 %v1974_v44  ;;  %v3305_v21 = vld [vmem:[#allocation3 + $0x30] sm:$0xf] }
 0x177   : > { %v4432_v27 = vld [vmem:[#allocation3 + $0xc] sm:$0x1]  ;;  %v3351_v7 = vrot.slane %v2524_v39, 9  ;;  %v2176_v10 = vsel %vm3954_vm14, %v3317_v43, %v2175_v38  ;;  %v2553_v9 = vrot.slane %v4416_v53, 5  ;;  %v3350_v11 = vrot.slane %v4419_v25, 9 }
 0x178   : > { %v1807_v12 = vor.u32 %v1805_v33, %v1804_v47  ;;  %v1808_v49 = vrot.slane %v1804_v47, 4  ;;  %v1978_v52 = vrot.slane %v1976_v24, 4  ;;  %v1981_v46 = vrot.slane %v1979_v63, 5  ;;  %v2728_v0 = vld [vmem:[#allocation3 + $0x10] sm:$0xf] }
 0x179   : > { %v2015_v57 = vpack.c.b16 %v2010_v30, %v2009_v61  ;;  %v2689_v51 = vsel %vm692_vm0, %v3363_v36, 0  ;;  %v2883_v15 = vsel %vm692_vm0, %v3384_v16, 0  ;;  %v2730_v62 = vld [vmem:[#allocation3 + $0x18] sm:$0xf]  ;;  %v2189_v31 = vunpack.c.l.b16 %v2176_v10  ;;  %v2329_v63 = vld [vmem:[#allocation3 + $0x8] sm:$0xf] }
 0x17a   : > { %v1869_v26 = vsel %vm3784_vm7, %v1807_v12, %v1868_v1  ;;  %v1872_v48 = vsel %vm3680_vm4, %v1808_v49, %v1871_v2  ;;  %v3423_v55 = vld [vmem:[#allocation3 + $0x34] sm:$0xf0]  ;;  %v1982_v56 = vor.u32 %v1981_v46, %v1978_v52  ;;  %2698 = vmatpush.bf16.msra.mxu3 %v2689_v51  ;;  %2892 = vmatpush.bf16.msra.mxu0 %v2883_v15  ;;  %v2549_v54 = vrot.slane %v4432_v27, 5  ;;  %v4447_v43 = vld [vmem:[#allocation3 + $0x1c] sm:$0x1] }
 0x17b   : > { %v2132_v6 = vld [vmem:[#allocation3 + $0x38] sm:$0xe]  ;;  %1870 = vst [vmem:[#allocation3 + $0x40] sm:$0xf] %v1869_v26  ;;  %v3306_v45 = vor.u32 %v3423_v55, %v3305_v21  ;;  %v1890_v41 = vld [vmem:[#allocation3 + $0x3c] sm:$0x1]  ;;  %v2554_v47 = vsel %vm3954_vm14, %v3351_v7, %v2553_v9 }
 0x17c   : > { %v3318_v40 = vrot.slane %v2132_v6, 9  ;;  %1873 = vst [vmem:[#allocation3 + $0x44] sm:$0x1] %v1872_v48  ;;  %v2179_v32 = vrot.slane %v1890_v41, 5  ;;  %v1881_v5 = vld [vmem:[#allocation3 + $0x38] sm:$0xf]  ;;  %v2582_v10 = vunpack.c.l.b16 %v2554_v47 }
 0x17d   : > { %3310 = vmatmul.msk.bf16.gmra.mxu2 %vm679_vm8, %v3306_v45  ;;  %v1990_v37 = vshrl.u32 %v1881_v5, 16  ;;  %v1993_v4 = vshll.u32 %v1881_v5, 16  ;;  %v1999_v58 = vshll.u32 %v1890_v41, 16  ;;  %v2745_v33 = vshrl.u32 %v2728_v0, 16  ;;  %v3339_v2 = vld [vmem:[#allocation3 + $0x38] sm:$0xf] }
 0x17e   : > { %v2180_v42 = vsel %vm3954_vm14, %v3318_v40, %v2179_v32  ;;  %v2748_v24 = vshll.u32 %v2728_v0, 16  ;;  %v2759_v12 = vshrl.u32 %v2730_v62, 16  ;;  %v2762_v49 = vshll.u32 %v2730_v62, 16  ;;  %v2331_v48 = vld [vmem:[#allocation3 + $0x10] sm:$0xf] }
 0x17f   : > { %v2190_v60 = vunpack.c.l.b16 %v2180_v42  ;;  %v1992_v34 = vrot.slane %v1990_v37, 4  ;;  %v1995_v23 = vrot.slane %v1993_v4, 5  ;;  %v1983_v38 = vrot.slane %v1982_v56, 4  ;;  %v4449_v6 = vld [vmem:[#allocation3 + $0x14] sm:$0x1] }
 0x180   : > { %3289 = vmatmul.msk.bf16.gmra.mxu1 %vm679_vm8, %v2015_v57  ;;  %v2001_v25 = vrot.slane %v1999_v58, 5  ;;  %v2747_v39 = vrot.slane %v2745_v33, 4  ;;  %v2750_v36 = vrot.slane %v2748_v24, 5  ;;  %v2761_v16 = vrot.slane %v2759_v12, 4  ;;  %v3397_v32 = vld [vmem:[%s4742_s3 + $0x20] sm:$0xf] }
 0x181   : > { %v2194_v1 = vpack.c.b16 %v2190_v60, %v2189_v31  ;;  %v1996_v44 = vor.u32 %v1995_v23, %v1992_v34  ;;  %v2764_v26 = vrot.slane %v2762_v49, 5  ;;  %v1987_v55 = vrot.slane %v1985_v29, 5  ;;  %v3366_v31 = vld [vmem:[#allocation3 + $0x10] sm:$0xf]  ;;  %v3428_v60 = vld [vmem:[#allocation3 + $0x14] sm:$0xf0] }
 0x182   : > { %v3427_v30 = vld [vmem:[#allocation3 + $0x3c] sm:$0xf0]  ;;  %v2346_v52 = vshrl.u32 %v2329_v63, 16  ;;  %v2349_v46 = vshll.u32 %v2329_v63, 16  ;;  %v2751_v41 = vor.u32 %v2750_v36, %v2747_v39  ;;  %v2768_v7 = vshll.u32 %v4447_v43, 16 }
 0x183   : > { %v3340_v61 = vor.u32 %v3427_v30, %v3339_v2  ;;  %v1997_v21 = vrot.slane %v1996_v44, 4  ;;  %v2765_v40 = vor.u32 %v2764_v26, %v2761_v16  ;;  %v2550_v57 = vsel %vm3954_vm14, %v3350_v11, %v2549_v54  ;;  %v4467_v24 = vld [vmem:[#allocation3 + $0x24] sm:$0x1]  ;;  %v2732_v63 = vld [vmem:[#allocation3 + $0x20] sm:$0xf] }
 0x184   : > { %3323 = vmatmul.msk.bf16.gmra.mxu3 %vm679_vm8, %v2194_v1  ;;  %v2360_v29 = vshrl.u32 %v2331_v48, 16  ;;  %v1988_v5 = vsel %vm3863_vm11, %v1983_v38, %v1987_v55  ;;  %v2754_v9 = vshll.u32 %v4449_v6, 16  ;;  %v2363_v4 = vshll.u32 %v2331_v48, 16  ;;  %v2526_v12 = vld [vmem:[#allocation3 + $0x20] sm:$0xe] }
 0x185   : > { %3344 = vmatmul.msk.bf16.gmra.mxu0 %vm679_vm8, %v3340_v61  ;;  %v2002_v45 = vsel %vm3863_vm11, %v1997_v21, %v2001_v25  ;;  %v2766_v37 = vrot.slane %v2765_v40, 4  ;;  %v2348_v0 = vrot.slane %v2346_v52, 4  ;;  %v2351_v42 = vrot.slane %v2349_v46, 5  ;;  %v2734_v49 = vld [vmem:[#allocation3 + $0x28] sm:$0xf] }
 0x186   : > { %v2012_v51 = vunpack.c.l.b16 %v2002_v45  ;;  %v2581_v56 = vunpack.c.l.b16 %v2550_v57  ;;  %v2752_v58 = vrot.slane %v2751_v41, 4  ;;  %v2770_v15 = vrot.slane %v2768_v7, 5  ;;  %v4473_v36 = vld [vmem:[#allocation3 + $0x1c] sm:$0x1]  ;;  %v2525_v61 = vld [vmem:[#allocation3 + $0x18] sm:$0xe] }
 0x187   : > { %v3005_v11 = vsel %vm692_vm0, %v3397_v32, 0  ;;  %v2011_v62 = vunpack.c.l.b16 %v1988_v5  ;;  %v2362_v34 = vrot.slane %v2360_v29, 4  ;;  %v2365_v23 = vrot.slane %v2363_v4, 5  ;;  %v2333_v40 = vld [vmem:[#allocation3 + $0x18] sm:$0xf] }
 0x188   : > { %3014 = vmatpush.bf16.msra.mxu1 %v3005_v11  ;;  %v2589_v54 = vpack.c.b16 %v2582_v10, %v2581_v56  ;;  %v2756_v47 = vrot.slane %v2754_v9, 5  ;;  %v2771_v33 = vsel %vm3863_vm11, %v2766_v37, %v2770_v15  ;;  %v2352_v2 = vor.u32 %v2351_v42, %v2348_v0  ;;  %v2335_v32 = vld [vmem:[#allocation3 + $0x20] sm:$0xf]  ;;  %v4479_v37 = vld [vmem:[#allocation3 + $0x2c] sm:$0x1] }
 0x189   : > { %v2016_v1 = vpack.c.b16 %v2012_v51, %v2011_v62  ;;  %v2355_v44 = vshll.u32 %v4432_v27, 16  ;;  %v3367_v30 = vor.u32 %v3428_v60, %v3366_v31  ;;  %v2859_v25 = vunpack.c.l.b16 %v2771_v33  ;;  %v4483_v15 = vld [vmem:[#allocation3 + $0x24] sm:$0x1] }
 0x18a   : > { %v2757_v38 = vsel %vm3863_vm11, %v2752_v58, %v2756_v47  ;;  %v2366_v39 = vor.u32 %v2365_v23, %v2362_v34  ;;  %v2773_v21 = vshrl.u32 %v2732_v63, 16  ;;  %v2776_v16 = vshll.u32 %v2732_v63, 16 }
 0x18b   : > { %v3353_v26 = vrot.slane %v2526_v12, 9  ;;  %v2561_v48 = vrot.slane %v4467_v24, 5  ;;  %v2787_v55 = vshrl.u32 %v2734_v49, 16  ;;  %v2790_v27 = vshll.u32 %v2734_v49, 16 }
 0x18c   : > { %v2858_v52 = vunpack.c.l.b16 %v2757_v38  ;;  %v2353_v46 = vrot.slane %v2352_v2, 4  ;;  %v2357_v45 = vrot.slane %v2355_v44, 5  ;;  %v2369_v41 = vshll.u32 %v4416_v53, 16 }
 0x18d   : > { %3359 = vmatmul.msk.bf16.vlgmr.msra.gmra.mxu2 %vm679_vm8, %v2589_v54  ;;  %v3352_v7 = vrot.slane %v2525_v61, 9  ;;  %v2557_v57 = vrot.slane %v4473_v36, 5  ;;  %v2789_v10 = vrot.slane %v2787_v55, 4  ;;  %v2792_v29 = vrot.slane %v2790_v27, 5  ;;  %v4497_v27 = vld [vmem:[#allocation3 + $0x2c] sm:$0x1] }
 0x18e   : > { %v2866_v5 = vpack.c.b16 %v2859_v25, %v2858_v52  ;;  %v2367_v9 = vrot.slane %v2366_v39, 4  ;;  %v2775_v4 = vrot.slane %v2773_v21, 4  ;;  %v2778_v51 = vrot.slane %v2776_v16, 5  ;;  %v2736_v25 = vld [vmem:[#allocation3 + $0x30] sm:$0xf] }
 0x18f   : > { %v2562_v0 = vsel %vm3954_vm14, %v3353_v26, %v2561_v48  ;;  %v2793_v42 = vor.u32 %v2792_v29, %v2789_v10  ;;  %v2374_v56 = vshrl.u32 %v2333_v40, 16  ;;  %v2377_v58 = vshll.u32 %v2333_v40, 16  ;;  %v2738_v39 = vld [vmem:[#allocation3 + $0x38] sm:$0xf]  ;;  %v2527_v52 = vld [vmem:[#allocation3 + $0x28] sm:$0xe] }
 0x190   : > { %3290 = vmatmul.msk.bf16.gmra.mxu1 %vm679_vm8, %v2016_v1  ;;  %v2371_v53 = vrot.slane %v2369_v41, 5  ;;  %v2388_v11 = vshrl.u32 %v2335_v32, 16  ;;  %v2391_v62 = vshll.u32 %v2335_v32, 16  ;;  %v2358_v31 = vsel %vm3863_vm11, %v2353_v46, %v2357_v45  ;;  %v2528_v45 = vld [vmem:[#allocation3 + $0x30] sm:$0xe] }
 0x191   : > { %v2796_v60 = vshll.u32 %v4479_v37, 16  ;;  %v2558_v23 = vsel %vm3954_vm14, %v3352_v7, %v2557_v57  ;;  %v2584_v54 = vunpack.c.l.b16 %v2562_v0  ;;  %v2779_v47 = vor.u32 %v2778_v51, %v2775_v4  ;;  %v4502_v32 = vld [vmem:[#allocation3 + $0x34] sm:$0x1] }
 0x192   : > { %v2372_v34 = vsel %vm3863_vm11, %v2367_v9, %v2371_v53  ;;  %v2782_v33 = vshll.u32 %v4483_v15, 16  ;;  %v2794_v63 = vrot.slane %v2793_v42, 4  ;;  %v2376_v1 = vrot.slane %v2374_v56, 4  ;;  %v3429_v9 = vld [vmem:[#allocation3 + $0x24] sm:$0xf0] }
 0x193   : > { %v2379_v2 = vrot.slane %v2377_v58, 5  ;;  %v2390_v44 = vrot.slane %v2388_v11, 4  ;;  %v2393_v12 = vrot.slane %v2391_v62, 5  ;;  %v2460_v49 = vunpack.c.l.b16 %v2372_v34  ;;  %v2337_v56 = vld [vmem:[#allocation3 + $0x28] sm:$0xf] }
 0x194   : > { %3380 = vmatmul.msk.bf16.vlgmr.msra.gmra.mxu3 %vm679_vm8, %v3367_v30  ;;  %v2583_v30 = vunpack.c.l.b16 %v2558_v23  ;;  %v2798_v38 = vrot.slane %v2796_v60, 5  ;;  %v2459_v61 = vunpack.c.l.b16 %v2358_v31  ;;  %v2780_v21 = vrot.slane %v2779_v47, 4  ;;  %v2339_v31 = vld [vmem:[#allocation3 + $0x30] sm:$0xf]  ;;  %v4509_v34 = vld [vmem:[#allocation3 + $0x34] sm:$0x1] }
 0x195   : > { %3385 = vmatmul.msk.bf16.vlgmr.msra.gmra.mxu0 %vm679_vm8, %v2866_v5  ;;  %v2784_v26 = vrot.slane %v2782_v33, 5  ;;  %v2380_v55 = vor.u32 %v2379_v2, %v2376_v1  ;;  %v2394_v46 = vor.u32 %v2393_v12, %v2390_v44  ;;  %v2801_v41 = vshrl.u32 %v2736_v25, 16 }
 0x196   : > { %v2590_v16 = vpack.c.b16 %v2584_v54, %v2583_v30  ;;  %v2799_v48 = vsel %vm3863_vm11, %v2794_v63, %v2798_v38  ;;  %v2804_v40 = vshll.u32 %v2736_v25, 16  ;;  %v2815_v7 = vshrl.u32 %v2738_v39, 16  ;;  %v4511_v63 = vld [vmem:[#allocation3 + $0x3c] sm:$0x1]  ;;  %v319_v38 = vld [vmem:[#allocation3 + $0x48] sm:$0x1] }
 0x197   : > { %v2467_v57 = vpack.c.b16 %v2460_v49, %v2459_v61  ;;  %v2383_v10 = vshll.u32 %v4473_v36, 16  ;;  %v2397_v29 = vshll.u32 %v4467_v24, 16  ;;  %v2818_v5 = vshll.u32 %v2738_v39, 16  ;;  %v3370_v24 = vld [vmem:[#allocation3 + $0x20] sm:$0xf] }
 0x198   : > { %v2785_v4 = vsel %vm3863_vm11, %v2780_v21, %v2784_v26  ;;  %v3354_v51 = vrot.slane %v2527_v52, 9  ;;  %v2565_v0 = vrot.slane %v4497_v27, 5  ;;  %v2817_v42 = vrot.slane %v2815_v7, 4  ;;  %v2529_v7 = vld [vmem:[#allocation3 + $0x38] sm:$0xe] }
 0x199   : > { %v2861_v58 = vunpack.c.l.b16 %v2799_v48  ;;  %v2381_v53 = vrot.slane %v2380_v55, 4  ;;  %v3355_v11 = vrot.slane %v2528_v45, 9  ;;  %v2820_v62 = vrot.slane %v2818_v5, 5 }
 0x19a   : > { %v2395_v36 = vrot.slane %v2394_v46, 4  ;;  %v2569_v60 = vrot.slane %v4502_v32, 5  ;;  %v2803_v23 = vrot.slane %v2801_v41, 4  ;;  %v2806_v54 = vrot.slane %v2804_v40, 5  ;;  %v4522_v46 = vld [vmem:[#allocation3 + $0x3c] sm:$0x1] }
 0x19b   : > { %v2860_v47 = vunpack.c.l.b16 %v2785_v4  ;;  %v2385_v33 = vrot.slane %v2383_v10, 5  ;;  %v2402_v1 = vshrl.u32 %v2337_v56, 16  ;;  %v2405_v2 = vshll.u32 %v2337_v56, 16 }
 0x19c   : > { %v2399_v44 = vrot.slane %v2397_v29, 5  ;;  %v2821_v12 = vor.u32 %v2820_v62, %v2817_v42  ;;  %v2416_v49 = vshrl.u32 %v2339_v31, 16  ;;  %v2419_v30 = vshll.u32 %v2339_v31, 16  ;;  %v2530_v42 = vld [vmem:[#allocation3 + $0x40] sm:$0xe] }
 0x19d   : > { %3360 = vmatmul.msk.bf16.gmra.mxu2 %vm679_vm8, %v2590_v16  ;;  %v3371_v25 = vor.u32 %v3429_v9, %v3370_v24  ;;  %v2867_v39 = vpack.c.b16 %v2861_v58, %v2860_v47  ;;  %v2386_v61 = vsel %vm3863_vm11, %v2381_v53, %v2385_v33  ;;  %v2566_v21 = vsel %vm3954_vm14, %v3354_v51, %v2565_v0  ;;  %v349_v16 = vld [vmem:[#allocation3 + $0x4c] sm:$0x1]  ;;  %v4531_v0 = vld [vmem:[#allocation3 + $0x44] sm:$0x1]  ;;  %v2740_v62 = vld [vmem:[#allocation3 + $0x40] sm:$0xf] }
 0x19e   : > { %v2400_v26 = vsel %vm3863_vm11, %v2395_v36, %v2399_v44  ;;  %v2570_v48 = vsel %vm3954_vm14, %v3355_v11, %v2569_v60  ;;  %v2807_v55 = vor.u32 %v2806_v54, %v2803_v23  ;;  %v2824_v52 = vshll.u32 %v4511_v63, 16 }
 0x19f   : > { %v2810_v45 = vshll.u32 %v4509_v34, 16  ;;  %v2404_v41 = vrot.slane %v2402_v1, 4  ;;  %v2407_v40 = vrot.slane %v2405_v2, 5  ;;  %v2822_v10 = vrot.slane %v2821_v12, 4 }
 0x1a0   : > { %3346 = vmatmul.msk.bf16.vlgmr.msrb.gmra.mxu1 %vm679_vm8, %v2467_v57  ;;  %v320_v57 = vsel %vm3680_vm4, 0, %v319_v38  ;;  %v2418_v29 = vrot.slane %v2416_v49, 4  ;;  %v2421_v5 = vrot.slane %v2419_v30, 5  ;;  %v350_v9 = vsel %vm3693_vm6, 0, %v349_v16  ;;  %v2922_v49 = vld [vmem:[#allocation3 + $0x10] sm:$0xe] }
 0x1a1   : > { %321 = vst [vmem:[#allocation3 + $0x48] sm:$0x1] %v320_v57  ;;  %v2461_v4 = vunpack.c.l.b16 %v2386_v61  ;;  %v2586_v51 = vunpack.c.l.b16 %v2570_v48  ;;  %v2462_v56 = vunpack.c.l.b16 %v2400_v26  ;;  %v2585_v58 = vunpack.c.l.b16 %v2566_v21  ;;  %v3374_v21 = vld [vmem:[#allocation3 + $0x30] sm:$0xf]  ;;  %v3430_v16 = vld [vmem:[#allocation3 + $0x34] sm:$0xf0] }
 0x1a2   : > { %351 = vst [vmem:[#allocation3 + $0x4c] sm:$0x1] %v350_v9  ;;  %v2808_v53 = vrot.slane %v2807_v55, 4  ;;  %v2826_v11 = vrot.slane %v2824_v52, 5  ;;  %v2812_v3 = vrot.slane %v2810_v45, 5  ;;  %v2408_v31 = vor.u32 %v2407_v40, %v2404_v41 }
 0x1a3   : > { %v3356_v24 = vrot.slane %v2529_v7, 9  ;;  %v2573_v36 = vrot.slane %v4522_v46, 5  ;;  %v2422_v60 = vor.u32 %v2421_v5, %v2418_v29  ;;  %v3357_v23 = vrot.slane %v2530_v42, 9  ;;  %v4552_v41 = vld [vmem:[#allocation3 + $0x44] sm:$0x1] }
 0x1a4   : > { %3381 = vmatmul.msk.bf16.gmra.mxu3 %vm679_vm8, %v3371_v25  ;;  %v2827_v8 = vsel %vm3863_vm11, %v2822_v10, %v2826_v11  ;;  %v2577_v54 = vrot.slane %v4531_v0, 5  ;;  %v2591_v47 = vpack.c.b16 %v2586_v51, %v2585_v58  ;;  %v2411_v33 = vshll.u32 %v4497_v27, 16  ;;  %v2923_v27 = vld [vmem:[#allocation3 + $0x18] sm:$0xe]  ;;  %v2924_v9 = vld [vmem:[#allocation3 + $0x20] sm:$0xe] }
 0x1a5   : > { %3386 = vmatmul.msk.bf16.gmra.mxu0 %vm679_vm8, %v2867_v39  ;;  %v2829_v1 = vshrl.u32 %v2740_v62, 16  ;;  %v2832_v2 = vshll.u32 %v2740_v62, 16  ;;  %v2813_v44 = vsel %vm3863_vm11, %v2808_v53, %v2812_v3  ;;  %v2425_v12 = vshll.u32 %v4502_v32, 16  ;;  %v2341_v58 = vld [vmem:[#allocation3 + $0x38] sm:$0xf] }
 0x1a6   : > { %v2468_v30 = vpack.c.b16 %v2462_v56, %v2461_v4  ;;  %v2863_v38 = vunpack.c.l.b16 %v2827_v8  ;;  %v4542_v25 = vrot.slane %v2408_v31, 4  ;;  %v4546_v39 = vsel %vm3954_vm14, %v3356_v24, %v2573_v36  ;;  %v2343_v62 = vld [vmem:[#allocation3 + $0x40] sm:$0xf]  ;;  %v2925_v24 = vld [vmem:[#allocation3 + $0x28] sm:$0xe] }
 0x1a7   : > { %v2423_v26 = vrot.slane %v2422_v60, 4  ;;  %v4550_v48 = vsel %vm3954_vm14, %v3357_v23, %v2577_v54  ;;  %v2862_v52 = vunpack.c.l.b16 %v2813_v44  ;;  %v2413_v45 = vrot.slane %v2411_v33, 5  ;;  %v2926_v44 = vld [vmem:[#allocation3 + $0x30] sm:$0xe] }
 0x1a8   : > { %v2742_v61 = vld [vmem:[#allocation3 + $0x48] sm:$0xf]  ;;  %v2831_v40 = vrot.slane %v2829_v1, 4  ;;  %v2834_v7 = vrot.slane %v2832_v2, 5  ;;  %v2427_v57 = vrot.slane %v2425_v12, 5  ;;  %v3389_v5 = vrot.slane %v2922_v49, 9 }
 0x1a9   : > { %v2843_v32 = vshrl.u32 %v2742_v61, 16  ;;  %v2846_v55 = vshll.u32 %v2742_v61, 16  ;;  %v3375_v4 = vor.u32 %v3430_v16, %v3374_v21  ;;  %v2414_v51 = vsel %vm3863_vm11, %v4542_v25, %v2413_v45  ;;  %v4563_v36 = vld [vmem:[#allocation3 + $0x4c] sm:$0x1] }
 0x1aa   : > { %v2587_v42 = vunpack.c.l.b16 %v4546_v39  ;;  %v2588_v56 = vunpack.c.l.b16 %v4550_v48  ;;  %v2868_v53 = vpack.c.b16 %v2863_v38, %v2862_v52  ;;  %v2428_v11 = vsel %vm3863_vm11, %v2423_v26, %v2427_v57 }
 0x1ab   : > { %v2845_v10 = vrot.slane %v2843_v32, 4  ;;  %v2848_v29 = vrot.slane %v2846_v55, 5  ;;  %v2948_v3 = vrot.slane %v4449_v6, 5  ;;  %v3390_v31 = vrot.slane %v2923_v27, 9 }
 0x1ac   : > { %v2835_v8 = vor.u32 %v2834_v7, %v2831_v40  ;;  %v2838_v60 = vshll.u32 %v4552_v41, 16  ;;  %v2952_v23 = vrot.slane %v4447_v43, 5  ;;  %v3391_v54 = vrot.slane %v2924_v9, 9  ;;  %v2927_v7 = vld [vmem:[#allocation3 + $0x38] sm:$0xe] }
 0x1ad   : > { %3361 = vmatmul.msk.bf16.gmra.mxu2 %vm679_vm8, %v2591_v47  ;;  %v2849_v47 = vor.u32 %v2848_v29, %v2845_v10  ;;  %v2852_v33 = vshll.u32 %v4563_v36, 16  ;;  %v2949_v1 = vsel %vm3954_vm14, %v3389_v5, %v2948_v3  ;;  %v2956_v2 = vrot.slane %v4483_v15, 5 }
 0x1ae   : > { %v2464_v6 = vunpack.c.l.b16 %v2428_v11  ;;  %v2430_v12 = vshrl.u32 %v2341_v58, 16  ;;  %v2953_v49 = vsel %vm3954_vm14, %v3390_v31, %v2952_v23  ;;  %v3392_v43 = vrot.slane %v2925_v24, 9  ;;  %v3378_v23 = vld [vmem:[#allocation3 + $0x40] sm:$0xf] }
 0x1af   : > { %v2980_v38 = vunpack.c.l.b16 %v2949_v1  ;;  %v2981_v25 = vunpack.c.l.b16 %v2953_v49  ;;  %v2957_v39 = vsel %vm3954_vm14, %v3391_v54, %v2956_v2  ;;  %v2836_v61 = vrot.slane %v2835_v8, 4  ;;  %v3431_v54 = vld [vmem:[#allocation3 + $0x44] sm:$0xf0]  ;;  %v2928_v1 = vld [vmem:[#allocation3 + $0x40] sm:$0xe] }
 0x1b0   : > { %3347 = vmatmul.msk.bf16.gmra.mxu1 %vm679_vm8, %v2468_v30  ;;  %v2444_v30 = vshrl.u32 %v2343_v62, 16  ;;  %v2447_v27 = vshll.u32 %v2343_v62, 16  ;;  %v2960_v15 = vrot.slane %v4479_v37, 5  ;;  %v3393_v21 = vrot.slane %v2926_v44, 9  ;;  %v2929_v2 = vld [vmem:[#allocation3 + $0x48] sm:$0xe] }
 0x1b1   : > { %v2850_v16 = vrot.slane %v2849_v47, 4  ;;  %v2854_v26 = vrot.slane %v2852_v33, 5  ;;  %v2988_v48 = vpack.c.b16 %v2981_v25, %v2980_v38  ;;  %v2964_v32 = vrot.slane %v4509_v34, 5 }
 0x1b2   : > { %v2840_v55 = vrot.slane %v2838_v60, 5  ;;  %v2433_v52 = vshll.u32 %v2341_v58, 16  ;;  %v2961_v45 = vsel %vm3954_vm14, %v3392_v43, %v2960_v15  ;;  %v2982_v40 = vunpack.c.l.b16 %v2957_v39 }
 0x1b3   : > { %v2983_v57 = vunpack.c.l.b16 %v2961_v45  ;;  %v2965_v10 = vsel %vm3954_vm14, %v3393_v21, %v2964_v32  ;;  %v3394_v29 = vrot.slane %v2927_v7, 9  ;;  %v2968_v37 = vrot.slane %v4511_v63, 5 }
 0x1b4   : > { %3382 = vmatmul.msk.bf16.gmra.mxu3 %vm679_vm8, %v3375_v4  ;;  %v2463_v5 = vunpack.c.l.b16 %v2414_v51  ;;  %v2592_v9 = vpack.c.b16 %v2588_v56, %v2587_v42  ;;  %v2446_v4 = vrot.slane %v2444_v30, 4  ;;  %v2841_v34 = vsel %vm3863_vm11, %v2836_v61, %v2840_v55 }
 0x1b5   : > { %3387 = vmatmul.msk.bf16.gmra.mxu0 %vm679_vm8, %v2868_v53  ;;  %v2449_v53 = vrot.slane %v2447_v27, 5  ;;  %v2855_v58 = vsel %vm3863_vm11, %v2850_v16, %v2854_v26  ;;  %v2989_v11 = vpack.c.b16 %v2983_v57, %v2982_v40  ;;  %v2969_v62 = vsel %vm3954_vm14, %v3394_v29, %v2968_v37 }
 0x1b6   : > { %v2432_v3 = vrot.slane %v2430_v12, 4  ;;  %v2435_v31 = vrot.slane %v2433_v52, 5  ;;  %v2984_v24 = vunpack.c.l.b16 %v2965_v10  ;;  %v2985_v63 = vunpack.c.l.b16 %v2969_v62 }
 0x1b7   : > { %v2469_v51 = vpack.c.b16 %v2464_v6, %v2463_v5  ;;  %v2864_v42 = vunpack.c.l.b16 %v2841_v34  ;;  %v2865_v56 = vunpack.c.l.b16 %v2855_v58  ;;  %v2450_v8 = vor.u32 %v2449_v53, %v2446_v4 }
 0x1b8   : > { %v2990_v60 = vpack.c.b16 %v2985_v63, %v2984_v24  ;;  %v2436_v47 = vor.u32 %v2435_v31, %v2432_v3  ;;  %v2453_v33 = vshll.u32 %v4531_v0, 16  ;;  %v3395_v44 = vrot.slane %v2928_v1, 9 }
 0x1b9   : > { %v2972_v12 = vrot.slane %v4552_v41, 5  ;;  %v3396_v49 = vrot.slane %v2929_v2, 9  ;;  %v2976_v43 = vrot.slane %v4563_v36, 5  ;;  %v3379_v6 = vor.u32 %v3431_v54, %v3378_v23 }
 0x1ba   : > { %v2869_v30 = vpack.c.b16 %v2865_v56, %v2864_v42  ;;  %v2439_v38 = vshll.u32 %v4522_v46, 16  ;;  %v2451_v25 = vrot.slane %v2450_v8, 4  ;;  %v2437_v0 = vrot.slane %v2436_v47, 4 }
 0x1bb   : > { %v2973_v39 = vsel %vm3954_vm14, %v3395_v44, %v2972_v12  ;;  %v2977_v61 = vsel %vm3954_vm14, %v3396_v49, %v2976_v43  ;;  %v2455_v41 = vrot.slane %v2453_v33, 5 }
 0x1bc   : > { %v2986_v27 = vunpack.c.l.b16 %v2973_v39  ;;  %v2987_v15 = vunpack.c.l.b16 %v2977_v61  ;;  %v2441_v36 = vrot.slane %v2439_v38, 5 }
 0x1bd   : > { %3362 = vmatmul.msk.bf16.gmra.mxu2 %vm679_vm8, %v2592_v9  ;;  %v2456_v21 = vsel %vm3863_vm11, %v2451_v25, %v2455_v41 }
 0x1be   : > { %v2991_v46 = vpack.c.b16 %v2987_v15, %v2986_v27  ;;  %v2442_v16 = vsel %vm3863_vm11, %v2437_v0, %v2441_v36  ;;  %v2466_v26 = vunpack.c.l.b16 %v2456_v21 }
 0x1bf   : > { %v2465_v32 = vunpack.c.l.b16 %v2442_v16 }
 0x1c0   : > { %3348 = vmatmul.msk.bf16.gmra.mxu1 %vm679_vm8, %v2469_v51 }
 0x1c1   : > { %v2470_v50 = vpack.c.b16 %v2466_v26, %v2465_v32 }
 0x1c4   : > { %3383 = vmatmul.msk.bf16.gmra.mxu3 %vm679_vm8, %v3379_v6 }
 0x1c5   : > { %3388 = vmatmul.msk.bf16.gmra.mxu0 %vm679_vm8, %v2869_v30 }
 0x1d0   : > { %3349 = vmatmul.msk.bf16.gmra.mxu1 %vm679_vm8, %v2470_v50  ;;  %v2105_v40 = vpop.f32.mrf.mxu2 }
 0x1d2   : > { %v2301_v10 = vpop.f32.mrf.mxu0 }
 0x1d6   : > { %v2219_v57 = vpop.f32.mrf.mxu3 }
 0x1d8   : > { %v2107_v59 = vpop.f32.mrf.mxu2 }
 0x1da   : > { %v2041_v55 = vpop.f32.mrf.mxu1  ;;  %v2303_v9 = vpop.f32.mrf.mxu0 }
 0x1db   : > { %v2106_v30 = vadd.f32 %v2105_v40, %v2041_v55 }
 0x1dd   : > { %v2239_v25 = vadd.f32 %v2219_v57, %v2106_v30 }
 0x1de   : > { %v2221_v37 = vpop.f32.mrf.mxu3 }
 0x1df   : > { %v2321_v41 = vadd.f32 %v2301_v10, %v2239_v25 }
 0x1e0   : > { %3398 = vmatmul.msk.bf16.vlgmr.msra.gmra.mxu1 %vm679_vm8, %v2988_v48  ;;  %v2110_v4 = vpop.f32.mrf.mxu2 }
 0x1e2   : > { %v2043_v52 = vpop.f32.mrf.mxu1  ;;  %v2306_v34 = vpop.f32.mrf.mxu0 }
 0x1e3   : > { %v2108_v0 = vadd.f32 %v2107_v59, %v2043_v52 }
 0x1e5   : > { %v2240_v36 = vadd.f32 %v2221_v37, %v2108_v0 }
 0x1e6   : > { %v2224_v53 = vpop.f32.mrf.mxu3 }
 0x1e7   : > { %v2322_v32 = vadd.f32 %v2303_v9, %v2240_v36 }
 0x1e8   : > { %v2112_v58 = vpop.f32.mrf.mxu2 }
 0x1ea   : > { %v2308_v3 = vpop.f32.mrf.mxu0 }
 0x1ed   : > { %v2046_v45 = vpop.f32.mrf.mxu1 }
 0x1ee   : > { %v2226_v62 = vpop.f32.mrf.mxu3  ;;  %v2111_v26 = vadd.f32 %v2110_v4, %v2046_v45 }
 0x1f0   : > { %3399 = vmatmul.msk.bf16.gmra.mxu1 %vm679_vm8, %v2989_v11  ;;  %v2115_v31 = vpop.f32.mrf.mxu2  ;;  %v2241_v30 = vadd.f32 %v2224_v53, %v2111_v26 }
 0x1f2   : > { %v4621_v51 = vpop.f32.mrf.mxu0 }
 0x1f5   : > { %v2048_v7 = vpop.f32.mrf.mxu1 }
 0x1f6   : > { %v2113_v59 = vadd.f32 %v2112_v58, %v2048_v7 }
 0x1f7   : > { %v4619_v63 = vpop.f32.mrf.mxu3 }
 0x1f8   : > { %v4623_v56 = vpop.f32.mrf.mxu2  ;;  %v2242_v4 = vadd.f32 %v2226_v62, %v2113_v59 }
 0x1fa   : > { %v4627_v23 = vpop.f32.mrf.mxu0 }
 0x1fd   : > { %v4609_v29 = vpop.f32.mrf.mxu1 }
 0x1ff   : > { %v4625_v8 = vpop.f32.mrf.mxu3 }
 0x200   : > { %3400 = vmatmul.msk.bf16.gmra.mxu1 %vm679_vm8, %v2990_v60  ;;  %v4629_v54 = vpop.f32.mrf.mxu2 }
 0x202   : > { %v4633_v1 = vpop.f32.mrf.mxu0 }
 0x205   : > { %v4612_v5 = vpop.f32.mrf.mxu1 }
 0x207   : > { %v4631_v47 = vpop.f32.mrf.mxu3 }
 0x208   : > { %v4635_v2 = vpop.f32.mrf.mxu2 }
 0x20a   : > { %v4641_v49 = vpop.f32.mrf.mxu0 }
 0x20d   : > { %v4614_v48 = vpop.f32.mrf.mxu1 }
 0x20f   : > { %v4639_v12 = vpop.f32.mrf.mxu3 }
 0x210   : > { %3401 = vmatmul.msk.bf16.gmra.mxu1 %vm679_vm8, %v2991_v46  ;;  %v2617_v43 = vpop.f32.mrf.mxu2 }
 0x212   : > { %v2894_v39 = vpop.f32.mrf.mxu0 }
 0x215   : > { %v4617_v11 = vpop.f32.mrf.mxu1 }
 0x217   : > { %v2700_v38 = vpop.f32.mrf.mxu3 }
 0x218   : > { %v2619_v27 = vpop.f32.mrf.mxu2 }
 0x21a   : > { %v2896_v50 = vpop.f32.mrf.mxu0 }
 0x21d   : > { %v2495_v24 = vpop.f32.mrf.mxu1 }
 0x21e   : > { %v2515_v15 = vadd.f32 %v2495_v24, %v2321_v41  ;;  %v2323_v24 = vadd.f32 %v2306_v34, %v2241_v30 }
 0x21f   : > { %v2702_v21 = vpop.f32.mrf.mxu3 }
 0x220   : > { %v2637_v46 = vadd.f32 %v2617_v43, %v2515_v15  ;;  %v2622_v57 = vpop.f32.mrf.mxu2 }
 0x222   : > { %v2720_v55 = vadd.f32 %v2700_v38, %v2637_v46  ;;  %v2899_v9 = vpop.f32.mrf.mxu0 }
 0x224   : > { %v2914_v18 = vadd.f32 %v2894_v39, %v2720_v55 }
 0x225   : > { %v2497_v42 = vpop.f32.mrf.mxu1 }
 0x226   : > { %v2516_v40 = vadd.f32 %v2497_v42, %v2322_v32 }
 0x227   : > { %v2705_v52 = vpop.f32.mrf.mxu3 }
 0x228   : > { %v2638_v19 = vadd.f32 %v2619_v27, %v2516_v40  ;;  %v2624_v38 = vpop.f32.mrf.mxu2 }
 0x22a   : > { %v2721_v43 = vadd.f32 %v2702_v21, %v2638_v19  ;;  %v2324_v19 = vadd.f32 %v2308_v3, %v2242_v4  ;;  %v2901_v27 = vpop.f32.mrf.mxu0 }
 0x22c   : > { %v2915_v7 = vadd.f32 %v2896_v50, %v2721_v43 }
 0x22d   : > { %v2500_v60 = vpop.f32.mrf.mxu1 }
 0x22e   : > { %v2517_v25 = vadd.f32 %v2500_v60, %v2323_v24 }
 0x22f   : > { %v2707_v60 = vpop.f32.mrf.mxu3 }
 0x230   : > { %v2639_v53 = vadd.f32 %v2622_v57, %v2517_v25  ;;  %v2627_v21 = vpop.f32.mrf.mxu2 }
 0x232   : > { %v2722_v39 = vadd.f32 %v2705_v52, %v2639_v53  ;;  %v2904_v40 = vpop.f32.mrf.mxu0 }
 0x234   : > { %v2916_v36 = vadd.f32 %v2899_v9, %v2722_v39 }
 0x235   : > { %v2502_v33 = vpop.f32.mrf.mxu1 }
 0x238   : > { %v2629_v57 = vpop.f32.mrf.mxu2 }
 0x23d   : > { %v4637_v44 = vpop.f32.mrf.mxu1 }
 0x240   : > { %v2632_v4 = vpop.f32.mrf.mxu2 }
 0x245   : > { %v4643_v6 = vpop.f32.mrf.mxu1 }
 0x248   : > { %v2634_v39 = vpop.f32.mrf.mxu2 }
 0x24d   : > { %v4645_v61 = vpop.f32.mrf.mxu1 }
 0x255   : > { %v4647_v16 = vpop.f32.mrf.mxu1 }
 0x25d   : > { %v3016_v10 = vpop.f32.mrf.mxu1 }
 0x25e   : > { %v3036_v37 = vadd.f32 %v3016_v10, %v2914_v18  ;;  %v2116_v18 = vadd.f32 %v2115_v31, %v4609_v29  ;;  %v2118_v29 = vadd.f32 %v4623_v56, %v4612_v5 }
 0x260   : > { %v3044_v45 = vadd.f32 %v3435_v22, %v3036_v37  ;;  %v2518_v22 = vadd.f32 %v2502_v33, %v2324_v19  ;;  %v2243_v0 = vadd.f32 %v4619_v63, %v2116_v18  ;;  %v2710_v63 = vpop.f32.mrf.mxu3  ;;  %v2244_v26 = vadd.f32 %v4625_v8, %v2118_v29 }
 0x261   : > { %v4761_v8 = vunpack.c.h.bf16 %v3703_v13  ;;  %v4763_v19 = vunpack.c.h.bf16 %v3705_v14 }
 0x262   : > { %v3052_v42 = vpack.c.bf16 %v3044_v45, %v3044_v45  ;;  %v2640_v15 = vadd.f32 %v2624_v38, %v2518_v22  ;;  %v2325_v3 = vadd.f32 %v4621_v51, %v2243_v0  ;;  %v2121_v51 = vadd.f32 %v4629_v54, %v4614_v48 }
 0x263   : > { %v2326_v56 = vadd.f32 %v4627_v23, %v2244_v26  ;;  %v2123_v23 = vadd.f32 %v4635_v2, %v4617_v11 }
 0x264   : > { %3060 = vst.msk [vmem:[%s4654_s27] sm:$0xf] %vm215_vm2, %v3052_v42  ;;  %v2723_v33 = vadd.f32 %v2707_v60, %v2640_v15  ;;  %v2519_v17 = vadd.f32 %v4637_v44, %v2325_v3  ;;  %v2245_v10 = vadd.f32 %v4631_v47, %v2121_v51  ;;  %v4762_v47 = vunpack.c.l.bf16 %v3705_v14 }
 0x265   : > { %v3018_v34 = vpop.f32.mrf.mxu1  ;;  %v2246_v42 = vadd.f32 %v4639_v12, %v2123_v23  ;;  %v4764_v15 = vunpack.c.l.bf16 %v3727_v28  ;;  %v4765_v3 = vunpack.c.h.bf16 %v3727_v28 }
 0x266   : > { %v3037_v58 = vadd.f32 %v3018_v34, %v2915_v7  ;;  %v2641_v50 = vadd.f32 %v2627_v21, %v2519_v17  ;;  %v2917_v55 = vadd.f32 %v2901_v27, %v2723_v33  ;;  %v2327_v54 = vadd.f32 %v4633_v1, %v2245_v10 }
 0x267   : > { %v2328_v1 = vadd.f32 %v4641_v49, %v2246_v42 }
 0x268   : > { %v3045_v62 = vadd.f32 %v3436_v20, %v3037_v58  ;;  %v2724_v30 = vadd.f32 %v2710_v63, %v2641_v50  ;;  %v2712_v24 = vpop.f32.mrf.mxu3  ;;  %v2521_v13 = vadd.f32 %v4645_v61, %v2327_v54 }
 0x269   : > { %v2522_v61 = vadd.f32 %v4647_v16, %v2328_v1 }
 0x26a   : > { %v3053_v41 = vpack.c.bf16 %v3045_v62, %v3045_v62  ;;  %v2918_v43 = vadd.f32 %v2904_v40, %v2724_v30  ;;  %v2643_v53 = vadd.f32 %v2632_v4, %v2521_v13 }
 0x26b   : > { %v2644_v22 = vadd.f32 %v2634_v39, %v2522_v61 }
 0x26c   : > { %3061 = vst.msk [vmem:[%s4654_s27 + $0x4] sm:$0xf] %vm215_vm2, %v3053_v41 }
 0x26d   : > { %v3021_v46 = vpop.f32.mrf.mxu1 }
 0x26e   : > { %v3038_v31 = vadd.f32 %v3021_v46, %v2916_v36 }
 0x270   : > { %v3046_v20 = vadd.f32 %v3439_v35, %v3038_v31  ;;  %v2520_v35 = vadd.f32 %v4643_v6, %v2326_v56  ;;  %v2906_v6 = vpop.f32.mrf.mxu0  ;;  %v2715_v11 = vpop.f32.mrf.mxu3 }
 0x271   : > { %v2726_v18 = vadd.f32 %v2715_v11, %v2643_v53 }
 0x272   : > { %v3054_v32 = vpack.c.bf16 %v3046_v20, %v3046_v20  ;;  %v2642_v37 = vadd.f32 %v2629_v57, %v2520_v35 }
 0x274   : > { %3062 = vst.msk [vmem:[%s4654_s27 + $0x8] sm:$0xf] %vm215_vm2, %v3054_v32  ;;  %v2725_v45 = vadd.f32 %v2712_v24, %v2642_v37 }
 0x275   : > { %v3023_v5 = vpop.f32.mrf.mxu1 }
 0x276   : > { %v3039_v44 = vadd.f32 %v3023_v5, %v2917_v55  ;;  %v2919_v7 = vadd.f32 %v2906_v6, %v2725_v45 }
 0x278   : > { %v3047_v52 = vadd.f32 %v4761_v8, %v3039_v44  ;;  %v2909_v12 = vpop.f32.mrf.mxu0  ;;  %v2717_v49 = vpop.f32.mrf.mxu3 }
 0x279   : > { %v2920_v62 = vadd.f32 %v2909_v12, %v2726_v18  ;;  %v2727_v27 = vadd.f32 %v2717_v49, %v2644_v22 }
 0x27a   : > { %v3055_v59 = vpack.c.bf16 %v3047_v52, %v3047_v52 }
 0x27c   : > { %3063 = vst.msk [vmem:[%s4654_s27 + $0xc] sm:$0xf] %vm215_vm2, %v3055_v59 }
 0x27d   : > { %v3026_v48 = vpop.f32.mrf.mxu1 }
 0x27e   : > { %v3040_v25 = vadd.f32 %v3026_v48, %v2918_v43 }
 0x280   : > { %v3048_v9 = vadd.f32 %v4762_v47, %v3040_v25  ;;  %v2911_v36 = vpop.f32.mrf.mxu0 }
 0x281   : > { %v2921_v21 = vadd.f32 %v2911_v36, %v2727_v27 }
 0x282   : > { %v3056_v38 = vpack.c.bf16 %v3048_v9, %v3048_v9 }
 0x284   : > { %3064 = vst.msk [vmem:[%s4654_s27 + $0x10] sm:$0xf] %vm215_vm2, %v3056_v38 }
 0x285   : > { %v3028_v2 = vpop.f32.mrf.mxu1 }
 0x286   : > { %v3041_v34 = vadd.f32 %v3028_v2, %v2919_v7 }
 0x288   : > { %v3049_v58 = vadd.f32 %v4763_v19, %v3041_v34 }
 0x28a   : > { %v3057_v60 = vpack.c.bf16 %v3049_v58, %v3049_v58 }
 0x28c   : > { %3065 = vst.msk [vmem:[%s4654_s27 + $0x14] sm:$0xf] %vm215_vm2, %v3057_v60 }
 0x28d   : > { %v3031_v0 = vpop.f32.mrf.mxu1 }
 0x28e   : > { %v3042_v41 = vadd.f32 %v3031_v0, %v2920_v62 }
 0x290   : > { %v3050_v16 = vadd.f32 %v4764_v15, %v3042_v41 }
 0x292   : > { %v3058_v14 = vpack.c.bf16 %v3050_v16, %v3050_v16 }
 0x294   : > { %3066 = vst.msk [vmem:[%s4654_s27 + $0x18] sm:$0xf] %vm215_vm2, %v3058_v14 }
 0x295   : > { %v3033_v46 = vpop.f32.mrf.mxu1 }
 0x296   : > { %v3043_v29 = vadd.f32 %v3033_v46, %v2921_v21 }
 0x298   : > { %v3051_v31 = vadd.f32 %v4765_v3, %v3043_v29 }
 0x29a   : > { %v3059_v33 = vpack.c.bf16 %v3051_v31, %v3051_v31 }
 0x29c   : > { %3067 = vst.msk [vmem:[%s4654_s27 + $0x1c] sm:$0xf] %vm215_vm2, %v3059_v33 }
 0x29d   : > { %3549 = shalt.err (!%p3546_p8)
}
 0x29e   : > { %s3592_s20 = smov 64   ;;  %s3593_s22 = smov 4  }
 0x29f   : > { %3458 = dma.vmem_to_hbm [thread:$0]  (%p3657_p5), %s3082_s6, 512, %s3084_s7, %s3069_s19, %s3592_s20, %s3592_s20, %s3593_s22  }
 0x2a0 PF: > { %p3470_p9 = scmp.ge.s32.totalorder %s3588_s18, 2  ;;  %s3098_s23 = sand.u32 1, %s3576_s15  }
 0x2a1   : > { %s3099_s27 = scalar_lea.sflag [#allocation5], %s3098_s23 }
 0x2a2   : > { %p3465_p10 = pnand %p3470_p9, %p3661_p6 }
 0x2a4   : > { %p3466_p11 = pneg %p3465_p10 }
 0x2a6   : > { %3571 = dma.done.wait (%p3466_p11), %s3099_s27, 512  }
 0x2a7   : > { %3573 = vsyncadd (%p3466_p11), %s3099_s27, 4294966784  ;;  %p15_p12 = scmp.ge.s32.totalorder %s3644_s21, 4   ;;  %s4766_s15 = smov %s3580_s16 }
 0x2a8   : > { %s4767_s16 = smov %s3584_s17  ;;  %s4768_s17 = smov %s3655_s24 }
 0x2a9   : > { %s4769_s18 = smov %s3644_s21  ;;  %17 = sbr.rel (!%p15_p12) target bundleno = 4 (0x4), region = 98 }
 0x2ae   :  { %3105 = vsyncpa [#allocation5], 1 }
 0x2af   :  { %3107 = vsyncpa [#allocation5 + $0x1], 1 }
 0x2b0   :  { %3108 = vsyncpa [#allocation6], 1 }
 0x2b1   :  { %3110 = vsyncpa [#allocation6 + $0x1], 1 }

</bundles_post_ra>
